<compile_context>
chip_gen: v5e
topology: v5e:2x2
jax: 0.10.0
libtpu: 0.0.40
codegen_flags: <defaults>
</compile_context>

<pallas_src>
import math
from functools import partial

import jax
import jax.numpy as jnp
from jax.experimental import pallas as pl
from jax.experimental.pallas import tpu as pltpu

# ----------------------------------------------------------------------------- config
C_IN = 32                     # in_planes (divisible by num_heads=8)
OU = 32                       # ou_planes of the FFN
NUM_HEADS = 8
HEAD_DIM = C_IN // NUM_HEADS
NUM_CONTEXTS = 5              # -> T = num_contexts + 1 = 6 contexts stacked
T_CTX = NUM_CONTEXTS + 1
TOKEN_LEN = 16                # L ; num_heads*L = 128 keeps the score matmul lane-dense
BATCH = 2
LN_EPS = 1e-5
NORM_EPS = 1e-12


# ----------------------------------------------------------------------------- exact GELU via erf polynomial
_ERF_P = 0.3275911
_ERF_A = (0.254829592, -0.284496736, 1.421413741, -1.453152027, 1.061405429)


def _erf_approx(x):
    # Abramowitz & Stegun 7.1.26, |err| <= 1.5e-7.  (kernel-only: uses pl.reciprocal)
    a1, a2, a3, a4, a5 = _ERF_A
    ax = jnp.abs(x)
    t = pl.reciprocal(1.0 + _ERF_P * ax, approx=True)          # EUP slot, ~free
    poly = ((((a5 * t + a4) * t + a3) * t + a2) * t + a1) * t
    y = 1.0 - poly * jnp.exp(-ax * ax)
    return jnp.where(x >= 0, y, -y)


def _gelu_exact(x):
    return 0.5 * x * (1.0 + _erf_approx(x * (1.0 / math.sqrt(2.0))))


# ----------------------------------------------------------------------------- fused Alignment kernel (whole problem in one step)
def _alignment_kernel(B, C, T, L, NH, HD,
                      x_ref, wcat_ref, bias_ref, g_ref, bs_ref, hm_ref,
                      wmf_ref, vec_ref, o_ref):
    f32, bf16 = jnp.float32, jnp.bfloat16
    N = B * T * L
    BT = B * T
    M = NH * L

    # (1) fused [ds | q | k | v] projection: one lane-dense (N,C)@(C,4C) matmul.
    #     PE and all per-branch biases (incl. bm on the shortcut lanes) are in bias_ref.
    slab = jnp.dot(x_ref[...], wcat_ref[...], preferred_element_type=f32) + bias_ref[...]

    # (2) per-head L2 normalisation: ONE block-diagonal sum-of-squares matmul + rsqrt.
    #     The ds lanes get "normalised" too but are never read from nslab (lane-parallel,
    #     so this costs nothing extra).
    ssq = jnp.dot((slab * slab).astype(bf16), g_ref[...], preferred_element_type=f32)
    nslab = slab * jax.lax.rsqrt(jnp.maximum(ssq, NORM_EPS * NORM_EPS))

    shortcut = slab[:, :C]                                      # un-normalised; bias = bds + bm
    q3 = nslab[:, C:2 * C].astype(bf16).reshape(BT, L, C)
    k3 = nslab[:, 2 * C:3 * C].reshape(BT, L, C)
    v3 = nslab[:, 3 * C:].reshape(BT, L, C)

    # (3) attention, batched over the B*T contexts.  Keys/values are replicated across
    #     heads by a sublane-tile concat + 0/1 head-channel mask (no `rep` matmuls).
    hm = hm_ref[...]                                            # (M, C) bf16 0/1 mask
    kcat = jnp.concatenate([k3] * NH, axis=1).astype(bf16) * hm   # (BT, M, C)
    vcat = jnp.concatenate([v3] * NH, axis=1).astype(bf16) * hm   # (BT, M, C)
    s = jnp.einsum('blc,bmc->blm', q3, kcat,
                   preferred_element_type=f32) * (1.0 / math.sqrt(HD))
    # q,k are (near-)unit per head -> |s| <= ~1/sqrt(HD): exp is safe w/o max-subtraction.
    e = jnp.exp(s).reshape(N, M)
    denom = jnp.dot(e.astype(bf16), bs_ref[...], preferred_element_type=f32)  # per-head block sums
    p = (e * pl.reciprocal(denom, approx=True)).astype(bf16).reshape(BT, L, M)
    attn = jnp.einsum('blm,bmc->blc', p, vcat,
                      preferred_element_type=f32).reshape(N, C)

    # (4) output projection + residual (bm already folded into shortcut), then the FFN:
    #     Linear -> LayerNorm -> exact GELU.  These two (N,32)x(32,32) GEMMs stay f32:
    #     negligible MXU time, keeps the final-stage accuracy budget comfortable.
    y = jnp.dot(attn, wmf_ref[:, :C], preferred_element_type=f32) + shortcut
    h = jnp.dot(y, wmf_ref[:, C:], preferred_element_type=f32) + vec_ref[0:1, :]
    mu = jnp.mean(h, axis=-1, keepdims=True)
    var = jnp.mean(jnp.square(h - mu), axis=-1, keepdims=True)
    hn = (h - mu) * jax.lax.rsqrt(var + LN_EPS) * vec_ref[1:2, :] + vec_ref[2:3, :]
    o_ref[...] = _gelu_exact(hn)


def alignment_pallas(x, params, num_contexts=NUM_CONTEXTS):
    # x: (B, C, T, L) NCHW with T == num_contexts + 1.  All PositionalEncoding buffers
    # of the module are identical, so every num_contexts branch reduces to adding
    # pe[:L] to each context — folded host-side into the q/k/v biases.
    B, C, T, L = x.shape
    NH, HD = NUM_HEADS, C // NUM_HEADS
    ou = params['f']['w'].shape[1]
    N, M = B * T * L, NH * L
    f32, bf16 = jnp.float32, jnp.bfloat16

    wds, bds = params['ds']['w'], params['ds']['b']
    wq, bq = params['q']['w'], params['q']['b']
    wkv, bkv = params['kv']['w'], params['kv']['b']
    wm, bm = params['m']['w'], params['m']['b']
    wf, bf_ = params['f']['w'], params['f']['b']
    pe = params['pe'][:L]

    # fused projection weight slab [ds | q | k | v]  (f32: first matmul kept f32)
    wcat = jnp.concatenate([wds, wq, wkv[:, :C], wkv[:, C:]], axis=1).astype(f32)   # (C, 4C)
    # PE folded into position-dependent biases; bm folded into the shortcut lanes
    bias_blk = jnp.concatenate([jnp.broadcast_to(bds + bm, (L, C)),
                                pe @ wq + bq,
                                pe @ wkv[:, :C] + bkv[:C],
                                pe @ wkv[:, C:] + bkv[C:]], axis=1)                  # (L, 4C)
    bias_slab = jnp.tile(bias_blk, (B * T, 1)).astype(f32)                           # (N, 4C)

    # hoisted 0/1 constants (bf16: exact, native MXU dtype on v6e/v7x)
    ch = jnp.arange(4 * C)
    r = jnp.arange(M)
    g4c = (ch[:, None] // HD == ch[None, :] // HD).astype(bf16)                      # (4C, 4C) ssq groups
    bs = (r[:, None] // L == r[None, :] // L).astype(bf16)                           # (M, M) head-block sums
    hm = (r[:, None] // L == jnp.arange(C)[None, :] // HD).astype(bf16)              # (M, C) head mask

    wmf = jnp.concatenate([wm, wf], axis=1).astype(f32)                               # (C, C+ou)
    vecs = jnp.stack([bf_, params['ln_g'], params['ln_b']]).astype(f32)               # (3, ou)

    # channels-last rows; the inverse permute runs on the output (see TODO above).
    xt = x.transpose(0, 2, 3, 1).reshape(N, C).astype(f32)

    ins = [xt, wcat, bias_slab, g4c, bs, hm, wmf, vecs]
    bytes_accessed = sum(int(a.size) * a.dtype.itemsize for a in ins) + N * ou * 4
    flops = (2 * N * (4 * C * C + 4 * C * 4 * C + M * M + C * C + C * ou)
             + 2 * B * T * L * C * M * 2)
    cost = pl.CostEstimate(flops=flops,
                           transcendentals=N * (M + 4 * C + 2 * ou),
                           bytes_accessed=bytes_accessed)

    def full(a):
        return pl.BlockSpec(a.shape, lambda i: (0, 0))

    out = pl.pallas_call(
        partial(_alignment_kernel, B, C, T, L, NH, HD),
        out_shape=jax.ShapeDtypeStruct((N, ou), f32),
        grid=(1,),                    # batch folded into the single step (v5e/v6e optimum;
                                      # safe fallback for v7x — see header comment).
        in_specs=[full(a) for a in ins],
        out_specs=pl.BlockSpec((N, ou), lambda i: (0, 0)),
        compiler_params=pltpu.CompilerParams(dimension_semantics=("arbitrary",)),
        cost_estimate=cost,
    )(*ins)
    return out.reshape(B, T, L, ou).transpose(0, 3, 1, 2)       # (B, OU, T, L)


# ----------------------------------------------------------------------------- pure-JAX reference (mirrors the PyTorch module)
def alignment_ref(x, params, num_contexts=NUM_CONTEXTS):
    B, C, T, L = x.shape
    NH, HD = NUM_HEADS, C // NUM_HEADS
    xt = x.transpose(0, 2, 3, 1)                              # (B, T, L, C)
    shortcut = xt @ params['ds']['w'] + params['ds']['b']     # 1x1 conv, no activation
    xp = xt + params['pe'][None, None, :L, :]                 # positional encodings

    q = xp @ params['q']['w'] + params['q']['b']
    kv = xp @ params['kv']['w'] + params['kv']['b']
    k, v = kv[..., :C], kv[..., C:]

    def heads(z):
        return z.reshape(B, T, L, NH, HD).transpose(0, 1, 3, 2, 4)

    def l2n(z):
        n = jnp.sqrt(jnp.sum(z * z, axis=-1, keepdims=True))
        return z / jnp.maximum(n, NORM_EPS)

    qn, kn, vn = l2n(heads(q)), l2n(heads(k)), l2n(heads(v))
    s = jnp.einsum('btnld,btnmd->btnlm', qn, kn) / math.sqrt(HD)
    p = jax.nn.softmax(s, axis=-1)
    o = jnp.einsum('btnlm,btnmd->btnld', p, vn)
    o = o.transpose(0, 1, 3, 2, 4).reshape(B, T, L, C)
    attn = o @ params['m']['w'] + params['m']['b']

    y = attn + shortcut                                       # dropout = identity
    h = y @ params['f']['w'] + params['f']['b']
    mu = jnp.mean(h, axis=-1, keepdims=True)
    var = jnp.mean(jnp.square(h - mu), axis=-1, keepdims=True)
    hn = (h - mu) * jax.lax.rsqrt(var + LN_EPS) * params['ln_g'] + params['ln_b']
    out = jax.nn.gelu(hn, approximate=False)
    return out.transpose(0, 3, 1, 2)


# ----------------------------------------------------------------------------- deterministic params
def init_params(key):
    ks = iter(jax.random.split(key, 16))

    def lin(kin, kout):
        return {'w': jax.random.normal(next(ks), (kin, kout), jnp.float32) / math.sqrt(kin),
                'b': 0.02 * jax.random.normal(next(ks), (kout,), jnp.float32)}

    # PositionalEncoding buffer (identical for position1..position9)
    pos = jnp.arange(TOKEN_LEN, dtype=jnp.float32)[:, None]
    div = jnp.exp(jnp.arange(0, C_IN, 2, dtype=jnp.float32) * (-math.log(10000.0) / C_IN))
    pe = jnp.zeros((TOKEN_LEN, C_IN), jnp.float32)
    pe = pe.at[:, 0::2].set(jnp.sin(pos * div))
    pe = pe.at[:, 1::2].set(jnp.cos(pos * div))

    return {
        'ds': lin(C_IN, C_IN),           # downsample 1x1 conv (torch weight transposed)
        'q': lin(C_IN, C_IN),
        'kv': lin(C_IN, 2 * C_IN),
        'm': lin(C_IN, C_IN),
        'f': lin(C_IN, OU),              # FFN linear
        'ln_g': jnp.ones((OU,), jnp.float32),
        'ln_b': jnp.zeros((OU,), jnp.float32),
        'pe': pe,
    }


# ----------------------------------------------------------------------------- main
if __name__ == "__main__":
    root = jax.random.PRNGKey(0)
    pkey, xkey = jax.random.split(root)
    params = init_params(pkey)
    x = jax.random.normal(xkey, (BATCH, C_IN, T_CTX, TOKEN_LEN), jnp.float32)   # (B, C, T, L)

    run_pallas = jax.jit(lambda xx: alignment_pallas(xx, params))
    out = run_pallas(x)
    jax.block_until_ready(out)

    ref = alignment_ref(x, params)

    assert out.shape == (BATCH, OU, T_CTX, TOKEN_LEN)
    assert bool(jnp.all(jnp.isfinite(out)))
    max_err = float(jnp.max(jnp.abs(out - ref)))
    assert bool(jnp.allclose(out, ref, atol=2e-2, rtol=2e-2)), f"max abs err {max_err}"
    print("KERNEL_OK")
</pallas_src>

<mosaic_0001>
module attributes {stable_mosaic.version = 11 : i64} {
  func.func @_alignment_kernel(%arg0: i32, %arg1: memref<192x32xf32, #tpu.memory_space<vmem>>, %arg2: memref<32x128xf32, #tpu.memory_space<vmem>>, %arg3: memref<192x128xf32, #tpu.memory_space<vmem>>, %arg4: memref<128x128xbf16, #tpu.memory_space<vmem>>, %arg5: memref<128x128xbf16, #tpu.memory_space<vmem>>, %arg6: memref<128x32xbf16, #tpu.memory_space<vmem>>, %arg7: memref<32x64xf32, #tpu.memory_space<vmem>>, %arg8: memref<3x32xf32, #tpu.memory_space<vmem>>, %arg9: memref<192x32xf32, #tpu.memory_space<vmem>>) attributes {dimension_semantics = [#tpu.dimension_semantics<arbitrary>], iteration_bounds = array<i64: 1>, scalar_prefetch = 0 : i64, scratch_operands = 0 : i64, tpu.core_type = #tpu.core_type<tc>, window_params = [{pipeline_mode = #tpu.pipeline_mode<synchronous>, transform_indices = @transform_0, window_bounds = array<i64: 192, 32>}, {pipeline_mode = #tpu.pipeline_mode<synchronous>, transform_indices = @transform_1, window_bounds = array<i64: 32, 128>}, {pipeline_mode = #tpu.pipeline_mode<synchronous>, transform_indices = @transform_2, window_bounds = array<i64: 192, 128>}, {pipeline_mode = #tpu.pipeline_mode<synchronous>, transform_indices = @transform_3, window_bounds = array<i64: 128, 128>}, {pipeline_mode = #tpu.pipeline_mode<synchronous>, transform_indices = @transform_4, window_bounds = array<i64: 128, 128>}, {pipeline_mode = #tpu.pipeline_mode<synchronous>, transform_indices = @transform_5, window_bounds = array<i64: 128, 32>}, {pipeline_mode = #tpu.pipeline_mode<synchronous>, transform_indices = @transform_6, window_bounds = array<i64: 32, 64>}, {pipeline_mode = #tpu.pipeline_mode<synchronous>, transform_indices = @transform_7, window_bounds = array<i64: 3, 32>}, {pipeline_mode = #tpu.pipeline_mode<synchronous>, transform_indices = @transform_8, window_bounds = array<i64: 192, 32>}]} {
    %c0 = arith.constant 0 : index
    %c0_0 = arith.constant 0 : index
    %0 = vector.load %arg1[%c0, %c0_0] : memref<192x32xf32, #tpu.memory_space<vmem>>, vector<192x32xf32>
    %c0_1 = arith.constant 0 : index
    %c0_2 = arith.constant 0 : index
    %1 = vector.load %arg2[%c0_1, %c0_2] : memref<32x128xf32, #tpu.memory_space<vmem>>, vector<32x128xf32>
    %cst = arith.constant dense<0.000000e+00> : vector<192x128xf32>
    %2 = tpu.matmul %0, %1, %cst {dimension_numbers = #tpu.dot_dimension_numbers<[1], [0], [0], [1], [0, 0, 1, 1], [], []>} : vector<192x32xf32>, vector<32x128xf32>, vector<192x128xf32> -> vector<192x128xf32>
    %c0_3 = arith.constant 0 : index
    %c0_4 = arith.constant 0 : index
    %3 = vector.load %arg3[%c0_3, %c0_4] : memref<192x128xf32, #tpu.memory_space<vmem>>, vector<192x128xf32>
    %4 = arith.addf %2, %3 : vector<192x128xf32>
    %5 = arith.mulf %4, %4 : vector<192x128xf32>
    %6 = arith.truncf %5 : vector<192x128xf32> to vector<192x128xbf16>
    %c0_5 = arith.constant 0 : index
    %c0_6 = arith.constant 0 : index
    %7 = vector.load %arg4[%c0_5, %c0_6] : memref<128x128xbf16, #tpu.memory_space<vmem>>, vector<128x128xbf16>
    %cst_7 = arith.constant dense<0.000000e+00> : vector<192x128xf32>
    %8 = tpu.matmul %6, %7, %cst_7 {dimension_numbers = #tpu.dot_dimension_numbers<[1], [0], [0], [1], [0, 0, 1, 1], [], []>} : vector<192x128xbf16>, vector<128x128xbf16>, vector<192x128xf32> -> vector<192x128xf32>
    %cst_8 = arith.constant 1.000000e-24 : f32
    %9 = vector.broadcast %cst_8 : f32 to vector<192x128xf32>
    %10 = arith.maximumf %8, %9 : vector<192x128xf32>
    %11 = math.rsqrt %10 : vector<192x128xf32>
    %12 = arith.mulf %4, %11 : vector<192x128xf32>
    %13 = vector.extract_strided_slice %4 {offsets = [0, 0], sizes = [192, 32], strides = [1, 1]} : vector<192x128xf32> to vector<192x32xf32>
    %14 = vector.extract_strided_slice %12 {offsets = [0, 32], sizes = [192, 32], strides = [1, 1]} : vector<192x128xf32> to vector<192x32xf32>
    %15 = arith.truncf %14 : vector<192x32xf32> to vector<192x32xbf16>
    %16 = vector.shape_cast %15 : vector<192x32xbf16> to vector<12x16x32xbf16>
    %17 = vector.extract_strided_slice %12 {offsets = [0, 64], sizes = [192, 32], strides = [1, 1]} : vector<192x128xf32> to vector<192x32xf32>
    %18 = vector.shape_cast %17 : vector<192x32xf32> to vector<12x16x32xf32>
    %19 = vector.extract_strided_slice %12 {offsets = [0, 96], sizes = [192, 32], strides = [1, 1]} : vector<192x128xf32> to vector<192x32xf32>
    %20 = vector.shape_cast %19 : vector<192x32xf32> to vector<12x16x32xf32>
    %c0_9 = arith.constant 0 : index
    %c0_10 = arith.constant 0 : index
    %21 = vector.load %arg6[%c0_9, %c0_10] : memref<128x32xbf16, #tpu.memory_space<vmem>>, vector<128x32xbf16>
    %22 = tpu.concatenate %18, %18, %18, %18, %18, %18, %18, %18 in 1 : vector<12x16x32xf32>, vector<12x16x32xf32>, vector<12x16x32xf32>, vector<12x16x32xf32>, vector<12x16x32xf32>, vector<12x16x32xf32>, vector<12x16x32xf32>, vector<12x16x32xf32> -> vector<12x128x32xf32>
    %23 = arith.truncf %22 : vector<12x128x32xf32> to vector<12x128x32xbf16>
    %24 = vector.shape_cast %21 : vector<128x32xbf16> to vector<1x128x32xbf16>
    %25 = vector.broadcast %24 : vector<1x128x32xbf16> to vector<12x128x32xbf16>
    %26 = arith.mulf %23, %25 : vector<12x128x32xbf16>
    %27 = tpu.concatenate %20, %20, %20, %20, %20, %20, %20, %20 in 1 : vector<12x16x32xf32>, vector<12x16x32xf32>, vector<12x16x32xf32>, vector<12x16x32xf32>, vector<12x16x32xf32>, vector<12x16x32xf32>, vector<12x16x32xf32>, vector<12x16x32xf32> -> vector<12x128x32xf32>
    %28 = arith.truncf %27 : vector<12x128x32xf32> to vector<12x128x32xbf16>
    %29 = vector.shape_cast %21 : vector<128x32xbf16> to vector<1x128x32xbf16>
    %30 = vector.broadcast %29 : vector<1x128x32xbf16> to vector<12x128x32xbf16>
    %31 = arith.mulf %28, %30 : vector<12x128x32xbf16>
    "tpu.trace_start"() <{level = 10 : i32, message = "blc,bmc->blm"}> : () -> ()
    %cst_11 = arith.constant dense<0.000000e+00> : vector<12x16x128xf32>
    %32 = tpu.matmul %16, %26, %cst_11 {dimension_numbers = #tpu.dot_dimension_numbers<[2], [2], [1], [1], [0, 0, 0, 1, 1, 1], [0], [0]>} : vector<12x16x32xbf16>, vector<12x128x32xbf16>, vector<12x16x128xf32> -> vector<12x16x128xf32>
    "tpu.trace_stop"() : () -> ()
    %cst_12 = arith.constant 5.000000e-01 : f32
    %33 = vector.broadcast %cst_12 : f32 to vector<12x16x128xf32>
    %34 = arith.mulf %32, %33 : vector<12x16x128xf32>
    %35 = math.exp %34 : vector<12x16x128xf32>
    %36 = vector.shape_cast %35 : vector<12x16x128xf32> to vector<192x128xf32>
    %37 = arith.truncf %36 : vector<192x128xf32> to vector<192x128xbf16>
    %c0_13 = arith.constant 0 : index
    %c0_14 = arith.constant 0 : index
    %38 = vector.load %arg5[%c0_13, %c0_14] : memref<128x128xbf16, #tpu.memory_space<vmem>>, vector<128x128xbf16>
    %cst_15 = arith.constant dense<0.000000e+00> : vector<192x128xf32>
    %39 = tpu.matmul %37, %38, %cst_15 {dimension_numbers = #tpu.dot_dimension_numbers<[1], [0], [0], [1], [0, 0, 1, 1], [], []>} : vector<192x128xbf16>, vector<128x128xbf16>, vector<192x128xf32> -> vector<192x128xf32>
    %40 = tpu.reciprocal %39 {approx = true} : vector<192x128xf32> -> vector<192x128xf32>
    %41 = arith.mulf %36, %40 : vector<192x128xf32>
    %42 = arith.truncf %41 : vector<192x128xf32> to vector<192x128xbf16>
    %43 = vector.shape_cast %42 : vector<192x128xbf16> to vector<12x16x128xbf16>
    "tpu.trace_start"() <{level = 10 : i32, message = "blm,bmc->blc"}> : () -> ()
    %cst_16 = arith.constant dense<0.000000e+00> : vector<12x16x32xf32>
    %44 = tpu.matmul %43, %31, %cst_16 {dimension_numbers = #tpu.dot_dimension_numbers<[2], [1], [1], [2], [0, 0, 0, 1, 1, 2], [0], [0]>} : vector<12x16x128xbf16>, vector<12x128x32xbf16>, vector<12x16x32xf32> -> vector<12x16x32xf32>
    "tpu.trace_stop"() : () -> ()
    %45 = vector.shape_cast %44 : vector<12x16x32xf32> to vector<192x32xf32>
    %c0_17 = arith.constant 0 : index
    %c0_18 = arith.constant 0 : index
    %46 = vector.load %arg7[%c0_17, %c0_18] : memref<32x64xf32, #tpu.memory_space<vmem>>, vector<32x32xf32>
    %cst_19 = arith.constant dense<0.000000e+00> : vector<192x32xf32>
    %47 = tpu.matmul %45, %46, %cst_19 {dimension_numbers = #tpu.dot_dimension_numbers<[1], [0], [0], [1], [0, 0, 1, 1], [], []>} : vector<192x32xf32>, vector<32x32xf32>, vector<192x32xf32> -> vector<192x32xf32>
    %48 = arith.addf %47, %13 : vector<192x32xf32>
    %c0_20 = arith.constant 0 : index
    %c32 = arith.constant 32 : index
    %49 = vector.load %arg7[%c0_20, %c32] : memref<32x64xf32, #tpu.memory_space<vmem>>, vector<32x32xf32>
    %cst_21 = arith.constant dense<0.000000e+00> : vector<192x32xf32>
    %50 = tpu.matmul %48, %49, %cst_21 {dimension_numbers = #tpu.dot_dimension_numbers<[1], [0], [0], [1], [0, 0, 1, 1], [], []>} : vector<192x32xf32>, vector<32x32xf32>, vector<192x32xf32> -> vector<192x32xf32>
    %c0_22 = arith.constant 0 : index
    %c0_23 = arith.constant 0 : index
    %51 = vector.load %arg8[%c0_22, %c0_23] : memref<3x32xf32, #tpu.memory_space<vmem>>, vector<1x32xf32>
    %52 = vector.broadcast %51 : vector<1x32xf32> to vector<192x32xf32>
    %53 = arith.addf %50, %52 : vector<192x32xf32>
    %cst_24 = arith.constant dense<0.000000e+00> : vector<192xf32>
    %54 = vector.multi_reduction <add>, %53, %cst_24 [1] : vector<192x32xf32> to vector<192xf32>
    %55 = vector.shape_cast %54 : vector<192xf32> to vector<192x1xf32>
    %cst_25 = arith.constant 3.200000e+01 : f32
    %56 = vector.broadcast %cst_25 : f32 to vector<192x1xf32>
    %57 = arith.divf %55, %56 : vector<192x1xf32>
    %58 = vector.broadcast %57 : vector<192x1xf32> to vector<192x32xf32>
    %59 = arith.subf %53, %58 : vector<192x32xf32>
    %60 = arith.mulf %59, %59 : vector<192x32xf32>
    %cst_26 = arith.constant dense<0.000000e+00> : vector<192xf32>
    %61 = vector.multi_reduction <add>, %60, %cst_26 [1] : vector<192x32xf32> to vector<192xf32>
    %62 = vector.shape_cast %61 : vector<192xf32> to vector<192x1xf32>
    %cst_27 = arith.constant 3.200000e+01 : f32
    %63 = vector.broadcast %cst_27 : f32 to vector<192x1xf32>
    %64 = arith.divf %62, %63 : vector<192x1xf32>
    %65 = vector.broadcast %57 : vector<192x1xf32> to vector<192x32xf32>
    %66 = arith.subf %53, %65 : vector<192x32xf32>
    %cst_28 = arith.constant 9.99999974E-6 : f32
    %67 = vector.broadcast %cst_28 : f32 to vector<192x1xf32>
    %68 = arith.addf %64, %67 : vector<192x1xf32>
    %69 = math.rsqrt %68 : vector<192x1xf32>
    %70 = vector.broadcast %69 : vector<192x1xf32> to vector<192x32xf32>
    %71 = arith.mulf %66, %70 : vector<192x32xf32>
    %c1 = arith.constant 1 : index
    %c0_29 = arith.constant 0 : index
    %72 = vector.load %arg8[%c1, %c0_29] : memref<3x32xf32, #tpu.memory_space<vmem>>, vector<1x32xf32>
    %73 = vector.broadcast %72 : vector<1x32xf32> to vector<192x32xf32>
    %74 = arith.mulf %71, %73 : vector<192x32xf32>
    %c2 = arith.constant 2 : index
    %c0_30 = arith.constant 0 : index
    %75 = vector.load %arg8[%c2, %c0_30] : memref<3x32xf32, #tpu.memory_space<vmem>>, vector<1x32xf32>
    %76 = vector.broadcast %75 : vector<1x32xf32> to vector<192x32xf32>
    %77 = arith.addf %74, %76 : vector<192x32xf32>
    %cst_31 = arith.constant 5.000000e-01 : f32
    %78 = vector.broadcast %cst_31 : f32 to vector<192x32xf32>
    %79 = arith.mulf %78, %77 : vector<192x32xf32>
    %cst_32 = arith.constant 0.707106769 : f32
    %80 = vector.broadcast %cst_32 : f32 to vector<192x32xf32>
    %81 = arith.mulf %77, %80 : vector<192x32xf32>
    %82 = math.absf %81 : vector<192x32xf32>
    %cst_33 = arith.constant 0.327591091 : f32
    %83 = vector.broadcast %cst_33 : f32 to vector<192x32xf32>
    %84 = arith.mulf %83, %82 : vector<192x32xf32>
    %cst_34 = arith.constant 1.000000e+00 : f32
    %85 = vector.broadcast %cst_34 : f32 to vector<192x32xf32>
    %86 = arith.addf %85, %84 : vector<192x32xf32>
    %87 = tpu.reciprocal %86 {approx = true} : vector<192x32xf32> -> vector<192x32xf32>
    %cst_35 = arith.constant 1.06140542 : f32
    %88 = vector.broadcast %cst_35 : f32 to vector<192x32xf32>
    %89 = arith.mulf %88, %87 : vector<192x32xf32>
    %cst_36 = arith.constant -1.45315206 : f32
    %90 = vector.broadcast %cst_36 : f32 to vector<192x32xf32>
    %91 = arith.addf %89, %90 : vector<192x32xf32>
    %92 = arith.mulf %91, %87 : vector<192x32xf32>
    %cst_37 = arith.constant 1.42141378 : f32
    %93 = vector.broadcast %cst_37 : f32 to vector<192x32xf32>
    %94 = arith.addf %92, %93 : vector<192x32xf32>
    %95 = arith.mulf %94, %87 : vector<192x32xf32>
    %cst_38 = arith.constant -0.284496725 : f32
    %96 = vector.broadcast %cst_38 : f32 to vector<192x32xf32>
    %97 = arith.addf %95, %96 : vector<192x32xf32>
    %98 = arith.mulf %97, %87 : vector<192x32xf32>
    %cst_39 = arith.constant 0.254829586 : f32
    %99 = vector.broadcast %cst_39 : f32 to vector<192x32xf32>
    %100 = arith.addf %98, %99 : vector<192x32xf32>
    %101 = arith.mulf %100, %87 : vector<192x32xf32>
    %cst_40 = arith.constant 0.000000e+00 : f32
    %102 = vector.broadcast %cst_40 : f32 to vector<192x32xf32>
    %103 = arith.subf %102, %82 : vector<192x32xf32>
    %104 = arith.mulf %103, %82 : vector<192x32xf32>
    %105 = math.exp %104 : vector<192x32xf32>
    %106 = arith.mulf %101, %105 : vector<192x32xf32>
    %cst_41 = arith.constant 1.000000e+00 : f32
    %107 = vector.broadcast %cst_41 : f32 to vector<192x32xf32>
    %108 = arith.subf %107, %106 : vector<192x32xf32>
    %cst_42 = arith.constant 0.000000e+00 : f32
    %109 = vector.broadcast %cst_42 : f32 to vector<192x32xf32>
    %110 = arith.cmpf oge, %81, %109 : vector<192x32xf32>
    %cst_43 = arith.constant 0.000000e+00 : f32
    %111 = vector.broadcast %cst_43 : f32 to vector<192x32xf32>
    %112 = arith.subf %111, %108 : vector<192x32xf32>
    %113 = arith.select %110, %108, %112 : vector<192x32xi1>, vector<192x32xf32>
    %cst_44 = arith.constant 1.000000e+00 : f32
    %114 = vector.broadcast %cst_44 : f32 to vector<192x32xf32>
    %115 = arith.addf %114, %113 : vector<192x32xf32>
    %116 = arith.mulf %79, %115 : vector<192x32xf32>
    %c0_45 = arith.constant 0 : index
    %c0_46 = arith.constant 0 : index
    %117 = vector.load %arg9[%c0_45, %c0_46] : memref<192x32xf32, #tpu.memory_space<vmem>>, vector<192x32xf32>
    tpu.vector_store %arg9[%c0_45, %c0_46], %116 {strides = array<i32>} : memref<192x32xf32, #tpu.memory_space<vmem>>, vector<192x32xf32>,
    return
  }
  func.func @transform_0(%arg0: i32) -> (i32, i32) {
    %c0_i32 = arith.constant 0 : i32
    %c0_i32_0 = arith.constant 0 : i32
    %c0_i32_1 = arith.constant 0 : i32
    return %c0_i32, %c0_i32_0 : i32, i32
  }
  func.func @transform_1(%arg0: i32) -> (i32, i32) {
    %c0_i32 = arith.constant 0 : i32
    %c0_i32_0 = arith.constant 0 : i32
    %c0_i32_1 = arith.constant 0 : i32
    return %c0_i32, %c0_i32_0 : i32, i32
  }
  func.func @transform_2(%arg0: i32) -> (i32, i32) {
    %c0_i32 = arith.constant 0 : i32
    %c0_i32_0 = arith.constant 0 : i32
    %c0_i32_1 = arith.constant 0 : i32
    return %c0_i32, %c0_i32_0 : i32, i32
  }
  func.func @transform_3(%arg0: i32) -> (i32, i32) {
    %c0_i32 = arith.constant 0 : i32
    %c0_i32_0 = arith.constant 0 : i32
    %c0_i32_1 = arith.constant 0 : i32
    return %c0_i32, %c0_i32_0 : i32, i32
  }
  func.func @transform_4(%arg0: i32) -> (i32, i32) {
    %c0_i32 = arith.constant 0 : i32
    %c0_i32_0 = arith.constant 0 : i32
    %c0_i32_1 = arith.constant 0 : i32
    return %c0_i32, %c0_i32_0 : i32, i32
  }
  func.func @transform_5(%arg0: i32) -> (i32, i32) {
    %c0_i32 = arith.constant 0 : i32
    %c0_i32_0 = arith.constant 0 : i32
    %c0_i32_1 = arith.constant 0 : i32
    return %c0_i32, %c0_i32_0 : i32, i32
  }
  func.func @transform_6(%arg0: i32) -> (i32, i32) {
    %c0_i32 = arith.constant 0 : i32
    %c0_i32_0 = arith.constant 0 : i32
    %c0_i32_1 = arith.constant 0 : i32
    return %c0_i32, %c0_i32_0 : i32, i32
  }
  func.func @transform_7(%arg0: i32) -> (i32, i32) {
    %c0_i32 = arith.constant 0 : i32
    %c0_i32_0 = arith.constant 0 : i32
    %c0_i32_1 = arith.constant 0 : i32
    return %c0_i32, %c0_i32_0 : i32, i32
  }
  func.func @transform_8(%arg0: i32) -> (i32, i32) {
    %c0_i32 = arith.constant 0 : i32
    %c0_i32_0 = arith.constant 0 : i32
    %c0_i32_1 = arith.constant 0 : i32
    return %c0_i32, %c0_i32_0 : i32, i32
  }
}

</mosaic_0001>

<bundles_post_ra>
// kernel: _lambda_.1
= control target key start
LH: loop header
LB: loop body
LE: loop exit
PB: predicated region body
PF: predicated region fallthrough
CT: control target
= control target key end

     0   :  { %s9988_s0 = inlined_call_operand.vmem [shape: f32[192,32], index: 0, kind: input, shape index: {}]   ;;  %s9989_s1 = inlined_call_operand.vmem [shape: f32[32,128], index: 1, kind: input, shape index: {}]   ;;  %s9990_s2 = inlined_call_operand.vmem [shape: f32[192,128], index: 2, kind: input, shape index: {}]   ;;  %s9991_s3 = inlined_call_operand.vmem [shape: bf16[128,128], index: 3, kind: input, shape index: {}]   ;;  %s9992_s4 = inlined_call_operand.vmem [shape: bf16[128,128], index: 4, kind: input, shape index: {}]   ;;  %s9993_s5 = inlined_call_operand.vmem [shape: bf16[128,32], index: 5, kind: input, shape index: {}]   ;;  %s9994_s6 = inlined_call_operand.vmem [shape: f32[32,64], index: 6, kind: input, shape index: {}]   ;;  %s9995_s7 = inlined_call_operand.vmem [shape: f32[3,32], index: 7, kind: input, shape index: {}]   ;;  %s9996_s8 = inlined_call_operand.hbm [shape: f32[192,32], index: 8, kind: output, shape index: {}]  }
   0x1   :  { %v57_v0 = vld [vmem:[%s9989_s1 + $0x18] sm:$0xff]  ;;  %v56_v1 = vld [vmem:[%s9989_s1 + $0x10] sm:$0xff]  ;;  %v55_v2 = vld [vmem:[%s9989_s1 + $0x8] sm:$0xff] }
   0x2   :  { %167 = vmatpush.msra.mxu0 %v57_v0  ;;  %6006 = vmatpush.msra.mxu1 %v57_v0  ;;  %v54_v3 = vld [vmem:[%s9989_s1] sm:$0xff] }
   0x4   :  { %168 = vmatpush.msra.mxu0 %v56_v1  ;;  %6007 = vmatpush.msra.mxu1 %v56_v1 }
   0x5   :  { %13 = vsyncpa [#allocation3], 0  ;;  %v30_v4 = vld [vmem:[%s9988_s0] sm:$0xff]  ;;  %vm82_vm0 = vcmask 261120   ;;  %v31_v5 = vld [vmem:[%s9988_s0 + $0x8] sm:$0xff]  ;;  %s6430_s21 = smov 32  }
   0x6   :  { %169 = vmatpush.msra.mxu0 %v55_v2  ;;  %6008 = vmatpush.msra.mxu1 %v55_v2  ;;  %v32_v6 = vld [vmem:[%s9988_s0 + $0x10] sm:$0xff]  ;;  %v33_v8 = vld [vmem:[%s9988_s0 + $0x18] sm:$0xff]  ;;  %v34_v10 = vld [vmem:[%s9988_s0 + $0x20] sm:$0xff]  ;;  %s5791_s28 = sshll.u32 %s9996_s8, 4  ;;  %s6433_s29 = smov 128   ;;  %s5792_s28 = int_to_ptr.hbm [resolvable:$true] %s5791_s28 }
   0x7   :  { %v44_v7 = vld [vmem:[%s9988_s0 + $0x70] sm:$0xff]  ;;  %v45_v9 = vld [vmem:[%s9988_s0 + $0x78] sm:$0xff]  ;;  %v46_v11 = vld [vmem:[%s9988_s0 + $0x80] sm:$0xff]  ;;  %s6434_s30 = smov 8  }
   0x8   :  { %170 = vmatpush.msra.mxu0 %v54_v3  ;;  %6009 = vmatpush.msra.mxu1 %v54_v3  ;;  %v35_v12 = vld [vmem:[%s9988_s0 + $0x28] sm:$0xff]  ;;  %v36_v14 = vld [vmem:[%s9988_s0 + $0x30] sm:$0xff]  ;;  %v37_v16 = vld [vmem:[%s9988_s0 + $0x38] sm:$0xff] }
   0x9   :  { %5803 = vmatmul.msk.f32.vlgmr.msra.gmra.mxu0 %vm82_vm0, %v30_v4  ;;  %5817 = vmatmul.msk.f32.vlgmr.msra.gmra.mxu1 %vm82_vm0, %v44_v7  ;;  %v47_v13 = vld [vmem:[%s9988_s0 + $0x88] sm:$0xff]  ;;  %v48_v15 = vld [vmem:[%s9988_s0 + $0x90] sm:$0xff]  ;;  %v49_v17 = vld [vmem:[%s9988_s0 + $0x98] sm:$0xff] }
   0xa   :  { %v38_v18 = vld [vmem:[%s9988_s0 + $0x40] sm:$0xff]  ;;  %v39_v20 = vld [vmem:[%s9988_s0 + $0x48] sm:$0xff]  ;;  %v5958_v22 = vld [vmem:[%s9991_s3 + $0x38] sm:$0xff] }
   0xb   :  { %v50_v19 = vld [vmem:[%s9988_s0 + $0xa0] sm:$0xff]  ;;  %v51_v21 = vld [vmem:[%s9988_s0 + $0xa8] sm:$0xff]  ;;  %344 = vmatpush.bf16.msrb.mxu1 %v5958_v22  ;;  %v5957_v23 = vld [vmem:[%s9991_s3 + $0x30] sm:$0xff] }
   0xc   :  { %v40_v24 = vld [vmem:[%s9988_s0 + $0x50] sm:$0xff]  ;;  %v5956_v26 = vld [vmem:[%s9991_s3 + $0x28] sm:$0xff]  ;;  %v5955_v27 = vld [vmem:[%s9991_s3 + $0x20] sm:$0xff] }
   0xd   :  { %v52_v25 = vld [vmem:[%s9988_s0 + $0xb0] sm:$0xff]  ;;  %v41_v28 = vld [vmem:[%s9988_s0 + $0x58] sm:$0xff]  ;;  %v42_v31 = vld [vmem:[%s9988_s0 + $0x60] sm:$0xff] }
   0xe   :  { %v53_v29 = vld [vmem:[%s9988_s0 + $0xb8] sm:$0xff]  ;;  %v5953_v32 = vld [vmem:[%s9991_s3 + $0x10] sm:$0xff]  ;;  %v5952_v33 = vld [vmem:[%s9991_s3 + $0x8] sm:$0xff] }
   0xf   :  { %345 = vmatpush.bf16.msrb.mxu1 %v5957_v23  ;;  %v5954_v30 = vld [vmem:[%s9991_s3 + $0x18] sm:$0xff]  ;;  %v43_v34 = vld [vmem:[%s9988_s0 + $0x68] sm:$0xff]  ;;  %v5951_v35 = vld [vmem:[%s9991_s3] sm:$0xff]  ;;  %s6428_s0 = smov 64  }
  0x10   :  { %v6005_v36 = vld [vmem:[%s9993_s5 + $0x38] sm:$0xff]   ;;  %v6003_v37 = vld [vmem:[%s9993_s5 + $0x28] sm:$0xff]   ;;  %v58_v45 = vld [vmem:[%s9990_s2] sm:$0xff] }
  0x11   :  { %5804 = vmatmul.msk.f32.gmra.mxu0 %vm82_vm0, %v31_v5  ;;  %5818 = vmatmul.msk.f32.gmra.mxu1 %vm82_vm0, %v45_v9  ;;  %v5997_v38 = vunpack.c.l.bf16 %v6005_v36  ;;  %v5998_v39 = vunpack.c.h.bf16 %v6005_v36  ;;  %v5989_v40 = vunpack.c.l.bf16 %v6003_v37  ;;  %v5990_v41 = vunpack.c.h.bf16 %v6003_v37  ;;  %v6004_v46 = vld [vmem:[%s9993_s5 + $0x30] sm:$0xff]   ;;  %v6002_v47 = vld [vmem:[%s9993_s5 + $0x20] sm:$0xff]   ;;  %v59_v48 = vld [vmem:[%s9990_s2 + $0x8] sm:$0xff] }
  0x12   :  { %v5993_v49 = vunpack.c.l.bf16 %v6004_v46  ;;  %v5994_v50 = vunpack.c.h.bf16 %v6004_v46  ;;  %v5985_v51 = vunpack.c.l.bf16 %v6002_v47  ;;  %v5986_v52 = vunpack.c.h.bf16 %v6002_v47  ;;  %v5999_v61 = vld [vmem:[%s9993_s5 + $0x8] sm:$0xff]   ;;  %v5968_v62 = vld [vmem:[%s9993_s5] sm:$0xff]   ;;  %v65_v36 = vld [vmem:[%s9990_s2 + $0x38] sm:$0xff] }
  0x13   :  { %346 = vmatpush.bf16.msrb.mxu1 %v5956_v26  ;;  %v6618_v43 = vpack.i.bf16 %v5998_v39, %v5997_v38  ;;  %v6620_v44 = vpack.i.bf16 %v5990_v41, %v5989_v40  ;;  %v5973_v63 = vunpack.c.l.bf16 %v5999_v61  ;;  %v5974_v0 = vunpack.c.h.bf16 %v5999_v61  ;;  %v63_v22 = vld [vmem:[%s9990_s2 + $0x28] sm:$0xff]  ;;  %v66_v46 = vld [vmem:[%s9990_s2 + $0x40] sm:$0xff] }
  0x14   :  { %v6640_v55 = vpack.i.bf16 %v5994_v50, %v5993_v49  ;;  %v6642_v56 = vpack.i.bf16 %v5986_v52, %v5985_v51  ;;  %v5969_v1 = vunpack.c.l.bf16 %v5968_v62  ;;  %v5970_v2 = vunpack.c.h.bf16 %v5968_v62 }
  0x15   :  { %10090 = vst [vmem:[#allocation5_spill] sm:$0xff] %v6618_v43  ;;  %6018 = vrot.lane.b32.xlu0 %v6618_v43, %s6428_s0  ;;  %6028 = vrot.lane.b32.xlu1 %v6620_v44, %s6428_s0  ;;  %v6660_v4 = vpack.i.bf16 %v5974_v0, %v5973_v63  ;;  %v69_v63 = vld [vmem:[%s9990_s2 + $0x58] sm:$0xff] }
  0x16   :  { %10091 = vst [vmem:[#allocation6_spill] sm:$0xff] %v6620_v44  ;;  %v6662_v5 = vpack.i.bf16 %v5970_v2, %v5969_v1 }
  0x17   :  { %347 = vmatpush.bf16.msrb.mxu1 %v5955_v27  ;;  %10093 = vst [vmem:[#allocation8_spill] sm:$0xff] %v6640_v55 }
  0x18   :  { %10094 = vst [vmem:[#allocation9_spill] sm:$0xff] %v6642_v56 }
  0x19   :  { %5805 = vmatmul.msk.f32.gmra.mxu0 %vm82_vm0, %v32_v6  ;;  %5819 = vmatmul.msk.f32.gmra.mxu1 %vm82_vm0, %v46_v11  ;;  %10096 = vst [vmem:[#allocation11_spill] sm:$0xff] %v6660_v4  ;;  %v60_v6 = vld [vmem:[%s9990_s2 + $0x10] sm:$0xff] }
  0x1a   :  { %10097 = vst [vmem:[#allocation12_spill] sm:$0xff] %v6662_v5 }
  0x1b   :  { %348 = vmatpush.bf16.msrb.mxu1 %v5954_v30 }
  0x1d   :  { %6023 = vrot.lane.b32.xlu0 %v6640_v55, %s6428_s0  ;;  %6033 = vrot.lane.b32.xlu1 %v6642_v56, %s6428_s0 }
  0x1f   :  { %349 = vmatpush.bf16.msrb.mxu1 %v5953_v32 }
  0x21   :  { %5806 = vmatmul.msk.f32.gmra.mxu0 %vm82_vm0, %v33_v8  ;;  %5820 = vmatmul.msk.f32.gmra.mxu1 %vm82_vm0, %v47_v13  ;;  %v61_v8 = vld [vmem:[%s9990_s2 + $0x18] sm:$0xff] }
  0x23   :  { %350 = vmatpush.bf16.msrb.mxu1 %v5952_v33  ;;  %v64_v33 = vld [vmem:[%s9990_s2 + $0x30] sm:$0xff] }
  0x25   :  { %6048 = vrot.lane.b32.xlu1 %v6660_v4, %s6428_s0  ;;  %6053 = vrot.lane.b32.xlu0 %v6662_v5, %s6428_s0 }
  0x27   :  { %351 = vmatpush.bf16.msrb.mxu1 %v5951_v35 }
  0x29   :  { %5807 = vmatmul.msk.f32.gmra.mxu0 %vm82_vm0, %v34_v10  ;;  %5821 = vmatmul.msk.f32.gmra.mxu1 %vm82_vm0, %v48_v15 }
  0x31   :  { %5808 = vmatmul.msk.f32.gmra.mxu0 %vm82_vm0, %v35_v12  ;;  %5822 = vmatmul.msk.f32.gmra.mxu1 %vm82_vm0, %v49_v17 }
  0x39   :  { %5809 = vmatmul.msk.f32.gmra.mxu0 %vm82_vm0, %v36_v14  ;;  %5823 = vmatmul.msk.f32.gmra.mxu1 %vm82_vm0, %v50_v19  ;;  %v6001_v14 = vld [vmem:[%s9993_s5 + $0x18] sm:$0xff]   ;;  %v62_v19 = vld [vmem:[%s9990_s2 + $0x20] sm:$0xff] }
  0x3a   :  { %v5981_v15 = vunpack.c.l.bf16 %v6001_v14 }
  0x41   :  { %5810 = vmatmul.msk.f32.gmra.mxu0 %vm82_vm0, %v37_v16  ;;  %5824 = vmatmul.msk.f32.gmra.mxu1 %vm82_vm0, %v51_v21  ;;  %v5982_v16 = vunpack.c.h.bf16 %v6001_v14  ;;  %v6000_v21 = vld [vmem:[%s9993_s5 + $0x10] sm:$0xff]   ;;  %v71_v14 = vld [vmem:[%s9990_s2 + $0x68] sm:$0xff] }
  0x42   :  { %v5977_v23 = vunpack.c.l.bf16 %v6000_v21 }
  0x49   :  { %5811 = vmatmul.msk.f32.gmra.mxu0 %vm82_vm0, %v38_v18  ;;  %5825 = vmatmul.msk.f32.gmra.mxu1 %vm82_vm0, %v52_v25  ;;  %v6685_v18 = vpack.i.bf16 %v5982_v16, %v5981_v15 }
  0x4b   :  { %10100 = vst [vmem:[#allocation15_spill] sm:$0xff] %v6685_v18  ;;  %6038 = vrot.lane.b32.xlu2 %v6685_v18, %s6428_s0 }
  0x51   :  { %5812 = vmatmul.msk.f32.gmra.mxu0 %vm82_vm0, %v39_v20  ;;  %5826 = vmatmul.msk.f32.gmra.mxu1 %vm82_vm0, %v53_v29 }
  0x59   :  { %5813 = vmatmul.msk.f32.gmra.mxu0 %vm82_vm0, %v40_v24  ;;  %v5978_v24 = vunpack.c.h.bf16 %v6000_v21 }
  0x5b   :  { %v6700_v26 = vpack.i.bf16 %v5978_v24, %v5977_v23  ;;  %v72_v23 = vld [vmem:[%s9990_s2 + $0x70] sm:$0xff]  ;;  %v73_v24 = vld [vmem:[%s9990_s2 + $0x78] sm:$0xff] }
  0x5d   :  { %10102 = vst [vmem:[#allocation17_spill] sm:$0xff] %v6700_v26  ;;  %6043 = vrot.lane.b32.xlu2 %v6700_v26, %s6428_s0 }
  0x61   :  { %5814 = vmatmul.msk.f32.gmra.mxu0 %vm82_vm0, %v41_v28 }
  0x69   :  { %5815 = vmatmul.msk.f32.gmra.mxu0 %vm82_vm0, %v42_v31 }
  0x71   :  { %5816 = vmatmul.msk.f32.gmra.mxu0 %vm82_vm0, %v43_v34 }
  0x86   :  { %v172_v42 = vpop.f32.mrf.mxu0  ;;  %v214_v29 = vpop.f32.mrf.mxu1 }
  0x87   :  { %v6638_v53 = vadd.f32 %v172_v42, %v58_v45 }
  0x89   :  { %10092 = vst [vmem:[#allocation7_spill] sm:$0xff] %v6638_v53  ;;  %v244_v58 = vmul.f32 %v6638_v53, %v6638_v53 }
  0x8e   :  { %v175_v54 = vpop.f32.mrf.mxu0  ;;  %v217_v34 = vpop.f32.mrf.mxu1 }
  0x8f   :  { %v6644_v57 = vadd.f32 %v175_v54, %v59_v48  ;;  %v67_v48 = vld [vmem:[%s9990_s2 + $0x48] sm:$0xff] }
  0x91   :  { %10095 = vst [vmem:[#allocation10_spill] sm:$0xff] %v6644_v57  ;;  %v245_v59 = vmul.f32 %v6644_v57, %v6644_v57 }
  0x93   :  { %v268_v60 = vpack.c.bf16 %v245_v59, %v244_v58 }
  0x95   :  { %352 = vmatmul.bf16.vlgmr.msrb.gmra.mxu1 %v268_v60  ;;  %v68_v60 = vld [vmem:[%s9990_s2 + $0x50] sm:$0xff] }
  0x96   :  { %v178_v3 = vpop.f32.mrf.mxu0  ;;  %v220_v42 = vpop.f32.mrf.mxu1 }
  0x97   :  { %v6671_v7 = vadd.f32 %v178_v3, %v60_v6 }
  0x99   :  { %10098 = vst [vmem:[#allocation13_spill] sm:$0xff] %v6671_v7  ;;  %v246_v11 = vmul.f32 %v6671_v7, %v6671_v7 }
  0x9e   :  { %v181_v9 = vpop.f32.mrf.mxu0  ;;  %v223_v50 = vpop.f32.mrf.mxu1 }
  0x9f   :  { %v6676_v10 = vadd.f32 %v181_v9, %v61_v8 }
  0xa1   :  { %10099 = vst [vmem:[#allocation14_spill] sm:$0xff] %v6676_v10  ;;  %v247_v12 = vmul.f32 %v6676_v10, %v6676_v10 }
  0xa3   :  { %v269_v13 = vpack.c.bf16 %v247_v12, %v246_v11  ;;  %v70_v11 = vld [vmem:[%s9990_s2 + $0x60] sm:$0xff] }
  0xa5   :  { %357 = vmatmul.bf16.gmra.mxu1 %v269_v13 }
  0xa6   :  { %v184_v17 = vpop.f32.mrf.mxu0  ;;  %v226_v61 = vpop.f32.mrf.mxu1 }
  0xa7   :  { %v6692_v20 = vadd.f32 %v184_v17, %v62_v19 }
  0xa9   :  { %10101 = vst [vmem:[#allocation16_spill] sm:$0xff] %v6692_v20  ;;  %v248_v28 = vmul.f32 %v6692_v20, %v6692_v20 }
  0xae   :  { %v187_v25 = vpop.f32.mrf.mxu0  ;;  %v229_v6 = vpop.f32.mrf.mxu1 }
  0xaf   :  { %v6702_v27 = vadd.f32 %v187_v25, %v63_v22  ;;  %v6772_v25 = vadd.f32 %v214_v29, %v72_v23  ;;  %v75_v29 = vld [vmem:[%s9990_s2 + $0x88] sm:$0xff] }
  0xb1   :  { %10103 = vst [vmem:[#allocation18_spill] sm:$0xff] %v6702_v27  ;;  %v249_v30 = vmul.f32 %v6702_v27, %v6702_v27 }
  0xb2   :  { %10112 = vst [vmem:[#allocation27_spill] sm:$0xff] %v6772_v25 }
  0xb3   :  { %v270_v31 = vpack.c.bf16 %v249_v30, %v248_v28  ;;  %v6774_v28 = vadd.f32 %v217_v34, %v73_v24  ;;  %v258_v30 = vmul.f32 %v6772_v25, %v6772_v25 }
  0xb5   :  { %362 = vmatmul.bf16.gmra.mxu1 %v270_v31  ;;  %10113 = vst [vmem:[#allocation28_spill] sm:$0xff] %v6774_v28  ;;  %v259_v31 = vmul.f32 %v6774_v28, %v6774_v28 }
  0xb6   :  { %v190_v32 = vpop.f32.mrf.mxu0  ;;  %v232_v13 = vpop.f32.mrf.mxu1 }
  0xb7   :  { %v6713_v35 = vadd.f32 %v190_v32, %v64_v33  ;;  %v275_v33 = vpack.c.bf16 %v259_v31, %v258_v30  ;;  %v6039_v31 = vpop.permute.xlu2 %6038 }
  0xb9   :  { %10104 = vst [vmem:[#allocation19_spill] sm:$0xff] %v6713_v35  ;;  %v250_v39 = vmul.f32 %v6713_v35, %v6713_v35 }
  0xbe   :  { %v193_v37 = vpop.f32.mrf.mxu0  ;;  %v235_v22 = vpop.f32.mrf.mxu1 }
  0xbf   :  { %v6718_v38 = vadd.f32 %v193_v37, %v65_v36  ;;  %v74_v36 = vld [vmem:[%s9990_s2 + $0x80] sm:$0xff] }
  0xc0   :  { %v6786_v34 = vadd.f32 %v220_v42, %v74_v36  ;;  %v77_v42 = vld [vmem:[%s9990_s2 + $0x98] sm:$0xff] }
  0xc1   :  { %10105 = vst [vmem:[#allocation20_spill] sm:$0xff] %v6718_v38  ;;  %v251_v40 = vmul.f32 %v6718_v38, %v6718_v38 }
  0xc2   :  { %10114 = vst [vmem:[#allocation29_spill] sm:$0xff] %v6786_v34 }
  0xc3   :  { %v271_v41 = vpack.c.bf16 %v251_v40, %v250_v39  ;;  %v6788_v39 = vadd.f32 %v223_v50, %v75_v29  ;;  %v260_v40 = vmul.f32 %v6786_v34, %v6786_v34  ;;  %v6019_v50 = vpop.permute.xlu0 %6018 }
  0xc5   :  { %367 = vmatmul.bf16.gmra.mxu1 %v271_v41  ;;  %10115 = vst [vmem:[#allocation30_spill] sm:$0xff] %v6788_v39  ;;  %v261_v41 = vmul.f32 %v6788_v39, %v6788_v39 }
  0xc6   :  { %v196_v45 = vpop.f32.mrf.mxu0  ;;  %v238_v32 = vpop.f32.mrf.mxu1 }
  0xc7   :  { %v6727_v47 = vadd.f32 %v196_v45, %v66_v46 }
  0xc9   :  { %10106 = vst [vmem:[#allocation21_spill] sm:$0xff] %v6727_v47  ;;  %v252_v52 = vmul.f32 %v6727_v47, %v6727_v47 }
  0xcb   :  { %v6024_v24 = vpop.permute.xlu0 %6023 }
  0xce   :  { %v199_v49 = vpop.f32.mrf.mxu0  ;;  %v241_v37 = vpop.f32.mrf.mxu1 }
  0xcf   :  { %v6732_v51 = vadd.f32 %v199_v49, %v67_v48  ;;  %v276_v48 = vpack.c.bf16 %v261_v41, %v260_v40  ;;  %v6029_v49 = vpop.permute.xlu1 %6028 }
  0xd1   :  { %10107 = vst [vmem:[#allocation22_spill] sm:$0xff] %v6732_v51  ;;  %v253_v54 = vmul.f32 %v6732_v51, %v6732_v51 }
  0xd3   :  { %v272_v58 = vpack.c.bf16 %v253_v54, %v252_v52  ;;  %v76_v52 = vld [vmem:[%s9990_s2 + $0x90] sm:$0xff] }
  0xd4   :  { %v6800_v54 = vadd.f32 %v226_v61, %v76_v52  ;;  %v81_v61 = vld [vmem:[%s9990_s2 + $0xb8] sm:$0xff] }
  0xd5   :  { %372 = vmatmul.bf16.gmra.mxu1 %v272_v58  ;;  %v6802_v58 = vadd.f32 %v229_v6, %v77_v42 }
  0xd6   :  { %v202_v59 = vpop.f32.mrf.mxu0  ;;  %10116 = vst [vmem:[#allocation31_spill] sm:$0xff] %v6800_v54  ;;  %v262_v6 = vmul.f32 %v6800_v54, %v6800_v54 }
  0xd7   :  { %v6741_v62 = vadd.f32 %v202_v59, %v68_v60  ;;  %10117 = vst [vmem:[#allocation32_spill] sm:$0xff] %v6802_v58 }
  0xd9   :  { %10108 = vst [vmem:[#allocation23_spill] sm:$0xff] %v6741_v62  ;;  %v254_v2 = vmul.f32 %v6741_v62, %v6741_v62 }
  0xde   :  { %v205_v0 = vpop.f32.mrf.mxu0 }
  0xdf   :  { %v6746_v1 = vadd.f32 %v205_v0, %v69_v63  ;;  %v78_v0 = vld [vmem:[%s9990_s2 + $0xa0] sm:$0xff] }
  0xe1   :  { %10109 = vst [vmem:[#allocation24_spill] sm:$0xff] %v6746_v1  ;;  %v255_v3 = vmul.f32 %v6746_v1, %v6746_v1 }
  0xe3   :  { %v273_v8 = vpack.c.bf16 %v255_v3, %v254_v2  ;;  %v79_v2 = vld [vmem:[%s9990_s2 + $0xa8] sm:$0xff]  ;;  %v80_v3 = vld [vmem:[%s9990_s2 + $0xb0] sm:$0xff]  ;;  %s6429_s2 = smov 96  }
  0xe5   :  { %377 = vmatmul.bf16.gmra.mxu1 %v273_v8 }
  0xe6   :  { %v208_v9 = vpop.f32.mrf.mxu0 }
  0xe7   :  { %v6755_v12 = vadd.f32 %v208_v9, %v70_v11  ;;  %v6034_v11 = vpop.permute.xlu1 %6033 }
  0xe9   :  { %10110 = vst [vmem:[#allocation25_spill] sm:$0xff] %v6755_v12  ;;  %v256_v17 = vmul.f32 %v6755_v12, %v6755_v12 }
  0xee   :  { %v211_v15 = vpop.f32.mrf.mxu0 }
  0xef   :  { %v6760_v16 = vadd.f32 %v211_v15, %v71_v14  ;;  %v263_v14 = vmul.f32 %v6802_v58, %v6802_v58  ;;  %v6820_v15 = vadd.f32 %v232_v13, %v78_v0 }
  0xf1   :  { %10111 = vst [vmem:[#allocation26_spill] sm:$0xff] %v6760_v16  ;;  %v257_v19 = vmul.f32 %v6760_v16, %v6760_v16  ;;  %v277_v36 = vpack.c.bf16 %v263_v14, %v262_v6  ;;  %v6830_v40 = vmul.f32 %v6820_v15, %v6820_v15  ;;  %v6858_v6 = vunpack.i.l.bf16 %v6024_v24 }
  0xf2   :  { %10118 = vst [vmem:[#allocation33_spill] sm:$0xff] %v6820_v15 }
  0xf3   :  { %v274_v21 = vpack.c.bf16 %v257_v19, %v256_v17  ;;  %v6822_v17 = vadd.f32 %v235_v22, %v79_v2  ;;  %v6824_v19 = vadd.f32 %v238_v32, %v80_v3  ;;  %v6049_v2 = vpop.permute.xlu1 %6048  ;;  %10123 = vst [vmem:[#allocation38_spill] sm:$0xff] %v6858_v6 }
  0xf5   :  { %382 = vmatmul.bf16.gmra.mxu1 %v274_v21  ;;  %10119 = vst [vmem:[#allocation34_spill] sm:$0xff] %v6822_v17  ;;  %v6826_v21 = vadd.f32 %v241_v37, %v81_v61  ;;  %v6834_v13 = vmul.f32 %v6824_v19, %v6824_v19  ;;  %v6840_v32 = vmul.f32 %v6822_v17, %v6822_v17  ;;  %v6856_v61 = vunpack.i.h.bf16 %v6029_v49 }
  0xf6   :  { %10120 = vst [vmem:[#allocation35_spill] sm:$0xff] %v6824_v19 }
  0xf7   :  { %10121 = vst [vmem:[#allocation36_spill] sm:$0xff] %v6826_v21 }
 0x105   :  { %387 = vmatmul.bf16.gmra.mxu1 %v275_v33 }
 0x112   :  { %v353_v45 = vpop.f32.mrf.mxu1 }
 0x113   :  { %v413_v46 = vmax.f32 %v353_v45, 1e-24  ;;  %v6844_v45 = vmul.f32 %v6826_v21, %v6826_v21 }
 0x115   :  { %6110 = vrsqrt.f32 %v413_v46  ;;  %392 = vmatmul.bf16.gmra.mxu1 %v276_v48  ;;  %vm443_vm2 = vweird.f32 %v413_v46 }
 0x11a   :  { %v355_v59 = vpop.f32.mrf.mxu1 }
 0x11b   :  { %v6111_v60 = vpop.eup %6110  ;;  %v414_v63 = vmax.f32 %v355_v59, 1e-24  ;;  %v6848_v59 = vunpack.i.h.bf16 %v6019_v50 }
 0x11c   :  { %v438_v8 = vmul.f32 %v6111_v60, %v413_v46  ;;  %vm444_vm1 = vweird.f32 %v6111_v60  ;;  %v278_v46 = vpack.c.bf16 %v6840_v32, %v6830_v40  ;;  %v6868_v40 = vunpack.i.l.bf16 %v6049_v2 }
 0x11d   :  { %6112 = vrsqrt.f32 %v414_v63  ;;  %vm445_vm3 = vmor %vm443_vm2, %vm444_vm1  ;;  %vm453_vm5 = vweird.f32 %v414_v63 }
 0x11e   :  { %v439_v9 = vmul.f32 %v6111_v60, %v438_v8  ;;  %v6854_v8 = vunpack.i.l.bf16 %v6019_v50 }
 0x120   :  { %v440_v23 = vmul.f32 0.5, %v439_v9  ;;  %10122 = vst [vmem:[#allocation37_spill] sm:$0xff] %v6854_v8  ;;  %v6860_v9 = vunpack.i.l.bf16 %v6029_v49 }
 0x122   :  { %v441_v30 = vsub.f32 1.5, %v440_v23  ;;  %v358_v33 = vpop.f32.mrf.mxu1  ;;  %v6862_v23 = vunpack.i.l.bf16 %v6034_v11 }
 0x123   :  { %v6113_v29 = vpop.eup %6112  ;;  %v6836_v22 = vmax.f32 %v358_v33, 1e-24 }
 0x124   :  { %v442_v37 = vmul.f32 %v6111_v60, %v441_v30  ;;  %v448_v41 = vmul.f32 %v6113_v29, %v414_v63  ;;  %vm454_vm4 = vweird.f32 %v6113_v29 }
 0x125   :  { %6114 = vrsqrt.f32 %v6836_v22  ;;  %397 = vmatmul.bf16.gmra.mxu1 %v277_v36  ;;  %v6866_v36 = vunpack.i.l.bf16 %v6039_v31  ;;  %vm455_vm6 = vmor %vm453_vm5, %vm454_vm4  ;;  %vm463_vm7 = vweird.f32 %v6836_v22 }
 0x126   :  { %v446_v48 = vsel %vm445_vm3, %v6111_v60, %v442_v37  ;;  %v449_v52 = vmul.f32 %v6113_v29, %v448_v41  ;;  %v6874_v41 = vunpack.i.h.bf16 %v6024_v24 }
 0x127   :  { %v677_v42 = vmul.f32 %v446_v48, %v6638_v53  ;;  %v6044_v48 = vpop.permute.xlu2 %6043 }
 0x128   :  { %v450_v0 = vmul.f32 0.5, %v449_v52  ;;  %10125 = vst [vmem:[#allocation40_spill] sm:$0xff] %v6874_v41  ;;  %v6054_v52 = vpop.permute.xlu0 %6053  ;;  %v6890_v53 = vunpack.i.l.bf16 %v6044_v48  ;;  %v6899_v18 = vunpack.i.h.bf16 %v6044_v48 }
 0x129   :  { %v701_v60 = vpack.c.bf16 %v677_v42, %v677_v42  ;;  %v6878_v42 = vunpack.i.h.bf16 %v6034_v11  ;;  %v6892_v11 = vunpack.i.l.bf16 %v6054_v52 }
 0x12a   :  { %v451_v14 = vsub.f32 1.5, %v450_v0  ;;  %v360_v30 = vpop.f32.mrf.mxu1 }
 0x12b   :  { %v6864_v33 = vpop.eup %6114  ;;  %v6870_v50 = vmax.f32 %v360_v30, 1e-24  ;;  %v6872_v32 = vunpack.c.l.bf16 %v701_v60 }
 0x12c   :  { %v452_v37 = vmul.f32 %v6113_v29, %v451_v14  ;;  %v458_v49 = vmul.f32 %v6864_v33, %v6836_v22  ;;  %v6885_v14 = vunpack.i.h.bf16 %v6039_v31  ;;  %v6901_v31 = vunpack.i.h.bf16 %v6049_v2 }
 0x12d   :  { %10124 = vst [vmem:[#allocation39_spill] sm:$0xff] %v6872_v32  ;;  %6116 = vrsqrt.f32 %v6870_v50  ;;  %v859_v0 = vmul.f32 %v6854_v8, %v6872_v32  ;;  %v857_v30 = vmul.f32 %v6858_v6, %v6872_v32  ;;  %v855_v3 = vmul.f32 %v6860_v9, %v6872_v32 }
 0x12e   :  { %v459_v63 = vmul.f32 %v6864_v33, %v458_v49  ;;  %v456_v24 = vsel %vm455_vm6, %v6113_v29, %v452_v37  ;;  %v6897_v5 = vmul.f32 %v6862_v23, %v6872_v32  ;;  %v6904_v29 = vunpack.i.h.bf16 %v6054_v52 }
 0x12f   :  { %v678_v4 = vmul.f32 %v456_v24, %v6644_v57  ;;  %v1051_v49 = vpack.c.bf16 %v859_v0, %v859_v0  ;;  %v1049_v26 = vpack.c.bf16 %v857_v30, %v857_v30  ;;  %vm464_vm8 = vweird.f32 %v6864_v33 }
 0x130   :  { %v460_v56 = vmul.f32 0.5, %v459_v63  ;;  %v1663_v24 = vunpack.c.l.b16 %v701_v60  ;;  %v1047_v57 = vpack.c.bf16 %v855_v3, %v855_v3  ;;  %v851_v55 = vmul.f32 %v6866_v36, %v6872_v32  ;;  %vm6943_vm11 = vmor %vm463_vm7, %vm464_vm8 }
 0x131   :  { %v702_v37 = vpack.c.bf16 %v678_v4, %v678_v4  ;;  %v1045_v52 = vpack.c.bf16 %v6897_v5, %v6897_v5  ;;  %v1698_v44 = vunpack.c.l.b16 %v1051_v49  ;;  %v847_v3 = vmul.f32 %v6868_v40, %v6872_v32 }
 0x132   :  { %v363_v43 = vpop.f32.mrf.mxu1  ;;  %v461_v4 = vsub.f32 1.5, %v460_v56  ;;  %vm473_vm9 = vweird.f32 %v6870_v50  ;;  %v1043_v19 = vpack.c.bf16 %v851_v55, %v851_v55  ;;  %v1694_v15 = vunpack.c.l.b16 %v1047_v57 }
 0x133   :  { %v6909_v63 = vpop.eup %6116  ;;  %v6911_v48 = vmax.f32 %v363_v43, 1e-24  ;;  %v1664_v2 = vunpack.c.l.b16 %v702_v37  ;;  %v6913_v0 = vunpack.c.l.bf16 %v702_v37  ;;  %v1696_v37 = vunpack.c.l.b16 %v1049_v26 }
 0x134   :  { %v468_v30 = vmul.f32 %v6909_v63, %v6870_v50  ;;  %vm474_vm10 = vweird.f32 %v6909_v63 }
 0x135   :  { %10126 = vst [vmem:[#allocation41_spill] sm:$0xff] %v6913_v0  ;;  %6118 = vrsqrt.f32 %v6911_v48  ;;  %402 = vmatmul.bf16.gmra.mxu1 %v278_v46  ;;  %v1665_v43 = vpack.c.b16 %v1664_v2, %v1663_v24  ;;  %v860_v60 = vmul.f32 %v6848_v59, %v6913_v0  ;;  %v858_v56 = vmul.f32 %v6874_v41, %v6913_v0  ;;  %vm6964_vm12 = vmor %vm473_vm9, %vm474_vm10 }
 0x136   :  { %v469_v5 = vmul.f32 %v6909_v63, %v468_v30  ;;  %v856_v49 = vmul.f32 %v6856_v61, %v6913_v0  ;;  %v854_v46 = vmul.f32 %v6878_v42, %v6913_v0  ;;  %v852_v26 = vmul.f32 %v6885_v14, %v6913_v0 }
 0x137   :  { %1666 = vrot.lane.b32.xlu1 %v1665_v43, %s6429_s2  ;;  %v1052_v21 = vpack.c.bf16 %v860_v60, %v860_v60  ;;  %v462_v24 = vmul.f32 %v6864_v33, %v461_v4  ;;  %v1050_v30 = vpack.c.bf16 %v858_v56, %v858_v56  ;;  %v848_v55 = vmul.f32 %v6901_v31, %v6913_v0 }
 0x138   :  { %v470_v2 = vmul.f32 0.5, %v469_v5  ;;  %v1048_v17 = vpack.c.bf16 %v856_v49, %v856_v49  ;;  %v1039_v43 = vpack.c.bf16 %v847_v3, %v847_v3  ;;  %v1046_v34 = vpack.c.bf16 %v854_v46, %v854_v46 }
 0x139   :  { %v1699_v58 = vunpack.c.l.b16 %v1052_v21  ;;  %v1697_v54 = vunpack.c.l.b16 %v1050_v30  ;;  %v1044_v56 = vpack.c.bf16 %v852_v26, %v852_v26  ;;  %v850_v3 = vmul.f32 %v6899_v18, %v6913_v0 }
 0x13a   :  { %v471_v60 = vsub.f32 1.5, %v470_v2  ;;  %v365_v57 = vpop.f32.mrf.mxu1  ;;  %v1695_v39 = vunpack.c.l.b16 %v1048_v17  ;;  %v466_v17 = vsel %vm6943_vm11, %v6864_v33, %v462_v24  ;;  %v1040_v30 = vpack.c.bf16 %v848_v55, %v848_v55 }
 0x13b   :  { %v6119_v28 = vpop.eup %6118  ;;  %v6947_v5 = vmax.f32 %v365_v57, 1e-24  ;;  %v1707_v21 = vpack.c.b16 %v1699_v58, %v1698_v44  ;;  %v1706_v22 = vpack.c.b16 %v1697_v54, %v1696_v37  ;;  %v849_v44 = vmul.f32 %v6890_v53, %v6872_v32 }
 0x13c   :  { %v472_v49 = vmul.f32 %v6909_v63, %v471_v60  ;;  %v478_v46 = vmul.f32 %v6119_v28, %v6911_v48  ;;  %v1705_v2 = vpack.c.b16 %v1695_v39, %v1694_v15  ;;  %v1692_v54 = vunpack.c.l.b16 %v1045_v52 }
 0x13d   :  { %6120 = vrsqrt.f32 %v6947_v5  ;;  %1722 = vrot.lane.b32.xlu0 %v1707_v21, %s6428_s0  ;;  %1720 = vrot.lane.b32.xlu2 %v1706_v22, %s6428_s0  ;;  %v1693_v37 = vunpack.c.l.b16 %v1046_v34  ;;  %v1690_v26 = vunpack.c.l.b16 %v1043_v19  ;;  %v1691_v39 = vunpack.c.l.b16 %v1044_v56 }
 0x13e   :  { %v479_v33 = vmul.f32 %v6119_v28, %v478_v46  ;;  %v1042_v15 = vpack.c.bf16 %v850_v3, %v850_v3  ;;  %v846_v24 = vmul.f32 %v6904_v29, %v6913_v0  ;;  %v476_v50 = vsel %vm6964_vm12, %v6909_v63, %v472_v49 }
 0x13f   :  { %1718 = vrot.lane.b32.xlu1 %v1705_v2, %s6428_s0  ;;  %v1686_v60 = vunpack.c.l.b16 %v1039_v43  ;;  %v845_v57 = vmul.f32 %v6892_v11, %v6872_v32  ;;  %v679_v52 = vmul.f32 %v466_v17, %v6671_v7  ;;  %vm483_vm13 = vweird.f32 %v6911_v48 }
 0x140   :  { %v480_v55 = vmul.f32 0.5, %v479_v33  ;;  %v1687_v34 = vunpack.c.l.b16 %v1040_v30  ;;  %v1041_v19 = vpack.c.bf16 %v849_v44, %v849_v44  ;;  %v680_v4 = vmul.f32 %v476_v50, %v6676_v10 }
 0x141   :  { %vm484_vm14 = vweird.f32 %v6119_v28  ;;  %v1038_v3 = vpack.c.bf16 %v846_v24, %v846_v24  ;;  %v703_v46 = vpack.c.bf16 %v679_v52, %v679_v52  ;;  %v1704_v43 = vpack.c.b16 %v1693_v37, %v1692_v54 }
 0x142   :  { %v481_v21 = vsub.f32 1.5, %v480_v55  ;;  %v368_v56 = vpop.f32.mrf.mxu1  ;;  %v1703_v49 = vpack.c.b16 %v1691_v39, %v1690_v26  ;;  %v1689_v2 = vunpack.c.l.b16 %v1042_v15  ;;  %v1037_v33 = vpack.c.bf16 %v845_v57, %v845_v57  ;;  %vm485_vm15 = vmor %vm483_vm13, %vm484_vm14 }
 0x143   :  { %v6121_v22 = vpop.eup %6120  ;;  %v6980_v63 = vmax.f32 %v368_v56, 1e-24  ;;  %v704_v7 = vpack.c.bf16 %v680_v4, %v680_v4  ;;  %v10131_v30 = vpack.c.bf16 %v6844_v45, %v6834_v13  ;;  %v1701_v44 = vpack.c.b16 %v1687_v34, %v1686_v60 }
 0x144   :  { %v482_v58 = vmul.f32 %v6119_v28, %v481_v21  ;;  %v488_v17 = vmul.f32 %v6121_v22, %v6947_v5  ;;  %v1688_v54 = vunpack.c.l.b16 %v1041_v19  ;;  %v6990_v37 = vunpack.c.l.bf16 %v703_v46 }
 0x145   :  { %6122 = vrsqrt.f32 %v6980_v63  ;;  %407 = vmatmul.bf16.gmra.mxu1 %v10131_v30  ;;  %1714 = vrot.lane.b32.xlu0 %v1703_v49, %s6428_s0  ;;  %v1685_v15 = vunpack.c.l.b16 %v1038_v3  ;;  %vm493_vm1 = vweird.f32 %v6947_v5  ;;  %v6996_v13 = vunpack.c.l.bf16 %v704_v7 }
 0x146   :  { %10132 = vst [vmem:[#allocation42_spill] sm:$0xff] %v6990_v37  ;;  %v486_v26 = vsel %vm485_vm15, %v6119_v28, %v482_v58  ;;  %v489_v39 = vmul.f32 %v6121_v22, %v488_v17  ;;  %1716 = vrot.lane.b32.xlu2 %v1704_v43, %s6428_s0  ;;  %v1702_v24 = vpack.c.b16 %v1689_v2, %v1688_v54  ;;  %v1684_v50 = vunpack.c.l.b16 %v1037_v33 }
 0x147   :  { %v681_v48 = vmul.f32 %v486_v26, %v6692_v20  ;;  %1710 = vrot.lane.b32.xlu1 %v1701_v44, %s6428_s0  ;;  %10133 = vst [vmem:[#allocation43_spill] sm:$0xff] %v6996_v13  ;;  %v1768_v55 = vunpack.c.l.b16 %v704_v7  ;;  %v873_v60 = vmul.f32 %v6858_v6, %v6990_v37  ;;  %v874_v57 = vmul.f32 %v6874_v41, %v6996_v13 }
 0x148   :  { %v490_v45 = vmul.f32 0.5, %v489_v39  ;;  %v871_v52 = vmul.f32 %v6860_v9, %v6990_v37  ;;  %v872_v34 = vmul.f32 %v6856_v61, %v6996_v13  ;;  %vm494_vm2 = vweird.f32 %v6121_v22 }
 0x149   :  { %v7000_v28 = vpack.c.bf16 %v681_v48, %v681_v48  ;;  %v1700_v21 = vpack.c.b16 %v1685_v15, %v1684_v50  ;;  %v876_v7 = vmul.f32 %v6848_v59, %v6996_v13  ;;  %v1767_v43 = vunpack.c.l.b16 %v703_v46  ;;  %vm495_vm3 = vmor %vm493_vm1, %vm494_vm2 }
 0x14a   :  { %v491_v19 = vsub.f32 1.5, %v490_v45  ;;  %v370_v4 = vpop.f32.mrf.mxu1  ;;  %v1066_v49 = vpack.c.bf16 %v874_v57, %v874_v57  ;;  %v875_v2 = vmul.f32 %v6854_v8, %v6990_v37  ;;  %v1065_v33 = vpack.c.bf16 %v873_v60, %v873_v60 }
 0x14b   :  { %v7010_v56 = vpop.eup %6122  ;;  %v7012_v3 = vmax.f32 %v370_v4, 1e-24  ;;  %v1064_v30 = vpack.c.bf16 %v872_v34, %v872_v34  ;;  %v7019_v44 = vunpack.c.l.bf16 %v7000_v28  ;;  %v1769_v46 = vpack.c.b16 %v1768_v55, %v1767_v43 }
 0x14c   :  { %v492_v58 = vmul.f32 %v6121_v22, %v491_v19  ;;  %v498_v17 = vmul.f32 %v7010_v56, %v6980_v63  ;;  %v1063_v54 = vpack.c.bf16 %v871_v52, %v871_v52  ;;  %v1801_v15 = vunpack.c.l.b16 %v1066_v49 }
 0x14d   :  { %10134 = vst [vmem:[#allocation44_spill] sm:$0xff] %v7019_v44  ;;  %6124 = vrsqrt.f32 %v7012_v3  ;;  %1708 = vrot.lane.b32.xlu0 %v1700_v21, %s6428_s0  ;;  %v1068_v48 = vpack.c.bf16 %v876_v7, %v876_v7  ;;  %vm503_vm4 = vweird.f32 %v6980_v63  ;;  %v1067_v5 = vpack.c.bf16 %v875_v2, %v875_v2 }
 0x14e   :  { %v496_v26 = vsel %vm495_vm3, %v6121_v22, %v492_v58  ;;  %v499_v39 = vmul.f32 %v7010_v56, %v498_v17  ;;  %1712 = vrot.lane.b32.xlu2 %v1702_v24, %s6428_s0  ;;  %v867_v50 = vmul.f32 %v6866_v36, %v6990_v37  ;;  %v1800_v55 = vunpack.c.l.b16 %v1065_v33 }
 0x14f   :  { %v682_v45 = vmul.f32 %v496_v26, %v6702_v27  ;;  %1770 = vrot.lane.b32.xlu1 %v1769_v46, %s6429_s2  ;;  %v1799_v57 = vunpack.c.l.b16 %v1064_v30  ;;  %v868_v22 = vmul.f32 %v6885_v14, %v6996_v13  ;;  %vm504_vm5 = vweird.f32 %v7010_v56 }
 0x150   :  { %v500_v60 = vmul.f32 0.5, %v499_v39  ;;  %v1803_v24 = vunpack.c.l.b16 %v1068_v48  ;;  %v891_v34 = vmul.f32 %v6854_v8, %v7019_v44  ;;  %v1810_v21 = vpack.c.b16 %v1801_v15, %v1800_v55  ;;  %vm7056_vm6 = vmor %vm503_vm4, %vm504_vm5 }
 0x151   :  { %v7034_v52 = vpack.c.bf16 %v682_v45, %v682_v45  ;;  %v1798_v7 = vunpack.c.l.b16 %v1063_v54  ;;  %v870_v43 = vmul.f32 %v6878_v42, %v6996_v13  ;;  %v1802_v58 = vunpack.c.l.b16 %v1067_v5 }
 0x152   :  { %v501_v19 = vsub.f32 1.5, %v500_v60  ;;  %v373_v4 = vpop.f32.mrf.mxu1  ;;  %v1059_v17 = vpack.c.bf16 %v867_v50, %v867_v50  ;;  %v869_v33 = vmul.f32 %v6862_v23, %v6990_v37  ;;  %v1060_v26 = vpack.c.bf16 %v868_v22, %v868_v22 }
 0x153   :  { %v6125_v49 = vpop.eup %6124  ;;  %v7042_v2 = vunpack.c.l.bf16 %v7034_v52  ;;  %v1809_v46 = vpack.c.b16 %v1799_v57, %v1798_v7  ;;  %v1083_v39 = vpack.c.bf16 %v891_v34, %v891_v34  ;;  %v1811_v54 = vpack.c.b16 %v1803_v24, %v1802_v58 }
 0x154   :  { %v508_v30 = vmul.f32 %v6125_v49, %v7012_v3  ;;  %v502_v48 = vmul.f32 %v7010_v56, %v501_v19  ;;  %v1062_v5 = vpack.c.bf16 %v870_v43, %v870_v43  ;;  %vm513_vm7 = vweird.f32 %v7012_v3 }
 0x155   :  { %10135 = vst [vmem:[#allocation45_spill] sm:$0xff] %v7042_v2  ;;  %1824 = vrot.lane.b32.xlu0 %v1810_v21, %s6428_s0  ;;  %v892_v15 = vmul.f32 %v6848_v59, %v7042_v2  ;;  %v1794_v60 = vunpack.c.l.b16 %v1059_v17  ;;  %v1061_v57 = vpack.c.bf16 %v869_v33, %v869_v33  ;;  %v1795_v24 = vunpack.c.l.b16 %v1060_v26 }
 0x156   :  { %v509_v45 = vmul.f32 %v6125_v49, %v508_v30  ;;  %1822 = vrot.lane.b32.xlu2 %v1809_v46, %s6428_s0  ;;  %v1906_v34 = vunpack.c.l.b16 %v1083_v39  ;;  %v866_v19 = vmul.f32 %v6899_v18, %v6996_v13  ;;  %v1797_v7 = vunpack.c.l.b16 %v1062_v5 }
 0x157   :  { %1826 = vrot.lane.b32.xlu1 %v1811_v54, %s6428_s0  ;;  %v1084_v55 = vpack.c.bf16 %v892_v15, %v892_v15  ;;  %v889_v63 = vmul.f32 %v6858_v6, %v7019_v44  ;;  %v890_v43 = vmul.f32 %v6874_v41, %v7042_v2  ;;  %v506_v58 = vsel %vm7056_vm6, %v7010_v56, %v502_v48 }
 0x158   :  { %v510_v22 = vmul.f32 0.5, %v509_v45  ;;  %vm514_vm8 = vweird.f32 %v6125_v49  ;;  %v865_v30 = vmul.f32 %v6890_v53, %v6990_v37  ;;  %v1796_v26 = vunpack.c.l.b16 %v1061_v57 }
 0x159   :  { %v1907_v21 = vunpack.c.l.b16 %v1084_v55  ;;  %v1807_v54 = vpack.c.b16 %v1795_v24, %v1794_v60  ;;  %v1058_v15 = vpack.c.bf16 %v866_v19, %v866_v19  ;;  %v683_v45 = vmul.f32 %v506_v58, %v6713_v35  ;;  %vm515_vm9 = vmor %vm513_vm7, %vm514_vm8 }
 0x15a   :  { %v511_v17 = vsub.f32 1.5, %v510_v22  ;;  %v375_v33 = vpop.f32.mrf.mxu1  ;;  %v1808_v5 = vpack.c.b16 %v1797_v7, %v1796_v26  ;;  %v1081_v56 = vpack.c.bf16 %v889_v63, %v889_v63  ;;  %v1082_v48 = vpack.c.bf16 %v890_v43, %v890_v43 }
 0x15b   :  { %v1915_v46 = vpack.c.b16 %v1907_v21, %v1906_v34  ;;  %v1057_v55 = vpack.c.bf16 %v865_v30, %v865_v30  ;;  %v863_v57 = vmul.f32 %v6868_v40, %v6990_v37  ;;  %v7080_v22 = vmax.f32 %v373_v4, 1e-24 }
 0x15c   :  { %v512_v39 = vmul.f32 %v6125_v49, %v511_v17  ;;  %v1905_v60 = vunpack.c.l.b16 %v1082_v48  ;;  %v864_v3 = vmul.f32 %v6901_v31, %v6996_v13  ;;  %v1793_v34 = vunpack.c.l.b16 %v1058_v15 }
 0x15d   :  { %1930 = vrot.lane.b32.xlu0 %v1915_v46, %s6428_s0  ;;  %v1055_v19 = vpack.c.bf16 %v863_v57, %v863_v57  ;;  %v7088_v21 = vpack.c.bf16 %v683_v45, %v683_v45  ;;  %v1904_v7 = vunpack.c.l.b16 %v1081_v56  ;;  %v877_v4 = vmul.f32 %v6892_v11, %v7019_v44 }
 0x15e   :  { %v516_v50 = vsel %vm515_vm9, %v6125_v49, %v512_v39  ;;  %1818 = vrot.lane.b32.xlu2 %v1807_v54, %s6428_s0  ;;  %v888_v49 = vmul.f32 %v6856_v61, %v7042_v2  ;;  %v1056_v63 = vpack.c.bf16 %v864_v3, %v864_v3  ;;  %v1792_v58 = vunpack.c.l.b16 %v1057_v55 }
 0x15f   :  { %1820 = vrot.lane.b32.xlu1 %v1808_v5, %s6428_s0  ;;  %v684_v24 = vmul.f32 %v516_v50, %v6718_v38  ;;  %v887_v17 = vmul.f32 %v6860_v9, %v7019_v44  ;;  %v878_v30 = vmul.f32 %v6904_v29, %v7042_v2  ;;  %6126 = vrsqrt.f32 %v7080_v22 }
 0x160   :  { %v1914_v46 = vpack.c.b16 %v1905_v60, %v1904_v7  ;;  %v1790_v26 = vunpack.c.l.b16 %v1055_v19  ;;  %v1791_v39 = vunpack.c.l.b16 %v1056_v63  ;;  %v1806_v15 = vpack.c.b16 %v1793_v34, %v1792_v58 }
 0x161   :  { %v7097_v54 = vpack.c.bf16 %v684_v24, %v684_v24  ;;  %v1080_v45 = vpack.c.bf16 %v888_v49, %v888_v49  ;;  %v7100_v5 = vunpack.c.l.bf16 %v7088_v21  ;;  %v1069_v48 = vpack.c.bf16 %v877_v4, %v877_v4 }
 0x162   :  { %v378_v43 = vpop.f32.mrf.mxu1  ;;  %v1805_v56 = vpack.c.b16 %v1791_v39, %v1790_v26  ;;  %v1079_v50 = vpack.c.bf16 %v887_v17, %v887_v17  ;;  %v1070_v55 = vpack.c.bf16 %v878_v30, %v878_v30  ;;  %v7104_v57 = vmax.f32 %v375_v33, 1e-24 }
 0x163   :  { %10138 = vst [vmem:[#allocation46_spill] sm:$0xff] %v7100_v5  ;;  %v861_v60 = vmul.f32 %v6892_v11, %v6990_v37  ;;  %v862_v3 = vmul.f32 %v6904_v29, %v6996_v13  ;;  %v7112_v24 = vunpack.c.l.bf16 %v7097_v54  ;;  %v1903_v34 = vunpack.c.l.b16 %v1080_v45 }
 0x164   :  { %v1893_v19 = vunpack.c.l.b16 %v1070_v55  ;;  %v886_v49 = vmul.f32 %v6878_v42, %v7042_v2  ;;  %v1892_v33 = vunpack.c.l.b16 %v1069_v48  ;;  %v907_v58 = vmul.f32 %v6854_v8, %v7100_v5 }
 0x165   :  { %1928 = vrot.lane.b32.xlu0 %v1914_v46, %s6428_s0  ;;  %10139 = vst [vmem:[#allocation47_spill] sm:$0xff] %v7112_v24  ;;  %v7116_v7 = vpop.eup %6126  ;;  %v1053_v63 = vpack.c.bf16 %v861_v60, %v861_v60  ;;  %v1054_v4 = vpack.c.bf16 %v862_v3, %v862_v3  ;;  %v1902_v30 = vunpack.c.l.b16 %v1079_v50  ;;  %v885_v46 = vmul.f32 %v6862_v23, %v7019_v44 }
 0x166   :  { %1816 = vrot.lane.b32.xlu2 %v1806_v15, %s6428_s0  ;;  %v1908_v26 = vpack.c.b16 %v1893_v19, %v1892_v33  ;;  %v518_v45 = vmul.f32 %v7116_v7, %v7080_v22  ;;  %v1078_v55 = vpack.c.bf16 %v886_v49, %v886_v49  ;;  %6128 = vrsqrt.f32 %v7104_v57 }
 0x167   :  { %1814 = vrot.lane.b32.xlu1 %v1805_v56, %s6428_s0  ;;  %v1788_v39 = vunpack.c.l.b16 %v1053_v63  ;;  %v1789_v15 = vunpack.c.l.b16 %v1054_v4  ;;  %v1913_v56 = vpack.c.b16 %v1903_v34, %v1902_v30  ;;  %v908_v60 = vmul.f32 %v6848_v59, %v7112_v24 }
 0x168   :  { %v1099_v50 = vpack.c.bf16 %v907_v58, %v907_v58  ;;  %v7128_v3 = vmax.f32 %v378_v43, 1e-24  ;;  %v1077_v19 = vpack.c.bf16 %v885_v46, %v885_v46  ;;  %v519_v34 = vmul.f32 %v7116_v7, %v518_v45 }
 0x169   :  { %v1804_v48 = vpack.c.b16 %v1789_v15, %v1788_v39  ;;  %v1100_v33 = vpack.c.bf16 %v908_v60, %v908_v60  ;;  %v1901_v49 = vunpack.c.l.b16 %v1078_v55  ;;  %v882_v63 = vmul.f32 %v6899_v18, %v7042_v2 }
 0x16a   :  { %v380_v17 = vpop.f32.mrf.mxu1  ;;  %v906_v4 = vmul.f32 %v6874_v41, %v7112_v24  ;;  %v2010_v30 = vunpack.c.l.b16 %v1099_v50  ;;  %v1872_v43 = vunpack.c.l.b16 %v7034_v52  ;;  %v905_v58 = vmul.f32 %v6858_v6, %v7100_v5 }
 0x16b   :  { %6130 = vrsqrt.f32 %v7128_v3  ;;  %v1900_v39 = vunpack.c.l.b16 %v1077_v19  ;;  %v881_v15 = vmul.f32 %v6890_v53, %v7019_v44  ;;  %v884_v45 = vmul.f32 %v6885_v14, %v7042_v2 }
 0x16c   :  { %v1098_v52 = vpack.c.bf16 %v906_v4, %v906_v4  ;;  %v883_v60 = vmul.f32 %v6866_v36, %v7019_v44  ;;  %v7152_v50 = vmax.f32 %v380_v17, 1e-24  ;;  %v1074_v38 = vpack.c.bf16 %v882_v63, %v882_v63 }
 0x16d   :  { %1916 = vrot.lane.b32.xlu0 %v1908_v26, %s6428_s0  ;;  %v2011_v26 = vunpack.c.l.b16 %v1100_v33  ;;  %v1912_v33 = vpack.c.b16 %v1901_v49, %v1900_v39  ;;  %v1097_v35 = vpack.c.bf16 %v905_v58, %v905_v58  ;;  %v880_v63 = vmul.f32 %v6901_v31, %v7042_v2 }
 0x16e   :  { %1926 = vrot.lane.b32.xlu2 %v1913_v56, %s6428_s0  ;;  %v7147_v56 = vpop.eup %6128  ;;  %v2009_v4 = vunpack.c.l.b16 %v1098_v52  ;;  %v1075_v20 = vpack.c.bf16 %v883_v60, %v883_v60  ;;  %6132 = vrsqrt.f32 %v7152_v50  ;;  %v1897_v49 = vunpack.c.l.b16 %v1074_v38 }
 0x16f   :  { %1812 = vrot.lane.b32.xlu1 %v1804_v48, %s6428_s0  ;;  %v2019_v55 = vpack.c.b16 %v2011_v26, %v2010_v30  ;;  %v1871_v48 = vunpack.c.l.b16 %v7000_v28  ;;  %v528_v27 = vmul.f32 %v7147_v56, %v7104_v57  ;;  %v1073_v30 = vpack.c.bf16 %v881_v15, %v881_v15 }
 0x170   :  { %v1076_v26 = vpack.c.bf16 %v884_v45, %v884_v45  ;;  %v520_v28 = vmul.f32 0.5, %v519_v34  ;;  %v2008_v58 = vunpack.c.l.b16 %v1097_v35  ;;  %v901_v34 = vmul.f32 %v6862_v23, %v7100_v5 }
 0x171   :  { %v1873_v19 = vpack.c.b16 %v1872_v43, %v1871_v48  ;;  %v7159_v17 = vpop.eup %6130  ;;  %v902_v43 = vmul.f32 %v6878_v42, %v7112_v24  ;;  %v529_v15 = vmul.f32 %v7147_v56, %v528_v27  ;;  %v879_v48 = vmul.f32 %v6868_v40, %v7019_v44 }
 0x172   :  { %v7141_v46 = vpop.f32.mrf.mxu1  ;;  %v1899_v39 = vunpack.c.l.b16 %v1076_v26  ;;  %v521_v38 = vsub.f32 1.5, %v520_v28  ;;  %v2018_v52 = vpack.c.b16 %v2009_v4, %v2008_v58  ;;  %v1898_v60 = vunpack.c.l.b16 %v1075_v20 }
 0x173   :  { %v1072_v26 = vpack.c.bf16 %v880_v63, %v880_v63  ;;  %v1093_v2 = vpack.c.bf16 %v901_v34, %v901_v34  ;;  %v530_v13 = vmul.f32 0.5, %v529_v15  ;;  %vm523_vm10 = vweird.f32 %v7080_v22 }
 0x174   :  { %v1911_v10 = vpack.c.b16 %v1899_v39, %v1898_v60  ;;  %v7176_v27 = vpop.eup %6132  ;;  %v7180_v28 = vmul.f32 %v7116_v7, %v521_v38  ;;  %vm524_vm11 = vweird.f32 %v7116_v7  ;;  %v904_v63 = vmul.f32 %v6856_v61, %v7112_v24 }
 0x175   :  { %2034 = vrot.lane.b32.xlu0 %v2019_v55, %s6428_s0  ;;  %v1896_v55 = vunpack.c.l.b16 %v1073_v30  ;;  %v1071_v30 = vpack.c.bf16 %v879_v48, %v879_v48  ;;  %v548_v58 = vmul.f32 %v7176_v27, %v7152_v50  ;;  %v2004_v39 = vunpack.c.l.b16 %v1093_v2  ;;  %vm7208_vm12 = vmor %vm523_vm10, %vm524_vm11 }
 0x176   :  { %1924 = vrot.lane.b32.xlu2 %v1912_v33, %s6428_s0  ;;  %v1094_v33 = vpack.c.bf16 %v902_v43, %v902_v43  ;;  %v900_v43 = vmul.f32 %v6885_v14, %v7112_v24  ;;  %v1976_v34 = vunpack.c.l.b16 %v7097_v54  ;;  %v899_v15 = vmul.f32 %v6866_v36, %v7100_v5 }
 0x177   :  { %1874 = vrot.lane.b32.xlu1 %v1873_v19, %s6429_s2  ;;  %v538_v19 = vmul.f32 %v7159_v17, %v7128_v3  ;;  %v1910_v35 = vpack.c.b16 %v1897_v49, %v1896_v55  ;;  %v1895_v49 = vunpack.c.l.b16 %v1072_v26  ;;  %v1894_v55 = vunpack.c.l.b16 %v1071_v30 }
 0x178   :  { %v2005_v20 = vunpack.c.l.b16 %v1094_v33  ;;  %v903_v48 = vmul.f32 %v6860_v9, %v7100_v5  ;;  %v898_v38 = vmul.f32 %v6899_v18, %v7112_v24  ;;  %v1975_v33 = vunpack.c.l.b16 %v7088_v21 }
 0x179   :  { %v539_v4 = vmul.f32 %v7159_v17, %v538_v19  ;;  %v1092_v19 = vpack.c.bf16 %v900_v43, %v900_v43  ;;  %v897_v2 = vmul.f32 %v6890_v53, %v7100_v5  ;;  %vm533_vm13 = vweird.f32 %v7104_v57 }
 0x17a   :  { %v7169_v45 = vpop.f32.mrf.mxu1  ;;  %v2016_v60 = vpack.c.b16 %v2005_v20, %v2004_v39  ;;  %v1096_v26 = vpack.c.bf16 %v904_v63, %v904_v63  ;;  %vm534_vm14 = vweird.f32 %v7147_v56  ;;  %v549_v21 = vmul.f32 %v7176_v27, %v548_v58 }
 0x17b   :  { %v540_v54 = vmul.f32 0.5, %v539_v4  ;;  %v1977_v30 = vpack.c.b16 %v1976_v34, %v1975_v33  ;;  %v1091_v20 = vpack.c.bf16 %v899_v15, %v899_v15  ;;  %vm543_vm15 = vweird.f32 %v7128_v3  ;;  %vm7231_vm1 = vmor %vm533_vm13, %vm534_vm14 }
 0x17c   :  { %v7218_v22 = vmax.f32 %v7141_v46, 1e-24  ;;  %v1095_v43 = vpack.c.bf16 %v903_v48, %v903_v48  ;;  %v1090_v39 = vpack.c.bf16 %v898_v38, %v898_v38  ;;  %v526_v4 = vsel %vm7208_vm12, %v7116_v7, %v7180_v28 }
 0x17d   :  { %2032 = vrot.lane.b32.xlu0 %v2018_v52, %s6428_s0  ;;  %v2003_v63 = vunpack.c.l.b16 %v1092_v19  ;;  %v1089_v58 = vpack.c.bf16 %v897_v2, %v897_v2  ;;  %v541_v34 = vsub.f32 1.5, %v540_v54  ;;  %v2007_v15 = vunpack.c.l.b16 %v1096_v26 }
 0x17e   :  { %1920 = vrot.lane.b32.xlu2 %v1910_v35, %s6428_s0  ;;  %v1909_v35 = vpack.c.b16 %v1895_v49, %v1894_v55  ;;  %v896_v55 = vmul.f32 %v6901_v31, %v7112_v24  ;;  %v894_v7 = vmul.f32 %v6904_v29, %v7112_v24  ;;  %v550_v28 = vmul.f32 0.5, %v549_v21  ;;  %v10160_v24 = vld [vmem:[#allocation28_spill] sm:$0xff] }
 0x17f   :  { %1922 = vrot.lane.b32.xlu1 %v1911_v10, %s6428_s0  ;;  %v531_v10 = vsub.f32 1.5, %v530_v13  ;;  %v2001_v48 = vunpack.c.l.b16 %v1090_v39  ;;  %v893_v38 = vmul.f32 %v6892_v11, %v7100_v5  ;;  %vm544_vm2 = vweird.f32 %v7159_v17 }
 0x180   :  { %6134 = vrsqrt.f32 %v7218_v22  ;;  %v2006_v57 = vunpack.c.l.b16 %v1095_v43  ;;  %v2000_v19 = vunpack.c.l.b16 %v1089_v58  ;;  %v1086_v2 = vpack.c.bf16 %v894_v7, %v894_v7  ;;  %vm7254_vm3 = vmor %vm543_vm15, %vm544_vm2 }
 0x181   :  { %v532_v49 = vmul.f32 %v7147_v56, %v531_v10  ;;  %v2002_v10 = vunpack.c.l.b16 %v1091_v20  ;;  %v542_v26 = vmul.f32 %v7159_v17, %v541_v34  ;;  %v551_v21 = vsub.f32 1.5, %v550_v28 }
 0x182   :  { %v7199_v52 = vpop.f32.mrf.mxu1  ;;  %v2017_v54 = vpack.c.b16 %v2007_v15, %v2006_v57  ;;  %v2014_v20 = vpack.c.b16 %v2001_v48, %v2000_v19  ;;  %v1085_v43 = vpack.c.bf16 %v893_v38, %v893_v38  ;;  %vm553_vm4 = vweird.f32 %v7152_v50 }
 0x183   :  { %v2015_v33 = vpack.c.b16 %v2003_v63, %v2002_v10  ;;  %v536_v13 = vsel %vm7231_vm1, %v7147_v56, %v532_v49  ;;  %v7259_v56 = vmax.f32 %v7169_v45, 1e-24  ;;  %v685_v63 = vmul.f32 %v526_v4, %v6727_v47 }
 0x184   :  { %v686_v58 = vmul.f32 %v536_v13, %v6732_v51  ;;  %v1997_v46 = vunpack.c.l.b16 %v1086_v2  ;;  %vm554_vm5 = vweird.f32 %v7176_v27  ;;  %v552_v4 = vmul.f32 %v7176_v27, %v551_v21 }
 0x185   :  { %2028 = vrot.lane.b32.xlu0 %v2016_v60, %s6428_s0  ;;  %v895_v60 = vmul.f32 %v6868_v40, %v7100_v5  ;;  %v709_v15 = vpack.c.bf16 %v685_v63, %v685_v63  ;;  %v1996_v7 = vunpack.c.l.b16 %v1085_v43  ;;  %6136 = vrsqrt.f32 %v7259_v56  ;;  %vm7278_vm6 = vmor %vm553_vm4, %vm554_vm5 }
 0x186   :  { %1918 = vrot.lane.b32.xlu2 %v1909_v35, %s6428_s0  ;;  %v1088_v35 = vpack.c.bf16 %v896_v55, %v896_v55  ;;  %v7266_v3 = vpop.eup %6134  ;;  %v710_v45 = vpack.c.bf16 %v686_v58, %v686_v58  ;;  %v546_v55 = vsel %vm7254_vm3, %v7159_v17, %v542_v26  ;;  %v7287_v19 = vmax.f32 %v7199_v52, 1e-24 }
 0x187   :  { %1978 = vrot.lane.b32.xlu1 %v1977_v30, %s6429_s2  ;;  %v1087_v49 = vpack.c.bf16 %v895_v60, %v895_v60  ;;  %v7274_v10 = vunpack.c.l.bf16 %v709_v15  ;;  %v558_v57 = vmul.f32 %v7266_v3, %v7218_v22  ;;  %v2012_v60 = vpack.c.b16 %v1997_v46, %v1996_v7 }
 0x188   :  { %v1999_v34 = vunpack.c.l.b16 %v1088_v35  ;;  %v2080_v48 = vunpack.c.l.b16 %v710_v45  ;;  %v2079_v17 = vunpack.c.l.b16 %v709_v15  ;;  %v687_v35 = vmul.f32 %v546_v55, %v6741_v62 }
 0x189   :  { %v1998_v28 = vunpack.c.l.b16 %v1087_v49  ;;  %10146 = vst [vmem:[#allocation48_spill] sm:$0xff] %v7274_v10  ;;  %v923_v50 = vmul.f32 %v6854_v8, %v7274_v10  ;;  %v556_v26 = vsel %vm7278_vm6, %v7176_v27, %v552_v4  ;;  %v917_v52 = vmul.f32 %v6862_v23, %v7274_v10 }
 0x18a   :  { %v390_v30 = vpop.f32.mrf.mxu1  ;;  %v2081_v13 = vpack.c.b16 %v2080_v48, %v2079_v17  ;;  %v921_v63 = vmul.f32 %v6858_v6, %v7274_v10  ;;  %6138 = vrsqrt.f32 %v7287_v19  ;;  %vm563_vm7 = vweird.f32 %v7218_v22 }
 0x18b   :  { %v2013_v2 = vpack.c.b16 %v1999_v34, %v1998_v28  ;;  %v1115_v39 = vpack.c.bf16 %v923_v50, %v923_v50  ;;  %v7309_v27 = vpop.eup %6136  ;;  %v1109_v46 = vpack.c.bf16 %v917_v52, %v917_v52  ;;  %v688_v28 = vmul.f32 %v556_v26, %v6746_v1 }
 0x18c   :  { %v1113_v7 = vpack.c.bf16 %v921_v63, %v921_v63  ;;  %v915_v26 = vmul.f32 %v6866_v36, %v7274_v10  ;;  %vm564_vm8 = vweird.f32 %v7266_v3  ;;  %vm573_vm9 = vweird.f32 %v7259_v56 }
 0x18d   :  { %2026 = vrot.lane.b32.xlu0 %v2015_v33, %s6428_s0  ;;  %v7284_v33 = vunpack.c.l.bf16 %v710_v45  ;;  %v7316_v45 = vmax.f32 %v390_v30, 1e-24  ;;  %v2114_v55 = vunpack.c.l.b16 %v1115_v39  ;;  %v2108_v48 = vunpack.c.l.b16 %v1109_v46  ;;  %vm7380_vm10 = vmor %vm563_vm7, %vm564_vm8 }
 0x18e   :  { %2030 = vrot.lane.b32.xlu2 %v2017_v54, %s6428_s0  ;;  %v2112_v30 = vunpack.c.l.b16 %v1113_v7  ;;  %v1107_v63 = vpack.c.bf16 %v915_v26, %v915_v26  ;;  %v919_v7 = vmul.f32 %v6860_v9, %v7274_v10  ;;  %vm574_vm11 = vweird.f32 %v7309_v27 }
 0x18f   :  { %2024 = vrot.lane.b32.xlu1 %v2014_v20, %s6428_s0  ;;  %10149 = vst [vmem:[#allocation49_spill] sm:$0xff] %v7284_v33  ;;  %v924_v54 = vmul.f32 %v6848_v59, %v7284_v33  ;;  %v918_v21 = vmul.f32 %v6878_v42, %v7284_v33  ;;  %v559_v20 = vmul.f32 %v7266_v3, %v558_v57  ;;  %6140 = vrsqrt.f32 %v7316_v45  ;;  %vm7405_vm12 = vmor %vm573_vm9, %vm574_vm11 }
 0x190   :  { %v922_v15 = vmul.f32 %v6874_v41, %v7284_v33  ;;  %v7327_v52 = vpop.eup %6138  ;;  %v912_v46 = vmul.f32 %v6901_v31, %v7284_v33  ;;  %vm583_vm14 = vweird.f32 %v7287_v19  ;;  %vm593_vm2 = vweird.f32 %v7316_v45 }
 0x191   :  { %v1116_v49 = vpack.c.bf16 %v924_v54, %v924_v54  ;;  %v1110_v34 = vpack.c.bf16 %v918_v21, %v918_v21  ;;  %v7329_v21 = vpack.c.bf16 %v688_v28, %v688_v28  ;;  %vm584_vm13 = vweird.f32 %v7327_v52 }
 0x192   :  { %v7304_v43 = vpop.f32.mrf.mxu1  ;;  %v1114_v57 = vpack.c.bf16 %v922_v15, %v922_v15  ;;  %vm7446_vm1 = vmor %vm583_vm14, %vm584_vm13 }
 0x193   :  { %v2115_v4 = vunpack.c.l.b16 %v1116_v49  ;;  %v2109_v38 = vunpack.c.l.b16 %v1110_v34 }
 0x194   :  { %v2113_v54 = vunpack.c.l.b16 %v1114_v57  ;;  %v1104_v57 = vpack.c.bf16 %v912_v46, %v912_v46 }
 0x195   :  { %2020 = vrot.lane.b32.xlu0 %v2012_v60, %s6428_s0  ;;  %v568_v60 = vmul.f32 %v7309_v27, %v7259_v56  ;;  %v2123_v17 = vpack.c.b16 %v2115_v4, %v2114_v55  ;;  %v2120_v50 = vpack.c.b16 %v2109_v38, %v2108_v48  ;;  %v578_v48 = vmul.f32 %v7327_v52, %v7287_v19  ;;  %v7354_v26 = vpop.eup %6140 }
 0x196   :  { %2022 = vrot.lane.b32.xlu2 %v2013_v2, %s6428_s0  ;;  %v7321_v2 = vpack.c.bf16 %v687_v35, %v687_v35  ;;  %v916_v35 = vmul.f32 %v6885_v14, %v7284_v33  ;;  %v2122_v49 = vpack.c.b16 %v2113_v54, %v2112_v30  ;;  %v1111_v54 = vpack.c.bf16 %v919_v7, %v919_v7 }
 0x197   :  { %2082 = vrot.lane.b32.xlu1 %v2081_v13, %s6429_s2  ;;  %v7312_v58 = vpop.permute.xlu2 %1720  ;;  %v560_v13 = vmul.f32 0.5, %v559_v20  ;;  %v911_v20 = vmul.f32 %v6868_v40, %v7274_v10  ;;  %v569_v39 = vmul.f32 %v7309_v27, %v568_v60  ;;  %v920_v60 = vmul.f32 %v6856_v61, %v7284_v33 }
 0x198   :  { %v7340_v34 = vunpack.c.l.bf16 %v7321_v2  ;;  %v1108_v55 = vpack.c.bf16 %v916_v35, %v916_v35  ;;  %v579_v62 = vmul.f32 %v7327_v52, %v578_v48  ;;  %vm594_vm15 = vweird.f32 %v7354_v26 }
 0x199   :  { %v1103_v4 = vpack.c.bf16 %v911_v20, %v911_v20  ;;  %v561_v28 = vsub.f32 1.5, %v560_v13  ;;  %v570_v35 = vmul.f32 0.5, %v569_v39  ;;  %v2103_v20 = vunpack.c.l.b16 %v1104_v57  ;;  %vm7483_vm3 = vmor %vm593_vm2, %vm594_vm15 }
 0x19a   :  { %10150 = vst [vmem:[#allocation50_spill] sm:$0xff] %v7340_v34  ;;  %v395_v38 = vpop.f32.mrf.mxu1  ;;  %v2107_v30 = vunpack.c.l.b16 %v1108_v55  ;;  %v1112_v1 = vpack.c.bf16 %v920_v60, %v920_v60  ;;  %v588_v39 = vmul.f32 %v7354_v26, %v7316_v45  ;;  %v909_v57 = vmul.f32 %v6892_v11, %v7274_v10 }
 0x19b   :  { %v2102_v13 = vunpack.c.l.b16 %v1103_v4  ;;  %v562_v46 = vmul.f32 %v7266_v3, %v561_v28  ;;  %v2110_v4 = vunpack.c.l.b16 %v1111_v54  ;;  %v571_v60 = vsub.f32 1.5, %v570_v35 }
 0x19c   :  { %v2111_v7 = vunpack.c.l.b16 %v1112_v1  ;;  %v910_v28 = vmul.f32 %v6904_v29, %v7284_v33  ;;  %v1101_v35 = vpack.c.bf16 %v909_v57, %v909_v57  ;;  %v589_v22 = vmul.f32 %v7354_v26, %v588_v39 }
 0x19d   :  { %2138 = vrot.lane.b32.xlu0 %v2123_v17, %s6428_s0  ;;  %v7352_v17 = vunpack.c.l.bf16 %v7329_v21  ;;  %v2117_v55 = vpack.c.b16 %v2103_v20, %v2102_v13  ;;  %v913_v13 = vmul.f32 %v6890_v53, %v7274_v10  ;;  %v580_v20 = vmul.f32 0.5, %v579_v62 }
 0x19e   :  { %2132 = vrot.lane.b32.xlu2 %v2120_v50, %s6428_s0  ;;  %v2106_v50 = vunpack.c.l.b16 %v1107_v63  ;;  %v7362_v63 = vmax.f32 %v7304_v43, 1e-24  ;;  %v939_v43 = vmul.f32 %v6854_v8, %v7340_v34  ;;  %v2121_v54 = vpack.c.b16 %v2111_v7, %v2110_v4 }
 0x19f   :  { %2136 = vrot.lane.b32.xlu1 %v2122_v49, %s6428_s0  ;;  %10151 = vst [vmem:[#allocation51_spill] sm:$0xff] %v7352_v17  ;;  %v940_v48 = vmul.f32 %v6848_v59, %v7352_v17  ;;  %v566_v62 = vsel %vm7380_vm10, %v7266_v3, %v562_v46  ;;  %v2100_v7 = vunpack.c.l.b16 %v1101_v35  ;;  %v590_v46 = vmul.f32 0.5, %v589_v22 }
 0x1a0   :  { %v7342_v15 = vpop.permute.xlu2 %1716  ;;  %v2119_v49 = vpack.c.b16 %v2107_v30, %v2106_v50  ;;  %v7384_v50 = vmax.f32 %v395_v38, 1e-24  ;;  %v1131_v51 = vpack.c.bf16 %v939_v43, %v939_v43  ;;  %6142 = vrsqrt.f32 %v7362_v63 }
 0x1a1   :  { %v1132_v47 = vpack.c.bf16 %v940_v48, %v940_v48  ;;  %v914_v38 = vmul.f32 %v6899_v18, %v7284_v33  ;;  %v572_v43 = vmul.f32 %v7309_v27, %v571_v60  ;;  %v581_v33 = vsub.f32 1.5, %v580_v20 }
 0x1a2   :  { %v398_v4 = vpop.f32.mrf.mxu1  ;;  %6144 = vrsqrt.f32 %v7384_v50  ;;  %v2218_v39 = vunpack.c.l.b16 %v1131_v51  ;;  %v689_v3 = vmul.f32 %v566_v62, %v6755_v12  ;;  %v937_v56 = vmul.f32 %v6858_v6, %v7340_v34 }
 0x1a3   :  { %v2219_v48 = vunpack.c.l.b16 %v1132_v47  ;;  %v1106_v1 = vpack.c.bf16 %v914_v38, %v914_v38  ;;  %v933_v38 = vmul.f32 %v6862_v23, %v7340_v34  ;;  %v934_v62 = vmul.f32 %v6878_v42, %v7352_v17 }
 0x1a4   :  { %vm603_vm4 = vweird.f32 %v7362_v63  ;;  %vm613_vm8 = vweird.f32 %v7384_v50 }
 0x1a5   :  { %2130 = vrot.lane.b32.xlu0 %v2119_v49, %s6428_s0  ;;  %v2227_v35 = vpack.c.b16 %v2219_v48, %v2218_v39  ;;  %v2105_v47 = vunpack.c.l.b16 %v1106_v1  ;;  %v1129_v39 = vpack.c.bf16 %v937_v56, %v937_v56  ;;  %v591_v48 = vsub.f32 1.5, %v590_v46 }
 0x1a6   :  { %2126 = vrot.lane.b32.xlu2 %v2117_v55, %s6428_s0  ;;  %v1102_v55 = vpack.c.bf16 %v910_v28, %v910_v28  ;;  %v1105_v28 = vpack.c.bf16 %v913_v13, %v913_v13  ;;  %v938_v13 = vmul.f32 %v6874_v41, %v7352_v17  ;;  %v7416_v20 = vpop.eup %6142  ;;  %v1126_v1 = vpack.c.bf16 %v934_v62, %v934_v62 }
 0x1a7   :  { %2134 = vrot.lane.b32.xlu1 %v2121_v54, %s6428_s0  ;;  %v1125_v54 = vpack.c.bf16 %v933_v38, %v933_v38  ;;  %v592_v19 = vmul.f32 %v7354_v26, %v591_v48  ;;  %v1746_v48 = vsel %vm82_vm0, %v7312_v58, 0  ;;  %v927_v46 = vmul.f32 %v6868_v40, %v7340_v34 }
 0x1a8   :  { %v7386_v30 = vpop.permute.xlu2 %1712  ;;  %v2101_v57 = vunpack.c.l.b16 %v1102_v55  ;;  %v2104_v51 = vunpack.c.l.b16 %v1105_v28  ;;  %v576_v55 = vsel %vm7405_vm12, %v7309_v27, %v572_v43  ;;  %v1130_v27 = vpack.c.bf16 %v938_v13, %v938_v13  ;;  %v7432_v43 = vpop.eup %6144 }
 0x1a9   :  { %v7390_v49 = vpop.permute.xlu1 %1666  ;;  %v690_v56 = vmul.f32 %v576_v55, %v6760_v16  ;;  %v608_v13 = vmul.f32 %v7432_v43, %v7384_v50  ;;  %v2212_v62 = vunpack.c.l.b16 %v1125_v54  ;;  %v7459_v16 = vmax.f32 %v398_v4, 1e-24 }
 0x1aa   :  { %v2116_v10 = vpack.c.b16 %v2101_v57, %v2100_v7  ;;  %v582_v7 = vmul.f32 %v7327_v52, %v581_v33  ;;  %v2118_v57 = vpack.c.b16 %v2105_v47, %v2104_v51  ;;  %v2216_v33 = vunpack.c.l.b16 %v1129_v39 }
 0x1ab   :  { %v2217_v51 = vunpack.c.l.b16 %v1130_v27  ;;  %v7439_v47 = vpack.c.bf16 %v689_v3, %v689_v3  ;;  %v2213_v3 = vunpack.c.l.b16 %v1126_v1  ;;  %v931_v54 = vmul.f32 %v6866_v36, %v7340_v34 }
 0x1ac   :  { %v586_v55 = vsel %vm7446_vm1, %v7327_v52, %v582_v7  ;;  %v932_v4 = vmul.f32 %v6885_v14, %v7352_v17  ;;  %6146 = vrsqrt.f32 %v7459_v16  ;;  %vm604_vm5 = vweird.f32 %v7416_v20 }
 0x1ad   :  { %2124 = vrot.lane.b32.xlu0 %v2116_v10, %s6428_s0  ;;  %v2226_v38 = vpack.c.b16 %v2217_v51, %v2216_v33  ;;  %v2224_v12 = vpack.c.b16 %v2213_v3, %v2212_v62  ;;  %v1123_v51 = vpack.c.bf16 %v931_v54, %v931_v54  ;;  %v1119_v62 = vpack.c.bf16 %v927_v46, %v927_v46  ;;  %vm7562_vm7 = vmor %vm603_vm4, %vm604_vm5 }
 0x1ae   :  { %2242 = vrot.lane.b32.xlu2 %v2227_v35, %s6428_s0  ;;  %v935_v35 = vmul.f32 %v6860_v9, %v7340_v34  ;;  %v1124_v45 = vpack.c.bf16 %v932_v4, %v932_v4  ;;  %v7494_v3 = vunpack.c.l.bf16 %v7439_v47  ;;  %v691_v54 = vmul.f32 %v586_v55, %v6772_v25 }
 0x1af   :  { %v1723_v60 = vpop.permute.xlu0 %1722  ;;  %2128 = vrot.lane.b32.xlu1 %v2118_v57, %s6428_s0  ;;  %v936_v57 = vmul.f32 %v6856_v61, %v7352_v17  ;;  %v930_v55 = vmul.f32 %v6899_v18, %v7352_v17  ;;  %vm614_vm6 = vweird.f32 %v7432_v43  ;;  %vm623_vm12 = vweird.f32 %v7459_v16 }
 0x1b0   :  { %v7422_v22 = vpop.permute.xlu2 %1822  ;;  %v1749_v10 = vsel %vm82_vm0, %v1723_v60, 0  ;;  %v598_v60 = vmul.f32 %v7416_v20, %v7362_v63  ;;  %v1127_v39 = vpack.c.bf16 %v935_v35, %v935_v35  ;;  %v609_v35 = vmul.f32 %v7432_v43, %v608_v13  ;;  %vm7576_vm9 = vmor %vm613_vm8, %vm614_vm6 }
 0x1b1   :  { %1751 = vmatpush.bf16.xpose.msra.mxu2 %v1749_v10  ;;  %v7430_v28 = vpop.permute.xlu1 %1718  ;;  %v400_v10 = vpop.f32.mrf.mxu1  ;;  %v1128_v7 = vpack.c.bf16 %v936_v57, %v936_v57  ;;  %v928_v13 = vmul.f32 %v6901_v31, %v7352_v17  ;;  %v7496_v57 = vpack.c.bf16 %v690_v56, %v690_v56  ;;  %v2206_v56 = vunpack.c.l.b16 %v1119_v62 }
 0x1b2   :  { %v599_v27 = vmul.f32 %v7416_v20, %v598_v60  ;;  %v7466_v1 = vmax.f32 %v400_v10, 1e-24  ;;  %v2214_v10 = vunpack.c.l.b16 %v1127_v39  ;;  %v1122_v62 = vpack.c.bf16 %v930_v55, %v930_v55 }
 0x1b3   :  { %v1120_v4 = vpack.c.bf16 %v928_v13, %v928_v13  ;;  %v7519_v13 = vunpack.c.l.bf16 %v7496_v57 }
 0x1b4   :  { %6148 = vrsqrt.f32 %v7466_v1  ;;  %v600_v58 = vmul.f32 0.5, %v599_v27  ;;  %v1743_v27 = vsel %vm82_vm0, %v7430_v28, 0  ;;  %v2209_v25 = vunpack.c.l.b16 %v1122_v62 }
 0x1b5   :  { %2240 = vrot.lane.b32.xlu0 %v2226_v38, %s6428_s0  ;;  %v2215_v38 = vunpack.c.l.b16 %v1128_v7  ;;  %v2210_v7 = vunpack.c.l.b16 %v1123_v51  ;;  %v2207_v44 = vunpack.c.l.b16 %v1120_v4  ;;  %10162 = vst [vmem:[#allocation53_spill] sm:$0xff] %v7519_v13  ;;  %v948_v63 = vmul.f32 %v6885_v14, %v7519_v13 }
 0x1b6   :  { %2236 = vrot.lane.b32.xlu2 %v2224_v12, %s6428_s0  ;;  %v596_v12 = vsel %vm7483_vm3, %v7354_v26, %v592_v19  ;;  %v610_v26 = vmul.f32 0.5, %v609_v35  ;;  %v929_v19 = vmul.f32 %v6890_v53, %v7340_v34  ;;  %v925_v35 = vmul.f32 %v6892_v11, %v7340_v34 }
 0x1b7   :  { %v7462_v33 = vpop.permute.xlu0 %1714  ;;  %v2225_v39 = vpack.c.b16 %v2215_v38, %v2214_v10  ;;  %v692_v5 = vmul.f32 %v596_v12, %v10160_v24  ;;  %v926_v38 = vmul.f32 %v6904_v29, %v7352_v17  ;;  %v2221_v12 = vpack.c.b16 %v2207_v44, %v2206_v56 }
 0x1b8   :  { %v7468_v52 = vpop.permute.xlu2 %1818  ;;  %v1121_v10 = vpack.c.bf16 %v929_v19, %v929_v19  ;;  %v601_v28 = vsub.f32 1.5, %v600_v58  ;;  %v611_v19 = vsub.f32 1.5, %v610_v26  ;;  %v7530_v44 = vpack.c.bf16 %v691_v54, %v691_v54 }
 0x1b9   :  { %1752 = vmatpush.bf16.xpose.msra.mxu2 %v1746_v48  ;;  %v7477_v60 = vpop.permute.xlu1 %1710  ;;  %v2211_v48 = vunpack.c.l.b16 %v1124_v45  ;;  %2238 = vrot.lane.b32.xlu1 %v2225_v39, %s6428_s0  ;;  %v7516_v45 = vpop.eup %6146  ;;  %v1118_v4 = vpack.c.bf16 %v926_v38, %v926_v38  ;;  %v7532_v56 = vpack.c.bf16 %v692_v5, %v692_v5  ;;  %v956_v54 = vmul.f32 %v6848_v59, %v7519_v13 }
 0x1ba   :  { %v2208_v24 = vunpack.c.l.b16 %v1121_v10  ;;  %v618_v58 = vmul.f32 %v7516_v45, %v7459_v16  ;;  %v602_v10 = vmul.f32 %v7416_v20, %v601_v28  ;;  %v612_v38 = vmul.f32 %v7432_v43, %v611_v19 }
 0x1bb   :  { %v2223_v46 = vpack.c.b16 %v2211_v48, %v2210_v7  ;;  %v7524_v7 = vpop.eup %6148  ;;  %v1117_v48 = vpack.c.bf16 %v925_v35, %v925_v35  ;;  %v2205_v35 = vunpack.c.l.b16 %v1118_v4  ;;  %v953_v19 = vmul.f32 %v6858_v6, %v7494_v3 }
 0x1bc   :  { %v628_v55 = vmul.f32 %v7524_v7, %v7466_v1  ;;  %v2222_v26 = vpack.c.b16 %v2209_v25, %v2208_v24  ;;  %v951_v25 = vmul.f32 %v6860_v9, %v7494_v3  ;;  %v952_v24 = vmul.f32 %v6856_v61, %v7519_v13 }
 0x1bd   :  { %2234 = vrot.lane.b32.xlu0 %v2223_v46, %s6428_s0  ;;  %v955_v46 = vmul.f32 %v6854_v8, %v7494_v3  ;;  %v619_v28 = vmul.f32 %v7516_v45, %v618_v58  ;;  %vm624_vm10 = vweird.f32 %v7516_v45  ;;  %vm634_vm11 = vweird.f32 %v7524_v7 }
 0x1be   :  { %2230 = vrot.lane.b32.xlu2 %v2221_v12, %s6428_s0  ;;  %v629_v58 = vmul.f32 %v7524_v7, %v628_v55  ;;  %v954_v55 = vmul.f32 %v6874_v41, %v7519_v13  ;;  %vm7631_vm13 = vmor %vm623_vm12, %vm624_vm10  ;;  %vm633_vm14 = vweird.f32 %v7466_v1 }
 0x1bf   :  { %v7504_v37 = vpop.permute.xlu0 %1708  ;;  %v1147_v5 = vpack.c.bf16 %v955_v46, %v955_v46  ;;  %v1740_v46 = vsel %vm82_vm0, %v7342_v15, 0  ;;  %vm7647_vm15 = vmor %vm633_vm14, %vm634_vm11 }
 0x1c0   :  { %v7508_v51 = vpop.permute.xlu2 %1816  ;;  %v630_v34 = vmul.f32 0.5, %v629_v58  ;;  %v1146_v32 = vpack.c.bf16 %v954_v55, %v954_v55  ;;  %v947_v58 = vmul.f32 %v6866_v36, %v7494_v3 }
 0x1c1   :  { %10161 = vst [vmem:[#allocation52_spill] sm:$0xff] %v7508_v51  ;;  %1753 = vmatpush.bf16.xpose.msra.mxu2 %v1743_v27  ;;  %v7522_v39 = vpop.permute.xlu1 %1770  ;;  %v2204_v27 = vunpack.c.l.b16 %v1117_v48  ;;  %2232 = vrot.lane.b32.xlu1 %v2222_v26, %s6428_s0  ;;  %v1148_v48 = vpack.c.bf16 %v956_v54, %v956_v54  ;;  %v606_v54 = vsel %vm7562_vm7, %v7416_v20, %v602_v10  ;;  %v2322_v50 = vunpack.c.l.b16 %v1147_v5 }
 0x1c2   :  { %10163 = vst [vmem:[#allocation54_spill] sm:$0xff] %v7522_v39  ;;  %v620_v26 = vmul.f32 0.5, %v619_v28  ;;  %v7586_v10 = vunpack.c.l.bf16 %v7530_v44  ;;  %v7589_v5 = vunpack.c.l.bf16 %v7532_v56  ;;  %v10171_v39 = vld [vmem:[#allocation30_spill] sm:$0xff]  ;;  %v950_v28 = vmul.f32 %v6878_v42, %v7519_v13 }
 0x1c3   :  { %v2220_v12 = vpack.c.b16 %v2205_v35, %v2204_v27  ;;  %v1143_v27 = vpack.c.bf16 %v951_v25, %v951_v25  ;;  %v1144_v35 = vpack.c.bf16 %v952_v24, %v952_v24  ;;  %v2323_v17 = vunpack.c.l.b16 %v1148_v48  ;;  %v10170_v48 = vld [vmem:[#allocation29_spill] sm:$0xff] }
 0x1c4   :  { %10169 = vst [vmem:[#allocation56_spill] sm:$0xff] %v7589_v5  ;;  %v1142_v55 = vpack.c.bf16 %v950_v28, %v950_v28 }
 0x1c5   :  { %2228 = vrot.lane.b32.xlu0 %v2220_v12, %s6428_s0  ;;  %v616_v12 = vsel %vm7576_vm9, %v7432_v43, %v612_v38  ;;  %v2318_v25 = vunpack.c.l.b16 %v1143_v27  ;;  %v2319_v24 = vunpack.c.l.b16 %v1144_v35  ;;  %v2331_v20 = vpack.c.b16 %v2323_v17, %v2322_v50 }
 0x1c6   :  { %v694_v51 = vmul.f32 %v616_v12, %v10171_v39  ;;  %v949_v43 = vmul.f32 %v6862_v23, %v7494_v3  ;;  %v2321_v38 = vunpack.c.l.b16 %v1146_v32  ;;  %v621_v27 = vsub.f32 1.5, %v620_v26 }
 0x1c7   :  { %v7545_v62 = vpop.permute.xlu0 %1824  ;;  %v2329_v0 = vpack.c.b16 %v2319_v24, %v2318_v25  ;;  %2346 = vrot.lane.b32.xlu2 %v2331_v20, %s6428_s0  ;;  %v631_v50 = vsub.f32 1.5, %v630_v34  ;;  %v1139_v12 = vpack.c.bf16 %v947_v58, %v947_v58  ;;  %v971_v26 = vmul.f32 %v6854_v8, %v7586_v10 }
 0x1c8   :  { %v7552_v4 = vpop.permute.xlu2 %1926  ;;  %v1141_v35 = vpack.c.bf16 %v949_v43, %v949_v43  ;;  %v7616_v20 = vpack.c.bf16 %v694_v51, %v694_v51  ;;  %v2317_v34 = vunpack.c.l.b16 %v1142_v55  ;;  %v972_v43 = vmul.f32 %v6848_v59, %v7589_v5 }
 0x1c9   :  { %10164 = vst [vmem:[#allocation55_spill] sm:$0xff] %v7552_v4  ;;  %1754 = vmatpush.bf16.xpose.msra.mxu2 %v1740_v46  ;;  %v7569_v15 = vpop.permute.xlu1 %1826  ;;  %v1145_v46 = vpack.c.bf16 %v953_v19, %v953_v19  ;;  %v693_v4 = vmul.f32 %v606_v54, %v10170_v48  ;;  %2342 = vrot.lane.b32.xlu1 %v2329_v0, %s6428_s0  ;;  %v1737_v0 = vsel %vm82_vm0, %v7462_v33, 0  ;;  %v10181_v48 = vld [vmem:[#allocation32_spill] sm:$0xff] }
 0x1ca   :  { %v2316_v33 = vunpack.c.l.b16 %v1141_v35  ;;  %v632_v58 = vmul.f32 %v7524_v7, %v631_v50  ;;  %v969_v51 = vmul.f32 %v6858_v6, %v7586_v10  ;;  %v970_v55 = vmul.f32 %v6874_v41, %v7589_v5 }
 0x1cb   :  { %v2320_v17 = vunpack.c.l.b16 %v1145_v46  ;;  %v7611_v24 = vpack.c.bf16 %v693_v4, %v693_v4  ;;  %v1140_v46 = vpack.c.bf16 %v948_v63, %v948_v63  ;;  %v403_v4 = vpop.f32.mrf.mxu1 }
 0x1cc   :  { %v2328_v63 = vpack.c.b16 %v2317_v34, %v2316_v33  ;;  %v1161_v50 = vpack.c.bf16 %v969_v51, %v969_v51  ;;  %v1162_v1 = vpack.c.bf16 %v970_v55, %v970_v55  ;;  %v2184_v55 = vunpack.c.l.b16 %v7329_v21 }
 0x1cd   :  { %v2330_v32 = vpack.c.b16 %v2321_v38, %v2320_v17  ;;  %v622_v17 = vmul.f32 %v7516_v45, %v621_v27  ;;  %v2314_v38 = vunpack.c.l.b16 %v1139_v12  ;;  %v2315_v28 = vunpack.c.l.b16 %v1140_v46 }
 0x1ce   :  { %v7640_v16 = vunpack.c.l.bf16 %v7611_v24  ;;  %v7643_v46 = vunpack.c.l.bf16 %v7616_v20  ;;  %v2424_v39 = vunpack.c.l.b16 %v1161_v50  ;;  %v945_v27 = vmul.f32 %v6890_v53, %v7494_v3 }
 0x1cf   :  { %v7599_v19 = vpop.permute.xlu0 %1930  ;;  %2344 = vrot.lane.b32.xlu0 %v2330_v32, %s6428_s0  ;;  %v2327_v35 = vpack.c.b16 %v2315_v28, %v2314_v38  ;;  %v1163_v32 = vpack.c.bf16 %v971_v26, %v971_v26  ;;  %2340 = vrot.lane.b32.xlu2 %v2328_v63, %s6428_s0  ;;  %v626_v34 = vsel %vm7631_vm13, %v7516_v45, %v622_v17  ;;  %v1734_v28 = vsel %vm82_vm0, %v7386_v30, 0  ;;  %v10180_v17 = vld [vmem:[#allocation31_spill] sm:$0xff] }
 0x1d0   :  { %10172 = vst [vmem:[#allocation57_spill] sm:$0xff] %v7599_v19  ;;  %v7603_v54 = vpop.permute.xlu2 %1924  ;;  %v946_v45 = vmul.f32 %v6899_v18, %v7519_v13  ;;  %v966_v30 = vmul.f32 %v6878_v42, %v7589_v5  ;;  %v985_v21 = vmul.f32 %v6858_v6, %v7640_v16 }
 0x1d1   :  { %10173 = vst [vmem:[#allocation58_spill] sm:$0xff] %v7603_v54  ;;  %1755 = vmatpush.bf16.xpose.msra.mxu2 %v1737_v0  ;;  %v7609_v25 = vpop.permute.xlu1 %1820  ;;  %v1164_v0 = vpack.c.bf16 %v972_v43, %v972_v43  ;;  %2338 = vrot.lane.b32.xlu1 %v2327_v35, %s6428_s0  ;;  %v636_v43 = vsel %vm7647_vm15, %v7524_v7, %v632_v58  ;;  %v2426_v51 = vunpack.c.l.b16 %v1163_v32  ;;  %v2425_v35 = vunpack.c.l.b16 %v1162_v1 }
 0x1d2   :  { %v965_v7 = vmul.f32 %v6862_v23, %v7586_v10  ;;  %v695_v58 = vmul.f32 %v626_v34, %v10180_v17  ;;  %v2183_v32 = vunpack.c.l.b16 %v7321_v2  ;;  %v1138_v26 = vpack.c.bf16 %v946_v45, %v946_v45 }
 0x1d3   :  { %v2427_v38 = vunpack.c.l.b16 %v1164_v0  ;;  %v2434_v0 = vpack.c.b16 %v2425_v35, %v2424_v39  ;;  %v1158_v1 = vpack.c.bf16 %v966_v30, %v966_v30  ;;  %v405_v54 = vpop.f32.mrf.mxu1  ;;  %v7681_v34 = vmax.f32 %v403_v4, 1e-24 }
 0x1d4   :  { %v1157_v19 = vpack.c.bf16 %v965_v7, %v965_v7  ;;  %v1137_v2 = vpack.c.bf16 %v945_v27, %v945_v27  ;;  %v2313_v30 = vunpack.c.l.b16 %v1138_v26  ;;  %v968_v27 = vmul.f32 %v6856_v61, %v7589_v5 }
 0x1d5   :  { %v2435_v50 = vpack.c.b16 %v2427_v38, %v2426_v51  ;;  %v7686_v38 = vpack.c.bf16 %v695_v58, %v695_v58  ;;  %v2421_v51 = vunpack.c.l.b16 %v1158_v1  ;;  %v987_v7 = vmul.f32 %v6854_v8, %v7640_v16 }
 0x1d6   :  { %v944_v26 = vmul.f32 %v6901_v31, %v7519_v13  ;;  %6150 = vrsqrt.f32 %v7681_v34  ;;  %vm643_vm2 = vweird.f32 %v7681_v34 }
 0x1d7   :  { %v7637_v12 = vpop.permute.xlu0 %1928  ;;  %2448 = vrot.lane.b32.xlu0 %v2434_v0, %s6428_s0  ;;  %2450 = vrot.lane.b32.xlu2 %v2435_v50, %s6428_s0  ;;  %10183 = vst [vmem:[#allocation62_spill] sm:$0xff] %v7686_v38  ;;  %v2312_v50 = vunpack.c.l.b16 %v1137_v2 }
 0x1d8   :  { %10176 = vst [vmem:[#allocation59_spill] sm:$0xff] %v7637_v12  ;;  %v7652_v33 = vpop.permute.xlu2 %1920  ;;  %v2185_v12 = vpack.c.b16 %v2184_v55, %v2183_v32  ;;  %v1731_v55 = vsel %vm82_vm0, %v7477_v60, 0  ;;  %v988_v32 = vmul.f32 %v6848_v59, %v7643_v46  ;;  %v967_v60 = vmul.f32 %v6860_v9, %v7586_v10 }
 0x1d9   :  { %10179 = vst [vmem:[#allocation60_spill] sm:$0xff] %v7652_v33  ;;  %v7662_v63 = vpop.permute.xlu1 %1814  ;;  %1756 = vmatpush.bf16.xpose.msra.mxu2 %v1734_v28  ;;  %v986_v28 = vmul.f32 %v6874_v41, %v7643_v46  ;;  %v696_v33 = vmul.f32 %v636_v43, %v10181_v48  ;;  %v1177_v43 = vpack.c.bf16 %v985_v21, %v985_v21  ;;  %v7703_v21 = vmax.f32 %v405_v54, 1e-24 }
 0x1da   :  { %2186 = vrot.lane.b32.xlu1 %v2185_v12, %s6429_s2  ;;  %v2420_v12 = vunpack.c.l.b16 %v1157_v19  ;;  %v1180_v48 = vpack.c.bf16 %v988_v32, %v988_v32  ;;  %v943_v19 = vmul.f32 %v6868_v40, %v7494_v3  ;;  %v1136_v2 = vpack.c.bf16 %v944_v26, %v944_v26 }
 0x1db   :  { %v1178_v45 = vpack.c.bf16 %v986_v28, %v986_v28  ;;  %v7699_v58 = vpack.c.bf16 %v696_v33, %v696_v33  ;;  %v2528_v28 = vunpack.c.l.b16 %v1177_v43  ;;  %v2326_v33 = vpack.c.b16 %v2313_v30, %v2312_v50  ;;  %v7721_v30 = vpop.f32.mrf.mxu1 }
 0x1dc   :  { %v2432_v1 = vpack.c.b16 %v2421_v51, %v2420_v12  ;;  %6152 = vrsqrt.f32 %v7703_v21  ;;  %v1159_v51 = vpack.c.bf16 %v967_v60, %v967_v60  ;;  %v1135_v12 = vpack.c.bf16 %v943_v19, %v943_v19 }
 0x1dd   :  { %10186 = vst [vmem:[#allocation65_spill] sm:$0xff] %v7699_v58  ;;  %v2529_v0 = vunpack.c.l.b16 %v1178_v45  ;;  %v1160_v45 = vpack.c.bf16 %v968_v27, %v968_v27  ;;  %v7712_v17 = vunpack.c.l.bf16 %v7699_v58  ;;  %v2531_v27 = vunpack.c.l.b16 %v1180_v48 }
 0x1de   :  { %v982_v32 = vmul.f32 %v6878_v42, %v7643_v46  ;;  %v2311_v48 = vunpack.c.l.b16 %v1136_v2  ;;  %v1853_v19 = vsel %vm82_vm0, %v7569_v15, 0  ;;  %vm653_vm5 = vweird.f32 %v7703_v21 }
 0x1df   :  { %v7684_v39 = vpop.permute.xlu0 %1916  ;;  %2444 = vrot.lane.b32.xlu0 %v2432_v1, %s6428_s0  ;;  %v2538_v54 = vpack.c.b16 %v2529_v0, %v2528_v28  ;;  %2336 = vrot.lane.b32.xlu2 %v2326_v33, %s6428_s0  ;;  %v2423_v50 = vunpack.c.l.b16 %v1160_v45  ;;  %v1728_v1 = vsel %vm82_vm0, %v7504_v37, 0  ;;  %v964_v28 = vmul.f32 %v6885_v14, %v7589_v5 }
 0x1e0   :  { %10182 = vst [vmem:[#allocation61_spill] sm:$0xff] %v7684_v39  ;;  %v7689_v35 = vpop.permute.xlu2 %1918  ;;  %v7717_v39 = vunpack.c.l.bf16 %v7686_v38  ;;  %v981_v33 = vmul.f32 %v6862_v23, %v7640_v16  ;;  %v1002_v45 = vmul.f32 %v6874_v41, %v7712_v17  ;;  %v963_v37 = vmul.f32 %v6866_v36, %v7586_v10 }
 0x1e1   :  { %10184 = vst [vmem:[#allocation63_spill] sm:$0xff] %v7689_v35  ;;  %v7693_v4 = vpop.permute.xlu1 %1812  ;;  %1757 = vmatpush.bf16.xpose.msra.mxu2 %v1731_v55  ;;  %v1179_v55 = vpack.c.bf16 %v987_v7, %v987_v7  ;;  %v1174_v2 = vpack.c.bf16 %v982_v32, %v982_v32  ;;  %v1156_v35 = vpack.c.bf16 %v964_v28, %v964_v28 }
 0x1e2   :  { %10185 = vst [vmem:[#allocation64_spill] sm:$0xff] %v7693_v4  ;;  %2552 = vrot.lane.b32.xlu1 %v2538_v54, %s6428_s0  ;;  %v7743_v54 = vpop.eup %6150  ;;  %v1155_v58 = vpack.c.bf16 %v963_v37, %v963_v37 }
 0x1e3   :  { %v2530_v26 = vunpack.c.l.b16 %v1179_v55  ;;  %v2422_v55 = vunpack.c.l.b16 %v1159_v51  ;;  %v7747_v15 = vpop.eup %6152  ;;  %v1173_v51 = vpack.c.bf16 %v981_v33, %v981_v33  ;;  %v2419_v28 = vunpack.c.l.b16 %v1156_v35  ;;  %v410_v33 = vpop.f32.mrf.mxu1 }
 0x1e4   :  { %v980_v35 = vmul.f32 %v6885_v14, %v7643_v46  ;;  %v648_v37 = vmul.f32 %v7747_v15, %v7703_v21  ;;  %vm644_vm1 = vweird.f32 %v7743_v54  ;;  %vm654_vm3 = vweird.f32 %v7747_v15 }
 0x1e5   :  { %vm7849_vm4 = vmor %vm643_vm2, %vm644_vm1  ;;  %v1841_v21 = vsel %vm82_vm0, %v7468_v52, 0 }
 0x1e6   :  { %vm7868_vm6 = vmor %vm653_vm5, %vm654_vm3 }
 0x1e7   :  { %v2035_v43 = vpop.permute.xlu0 %2034 }
 0x1e8   :  { %v7724_v7 = vpop.permute.xlu2 %2030  ;;  %v2061_v0 = vsel %vm82_vm0, %v2035_v43, 0  ;;  %v2539_v43 = vpack.c.b16 %v2531_v27, %v2530_v26  ;;  %v2525_v27 = vunpack.c.l.b16 %v1174_v2 }
 0x1e9   :  { %v7731_v60 = vpop.permute.xlu1 %1874  ;;  %2063 = vmatpush.bf16.xpose.msra.mxu3 %v2061_v0  ;;  %1758 = vmatpush.bf16.xpose.msra.mxu2 %v1728_v1  ;;  %v2310_v0 = vunpack.c.l.b16 %v1135_v12  ;;  %v1001_v1 = vmul.f32 %v6858_v6, %v7717_v39 }
 0x1ea   :  { %10187 = vst [vmem:[#allocation66_spill] sm:$0xff] %v7731_v60  ;;  %v2433_v60 = vpack.c.b16 %v2423_v50, %v2422_v55  ;;  %2554 = vrot.lane.b32.xlu0 %v2539_v43, %s6428_s0  ;;  %v1004_v50 = vmul.f32 %v6848_v59, %v7712_v17  ;;  %v2418_v43 = vunpack.c.l.b16 %v1155_v58 }
 0x1eb   :  { %v2325_v38 = vpack.c.b16 %v2311_v48, %v2310_v0  ;;  %v1193_v32 = vpack.c.bf16 %v1001_v1, %v1001_v1  ;;  %v983_v0 = vmul.f32 %v6860_v9, %v7640_v16 }
 0x1ec   :  { %2446 = vrot.lane.b32.xlu2 %v2433_v60, %s6428_s0  ;;  %v984_v60 = vmul.f32 %v6856_v61, %v7643_v46 }
 0x1ed   :  { %2334 = vrot.lane.b32.xlu1 %v2325_v38, %s6428_s0  ;;  %v1003_v38 = vmul.f32 %v6854_v8, %v7717_v39  ;;  %v2632_v1 = vunpack.c.l.b16 %v1193_v32  ;;  %v1172_v8 = vpack.c.bf16 %v980_v35, %v980_v35  ;;  %v1175_v32 = vpack.c.bf16 %v983_v0, %v983_v0 }
 0x1ef   :  { %v2033_v41 = vpop.permute.xlu0 %2032  ;;  %v1195_v6 = vpack.c.bf16 %v1003_v38, %v1003_v38 }
 0x1f0   :  { %v7752_v12 = vpop.permute.xlu2 %2022  ;;  %v2058_v26 = vsel %vm82_vm0, %v2033_v41, 0  ;;  %5859 = vmatmul.msk.bf16.vlgmr.msra.gmra.mxu2 %vm82_vm0, %v7390_v49  ;;  %v1850_v41 = vsel %vm82_vm0, %v7545_v62, 0  ;;  %v638_v49 = vmul.f32 %v7743_v54, %v7681_v34  ;;  %v979_v62 = vmul.f32 %v6866_v36, %v7640_v16  ;;  %v10193_v34 = vld [vmem:[#allocation34_spill] sm:$0xff] }
 0x1f1   :  { %1855 = vmatpush.bf16.xpose.msrb.mxu2 %v1853_v19  ;;  %v1194_v19 = vpack.c.bf16 %v1002_v45, %v1002_v45  ;;  %v7759_v48 = vpop.permute.xlu1 %1922  ;;  %2064 = vmatpush.bf16.xpose.msra.mxu3 %v2058_v26  ;;  %v2524_v45 = vunpack.c.l.b16 %v1173_v51  ;;  %v1196_v51 = vpack.c.bf16 %v1004_v50, %v1004_v50  ;;  %v2431_v26 = vpack.c.b16 %v2419_v28, %v2418_v43 }
 0x1f2   :  { %10188 = vst [vmem:[#allocation67_spill] sm:$0xff] %v7759_v48  ;;  %v1176_v48 = vpack.c.bf16 %v984_v60, %v984_v60  ;;  %v639_v58 = vmul.f32 %v7743_v54, %v638_v49  ;;  %v1171_v38 = vpack.c.bf16 %v979_v62, %v979_v62  ;;  %v2523_v49 = vunpack.c.l.b16 %v1172_v8 }
 0x1f3   :  { %v2633_v55 = vunpack.c.l.b16 %v1194_v19  ;;  %v2536_v2 = vpack.c.b16 %v2525_v27, %v2524_v45  ;;  %v7777_v19 = vmax.f32 %v410_v33, 1e-24  ;;  %v7783_v27 = vmax.f32 %v7721_v30, 1e-24 }
 0x1f4   :  { %2442 = vrot.lane.b32.xlu2 %v2431_v26, %s6428_s0  ;;  %v2635_v28 = vunpack.c.l.b16 %v1196_v51  ;;  %v2055_v33 = vsel %vm82_vm0, %v7724_v7, 0  ;;  %v962_v45 = vmul.f32 %v6899_v18, %v7589_v5  ;;  %v2527_v30 = vunpack.c.l.b16 %v1176_v48 }
 0x1f5   :  { %2548 = vrot.lane.b32.xlu0 %v2536_v2, %s6428_s0  ;;  %v2642_v4 = vpack.c.b16 %v2633_v55, %v2632_v1  ;;  %6154 = vrsqrt.f32 %v7777_v19  ;;  %v2634_v55 = vunpack.c.l.b16 %v1195_v6  ;;  %v961_v7 = vmul.f32 %v6890_v53, %v7586_v10 }
 0x1f6   :  { %v960_v43 = vmul.f32 %v6901_v31, %v7589_v5  ;;  %v640_v0 = vmul.f32 0.5, %v639_v58  ;;  %v2526_v48 = vunpack.c.l.b16 %v1175_v32  ;;  %v941_v6 = vmul.f32 %v6892_v11, %v7494_v3 }
 0x1f7   :  { %v2029_v50 = vpop.permute.xlu0 %2028  ;;  %2656 = vrot.lane.b32.xlu1 %v2642_v4, %s6428_s0  ;;  %v942_v4 = vmul.f32 %v6904_v29, %v7519_v13  ;;  %v2643_v1 = vpack.c.b16 %v2635_v28, %v2634_v55  ;;  %v2522_v51 = vunpack.c.l.b16 %v1171_v38  ;;  %v1154_v62 = vpack.c.bf16 %v962_v45, %v962_v45 }
 0x1f8   :  { %v7787_v60 = vpop.permute.xlu2 %2132  ;;  %v959_v8 = vmul.f32 %v6868_v40, %v7586_v10  ;;  %6156 = vrsqrt.f32 %v7783_v27  ;;  %v1153_v58 = vpack.c.bf16 %v961_v7, %v961_v7  ;;  %v1133_v28 = vpack.c.bf16 %v941_v6, %v941_v6 }
 0x1f9   :  { %1856 = vmatpush.bf16.xpose.msrb.mxu2 %v1850_v41  ;;  %v649_v41 = vmul.f32 %v7747_v15, %v648_v37  ;;  %v7794_v35 = vpop.permute.xlu1 %1978  ;;  %2065 = vmatpush.bf16.xpose.msra.mxu3 %v2055_v33  ;;  %v1847_v37 = vsel %vm82_vm0, %v7422_v22, 0  ;;  %v2537_v22 = vpack.c.b16 %v2527_v30, %v2526_v48  ;;  %v1134_v26 = vpack.c.bf16 %v942_v4, %v942_v4 }
 0x1fa   :  { %v2535_v33 = vpack.c.b16 %v2523_v49, %v2522_v51  ;;  %v2417_v55 = vunpack.c.l.b16 %v1154_v62  ;;  %v1151_v30 = vpack.c.bf16 %v959_v8, %v959_v8  ;;  %v2052_v4 = vsel %vm82_vm0, %v2029_v50, 0 }
 0x1fb   :  { %v650_v2 = vmul.f32 0.5, %v649_v41  ;;  %v1152_v41 = vpack.c.bf16 %v960_v43, %v960_v43  ;;  %v7810_v32 = vpop.eup %6154  ;;  %v2309_v48 = vunpack.c.l.b16 %v1134_v26  ;;  %v1000_v7 = vmul.f32 %v6856_v61, %v7712_v17 }
 0x1fc   :  { %2550 = vrot.lane.b32.xlu2 %v2537_v22, %s6428_s0  ;;  %v2391_v43 = vunpack.c.l.b16 %v7530_v44  ;;  %v958_v50 = vmul.f32 %v6904_v29, %v7589_v5  ;;  %v668_v51 = vmul.f32 %v7810_v32, %v7777_v19  ;;  %v2308_v62 = vunpack.c.l.b16 %v1133_v28 }
 0x1fd   :  { %2658 = vrot.lane.b32.xlu0 %v2643_v1, %s6428_s0  ;;  %v651_v45 = vsub.f32 1.5, %v650_v2  ;;  %v2416_v2 = vunpack.c.l.b16 %v1153_v58  ;;  %v2415_v6 = vunpack.c.l.b16 %v1152_v41  ;;  %v1844_v1 = vsel %vm82_vm0, %v7609_v25, 0 }
 0x1fe   :  { %v999_v8 = vmul.f32 %v6860_v9, %v7717_v39  ;;  %v7833_v44 = vpop.eup %6156  ;;  %v2414_v26 = vunpack.c.l.b16 %v1151_v30  ;;  %v957_v25 = vmul.f32 %v6892_v11, %v7586_v10  ;;  %v2324_v58 = vpack.c.b16 %v2309_v48, %v2308_v62 }
 0x1ff   :  { %v2027_v38 = vpop.permute.xlu0 %2026  ;;  %2546 = vrot.lane.b32.xlu1 %v2535_v33, %s6428_s0  ;;  %v1192_v41 = vpack.c.bf16 %v1000_v7, %v1000_v7  ;;  %v658_v30 = vmul.f32 %v7833_v44, %v7783_v27  ;;  %v2288_v7 = vunpack.c.l.b16 %v7496_v57  ;;  %vm674_vm7 = vweird.f32 %v7810_v32 }
 0x200   :  { %v7815_v13 = vpop.permute.xlu2 %2126  ;;  %v2429_v28 = vpack.c.b16 %v2415_v6, %v2414_v26  ;;  %vm673_vm8 = vweird.f32 %v7777_v19  ;;  %vm664_vm9 = vweird.f32 %v7833_v44  ;;  %vm663_vm11 = vweird.f32 %v7783_v27 }
 0x201   :  { %1857 = vmatpush.bf16.xpose.msrb.mxu2 %v1847_v37  ;;  %v641_v37 = vsub.f32 1.5, %v640_v0  ;;  %2066 = vmatpush.bf16.xpose.msra.mxu3 %v2052_v4  ;;  %v7817_v49 = vpop.permute.xlu1 %2024  ;;  %v2392_v0 = vunpack.c.l.b16 %v7532_v56  ;;  %v2430_v56 = vpack.c.b16 %v2417_v55, %v2416_v2  ;;  %v1150_v4 = vpack.c.bf16 %v958_v50, %v958_v50  ;;  %vm7924_vm10 = vmor %vm673_vm8, %vm674_vm7 }
 0x202   :  { %v652_v55 = vmul.f32 %v7747_v15, %v651_v45  ;;  %v2049_v45 = vsel %vm82_vm0, %v2027_v38, 0  ;;  %v998_v2 = vmul.f32 %v6878_v42, %v7712_v17  ;;  %v2287_v38 = vunpack.c.l.b16 %v7439_v47  ;;  %vm7946_vm12 = vmor %vm663_vm11, %vm664_vm9 }
 0x203   :  { %v7831_v22 = vpack.c.b16 %v2392_v0, %v2391_v43  ;;  %v642_v33 = vmul.f32 %v7743_v54, %v641_v37  ;;  %v669_v43 = vmul.f32 %v7810_v32, %v668_v51  ;;  %v1191_v37 = vpack.c.bf16 %v999_v8, %v999_v8 }
 0x204   :  { %2332 = vrot.lane.b32.xlu2 %v2324_v58, %s6428_s0  ;;  %v1149_v0 = vpack.c.bf16 %v957_v25, %v957_v25  ;;  %v978_v51 = vmul.f32 %v6899_v18, %v7643_v46  ;;  %v997_v8 = vmul.f32 %v6862_v23, %v7717_v39  ;;  %v659_v26 = vmul.f32 %v7833_v44, %v658_v30 }
 0x205   :  { %2440 = vrot.lane.b32.xlu0 %v2430_v56, %s6428_s0  ;;  %v646_v6 = vsel %vm7849_vm4, %v7743_v54, %v642_v33  ;;  %v2413_v54 = vunpack.c.l.b16 %v1150_v4  ;;  %v656_v56 = vsel %vm7868_vm6, %v7747_v15, %v652_v55  ;;  %v2630_v25 = vunpack.c.l.b16 %v1191_v37  ;;  %v10194_v15 = vld [vmem:[#allocation33_spill] sm:$0xff] }
 0x206   :  { %v977_v47 = vmul.f32 %v6890_v53, %v7640_v16  ;;  %v670_v33 = vmul.f32 0.5, %v669_v43  ;;  %v2289_v58 = vpack.c.b16 %v2288_v7, %v2287_v38  ;;  %v1170_v52 = vpack.c.bf16 %v978_v51, %v978_v51 }
 0x207   :  { %v7847_v48 = vpop.permute.xlu0 %2020  ;;  %2438 = vrot.lane.b32.xlu1 %v2429_v28, %s6428_s0  ;;  %v1190_v28 = vpack.c.bf16 %v998_v2, %v998_v2  ;;  %v1189_v57 = vpack.c.bf16 %v997_v8, %v997_v8  ;;  %v697_v55 = vmul.f32 %v646_v6, %v10194_v15  ;;  %v660_v30 = vmul.f32 0.5, %v659_v26 }
 0x208   :  { %v7873_v62 = vpop.permute.xlu2 %2242  ;;  %v1169_v37 = vpack.c.bf16 %v977_v47, %v977_v47  ;;  %v671_v43 = vsub.f32 1.5, %v670_v33  ;;  %v996_v2 = vmul.f32 %v6885_v14, %v7712_v17  ;;  %v976_v6 = vmul.f32 %v6901_v31, %v7643_v46 }
 0x209   :  { %1858 = vmatpush.bf16.xpose.msrb.mxu2 %v1844_v1  ;;  %v2631_v1 = vunpack.c.l.b16 %v1192_v41  ;;  %2067 = vmatpush.bf16.xpose.msra.mxu3 %v2049_v45  ;;  %v7862_v50 = vpop.permute.xlu1 %2082  ;;  %v2412_v41 = vunpack.c.l.b16 %v1149_v0  ;;  %v698_v45 = vmul.f32 %v656_v56, %v10193_v34  ;;  %v2629_v7 = vunpack.c.l.b16 %v1190_v28 }
 0x20a   :  { %v2046_v0 = vsel %vm82_vm0, %v7817_v49, 0  ;;  %v2628_v38 = vunpack.c.l.b16 %v1189_v57  ;;  %v7904_v56 = vpack.c.bf16 %v697_v55, %v697_v55  ;;  %v661_v49 = vsub.f32 1.5, %v660_v30 }
 0x20b   :  { %v2641_v4 = vpack.c.b16 %v2631_v1, %v2630_v25  ;;  %v2428_v5 = vpack.c.b16 %v2413_v54, %v2412_v41  ;;  %v2521_v1 = vunpack.c.l.b16 %v1170_v52  ;;  %v7898_v51 = vpack.c.bf16 %v698_v45, %v698_v45  ;;  %v10195_v54 = vld [vmem:[#allocation52_spill] sm:$0xff] }
 0x20c   :  { %v1838_v8 = vsel %vm82_vm0, %v10195_v54, 0  ;;  %v2520_v26 = vunpack.c.l.b16 %v1169_v37  ;;  %v975_v47 = vmul.f32 %v6868_v40, %v7640_v16  ;;  %v672_v33 = vmul.f32 %v7810_v32, %v671_v43 }
 0x20d   :  { %2290 = vrot.lane.b32.xlu0 %v2289_v58, %s6429_s2  ;;  %2654 = vrot.lane.b32.xlu2 %v2641_v4, %s6428_s0  ;;  %v2640_v58 = vpack.c.b16 %v2629_v7, %v2628_v38  ;;  %v1188_v28 = vpack.c.bf16 %v996_v2, %v996_v2  ;;  %v1168_v52 = vpack.c.bf16 %v976_v6, %v976_v6  ;;  %v7915_v45 = vunpack.c.l.bf16 %v7898_v51 }
 0x20e   :  { %v2534_v4 = vpack.c.b16 %v2521_v1, %v2520_v26  ;;  %v7920_v55 = vunpack.c.l.bf16 %v7904_v56  ;;  %v662_v30 = vmul.f32 %v7833_v44, %v661_v49  ;;  %v1167_v43 = vpack.c.bf16 %v975_v47, %v975_v47 }
 0x20f   :  { %2436 = vrot.lane.b32.xlu1 %v2428_v5, %s6428_s0  ;;  %v995_v5 = vmul.f32 %v6866_v36, %v7717_v39  ;;  %v676_v19 = vsel %vm7924_vm10, %v7810_v32, %v672_v33  ;;  %v2627_v7 = vunpack.c.l.b16 %v1188_v28  ;;  %v2043_v2 = vsel %vm82_vm0, %v7752_v12, 0 }
 0x210   :  { %v7912_v41 = vpop.permute.xlu2 %2236  ;;  %v994_v1 = vmul.f32 %v6899_v18, %v7712_v17  ;;  %v2519_v6 = vunpack.c.l.b16 %v1168_v52  ;;  %v2496_v38 = vunpack.c.l.b16 %v7616_v20  ;;  %v974_v32 = vmul.f32 %v6904_v29, %v7643_v46 }
 0x211   :  { %1859 = vmatpush.bf16.xpose.msrb.mxu2 %v1841_v21  ;;  %v7889_v21 = vpop.permute.xlu0 %2138  ;;  %2068 = vmatpush.bf16.xpose.msra.mxu3 %v2046_v0  ;;  %v7906_v25 = vpop.permute.xlu1 %2136  ;;  %v1187_v57 = vpack.c.bf16 %v995_v5, %v995_v5  ;;  %v1835_v12 = vsel %vm82_vm0, %v7662_v63, 0  ;;  %v993_v27 = vmul.f32 %v6890_v53, %v7717_v39  ;;  %v1020_v20 = vmul.f32 %v6848_v59, %v7915_v45  ;;  %v10200_v5 = vld [vmem:[#allocation36_spill] sm:$0xff] }
 0x212   :  { %v700_v49 = vmul.f32 %v676_v19, %v10200_v5  ;;  %v2518_v26 = vunpack.c.l.b16 %v1167_v43  ;;  %v973_v47 = vmul.f32 %v6892_v11, %v7640_v16  ;;  %v2495_v63 = vunpack.c.l.b16 %v7611_v24 }
 0x213   :  { %v2626_v54 = vunpack.c.l.b16 %v1187_v57  ;;  %v1186_v28 = vpack.c.bf16 %v994_v1, %v994_v1  ;;  %v1166_v37 = vpack.c.bf16 %v974_v32, %v974_v32  ;;  %v1185_v43 = vpack.c.bf16 %v993_v27, %v993_v27 }
 0x214   :  { %v2533_v57 = vpack.c.b16 %v2519_v6, %v2518_v26  ;;  %v1212_v19 = vpack.c.bf16 %v1020_v20, %v1020_v20  ;;  %v1165_v24 = vpack.c.bf16 %v973_v47, %v973_v47  ;;  %v2040_v6 = vsel %vm82_vm0, %v7847_v48, 0  ;;  %v10203_v47 = vld [vmem:[#allocation64_spill] sm:$0xff] }
 0x215   :  { %2652 = vrot.lane.b32.xlu0 %v2640_v58, %s6428_s0  ;;  %2544 = vrot.lane.b32.xlu2 %v2534_v4, %s6428_s0  ;;  %v2639_v33 = vpack.c.b16 %v2627_v7, %v2626_v54  ;;  %v10201_v4 = vld [vmem:[#allocation37_spill] sm:$0xff]  ;;  %v7971_v7 = vpack.c.bf16 %v700_v49, %v700_v49  ;;  %v2625_v1 = vunpack.c.l.b16 %v1186_v28  ;;  %v990_v32 = vmul.f32 %v6904_v29, %v7712_v17 }
 0x216   :  { %v1019_v52 = vmul.f32 %v10201_v4, %v7920_v55  ;;  %v2269_v27 = vsel %vm82_vm0, %v7873_v62, 0  ;;  %v992_v20 = vmul.f32 %v6901_v31, %v7712_v17  ;;  %v2624_v49 = vunpack.c.l.b16 %v1185_v43  ;;  %v10204_v28 = vld [vmem:[#allocation57_spill] sm:$0xff] }
 0x217   :  { %2394 = vrot.lane.b32.xlu1 %v7831_v22, %s6429_s2  ;;  %v2739_v26 = vunpack.c.l.b16 %v1212_v19  ;;  %v1832_v48 = vsel %vm82_vm0, %v10203_v47, 0  ;;  %v1957_v62 = vsel %vm82_vm0, %v10204_v28, 0  ;;  %v1182_v43 = vpack.c.bf16 %v990_v32, %v990_v32 }
 0x218   :  { %v1211_v54 = vpack.c.bf16 %v1019_v52, %v1019_v52  ;;  %v2516_v52 = vunpack.c.l.b16 %v1165_v24  ;;  %v1015_v19 = vmul.f32 %v6860_v9, %v7920_v55 }
 0x219   :  { %1860 = vmatpush.bf16.xpose.msrb.mxu2 %v1838_v8  ;;  %v7934_v0 = vpop.permute.xlu0 %2130  ;;  %2069 = vmatpush.bf16.xpose.msra.mxu3 %v2043_v2  ;;  %v666_v8 = vsel %vm7946_vm12, %v7833_v44, %v662_v30  ;;  %v7963_v58 = vpop.permute.xlu1 %2134  ;;  %v2497_v30 = vpack.c.b16 %v2496_v38, %v2495_v63  ;;  %v10202_v2 = vld [vmem:[#allocation35_spill] sm:$0xff]  ;;  %v2517_v38 = vunpack.c.l.b16 %v1166_v37  ;;  %v2638_v37 = vpack.c.b16 %v2625_v1, %v2624_v49 }
 0x21a   :  { %v7968_v44 = vpop.permute.xlu2 %2230  ;;  %v699_v22 = vmul.f32 %v666_v8, %v10202_v2  ;;  %v989_v8 = vmul.f32 %v6892_v11, %v7717_v39 }
 0x21c   :  { %v7991_v63 = vpack.c.bf16 %v699_v22, %v699_v22  ;;  %v1181_v47 = vpack.c.bf16 %v989_v8, %v989_v8  ;;  %v8000_v22 = vunpack.c.l.bf16 %v7971_v7  ;;  %v10207_v8 = vld [vmem:[#allocation40_spill] sm:$0xff] }
 0x21d   :  { %2650 = vrot.lane.b32.xlu0 %v2639_v33, %s6428_s0  ;;  %2542 = vrot.lane.b32.xlu2 %v2533_v57, %s6428_s0  ;;  %v1016_v33 = vmul.f32 %v6856_v61, %v7915_v45  ;;  %v991_v57 = vmul.f32 %v6868_v40, %v7717_v39  ;;  %v1018_v49 = vmul.f32 %v10207_v8, %v7915_v45 }
 0x21e   :  { %10205 = vst [vmem:[#allocation52_spill] sm:$0xff] %v8000_v22 }
 0x21f   :  { %2498 = vrot.lane.b32.xlu1 %v2497_v30, %s6429_s2  ;;  %v2738_v30 = vunpack.c.l.b16 %v1211_v54  ;;  %v1208_v28 = vpack.c.bf16 %v1016_v33, %v1016_v33  ;;  %v1183_v1 = vpack.c.bf16 %v991_v57, %v991_v57  ;;  %v8007_v54 = vunpack.c.l.bf16 %v7991_v63 }
 0x221   :  { %1861 = vmatpush.bf16.xpose.msrb.mxu2 %v1835_v12  ;;  %v7979_v12 = vpop.permute.xlu0 %2124  ;;  %2070 = vmatpush.bf16.xpose.msra.mxu3 %v2040_v6  ;;  %v2532_v6 = vpack.c.b16 %v2517_v38, %v2516_v52  ;;  %v2747_v24 = vpack.c.b16 %v2739_v26, %v2738_v30  ;;  %10206 = vst [vmem:[#allocation37_spill] sm:$0xff] %v8007_v54  ;;  %v2621_v38 = vunpack.c.l.b16 %v1182_v43  ;;  %v2735_v57 = vunpack.c.l.b16 %v1208_v28  ;;  %v10209_v43 = vld [vmem:[#allocation38_spill] sm:$0xff] }
 0x222   :  { %v2347_v32 = vpop.permute.xlu2 %2346  ;;  %v1210_v28 = vpack.c.bf16 %v1018_v49, %v1018_v49  ;;  %v10211_v49 = vld [vmem:[#allocation65_spill] sm:$0xff] }
 0x223   :  { %v2373_v26 = vsel %vm82_vm0, %v2347_v32, 0 }
 0x224   :  { %2375 = vmatpush.bf16.xpose.msrb.mxu0 %v2373_v26  ;;  %v1033_v26 = vmul.f32 %v10209_v43, %v8007_v54 }
 0x225   :  { %2648 = vrot.lane.b32.xlu0 %v2638_v37, %s6428_s0  ;;  %2540 = vrot.lane.b32.xlu2 %v2532_v6, %s6428_s0  ;;  %v10208_v37 = vld [vmem:[#allocation54_spill] sm:$0xff]  ;;  %v2622_v6 = vunpack.c.l.b16 %v1183_v1 }
 0x227   :  { %2762 = vrot.lane.b32.xlu1 %v2747_v24, %s6428_s0  ;;  %v10210_v24 = vld [vmem:[#allocation59_spill] sm:$0xff] }
 0x228   :  { %5862 = vmatmul.msk.bf16.vlgmr.msra.gmra.mxu3 %vm82_vm0, %v7794_v35  ;;  %v1034_v35 = vmul.f32 %v10207_v8, %v8000_v22  ;;  %v2737_v8 = vunpack.c.l.b16 %v1210_v28 }
 0x229   :  { %2271 = vmatpush.bf16.xpose.msrb.mxu3 %v2269_v27  ;;  %1862 = vmatpush.bf16.xpose.msrb.mxu2 %v1832_v48  ;;  %v1184_v27 = vpack.c.bf16 %v992_v20, %v992_v20  ;;  %v8003_v48 = vpop.permute.xlu1 %2128  ;;  %v1207_v20 = vpack.c.bf16 %v1015_v19, %v1015_v19  ;;  %v2241_v52 = vpop.permute.xlu0 %2240  ;;  %v1017_v19 = vmul.f32 %v10209_v43, %v7920_v55 }
 0x22a   :  { %v2266_v30 = vsel %vm82_vm0, %v2241_v52, 0  ;;  %v1226_v2 = vpack.c.bf16 %v1034_v35, %v1034_v35 }
 0x22b   :  { %v2623_v33 = vunpack.c.l.b16 %v1184_v27  ;;  %v1954_v27 = vsel %vm82_vm0, %v10210_v24, 0  ;;  %v2734_v32 = vunpack.c.l.b16 %v1207_v20  ;;  %v1209_v5 = vpack.c.bf16 %v1017_v19, %v1017_v19  ;;  %v8031_v20 = vpop.permute.xlu2 %2340  ;;  %v10212_v24 = vld [vmem:[#allocation62_spill] sm:$0xff] }
 0x22c   :  { %v2841_v19 = vunpack.c.l.b16 %v1226_v2 }
 0x22d   :  { %v2745_v52 = vpack.c.b16 %v2735_v57, %v2734_v32  ;;  %v1036_v57 = vmul.f32 %v6848_v59, %v8000_v22  ;;  %v2736_v43 = vunpack.c.l.b16 %v1209_v5  ;;  %v10213_v32 = vld [vmem:[#allocation55_spill] sm:$0xff]  ;;  %v1009_v5 = vmul.f32 %v6890_v53, %v7920_v55 }
 0x22e   :  { %v1951_v28 = vsel %vm82_vm0, %v10213_v32, 0 }
 0x22f   :  { %2758 = vrot.lane.b32.xlu1 %v2745_v52, %s6428_s0 }
 0x230   :  { %5860 = vmatmul.msk.bf16.vlgmr.msrb.gmra.mxu2 %vm82_vm0, %v10208_v37  ;;  %v2637_v37 = vpack.c.b16 %v2623_v33, %v2622_v6  ;;  %v1013_v33 = vmul.f32 %v6862_v23, %v7920_v55  ;;  %v1010_v6 = vmul.f32 %v6899_v18, %v7915_v45 }
 0x231   :  { %1959 = vmatpush.bf16.xpose.msra.mxu2 %v1957_v62  ;;  %v2620_v62 = vunpack.c.l.b16 %v1181_v47  ;;  %2272 = vmatpush.bf16.xpose.msrb.mxu3 %v2266_v30  ;;  %v2239_v1 = vpop.permute.xlu1 %2238  ;;  %v1225_v30 = vpack.c.bf16 %v1033_v26, %v1033_v26  ;;  %v1035_v26 = vmul.f32 %v10201_v4, %v8007_v54 }
 0x232   :  { %2646 = vrot.lane.b32.xlu2 %v2637_v37, %s6428_s0  ;;  %v2263_v35 = vsel %vm82_vm0, %v2239_v1, 0  ;;  %v2746_v37 = vpack.c.b16 %v2737_v8, %v2736_v43  ;;  %v1205_v1 = vpack.c.bf16 %v1013_v33, %v1013_v33  ;;  %v1201_v8 = vpack.c.bf16 %v1009_v5, %v1009_v5 }
 0x233   :  { %v2636_v47 = vpack.c.b16 %v2621_v38, %v2620_v62  ;;  %v1014_v38 = vmul.f32 %v6878_v42, %v7915_v45  ;;  %v2600_v62 = vunpack.c.l.b16 %v10211_v49  ;;  %v2840_v52 = vunpack.c.l.b16 %v1225_v30 }
 0x234   :  { %v1228_v49 = vpack.c.bf16 %v1036_v57, %v1036_v57  ;;  %v1227_v32 = vpack.c.bf16 %v1035_v26, %v1035_v26  ;;  %v1032_v30 = vmul.f32 %v6856_v61, %v8000_v22  ;;  %v2260_v57 = vsel %vm82_vm0, %v7912_v41, 0 }
 0x235   :  { %2644 = vrot.lane.b32.xlu0 %v2636_v47, %s6428_s0  ;;  %v2235_v47 = vpop.permute.xlu0 %2234  ;;  %v1206_v59 = vpack.c.bf16 %v1014_v38, %v1014_v38  ;;  %v2451_v38 = vpop.permute.xlu2 %2450  ;;  %v1028_v61 = vmul.f32 %v6885_v14, %v8000_v22 }
 0x236   :  { %v2843_v33 = vunpack.c.l.b16 %v1228_v49  ;;  %v2842_v26 = vunpack.c.l.b16 %v1227_v32 }
 0x237   :  { %v2733_v4 = vunpack.c.l.b16 %v1206_v59  ;;  %v1011_v59 = vmul.f32 %v6866_v36, %v7920_v55  ;;  %v1220_v32 = vpack.c.bf16 %v1028_v61, %v1028_v61 }
 0x238   :  { %v2851_v49 = vpack.c.b16 %v2843_v33, %v2842_v26  ;;  %v1030_v33 = vmul.f32 %v6878_v42, %v8000_v22  ;;  %v10215_v26 = vld [vmem:[#allocation67_spill] sm:$0xff] }
 0x239   :  { %1960 = vmatpush.bf16.xpose.msra.mxu2 %v1954_v27  ;;  %v2599_v27 = vunpack.c.l.b16 %v10212_v24  ;;  %2273 = vmatpush.bf16.xpose.msrb.mxu3 %v2263_v35  ;;  %v2850_v24 = vpack.c.b16 %v2841_v19, %v2840_v52  ;;  %v1202_v35 = vpack.c.bf16 %v1010_v6, %v1010_v6  ;;  %v8053_v43 = vpop.permute.xlu1 %2232  ;;  %v1012_v19 = vmul.f32 %v6885_v14, %v7915_v45  ;;  %v10214_v52 = vld [vmem:[#allocation58_spill] sm:$0xff] }
 0x23a   :  { %v2477_v6 = vsel %vm82_vm0, %v2451_v38, 0  ;;  %v1948_v41 = vsel %vm82_vm0, %v10214_v52, 0  ;;  %v1203_v38 = vpack.c.bf16 %v1011_v59, %v1011_v59  ;;  %v1945_v52 = vsel %vm82_vm0, %v10215_v26, 0 }
 0x23b   :  { %v2601_v2 = vpack.c.b16 %v2600_v62, %v2599_v27  ;;  %2864 = vrot.lane.b32.xlu1 %v2850_v24, %s6428_s0  ;;  %v2732_v62 = vunpack.c.l.b16 %v1205_v1  ;;  %v2729_v27 = vunpack.c.l.b16 %v1202_v35  ;;  %2479 = vmatpush.bf16.xpose.msra.mxu1 %v2477_v6  ;;  %v1224_v1 = vpack.c.bf16 %v1032_v30, %v1032_v30 }
 0x23c   :  { %v1204_v14 = vpack.c.bf16 %v1012_v19, %v1012_v19  ;;  %v2835_v6 = vunpack.c.l.b16 %v1220_v32  ;;  %v2730_v61 = vunpack.c.l.b16 %v1203_v38  ;;  %v2703_v26 = vunpack.c.l.b16 %v7904_v56 }
 0x23d   :  { %2760 = vrot.lane.b32.xlu0 %v2746_v37, %s6428_s0  ;;  %2602 = vrot.lane.b32.xlu2 %v2601_v2, %s6429_s2  ;;  %v8064_v37 = vpop.permute.xlu0 %2228  ;;  %v2744_v5 = vpack.c.b16 %v2733_v4, %v2732_v62  ;;  %v2728_v2 = vunpack.c.l.b16 %v1201_v8  ;;  %v1008_v8 = vmul.f32 %v6901_v31, %v7915_v45  ;;  %v8077_v30 = vpop.permute.xlu2 %2336  ;;  %v1022_v56 = vmul.f32 %v6904_v29, %v8000_v22 }
 0x23e   :  { %v2731_v62 = vunpack.c.l.b16 %v1204_v14 }
 0x23f   :  { %v2742_v24 = vpack.c.b16 %v2729_v27, %v2728_v2  ;;  %v2257_v27 = vsel %vm82_vm0, %v2235_v47, 0  ;;  %v1200_v2 = vpack.c.bf16 %v1008_v8, %v1008_v8 }
 0x240   :  { %v2743_v42 = vpack.c.b16 %v2731_v62, %v2730_v61  ;;  %v2704_v62 = vunpack.c.l.b16 %v7898_v51 }
 0x241   :  { %1961 = vmatpush.bf16.xpose.msra.mxu2 %v1951_v28  ;;  %v1031_v28 = vmul.f32 %v6860_v9, %v8007_v54  ;;  %2274 = vmatpush.bf16.xpose.msrb.mxu3 %v2260_v57  ;;  %v1027_v9 = vmul.f32 %v6866_v36, %v8007_v54  ;;  %v2839_v57 = vunpack.c.l.b16 %v1224_v1  ;;  %v2343_v36 = vpop.permute.xlu1 %2342 }
 0x243   :  { %v1223_v35 = vpack.c.bf16 %v1031_v28, %v1031_v28  ;;  %2752 = vrot.lane.b32.xlu1 %v2742_v24, %s6428_s0  ;;  %v1219_v4 = vpack.c.bf16 %v1027_v9, %v1027_v9  ;;  %v1007_v28 = vmul.f32 %v6868_v40, %v7920_v55  ;;  %v1222_v9 = vpack.c.bf16 %v1030_v33, %v1030_v33 }
 0x244   :  { %v2254_v33 = vsel %vm82_vm0, %v8053_v43, 0  ;;  %v2705_v43 = vpack.c.b16 %v2704_v62, %v2703_v26  ;;  %v2807_v62 = vunpack.c.l.b16 %v7991_v63 }
 0x245   :  { %2756 = vrot.lane.b32.xlu0 %v2744_v5, %s6428_s0  ;;  %2866 = vrot.lane.b32.xlu2 %v2851_v49, %s6428_s0  ;;  %v2838_v19 = vunpack.c.l.b16 %v1223_v35  ;;  %v2834_v5 = vunpack.c.l.b16 %v1219_v4  ;;  %v2345_v1 = vpop.permute.xlu0 %2344  ;;  %v1199_v14 = vpack.c.bf16 %v1007_v28, %v1007_v28  ;;  %v1026_v35 = vmul.f32 %v6899_v18, %v8000_v22 }
 0x246   :  { %v2370_v49 = vsel %vm82_vm0, %v2345_v1, 0  ;;  %v2447_v32 = vpop.permute.xlu2 %2446  ;;  %v2837_v38 = vunpack.c.l.b16 %v1222_v9  ;;  %v1005_v28 = vmul.f32 %v6892_v11, %v7920_v55 }
 0x247   :  { %v2849_v59 = vpack.c.b16 %v2839_v57, %v2838_v19  ;;  %v2847_v47 = vpack.c.b16 %v2835_v6, %v2834_v5  ;;  %2376 = vmatpush.bf16.xpose.msrb.mxu0 %v2370_v49  ;;  %v1006_v57 = vmul.f32 %v6904_v29, %v7915_v45  ;;  %v2726_v8 = vunpack.c.l.b16 %v1199_v14 }
 0x248   :  { %v1025_v19 = vmul.f32 %v6890_v53, %v8007_v54  ;;  %v2367_v53 = vsel %vm82_vm0, %v2343_v36, 0  ;;  %v1197_v5 = vpack.c.bf16 %v1005_v28, %v1005_v28  ;;  %v1024_v36 = vmul.f32 %v6901_v31, %v8000_v22 }
 0x249   :  { %1962 = vmatpush.bf16.xpose.msra.mxu2 %v1948_v41  ;;  %2275 = vmatpush.bf16.xpose.msrb.mxu3 %v2257_v27  ;;  %v1029_v41 = vmul.f32 %v6862_v23, %v8007_v54  ;;  %v2727_v23 = vunpack.c.l.b16 %v1200_v2  ;;  %v8096_v4 = vpop.permute.xlu1 %2338  ;;  %v10216_v27 = vld [vmem:[#allocation60_spill] sm:$0xff]  ;;  %v2471_v28 = vsel %vm82_vm0, %v2447_v32, 0 }
 0x24a   :  { %v1942_v18 = vsel %vm82_vm0, %v10216_v27, 0  ;;  %v2724_v29 = vunpack.c.l.b16 %v1197_v5  ;;  %v2361_v32 = vsel %vm82_vm0, %v8096_v4, 0  ;;  %v2162_v4 = vsel %vm82_vm0, %v7906_v25, 0 }
 0x24b   :  { %v1221_v24 = vpack.c.bf16 %v1029_v41, %v1029_v41  ;;  %2858 = vrot.lane.b32.xlu1 %v2847_v47, %s6428_s0  ;;  %v2741_v61 = vpack.c.b16 %v2727_v23, %v2726_v8  ;;  %v1198_v41 = vpack.c.bf16 %v1006_v57, %v1006_v57  ;;  %v2251_v23 = vsel %vm82_vm0, %v7968_v44, 0 }
 0x24c   :  { %v1023_v8 = vmul.f32 %v6868_v40, %v8007_v54 }
 0x24d   :  { %2862 = vrot.lane.b32.xlu0 %v2849_v59, %s6428_s0  ;;  %2754 = vrot.lane.b32.xlu2 %v2743_v42, %s6428_s0  ;;  %v2836_v6 = vunpack.c.l.b16 %v1221_v24  ;;  %v1217_v59 = vpack.c.bf16 %v1025_v19, %v1025_v19  ;;  %v2449_v2 = vpop.permute.xlu0 %2448  ;;  %v2725_v47 = vunpack.c.l.b16 %v1198_v41  ;;  %v2808_v24 = vunpack.c.l.b16 %v7971_v7  ;;  %v10218_v41 = vld [vmem:[#allocation61_spill] sm:$0xff] }
 0x24e   :  { %v8114_v1 = vpop.permute.xlu2 %2442  ;;  %v2474_v9 = vsel %vm82_vm0, %v2449_v2, 0  ;;  %v1216_v19 = vpack.c.bf16 %v1024_v36, %v1024_v36  ;;  %v1215_v27 = vpack.c.bf16 %v1023_v8, %v1023_v8  ;;  %v10219_v2 = vld [vmem:[#allocation6_spill] sm:$0xff]  ;;  %v2358_v36 = vsel %vm82_vm0, %v8077_v30, 0  ;;  %v10224_v30 = vld [vmem:[#allocation15_spill] sm:$0xff] }
 0x24f   :  { %v2848_v51 = vpack.c.b16 %v2837_v38, %v2836_v6  ;;  %2377 = vmatpush.bf16.xpose.msrb.mxu0 %v2367_v53  ;;  %2480 = vmatpush.bf16.xpose.msra.mxu1 %v2474_v9  ;;  %v2832_v14 = vunpack.c.l.b16 %v1217_v59  ;;  %v10217_v38 = vld [vmem:[#allocation63_spill] sm:$0xff]  ;;  %v2740_v7 = vpack.c.b16 %v2725_v47, %v2724_v29  ;;  %v2809_v44 = vpack.c.b16 %v2808_v24, %v2807_v62  ;;  %v10220_v9 = vld [vmem:[#allocation66_spill] sm:$0xff]  ;;  %v10221_v47 = vld [vmem:[#allocation8_spill] sm:$0xff] }
 0x250   :  { %v1939_v57 = vsel %vm82_vm0, %v10217_v38, 0  ;;  %v2165_v53 = vsel %vm82_vm0, %v7889_v21, 0  ;;  %v2465_v25 = vsel %vm82_vm0, %v8114_v1, 0  ;;  %v2159_v29 = vsel %vm82_vm0, %v7963_v58, 0 }
 0x251   :  { %1963 = vmatpush.bf16.xpose.msra.mxu2 %v1945_v52  ;;  %2276 = vmatpush.bf16.xpose.msrb.mxu3 %v2254_v33  ;;  %v1218_v52 = vpack.c.bf16 %v1026_v35, %v1026_v35  ;;  %v2187_v49 = vpop.permute.xlu1 %2186  ;;  %v1021_v35 = vmul.f32 %v6892_v11, %v8007_v54  ;;  %v1214_v33 = vpack.c.bf16 %v1022_v56, %v1022_v56  ;;  %v2364_v11 = vsel %vm82_vm0, %v8031_v20, 0 }
 0x252   :  { %v2248_v20 = vsel %vm82_vm0, %v8064_v37, 0  ;;  %v2156_v58 = vsel %vm82_vm0, %v7787_v60, 0 }
 0x253   :  { %2706 = vrot.lane.b32.xlu1 %v2705_v43, %s6429_s2  ;;  %v2833_v42 = vunpack.c.l.b16 %v1218_v52  ;;  %v1213_v6 = vpack.c.bf16 %v1021_v35, %v1021_v35  ;;  %v2829_v40 = vunpack.c.l.b16 %v1214_v33  ;;  %v1936_v43 = vsel %vm82_vm0, %v10218_v41, 0  ;;  %v10226_v33 = vld [vmem:[#allocation12_spill] sm:$0xff] }
 0x255   :  { %2750 = vrot.lane.b32.xlu0 %v2741_v61, %s6428_s0  ;;  %2860 = vrot.lane.b32.xlu2 %v2848_v51, %s6428_s0  ;;  %v2846_v31 = vpack.c.b16 %v2833_v42, %v2832_v14  ;;  %v2831_v61 = vunpack.c.l.b16 %v1216_v19  ;;  %v2828_v52 = vunpack.c.l.b16 %v1213_v6  ;;  %v2830_v51 = vunpack.c.l.b16 %v1215_v27  ;;  %v10222_v14 = vld [vmem:[#allocation5_spill] sm:$0xff]  ;;  %v10227_v19 = vld [vmem:[#allocation11_spill] sm:$0xff] }
 0x256   :  { %v8134_v63 = vpop.permute.xlu2 %2550 }
 0x257   :  { %2378 = vmatpush.bf16.xpose.msrb.mxu0 %v2364_v11  ;;  %2481 = vmatpush.bf16.xpose.msra.mxu1 %v2471_v28  ;;  %v2844_v59 = vpack.c.b16 %v2829_v40, %v2828_v52  ;;  %v2845_v5 = vpack.c.b16 %v2831_v61, %v2830_v51  ;;  %v2150_v51 = vsel %vm82_vm0, %v8003_v48, 0 }
 0x259   :  { %1964 = vmatpush.bf16.xpose.msra.mxu2 %v1942_v18  ;;  %2277 = vmatpush.bf16.xpose.msrb.mxu3 %v2251_v23  ;;  %v2445_v18 = vpop.permute.xlu0 %2444  ;;  %v8137_v26 = vpop.permute.xlu1 %2552 }
 0x25a   :  { %v2468_v21 = vsel %vm82_vm0, %v2445_v18, 0  ;;  %v2153_v18 = vsel %vm82_vm0, %v7934_v0, 0 }
 0x25b   :  { %2810 = vrot.lane.b32.xlu1 %v2809_v44, %s6429_s2 }
 0x25d   :  { %2856 = vrot.lane.b32.xlu0 %v2846_v31, %s6428_s0  ;;  %2748 = vrot.lane.b32.xlu2 %v2740_v7, %s6428_s0 }
 0x25e   :  { %v2333_v42 = vpop.permute.xlu2 %2332 }
 0x25f   :  { %2379 = vmatpush.bf16.xpose.msrb.mxu0 %v2361_v32  ;;  %2482 = vmatpush.bf16.xpose.msra.mxu1 %v2468_v21  ;;  %v2352_v7 = vsel %vm82_vm0, %v2333_v42, 0  ;;  %v2144_v21 = vsel %vm82_vm0, %v7979_v12, 0  ;;  %v2578_v12 = vsel %vm82_vm0, %v8137_v26, 0 }
 0x261   :  { %1965 = vmatpush.bf16.xpose.msra.mxu2 %v1939_v57  ;;  %2278 = vmatpush.bf16.xpose.msrb.mxu3 %v2248_v20  ;;  %v8149_v37 = vpop.permute.xlu0 %2554  ;;  %v2335_v56 = vpop.permute.xlu1 %2334  ;;  %v10225_v57 = vld [vmem:[#allocation9_spill] sm:$0xff] }
 0x262   :  { %v2355_v38 = vsel %vm82_vm0, %v2335_v56, 0  ;;  %v2581_v56 = vsel %vm82_vm0, %v8149_v37, 0 }
 0x263   :  { %6068 = vrot.lane.b32.xlu1 %v10219_v2, %s6429_s2 }
 0x265   :  { %2852 = vrot.lane.b32.xlu0 %v2844_v59, %s6428_s0  ;;  %2854 = vrot.lane.b32.xlu2 %v2845_v5, %s6428_s0  ;;  %v2147_v5 = vsel %vm82_vm0, %v7815_v13, 0 }
 0x267   :  { %2380 = vmatpush.bf16.xpose.msrb.mxu0 %v2358_v36  ;;  %v2655_v23 = vpop.permute.xlu2 %2654  ;;  %2483 = vmatpush.bf16.xpose.msra.mxu1 %v2465_v25 }
 0x268   :  { %5864 = vmatmul.msk.bf16.vlgmr.msrb.gmra.mxu3 %vm82_vm0, %v2187_v49  ;;  %v10223_v49 = vld [vmem:[#allocation17_spill] sm:$0xff]  ;;  %v2679_v52 = vsel %vm82_vm0, %v2655_v23, 0 }
 0x269   :  { %1966 = vmatpush.bf16.xpose.msra.mxu2 %v1936_v43  ;;  %v8165_v24 = vpop.permute.xlu0 %2548  ;;  %v2657_v35 = vpop.permute.xlu1 %2656 }
 0x26a   :  { %v2682_v27 = vsel %vm82_vm0, %v2657_v35, 0  ;;  %v2575_v35 = vsel %vm82_vm0, %v8134_v63, 0 }
 0x26b   :  { %6083 = vrot.lane.b32.xlu1 %v10223_v49, %s6429_s2 }
 0x26d   :  { %6063 = vrot.lane.b32.xlu0 %v10221_v47, %s6429_s2  ;;  %6058 = vrot.lane.b32.xlu2 %v10222_v14, %s6429_s2 }
 0x26f   :  { %2381 = vmatpush.bf16.xpose.msrb.mxu0 %v2355_v38  ;;  %v8179_v62 = vpop.permute.xlu2 %2544 }
 0x270   :  { %5861 = vmatmul.msk.bf16.vlgmr.msra.gmra.mxu2 %vm82_vm0, %v10220_v9 }
 0x271   :  { %2167 = vmatpush.bf16.xpose.msrb.mxu2 %v2165_v53  ;;  %v2659_v8 = vpop.permute.xlu0 %2658  ;;  %v8181_v1 = vpop.permute.xlu1 %2546 }
 0x272   :  { %v2685_v31 = vsel %vm82_vm0, %v2659_v8, 0  ;;  %v2572_v8 = vsel %vm82_vm0, %v8165_v24, 0 }
 0x273   :  { %2687 = vmatpush.bf16.xpose.msra.mxu3 %v2685_v31 }
 0x275   :  { %6078 = vrot.lane.b32.xlu0 %v10224_v30, %s6429_s2  ;;  %6073 = vrot.lane.b32.xlu2 %v10225_v57, %s6429_s2 }
 0x277   :  { %2382 = vmatpush.bf16.xpose.msrb.mxu0 %v2352_v7  ;;  %v8190_v11 = vpop.permute.xlu2 %2542  ;;  %v2569_v7 = vsel %vm82_vm0, %v8181_v1, 0 }
 0x279   :  { %2168 = vmatpush.bf16.xpose.msrb.mxu2 %v2162_v4  ;;  %v2441_v44 = vpop.permute.xlu0 %2440  ;;  %v2439_v60 = vpop.permute.xlu1 %2438 }
 0x27a   :  { %v2462_v6 = vsel %vm82_vm0, %v2441_v44, 0  ;;  %v2459_v61 = vsel %vm82_vm0, %v2439_v60, 0  ;;  %v2566_v60 = vsel %vm82_vm0, %v8179_v62, 0 }
 0x27b   :  { %2484 = vmatpush.bf16.xpose.msra.mxu1 %v2462_v6  ;;  %2688 = vmatpush.bf16.xpose.msra.mxu3 %v2682_v27 }
 0x27d   :  { %6093 = vrot.lane.b32.xlu0 %v10226_v33, %s6429_s2  ;;  %6088 = vrot.lane.b32.xlu2 %v10227_v19, %s6429_s2 }
 0x27f   :  { %v8196_v28 = vpop.permute.xlu2 %2540 }
 0x281   :  { %2169 = vmatpush.bf16.xpose.msrb.mxu2 %v2159_v29  ;;  %v2291_v40 = vpop.permute.xlu0 %2290  ;;  %v2437_v20 = vpop.permute.xlu1 %2436 }
 0x282   :  { %5865 = vmatmul.msk.bf16.vlgmr.msrb.gmra.mxu0 %vm82_vm0, %v2291_v40  ;;  %v2456_v0 = vsel %vm82_vm0, %v2437_v20, 0 }
 0x283   :  { %2485 = vmatpush.bf16.xpose.msra.mxu1 %v2459_v61  ;;  %2689 = vmatpush.bf16.xpose.msra.mxu3 %v2679_v52 }
 0x289   :  { %2170 = vmatpush.bf16.xpose.msrb.mxu2 %v2156_v58  ;;  %v2653_v41 = vpop.permute.xlu0 %2652  ;;  %v2395_v59 = vpop.permute.xlu1 %2394 }
 0x28a   :  { %v2676_v53 = vsel %vm82_vm0, %v2653_v41, 0  ;;  %v10228_v41 = vld [vmem:[#allocation39_spill] sm:$0xff] }
 0x28b   :  { %2486 = vmatpush.bf16.xpose.msra.mxu1 %v2456_v0  ;;  %2690 = vmatpush.bf16.xpose.msra.mxu3 %v2676_v53  ;;  %v10229_v0 = vld [vmem:[#allocation41_spill] sm:$0xff]  ;;  %v2563_v53 = vsel %vm82_vm0, %v8190_v11, 0 }
 0x28c   :  { %v2647_v43 = vpop.permute.xlu2 %2646 }
 0x28d   :  { %v2667_v23 = vsel %vm82_vm0, %v2647_v43, 0 }
 0x291   :  { %2171 = vmatpush.bf16.xpose.msrb.mxu2 %v2153_v18  ;;  %v2651_v32 = vpop.permute.xlu0 %2650  ;;  %v8209_v42 = vpop.permute.xlu1 %2498 }
 0x292   :  { %5866 = vmatmul.msk.bf16.vlgmr.msra.gmra.mxu1 %vm82_vm0, %v2395_v59  ;;  %v2673_v48 = vsel %vm82_vm0, %v2651_v32, 0 }
 0x293   :  { %2691 = vmatpush.bf16.xpose.msra.mxu3 %v2673_v48 }
 0x297   :  { %v2603_v2 = vpop.permute.xlu2 %2602 }
 0x299   :  { %2172 = vmatpush.bf16.xpose.msrb.mxu2 %v2150_v51  ;;  %v2649_v9 = vpop.permute.xlu0 %2648  ;;  %v2763_v36 = vpop.permute.xlu1 %2762 }
 0x29a   :  { %v2670_v4 = vsel %vm82_vm0, %v2649_v9, 0  ;;  %v2789_v14 = vsel %vm82_vm0, %v2763_v36, 0 }
 0x29b   :  { %2692 = vmatpush.bf16.xpose.msra.mxu3 %v2670_v4  ;;  %2791 = vmatpush.bf16.xpose.msra.mxu0 %v2789_v14  ;;  %v5966_v14 = vld [vmem:[%s9992_s4 + $0x38] sm:$0xff] }
 0x29f   :  { %v2867_v13 = vpop.permute.xlu2 %2866 }
 0x2a0   :  { %v2893_v47 = vsel %vm82_vm0, %v2867_v13, 0 }
 0x2a1   :  { %2173 = vmatpush.bf16.xpose.msrb.mxu2 %v2147_v5  ;;  %2895 = vmatpush.bf16.xpose.msrb.mxu1 %v2893_v47  ;;  %v2759_v25 = vpop.permute.xlu1 %2758 }
 0x2a2   :  { %v2783_v63 = vsel %vm82_vm0, %v2759_v25, 0 }
 0x2a3   :  { %2693 = vmatpush.bf16.xpose.msra.mxu3 %v2667_v23 }
 0x2a7   :  { %v2645_v37 = vpop.permute.xlu0 %2644  ;;  %v2755_v49 = vpop.permute.xlu2 %2754 }
 0x2a8   :  { %v2664_v38 = vsel %vm82_vm0, %v2645_v37, 0  ;;  %v2777_v61 = vsel %vm82_vm0, %v2755_v49, 0  ;;  %v2560_v49 = vsel %vm82_vm0, %v8196_v28, 0 }
 0x2a9   :  { %2174 = vmatpush.bf16.xpose.msrb.mxu2 %v2144_v21  ;;  %v1760_v21 = vpop.f32.mrf.mxu2 }
 0x2ab   :  { %2694 = vmatpush.bf16.xpose.msra.mxu3 %v2664_v38 }
 0x2ad   :  { %v2865_v26 = vpop.permute.xlu1 %2864 }
 0x2ae   :  { %v2890_v57 = vsel %vm82_vm0, %v2865_v26, 0 }
 0x2af   :  { %v2761_v29 = vpop.permute.xlu0 %2760  ;;  %v2861_v30 = vpop.permute.xlu2 %2860  ;;  %2896 = vmatpush.bf16.xpose.msrb.mxu1 %v2890_v57 }
 0x2b0   :  { %5863 = vmatmul.msk.bf16.vlgmr.msrb.gmra.mxu2 %vm82_vm0, %v7862_v50  ;;  %v2786_v50 = vsel %vm82_vm0, %v2761_v29, 0  ;;  %v2884_v1 = vsel %vm82_vm0, %v2861_v30, 0  ;;  %v10231_v30 = vld [vmem:[#allocation43_spill] sm:$0xff] }
 0x2b1   :  { %2583 = vmatpush.bf16.xpose.msra.mxu2 %v2581_v56  ;;  %2792 = vmatpush.bf16.xpose.msra.mxu0 %v2786_v50  ;;  %v5965_v50 = vld [vmem:[%s9992_s4 + $0x30] sm:$0xff] }
 0x2b2   :  { %5868 = vmatmul.msk.bf16.vlgmr.msra.gmra.mxu3 %vm82_vm0, %v2603_v2 }
 0x2b5   :  { %v2753_v33 = vpop.permute.xlu1 %2752 }
 0x2b6   :  { %v2774_v9 = vsel %vm82_vm0, %v2753_v33, 0 }
 0x2b7   :  { %v2757_v31 = vpop.permute.xlu0 %2756  ;;  %v8230_v58 = vpop.permute.xlu2 %2748 }
 0x2b8   :  { %v2780_v6 = vsel %vm82_vm0, %v2757_v31, 0 }
 0x2b9   :  { %2584 = vmatpush.bf16.xpose.msra.mxu2 %v2578_v12  ;;  %2793 = vmatpush.bf16.xpose.msra.mxu0 %v2783_v63 }
 0x2bd   :  { %v2859_v27 = vpop.permute.xlu1 %2858 }
 0x2be   :  { %v2881_v13 = vsel %vm82_vm0, %v2859_v27, 0 }
 0x2bf   :  { %v2863_v19 = vpop.permute.xlu0 %2862  ;;  %v8236_v44 = vpop.permute.xlu2 %2854 }
 0x2c0   :  { %v2887_v24 = vsel %vm82_vm0, %v2863_v19, 0 }
 0x2c1   :  { %2585 = vmatpush.bf16.xpose.msra.mxu2 %v2575_v35  ;;  %2794 = vmatpush.bf16.xpose.msra.mxu0 %v2780_v6  ;;  %v10230_v35 = vld [vmem:[#allocation42_spill] sm:$0xff]  ;;  %v1762_v6 = vpop.f32.mrf.mxu2 }
 0x2c2   :  { %2897 = vmatpush.bf16.xpose.msrb.mxu1 %v2887_v24 }
 0x2c5   :  { %v8248_v51 = vpop.permute.xlu1 %2706 }
 0x2c7   :  { %v2751_v18 = vpop.permute.xlu0 %2750  ;;  %v6059_v40 = vpop.permute.xlu2 %6058 }
 0x2c8   :  { %v8244_v52 = vunpack.i.h.bf16 %v6059_v40  ;;  %v8246_v20 = vunpack.i.l.bf16 %v6059_v40  ;;  %v2771_v28 = vsel %vm82_vm0, %v2751_v18, 0 }
 0x2c9   :  { %2586 = vmatpush.bf16.xpose.msra.mxu2 %v2572_v8  ;;  %2795 = vmatpush.bf16.xpose.msra.mxu0 %v2777_v61 }
 0x2ca   :  { %2898 = vmatpush.bf16.xpose.msrb.mxu1 %v2884_v1  ;;  %v1291_v43 = vmul.f32 %v8246_v20, %v10228_v41  ;;  %v1292_v62 = vmul.f32 %v8244_v52, %v10229_v0  ;;  %v1307_v29 = vmul.f32 %v8246_v20, %v10230_v35  ;;  %v1308_v38 = vmul.f32 %v8244_v52, %v10231_v30 }
 0x2cc   :  { %v1483_v59 = vpack.c.bf16 %v1291_v43, %v1291_v43  ;;  %v1484_v5 = vpack.c.bf16 %v1292_v62, %v1292_v62  ;;  %v1500_v19 = vpack.c.bf16 %v1308_v38, %v1308_v38 }
 0x2cd   :  { %v8262_v36 = vpop.permute.xlu1 %2810 }
 0x2ce   :  { %v3234_v2 = vunpack.c.l.b16 %v1483_v59  ;;  %v3235_v48 = vunpack.c.l.b16 %v1484_v5  ;;  %v3319_v1 = vunpack.c.l.b16 %v1500_v19  ;;  %v2768_v5 = vsel %vm82_vm0, %v8230_v58, 0  ;;  %v5961_v19 = vld [vmem:[%s9992_s4 + $0x10] sm:$0xff] }
 0x2cf   :  { %v2857_v32 = vpop.permute.xlu0 %2856  ;;  %v6074_v56 = vpop.permute.xlu2 %6073 }
 0x2d0   :  { %v8258_v4 = vunpack.i.h.bf16 %v6074_v56  ;;  %v8260_v47 = vunpack.i.l.bf16 %v6074_v56  ;;  %v3243_v11 = vpack.c.b16 %v3235_v48, %v3234_v2  ;;  %v2878_v31 = vsel %vm82_vm0, %v2857_v32, 0 }
 0x2d1   :  { %2587 = vmatpush.bf16.xpose.msra.mxu2 %v2569_v7  ;;  %2796 = vmatpush.bf16.xpose.msra.mxu0 %v2774_v9  ;;  %v1499_v7 = vpack.c.bf16 %v1307_v29, %v1307_v29  ;;  %v2909_v9 = vmul.f32 0.5, %v1760_v21  ;;  %v5962_v21 = vld [vmem:[%s9992_s4 + $0x18] sm:$0xff] }
 0x2d2   :  { %2899 = vmatpush.bf16.xpose.msrb.mxu1 %v2881_v13  ;;  %3258 = vrot.lane.b32.xlu1 %v3243_v11, %s6430_s21  ;;  %v1285_v12 = vmul.f32 %v8260_v47, %v10228_v41  ;;  %v1286_v37 = vmul.f32 %v8258_v4, %v10229_v0  ;;  %v2910_v13 = vmul.f32 0.5, %v1762_v6 }
 0x2d3   :  { %v3318_v61 = vunpack.c.l.b16 %v1499_v7 }
 0x2d4   :  { %v1477_v23 = vpack.c.bf16 %v1285_v12, %v1285_v12  ;;  %v1478_v25 = vpack.c.bf16 %v1286_v37, %v1286_v37  ;;  %v8310_v12 = vpop.f32.mrf.mxu2 }
 0x2d5   :  { %v6069_v63 = vpop.permute.xlu1 %6068 }
 0x2d6   :  { %v3228_v57 = vunpack.c.l.b16 %v1477_v23  ;;  %v3229_v8 = vunpack.c.l.b16 %v1478_v25  ;;  %v8285_v24 = vunpack.i.h.bf16 %v6069_v63  ;;  %v8287_v27 = vunpack.i.l.bf16 %v6069_v63 }
 0x2d7   :  { %v8281_v26 = vpop.permute.xlu0 %2852  ;;  %v6089_v25 = vpop.permute.xlu2 %6088 }
 0x2d8   :  { %v3240_v33 = vpack.c.b16 %v3229_v8, %v3228_v57  ;;  %v1287_v18 = vmul.f32 %v8287_v27, %v10228_v41  ;;  %v1288_v40 = vmul.f32 %v8285_v24, %v10229_v0  ;;  %v2933_v57 = vmul.f32 1.442695, %v2909_v9 }
 0x2d9   :  { %2588 = vmatpush.bf16.xpose.msra.mxu2 %v2566_v60  ;;  %2797 = vmatpush.bf16.xpose.msra.mxu0 %v2771_v28  ;;  %v5964_v60 = vld [vmem:[%s9992_s4 + $0x28] sm:$0xff]  ;;  %v2935_v8 = vmul.f32 1.442695, %v2910_v13 }
 0x2da   :  { %2900 = vmatpush.bf16.xpose.msrb.mxu1 %v2878_v31  ;;  %3252 = vrot.lane.b32.xlu1 %v3240_v33, %s6430_s21  ;;  %v1479_v43 = vpack.c.bf16 %v1287_v18, %v1287_v18  ;;  %v1480_v62 = vpack.c.bf16 %v1288_v40, %v1288_v40  ;;  %v8338_v18 = vunpack.i.l.bf16 %v6089_v25  ;;  %v5960_v13 = vld [vmem:[%s9992_s4 + $0x8] sm:$0xff] }
 0x2db   :  { %6158 = vpow2.f32 %v2935_v8 }
 0x2dc   :  { %v3230_v48 = vunpack.c.l.b16 %v1479_v43  ;;  %v3231_v56 = vunpack.c.l.b16 %v1480_v62  ;;  %6160 = vpow2.f32 %v2933_v57  ;;  %v5959_v57 = vld [vmem:[%s9992_s4] sm:$0xff] }
 0x2dd   :  { %v6084_v11 = vpop.permute.xlu1 %6083 }
 0x2de   :  { %v8312_v37 = vunpack.i.h.bf16 %v6084_v11  ;;  %v8314_v58 = vunpack.i.l.bf16 %v6084_v11 }
 0x2df   :  { %v6064_v59 = vpop.permute.xlu0 %6063 }
 0x2e0   :  { %v8306_v32 = vunpack.i.h.bf16 %v6064_v59  ;;  %v8308_v2 = vunpack.i.l.bf16 %v6064_v59  ;;  %v1281_v38 = vmul.f32 %v8314_v58, %v10228_v41 }
 0x2e1   :  { %2589 = vmatpush.bf16.xpose.msra.mxu2 %v2563_v53  ;;  %v5963_v53 = vld [vmem:[%s9992_s4 + $0x20] sm:$0xff]  ;;  %2798 = vmatpush.bf16.xpose.msra.mxu0 %v2768_v5  ;;  %v8368_v8 = vpop.eup %6158 }
 0x2e2   :  { %v1290_v23 = vmul.f32 %v8306_v32, %v10229_v0  ;;  %v1305_v31 = vmul.f32 %v8308_v2, %v10230_v35  ;;  %v1473_v33 = vpack.c.bf16 %v1281_v38, %v1281_v38  ;;  %v1306_v6 = vmul.f32 %v8306_v32, %v10231_v30 }
 0x2e4   :  { %v1482_v28 = vpack.c.bf16 %v1290_v23, %v1290_v23  ;;  %v1498_v9 = vpack.c.bf16 %v1306_v6, %v1306_v6  ;;  %v1302_v23 = vmul.f32 %v8258_v4, %v10231_v30 }
 0x2e7   :  { %v6079_v40 = vpop.permute.xlu0 %6078 }
 0x2e8   :  { %v8342_v43 = vunpack.i.h.bf16 %v6079_v40  ;;  %v8344_v62 = vunpack.i.l.bf16 %v6079_v40  ;;  %5869 = vmatmul.msk.bf16.vlgmr.msra.gmra.mxu0 %vm82_vm0, %v8248_v51  ;;  %v1279_v51 = vmul.f32 %v8338_v18, %v10228_v41 }
 0x2e9   :  { %2590 = vmatpush.bf16.xpose.msra.mxu2 %v2560_v49  ;;  %v3241_v49 = vpack.c.b16 %v3231_v56, %v3230_v48 }
 0x2ea   :  { %v1283_v56 = vmul.f32 %v8344_v62, %v10228_v41 }
 0x2eb   :  { %3254 = vrot.lane.b32.xlu0 %v3241_v49, %s6430_s21 }
 0x2ec   :  { %v1475_v49 = vpack.c.bf16 %v1283_v56, %v1283_v56 }
 0x2f0   :  { %5867 = vmatmul.msk.bf16.vlgmr.msra.gmra.mxu2 %vm82_vm0, %v8209_v42  ;;  %v2875_v42 = vsel %vm82_vm0, %v8236_v44, 0  ;;  %v1289_v44 = vmul.f32 %v8308_v2, %v10228_v41 }
 0x2f1   :  { %3057 = vmatpush.bf16.msrb.mxu2 %v5966_v14  ;;  %2901 = vmatpush.bf16.xpose.msrb.mxu1 %v2875_v42  ;;  %v3327_v14 = vpack.c.b16 %v3319_v1, %v3318_v61  ;;  %v2872_v61 = vsel %vm82_vm0, %v8281_v26, 0  ;;  %v3233_v1 = vunpack.c.l.b16 %v1482_v28  ;;  %v1497_v42 = vpack.c.bf16 %v1305_v31, %v1305_v31  ;;  %v6094_v31 = vpop.permute.xlu0 %6093 }
 0x2f2   :  { %v1481_v29 = vpack.c.bf16 %v1289_v44, %v1289_v44  ;;  %v1284_v26 = vmul.f32 %v8342_v43, %v10229_v0 }
 0x2f3   :  { %3342 = vrot.lane.b32.xlu1 %v3327_v14, %s6430_s21  ;;  %v1866_v14 = vpop.f32.mrf.mxu2  ;;  %v3316_v38 = vunpack.c.l.b16 %v1497_v42 }
 0x2f4   :  { %v3232_v63 = vunpack.c.l.b16 %v1481_v29  ;;  %v1476_v44 = vpack.c.bf16 %v1284_v26, %v1284_v26  ;;  %v2912_v28 = vmul.f32 0.5, %v1866_v14  ;;  %v1303_v14 = vmul.f32 %v8287_v27, %v10230_v35 }
 0x2f5   :  { %3058 = vmatpush.bf16.msrb.mxu2 %v5965_v50  ;;  %v1282_v50 = vmul.f32 %v8312_v37, %v10229_v0 }
 0x2f6   :  { %v3242_v5 = vpack.c.b16 %v3233_v1, %v3232_v63  ;;  %v3227_v29 = vunpack.c.l.b16 %v1476_v44  ;;  %v1471_v63 = vpack.c.bf16 %v1279_v51, %v1279_v51  ;;  %v8376_v1 = vpop.eup %6160  ;;  %v1299_v51 = vmul.f32 %v8344_v62, %v10230_v35 }
 0x2f7   :  { %v1474_v7 = vpack.c.bf16 %v1282_v50, %v1282_v50  ;;  %v3317_v50 = vunpack.c.l.b16 %v1498_v9  ;;  %v2981_v26 = vpack.c.bf16 %v8368_v8, %v8376_v1 }
 0x2f8   :  { %3256 = vrot.lane.b32.xlu2 %v3242_v5, %s6430_s21  ;;  %v3222_v56 = vunpack.c.l.b16 %v1471_v63 }
 0x2f9   :  { %3059 = vmatpush.bf16.msrb.mxu2 %v5964_v60  ;;  %v8336_v60 = vunpack.i.h.bf16 %v6089_v25  ;;  %v3225_v59 = vunpack.c.l.b16 %v1474_v7  ;;  %2902 = vmatpush.bf16.xpose.msrb.mxu1 %v2872_v61  ;;  %v3226_v25 = vunpack.c.l.b16 %v1475_v49  ;;  %v8370_v7 = vunpack.i.h.bf16 %v6094_v31 }
 0x2fa   :  { %v1494_v61 = vpack.c.bf16 %v1302_v23, %v1302_v23  ;;  %v1304_v49 = vmul.f32 %v8285_v24, %v10231_v30  ;;  %v1297_v23 = vmul.f32 %v8314_v58, %v10230_v35 }
 0x2fb   :  { %v1280_v11 = vmul.f32 %v8336_v60, %v10229_v0  ;;  %v3239_v6 = vpack.c.b16 %v3227_v29, %v3226_v25  ;;  %v1278_v42 = vmul.f32 %v8370_v7, %v10229_v0  ;;  %v1968_v9 = vpop.f32.mrf.mxu2  ;;  %v1298_v25 = vmul.f32 %v8312_v37, %v10231_v30 }
 0x2fc   :  { %v1496_v63 = vpack.c.bf16 %v1304_v49, %v1304_v49 }
 0x2fd   :  { %3060 = vmatpush.bf16.msrb.mxu2 %v5963_v53  ;;  %v3224_v53 = vunpack.c.l.b16 %v1473_v33  ;;  %v1472_v33 = vpack.c.bf16 %v1280_v11, %v1280_v11  ;;  %v3313_v11 = vunpack.c.l.b16 %v1494_v61  ;;  %v10232_v61 = vld [vmem:[#allocation44_spill] sm:$0xff] }
 0x2ff   :  { %v3238_v48 = vpack.c.b16 %v3225_v59, %v3224_v53  ;;  %v2911_v53 = vmul.f32 0.5, %v8310_v12  ;;  %v3326_v59 = vpack.c.b16 %v3317_v50, %v3316_v38  ;;  %v1491_v50 = vpack.c.bf16 %v1299_v51, %v1299_v51 }
 0x300   :  { %5870 = vmatmul.msk.bf16.vlgmr.msrb.gmra.mxu1 %vm82_vm0, %v8262_v36  ;;  %3250 = vrot.lane.b32.xlu2 %v3239_v6, %s6430_s21  ;;  %v3223_v36 = vunpack.c.l.b16 %v1472_v33  ;;  %v1489_v6 = vpack.c.bf16 %v1297_v23, %v1297_v23 }
 0x301   :  { %3061 = vmatpush.bf16.msrb.mxu2 %v5962_v21  ;;  %3248 = vrot.lane.b32.xlu0 %v3238_v48, %s6430_s21  ;;  %v1301_v21 = vmul.f32 %v8260_v47, %v10230_v35  ;;  %v2939_v48 = vmul.f32 1.442695, %v2912_v28  ;;  %v2937_v29 = vmul.f32 1.442695, %v2911_v53  ;;  %v3310_v53 = vunpack.c.l.b16 %v1491_v50 }
 0x302   :  { %v3237_v28 = vpack.c.b16 %v3223_v36, %v3222_v56  ;;  %v3308_v51 = vunpack.c.l.b16 %v1489_v6 }
 0x303   :  { %v1493_v40 = vpack.c.bf16 %v1301_v21, %v1301_v21  ;;  %6162 = vpow2.f32 %v2939_v48  ;;  %v1323_v48 = vmul.f32 %v8246_v20, %v10232_v61 }
 0x304   :  { %6164 = vpow2.f32 %v2937_v29 }
 0x305   :  { %3062 = vmatpush.bf16.msrb.mxu2 %v5961_v19  ;;  %v8372_v19 = vunpack.i.l.bf16 %v6094_v31  ;;  %v3312_v0 = vunpack.c.l.b16 %v1493_v40  ;;  %v1495_v31 = vpack.c.bf16 %v1303_v14, %v1303_v14  ;;  %v1490_v40 = vpack.c.bf16 %v1298_v25, %v1298_v25 }
 0x306   :  { %v1515_v23 = vpack.c.bf16 %v1323_v48, %v1323_v48  ;;  %v10235_v48 = vld [vmem:[#allocation47_spill] sm:$0xff] }
 0x307   :  { %v1277_v5 = vmul.f32 %v8372_v19, %v10228_v41  ;;  %v1300_v41 = vmul.f32 %v8342_v43, %v10231_v30  ;;  %v3324_v33 = vpack.c.b16 %v3313_v11, %v3312_v0  ;;  %v3314_v36 = vunpack.c.l.b16 %v1495_v31 }
 0x308   :  { %3246 = vrot.lane.b32.xlu2 %v3237_v28, %s6430_s21  ;;  %v1319_v0 = vmul.f32 %v8287_v27, %v10232_v61 }
 0x309   :  { %3063 = vmatpush.bf16.msrb.mxu2 %v5960_v13  ;;  %3340 = vrot.lane.b32.xlu0 %v3326_v59, %s6430_s21  ;;  %v1469_v12 = vpack.c.bf16 %v1277_v5, %v1277_v5  ;;  %v1470_v13 = vpack.c.bf16 %v1278_v42, %v1278_v42  ;;  %v1321_v59 = vmul.f32 %v8308_v2, %v10232_v61  ;;  %v10233_v42 = vld [vmem:[#allocation45_spill] sm:$0xff]  ;;  %v8414_v49 = vpop.eup %6162 }
 0x30a   :  { %v1322_v56 = vmul.f32 %v8306_v32, %v10233_v42  ;;  %v1320_v11 = vmul.f32 %v8285_v24, %v10233_v42  ;;  %v8416_v25 = vpop.eup %6164  ;;  %v1511_v31 = vpack.c.bf16 %v1319_v0, %v1319_v0  ;;  %v1317_v0 = vmul.f32 %v8260_v47, %v10232_v61 }
 0x30b   :  { %v3220_v44 = vunpack.c.l.b16 %v1469_v12  ;;  %v3221_v21 = vunpack.c.l.b16 %v1470_v13  ;;  %v1324_v12 = vmul.f32 %v8244_v52, %v10233_v42  ;;  %v1970_v13 = vpop.f32.mrf.mxu2  ;;  %v1513_v14 = vpack.c.bf16 %v1321_v59, %v1321_v59 }
 0x30c   :  { %v2914_v29 = vmul.f32 0.5, %v1970_v13  ;;  %v1296_v13 = vmul.f32 %v8336_v60, %v10231_v30 }
 0x30d   :  { %3064 = vmatpush.bf16.msrb.mxu2 %v5959_v57  ;;  %v3236_v38 = vpack.c.b16 %v3221_v21, %v3220_v44  ;;  %v1492_v57 = vpack.c.bf16 %v1300_v41, %v1300_v41  ;;  %v3309_v41 = vunpack.c.l.b16 %v1490_v40  ;;  %v1514_v21 = vpack.c.bf16 %v1322_v56, %v1322_v56 }
 0x30e   :  { %v1516_v50 = vpack.c.bf16 %v1324_v12, %v1324_v12  ;;  %v3400_v6 = vunpack.c.l.b16 %v1513_v14  ;;  %v2982_v40 = vpack.c.bf16 %v8414_v49, %v8416_v25 }
 0x30f   :  { %3244 = vrot.lane.b32.xlu1 %v3236_v38, %s6430_s21  ;;  %v3311_v5 = vunpack.c.l.b16 %v1492_v57  ;;  %v8418_v57 = vpop.f32.mrf.mxu3  ;;  %v3322_v28 = vpack.c.b16 %v3309_v41, %v3308_v51  ;;  %v3401_v59 = vunpack.c.l.b16 %v1514_v21  ;;  %v3398_v51 = vunpack.c.l.b16 %v1511_v31 }
 0x310   :  { %3065 = vmatmul.bf16.vlgmr.msrb.gmra.mxu2 %v2981_v26  ;;  %v3315_v26 = vunpack.c.l.b16 %v1496_v63  ;;  %v1512_v63 = vpack.c.bf16 %v1320_v11, %v1320_v11  ;;  %v3403_v12 = vunpack.c.l.b16 %v1516_v50  ;;  %v1318_v11 = vmul.f32 %v8258_v4, %v10233_v42 }
 0x311   :  { %3336 = vrot.lane.b32.xlu0 %v3324_v33, %s6430_s21  ;;  %v3323_v44 = vpack.c.b16 %v3311_v5, %v3310_v53  ;;  %v2913_v33 = vmul.f32 0.5, %v1968_v9  ;;  %v3402_v53 = vunpack.c.l.b16 %v1515_v23  ;;  %v10234_v5 = vld [vmem:[#allocation46_spill] sm:$0xff]  ;;  %v1295_v9 = vmul.f32 %v8338_v18, %v10230_v35 }
 0x312   :  { %v3325_v38 = vpack.c.b16 %v3315_v26, %v3314_v36  ;;  %v1339_v56 = vmul.f32 %v8246_v20, %v10234_v5  ;;  %v1340_v36 = vmul.f32 %v8244_v52, %v10235_v48  ;;  %v2943_v26 = vmul.f32 1.442695, %v2914_v29 }
 0x313   :  { %v3399_v41 = vunpack.c.l.b16 %v1512_v63  ;;  %v2941_v14 = vmul.f32 1.442695, %v2913_v33  ;;  %v3411_v29 = vpack.c.b16 %v3403_v12, %v3402_v53  ;;  %v1488_v50 = vpack.c.bf16 %v1296_v13, %v1296_v13 }
 0x314   :  { %3338 = vrot.lane.b32.xlu2 %v3325_v38, %s6430_s21  ;;  %v1531_v21 = vpack.c.bf16 %v1339_v56, %v1339_v56  ;;  %v1532_v23 = vpack.c.bf16 %v1340_v36, %v1340_v36  ;;  %v1487_v38 = vpack.c.bf16 %v1295_v9, %v1295_v9  ;;  %6166 = vpow2.f32 %v2943_v26 }
 0x315   :  { %v1510_v31 = vpack.c.bf16 %v1318_v11, %v1318_v11  ;;  %6168 = vpow2.f32 %v2941_v14  ;;  %v3307_v56 = vunpack.c.l.b16 %v1488_v50  ;;  %v1293_v36 = vmul.f32 %v8372_v19, %v10230_v35 }
 0x316   :  { %v3486_v34 = vunpack.c.l.b16 %v1531_v21  ;;  %v3487_v33 = vunpack.c.l.b16 %v1532_v23  ;;  %v3306_v53 = vunpack.c.l.b16 %v1487_v38  ;;  %v1294_v26 = vmul.f32 %v8370_v7, %v10231_v30 }
 0x317   :  { %3334 = vrot.lane.b32.xlu1 %v3323_v44, %s6430_s21  ;;  %v3410_v44 = vpack.c.b16 %v3401_v59, %v3400_v6  ;;  %v2074_v63 = vpop.f32.mrf.mxu3  ;;  %v1337_v6 = vmul.f32 %v8308_v2, %v10234_v5  ;;  %v1338_v59 = vmul.f32 %v8306_v32, %v10235_v48  ;;  %v3397_v9 = vunpack.c.l.b16 %v1510_v31 }
 0x318   :  { %v1335_v13 = vmul.f32 %v8287_v27, %v10234_v5  ;;  %v3495_v11 = vpack.c.b16 %v3487_v33, %v3486_v34  ;;  %v3321_v35 = vpack.c.b16 %v3307_v56, %v3306_v53  ;;  %v1485_v23 = vpack.c.bf16 %v1293_v36, %v1293_v36 }
 0x319   :  { %3332 = vrot.lane.b32.xlu0 %v3322_v28, %s6430_s21  ;;  %v3409_v28 = vpack.c.b16 %v3399_v41, %v3398_v51  ;;  %v1336_v51 = vmul.f32 %v8285_v24, %v10235_v48  ;;  %v2916_v41 = vmul.f32 0.5, %v2074_v63  ;;  %v1529_v14 = vpack.c.bf16 %v1337_v6, %v1337_v6 }
 0x31a   :  { %v1527_v38 = vpack.c.bf16 %v1335_v13, %v1335_v13  ;;  %v1313_v33 = vmul.f32 %v8314_v58, %v10232_v61  ;;  %v1314_v6 = vmul.f32 %v8312_v37, %v10233_v42  ;;  %v1316_v56 = vmul.f32 %v8342_v43, %v10233_v42 }
 0x31b   :  { %v1528_v50 = vpack.c.bf16 %v1336_v51, %v1336_v51  ;;  %v3484_v31 = vunpack.c.l.b16 %v1529_v14 }
 0x31c   :  { %3426 = vrot.lane.b32.xlu2 %v3411_v29, %s6430_s21  ;;  %v1486_v29 = vpack.c.bf16 %v1294_v26, %v1294_v26  ;;  %v3482_v36 = vunpack.c.l.b16 %v1527_v38 }
 0x31d   :  { %v3483_v26 = vunpack.c.l.b16 %v1528_v50 }
 0x31e   :  { %v3305_v53 = vunpack.c.l.b16 %v1486_v29 }
 0x31f   :  { %3424 = vrot.lane.b32.xlu1 %v3410_v44, %s6430_s21  ;;  %v1530_v44 = vpack.c.bf16 %v1338_v59, %v1338_v59  ;;  %v3304_v59 = vunpack.c.l.b16 %v1485_v23  ;;  %v3493_v23 = vpack.c.b16 %v3483_v26, %v3482_v36 }
 0x320   :  { %3070 = vmatmul.bf16.gmra.mxu2 %v2982_v40  ;;  %v1509_v40 = vpack.c.bf16 %v1317_v0, %v1317_v0  ;;  %v8452_v0 = vpop.eup %6166 }
 0x321   :  { %3422 = vrot.lane.b32.xlu0 %v3409_v28, %s6430_s21  ;;  %10236 = vst [vmem:[#allocation64_spill] sm:$0xff] %v8452_v0  ;;  %v8454_v21 = vpop.eup %6168  ;;  %v2915_v28 = vmul.f32 0.5, %v8418_v57  ;;  %v3485_v63 = vunpack.c.l.b16 %v1530_v44  ;;  %v1315_v57 = vmul.f32 %v8344_v62, %v10232_v61  ;;  %v3320_v14 = vpack.c.b16 %v3305_v53, %v3304_v59 }
 0x322   :  { %v3396_v12 = vunpack.c.l.b16 %v1509_v40  ;;  %v2947_v40 = vmul.f32 1.442695, %v2916_v41  ;;  %v2983_v34 = vpack.c.bf16 %v8452_v0, %v8454_v21  ;;  %v1505_v41 = vpack.c.bf16 %v1313_v33, %v1313_v33 }
 0x323   :  { %v2945_v13 = vmul.f32 1.442695, %v2915_v28  ;;  %v3494_v51 = vpack.c.b16 %v3485_v63, %v3484_v31  ;;  %v1507_v44 = vpack.c.bf16 %v1315_v57, %v1315_v57  ;;  %v1331_v28 = vmul.f32 %v8344_v62, %v10234_v5 }
 0x324   :  { %v3408_v30 = vpack.c.b16 %v3397_v9, %v3396_v12  ;;  %3330 = vrot.lane.b32.xlu2 %v3321_v35, %s6430_s21  ;;  %v1311_v12 = vmul.f32 %v8338_v18, %v10232_v61  ;;  %v1312_v9 = vmul.f32 %v8336_v60, %v10233_v42  ;;  %v1508_v35 = vpack.c.bf16 %v1316_v56, %v1316_v56 }
 0x325   :  { %6170 = vpow2.f32 %v2947_v40  ;;  %v3392_v38 = vunpack.c.l.b16 %v1505_v41  ;;  %v3394_v31 = vunpack.c.l.b16 %v1507_v44  ;;  %v1333_v63 = vmul.f32 %v8260_v47, %v10234_v5 }
 0x326   :  { %v1503_v29 = vpack.c.bf16 %v1311_v12, %v1311_v12  ;;  %6172 = vpow2.f32 %v2945_v13  ;;  %v3395_v40 = vunpack.c.l.b16 %v1508_v35  ;;  %v1334_v33 = vmul.f32 %v8258_v4, %v10235_v48 }
 0x327   :  { %3510 = vrot.lane.b32.xlu1 %v3495_v11, %s6430_s21  ;;  %v1506_v11 = vpack.c.bf16 %v1314_v6, %v1314_v6  ;;  %v1329_v53 = vmul.f32 %v8314_v58, %v10234_v5  ;;  %v1330_v57 = vmul.f32 %v8312_v37, %v10235_v48  ;;  %v1523_v26 = vpack.c.bf16 %v1331_v28, %v1331_v28 }
 0x328   :  { %v3390_v6 = vunpack.c.l.b16 %v1503_v29  ;;  %v3407_v13 = vpack.c.b16 %v3395_v40, %v3394_v31  ;;  %v1526_v41 = vpack.c.bf16 %v1334_v33, %v1334_v33  ;;  %v1309_v40 = vmul.f32 %v8372_v19, %v10232_v61 }
 0x329   :  { %3420 = vrot.lane.b32.xlu0 %v3408_v30, %s6430_s21  ;;  %v1504_v30 = vpack.c.bf16 %v1312_v9, %v1312_v9  ;;  %v3393_v50 = vunpack.c.l.b16 %v1506_v11  ;;  %v1522_v44 = vpack.c.bf16 %v1330_v57, %v1330_v57 }
 0x32a   :  { %v3481_v31 = vunpack.c.l.b16 %v1526_v41 }
 0x32b   :  { %v3391_v59 = vunpack.c.l.b16 %v1504_v30  ;;  %v8489_v56 = vpop.eup %6170  ;;  %v3406_v36 = vpack.c.b16 %v3393_v50, %v3392_v38  ;;  %v3478_v30 = vunpack.c.l.b16 %v1523_v26  ;;  %v10240_v50 = vld [vmem:[#allocation49_spill] sm:$0xff] }
 0x32c   :  { %3328 = vrot.lane.b32.xlu2 %v3320_v14, %s6430_s21  ;;  %10237 = vst [vmem:[#allocation57_spill] sm:$0xff] %v8489_v56  ;;  %v8491_v9 = vpop.eup %6172  ;;  %v1521_v14 = vpack.c.bf16 %v1329_v53, %v1329_v53  ;;  %v1356_v28 = vmul.f32 %v8244_v52, %v10240_v50  ;;  %v1354_v57 = vmul.f32 %v8306_v32, %v10240_v50 }
 0x32d   :  { %10238 = vst [vmem:[#allocation40_spill] sm:$0xff] %v8491_v9  ;;  %v3405_v11 = vpack.c.b16 %v3391_v59, %v3390_v6  ;;  %v2984_v35 = vpack.c.bf16 %v8489_v56, %v8491_v9  ;;  %v3477_v6 = vunpack.c.l.b16 %v1522_v44 }
 0x32e   :  { %v3476_v33 = vunpack.c.l.b16 %v1521_v14  ;;  %v1546_v44 = vpack.c.bf16 %v1354_v57, %v1354_v57 }
 0x32f   :  { %3508 = vrot.lane.b32.xlu1 %v3494_v51, %s6430_s21  ;;  %v1525_v51 = vpack.c.bf16 %v1333_v63, %v1333_v63  ;;  %v1310_v63 = vmul.f32 %v8370_v7, %v10233_v42 }
 0x330   :  { %3075 = vmatmul.bf16.gmra.mxu2 %v2983_v34  ;;  %v1332_v34 = vmul.f32 %v8342_v43, %v10235_v48  ;;  %v3490_v61 = vpack.c.b16 %v3477_v6, %v3476_v33  ;;  %v3569_v6 = vunpack.c.l.b16 %v1546_v44 }
 0x331   :  { %3506 = vrot.lane.b32.xlu0 %v3493_v23, %s6430_s21  ;;  %v10239_v23 = vld [vmem:[#allocation48_spill] sm:$0xff]  ;;  %v1502_v41 = vpack.c.bf16 %v1310_v63, %v1310_v63 }
 0x332   :  { %v1524_v12 = vpack.c.bf16 %v1332_v34, %v1332_v34  ;;  %v1355_v29 = vmul.f32 %v8246_v20, %v10239_v23  ;;  %v3480_v34 = vunpack.c.l.b16 %v1525_v51  ;;  %v1353_v53 = vmul.f32 %v8308_v2, %v10239_v23 }
 0x333   :  { %v2176_v59 = vpop.f32.mrf.mxu2  ;;  %v1501_v51 = vpack.c.bf16 %v1309_v40, %v1309_v40  ;;  %v1328_v40 = vmul.f32 %v8336_v60, %v10235_v48 }
 0x334   :  { %3418 = vrot.lane.b32.xlu2 %v3407_v13, %s6430_s21  ;;  %v3479_v38 = vunpack.c.l.b16 %v1524_v12  ;;  %v1548_v12 = vpack.c.bf16 %v1356_v28, %v1356_v28  ;;  %v3492_v13 = vpack.c.b16 %v3481_v31, %v3480_v34  ;;  %v2917_v42 = vmul.f32 0.5, %v2176_v59 }
 0x335   :  { %v1545_v14 = vpack.c.bf16 %v1353_v53, %v1353_v53  ;;  %v3388_v28 = vunpack.c.l.b16 %v1501_v51  ;;  %v3389_v34 = vunpack.c.l.b16 %v1502_v41  ;;  %v1327_v31 = vmul.f32 %v8338_v18, %v10234_v5 }
 0x336   :  { %v3491_v26 = vpack.c.b16 %v3479_v38, %v3478_v30  ;;  %v3571_v15 = vunpack.c.l.b16 %v1548_v12  ;;  %v1326_v30 = vmul.f32 %v8370_v7, %v10235_v48  ;;  %v1349_v38 = vmul.f32 %v8260_v47, %v10239_v23 }
 0x337   :  { %3416 = vrot.lane.b32.xlu1 %v3406_v36, %s6430_s21  ;;  %v1547_v36 = vpack.c.bf16 %v1355_v29, %v1355_v29  ;;  %v1325_v29 = vmul.f32 %v8372_v19, %v10234_v5  ;;  %v2949_v63 = vmul.f32 1.442695, %v2917_v42  ;;  %v3568_v33 = vunpack.c.l.b16 %v1545_v14 }
 0x338   :  { %v1350_v53 = vmul.f32 %v8258_v4, %v10240_v50  ;;  %v1518_v12 = vpack.c.bf16 %v1326_v30, %v1326_v30  ;;  %v1519_v41 = vpack.c.bf16 %v1327_v31, %v1327_v31  ;;  %v1541_v48 = vpack.c.bf16 %v1349_v38, %v1349_v38 }
 0x339   :  { %3414 = vrot.lane.b32.xlu0 %v3405_v11, %s6430_s21  ;;  %v8510_v11 = vpop.f32.mrf.mxu3  ;;  %6174 = vpow2.f32 %v2949_v63  ;;  %v3578_v5 = vpack.c.b16 %v3569_v6, %v3568_v33  ;;  %v1351_v38 = vmul.f32 %v8287_v27, %v10239_v23  ;;  %v1345_v63 = vmul.f32 %v8314_v58, %v10239_v23 }
 0x33a   :  { %v1542_v42 = vpack.c.bf16 %v1350_v53, %v1350_v53  ;;  %v3474_v30 = vunpack.c.l.b16 %v1519_v41  ;;  %v3564_v31 = vunpack.c.l.b16 %v1541_v48  ;;  %v1346_v33 = vmul.f32 %v8312_v37, %v10240_v50  ;;  %v8546_v41 = vpop.f32.mrf.mxu0 }
 0x33b   :  { %v2178_v59 = vpop.f32.mrf.mxu2  ;;  %v1537_v48 = vpack.c.bf16 %v1345_v63, %v1345_v63 }
 0x33c   :  { %3504 = vrot.lane.b32.xlu2 %v3492_v13, %s6430_s21  ;;  %v2918_v57 = vmul.f32 0.5, %v2178_v59  ;;  %v3404_v13 = vpack.c.b16 %v3389_v34, %v3388_v28  ;;  %v1352_v34 = vmul.f32 %v8285_v24, %v10240_v50 }
 0x33e   :  { %v2951_v51 = vmul.f32 1.442695, %v2918_v57 }
 0x33f   :  { %3502 = vrot.lane.b32.xlu1 %v3491_v26, %s6430_s21  ;;  %v1517_v26 = vpack.c.bf16 %v1325_v29, %v1325_v29  ;;  %v1348_v29 = vmul.f32 %v8342_v43, %v10240_v50  ;;  %v8542_v59 = vpop.eup %6174 }
 0x340   :  { %3080 = vmatmul.bf16.gmra.mxu2 %v2984_v35  ;;  %v3570_v35 = vunpack.c.l.b16 %v1547_v36  ;;  %6176 = vpow2.f32 %v2951_v51  ;;  %10241 = vst [vmem:[#allocation54_spill] sm:$0xff] %v8542_v59  ;;  %v1544_v51 = vpack.c.bf16 %v1352_v34, %v1352_v34 }
 0x341   :  { %3500 = vrot.lane.b32.xlu0 %v3490_v61, %s6430_s21  ;;  %v1520_v61 = vpack.c.bf16 %v1328_v40, %v1328_v40  ;;  %v2282_v14 = vpop.f32.mrf.mxu3  ;;  %v3472_v44 = vunpack.c.l.b16 %v1517_v26  ;;  %v3565_v40 = vunpack.c.l.b16 %v1542_v42  ;;  %v1538_v42 = vpack.c.bf16 %v1346_v33, %v1346_v33 }
 0x342   :  { %v3579_v36 = vpack.c.b16 %v3571_v15, %v3570_v35  ;;  %v3473_v15 = vunpack.c.l.b16 %v1518_v12  ;;  %v1347_v35 = vmul.f32 %v8344_v62, %v10239_v23  ;;  %v2920_v6 = vmul.f32 0.5, %v2282_v14 }
 0x343   :  { %v3475_v28 = vunpack.c.l.b16 %v1520_v61  ;;  %v3576_v61 = vpack.c.b16 %v3565_v40, %v3564_v31  ;;  %v2919_v14 = vmul.f32 0.5, %v8510_v11  ;;  %v3567_v40 = vunpack.c.l.b16 %v1544_v51 }
 0x344   :  { %3412 = vrot.lane.b32.xlu2 %v3404_v13, %s6430_s21  ;;  %v3488_v53 = vpack.c.b16 %v3473_v15, %v3472_v44  ;;  %v1539_v57 = vpack.c.bf16 %v1347_v35, %v1347_v35  ;;  %v1543_v13 = vpack.c.bf16 %v1351_v38, %v1351_v38  ;;  %v2955_v44 = vmul.f32 1.442695, %v2920_v6  ;;  %v10243_v15 = vld [vmem:[#allocation50_spill] sm:$0xff] }
 0x345   :  { %v3489_v12 = vpack.c.b16 %v3475_v28, %v3474_v30  ;;  %v1371_v35 = vmul.f32 %v8246_v20, %v10243_v15  ;;  %v1369_v34 = vmul.f32 %v8308_v2, %v10243_v15  ;;  %v1367_v63 = vmul.f32 %v8287_v27, %v10243_v15 }
 0x346   :  { %v8544_v26 = vpop.eup %6176  ;;  %v3562_v28 = vunpack.c.l.b16 %v1539_v57  ;;  %v3566_v31 = vunpack.c.l.b16 %v1543_v13  ;;  %v3560_v6 = vunpack.c.l.b16 %v1537_v48  ;;  %6178 = vpow2.f32 %v2955_v44  ;;  %v10245_v48 = vld [vmem:[#allocation53_spill] sm:$0xff] }
 0x347   :  { %3594 = vrot.lane.b32.xlu1 %v3579_v36, %s6430_s21  ;;  %v1540_v36 = vpack.c.bf16 %v1348_v29, %v1348_v29  ;;  %10242 = vst [vmem:[#allocation38_spill] sm:$0xff] %v8544_v26  ;;  %v10244_v29 = vld [vmem:[#allocation51_spill] sm:$0xff]  ;;  %v1563_v57 = vpack.c.bf16 %v1371_v35, %v1371_v35  ;;  %v1559_v22 = vpack.c.bf16 %v1367_v63, %v1367_v63 }
 0x348   :  { %v1372_v30 = vmul.f32 %v8244_v52, %v10244_v29  ;;  %v1370_v11 = vmul.f32 %v8306_v32, %v10244_v29  ;;  %v1368_v33 = vmul.f32 %v8285_v24, %v10244_v29  ;;  %v1387_v51 = vmul.f32 %v8246_v20, %v7494_v3 }
 0x349   :  { %3592 = vrot.lane.b32.xlu0 %v3578_v5, %s6430_s21  ;;  %v2985_v5 = vpack.c.bf16 %v8544_v26, %v8542_v59  ;;  %v3563_v38 = vunpack.c.l.b16 %v1540_v36  ;;  %v3577_v59 = vpack.c.b16 %v3567_v40, %v3566_v31  ;;  %v1344_v40 = vmul.f32 %v8336_v60, %v10240_v50 }
 0x34a   :  { %v1564_v26 = vpack.c.bf16 %v1372_v30, %v1372_v30  ;;  %v1560_v54 = vpack.c.bf16 %v1368_v33, %v1368_v33  ;;  %v3654_v30 = vunpack.c.l.b16 %v1563_v57  ;;  %v1365_v63 = vmul.f32 %v8260_v47, %v10243_v15 }
 0x34b   :  { %v3575_v36 = vpack.c.b16 %v3563_v38, %v3562_v28  ;;  %v3259_v38 = vpop.permute.xlu1 %3258  ;;  %v1366_v33 = vmul.f32 %v8258_v4, %v10244_v29 }
 0x34c   :  { %3498 = vrot.lane.b32.xlu2 %v3489_v12, %s6430_s21  ;;  %v2953_v12 = vmul.f32 1.442695, %v2919_v14  ;;  %v2386_v14 = vpop.f32.mrf.mxu0  ;;  %v3655_v28 = vunpack.c.l.b16 %v1564_v26  ;;  %v3651_v31 = vunpack.c.l.b16 %v1560_v54  ;;  %3268 = vmatpush.bf16.msrb.mxu3 %v3259_v38  ;;  %v1557_v56 = vpack.c.bf16 %v1365_v63, %v1365_v63 }
 0x34d   :  { %v2922_v26 = vmul.f32 0.5, %v2386_v14  ;;  %v1558_v9 = vpack.c.bf16 %v1366_v33, %v1366_v33  ;;  %v2921_v14 = vmul.f32 0.5, %v8546_v41  ;;  %v1341_v41 = vmul.f32 %v8372_v19, %v10239_v23 }
 0x34e   :  { %6180 = vpow2.f32 %v2953_v12  ;;  %v1579_v12 = vpack.c.bf16 %v1387_v51, %v1387_v51  ;;  %v3663_v57 = vpack.c.b16 %v3655_v28, %v3654_v30  ;;  %v1386_v30 = vmul.f32 %v8306_v32, %v10245_v48 }
 0x34f   :  { %3496 = vrot.lane.b32.xlu1 %v3488_v53, %s6430_s21  ;;  %v3561_v53 = vunpack.c.l.b16 %v1538_v42  ;;  %v1388_v42 = vmul.f32 %v8244_v52, %v10245_v48  ;;  %v2959_v51 = vmul.f32 1.442695, %v2922_v26  ;;  %v3649_v63 = vunpack.c.l.b16 %v1558_v9 }
 0x350   :  { %3085 = vmatmul.bf16.gmra.mxu2 %v2985_v5  ;;  %v1562_v5 = vpack.c.bf16 %v1370_v11, %v1370_v11  ;;  %v3650_v11 = vunpack.c.l.b16 %v1559_v22  ;;  %v1383_v33 = vmul.f32 %v8287_v27, %v7494_v3  ;;  %v1384_v26 = vmul.f32 %v8285_v24, %v10245_v48 }
 0x351   :  { %3588 = vrot.lane.b32.xlu0 %v3576_v61, %s6430_s21  ;;  %v1561_v61 = vpack.c.bf16 %v1369_v34, %v1369_v34  ;;  %v3574_v13 = vpack.c.b16 %v3561_v53, %v3560_v6  ;;  %v8581_v6 = vpop.eup %6178  ;;  %v1580_v22 = vpack.c.bf16 %v1388_v42, %v1388_v42  ;;  %v3738_v42 = vunpack.c.l.b16 %v1579_v12 }
 0x352   :  { %v3653_v44 = vunpack.c.l.b16 %v1562_v5  ;;  %v3257_v34 = vpop.permute.xlu2 %3256  ;;  %10246 = vst [vmem:[#allocation59_spill] sm:$0xff] %v8581_v6  ;;  %v1536_v5 = vpack.c.bf16 %v1344_v40, %v1344_v40  ;;  %v3648_v40 = vunpack.c.l.b16 %v1557_v56  ;;  %6182 = vpow2.f32 %v2959_v51 }
 0x353   :  { %v3652_v35 = vunpack.c.l.b16 %v1561_v61  ;;  %3269 = vmatpush.bf16.msrb.mxu3 %v3257_v34  ;;  %v3253_v28 = vpop.permute.xlu1 %3252  ;;  %v1576_v56 = vpack.c.bf16 %v1384_v26, %v1384_v26  ;;  %v1362_v51 = vmul.f32 %v8312_v37, %v10244_v29  ;;  %v1360_v26 = vmul.f32 %v8336_v60, %v10244_v29 }
 0x354   :  { %3590 = vrot.lane.b32.xlu2 %v3577_v59, %s6430_s21  ;;  %v1343_v59 = vmul.f32 %v8338_v18, %v10239_v23  ;;  %v8583_v54 = vpop.eup %6180  ;;  %v3660_v23 = vpack.c.b16 %v3649_v63, %v3648_v40 }
 0x355   :  { %v3662_v53 = vpack.c.b16 %v3653_v44, %v3652_v35  ;;  %10247 = vst [vmem:[#allocation65_spill] sm:$0xff] %v8583_v54  ;;  %v2986_v38 = vpack.c.bf16 %v8581_v6, %v8583_v54  ;;  %v3739_v35 = vunpack.c.l.b16 %v1580_v22  ;;  %v1385_v44 = vmul.f32 %v8308_v2, %v7494_v3 }
 0x356   :  { %v1535_v61 = vpack.c.bf16 %v1343_v59, %v1343_v59  ;;  %v1342_v59 = vmul.f32 %v8370_v7, %v10240_v50  ;;  %v1575_v50 = vpack.c.bf16 %v1383_v33, %v1383_v33  ;;  %v3735_v63 = vunpack.c.l.b16 %v1576_v56 }
 0x357   :  { %3586 = vrot.lane.b32.xlu1 %v3575_v36, %s6430_s21  ;;  %v3661_v36 = vpack.c.b16 %v3651_v31, %v3650_v11  ;;  %v3559_v31 = vunpack.c.l.b16 %v1536_v5  ;;  %v3747_v12 = vpack.c.b16 %v3739_v35, %v3738_v42  ;;  %v1577_v22 = vpack.c.bf16 %v1385_v44, %v1385_v44 }
 0x358   :  { %v3558_v11 = vunpack.c.l.b16 %v1535_v61  ;;  %v1533_v61 = vpack.c.bf16 %v1341_v41, %v1341_v41  ;;  %v1534_v5 = vpack.c.bf16 %v1342_v59, %v1342_v59  ;;  %v1361_v42 = vmul.f32 %v8314_v58, %v10243_v15 }
 0x359   :  { %3584 = vrot.lane.b32.xlu0 %v3574_v13, %s6430_s21  ;;  %v8585_v13 = vpop.f32.mrf.mxu1  ;;  %v1364_v41 = vmul.f32 %v8342_v43, %v10244_v29  ;;  %v3734_v40 = vunpack.c.l.b16 %v1575_v50  ;;  %v1359_v33 = vmul.f32 %v8338_v18, %v10243_v15  ;;  %v1552_v54 = vpack.c.bf16 %v1360_v26, %v1360_v26 }
 0x35a   :  { %v8597_v34 = vpop.permute.xlu2 %3250  ;;  %v2923_v0 = vmul.f32 0.5, %v8585_v13  ;;  %v1381_v13 = vmul.f32 %v8260_v47, %v7494_v3 }
 0x35b   :  { %v3745_v50 = vpack.c.b16 %v3735_v63, %v3734_v40  ;;  %v1551_v6 = vpack.c.bf16 %v1359_v33, %v1359_v33  ;;  %v3643_v40 = vunpack.c.l.b16 %v1552_v54  ;;  %v1377_v63 = vmul.f32 %v8314_v58, %v7494_v3 }
 0x35c   :  { %3678 = vrot.lane.b32.xlu2 %v3663_v57, %s6430_s21  ;;  %v1578_v57 = vpack.c.bf16 %v1386_v30, %v1386_v30  ;;  %v3556_v30 = vunpack.c.l.b16 %v1533_v61  ;;  %v1378_v33 = vmul.f32 %v8312_v37, %v10245_v48  ;;  %v2961_v26 = vmul.f32 1.442695, %v2923_v0 }
 0x35d   :  { %v3255_v59 = vpop.permute.xlu0 %3254  ;;  %v1569_v54 = vpack.c.bf16 %v1377_v63, %v1377_v63 }
 0x35e   :  { %3270 = vmatpush.bf16.msrb.mxu3 %v3255_v59  ;;  %v3642_v59 = vunpack.c.l.b16 %v1551_v6 }
 0x35f   :  { %3676 = vrot.lane.b32.xlu1 %v3662_v53, %s6430_s21  ;;  %v2957_v53 = vmul.f32 1.442695, %v2921_v14  ;;  %v3737_v14 = vunpack.c.l.b16 %v1578_v57  ;;  %v1553_v57 = vpack.c.bf16 %v1361_v42, %v1361_v42  ;;  %v1379_v42 = vmul.f32 %v8344_v62, %v7494_v3 }
 0x360   :  { %3090 = vmatmul.bf16.gmra.mxu2 %v2986_v38  ;;  %v3736_v38 = vunpack.c.l.b16 %v1577_v22  ;;  %v3657_v6 = vpack.c.b16 %v3643_v40, %v3642_v59  ;;  %v1375_v59 = vmul.f32 %v8338_v18, %v7494_v3  ;;  %v1376_v40 = vmul.f32 %v8336_v60, %v10245_v48 }
 0x361   :  { %3674 = vrot.lane.b32.xlu0 %v3661_v36, %s6430_s21  ;;  %v3573_v36 = vpack.c.b16 %v3559_v31, %v3558_v11  ;;  %6184 = vpow2.f32 %v2957_v53  ;;  %v2490_v9 = vpop.f32.mrf.mxu1  ;;  %v3557_v11 = vunpack.c.l.b16 %v1534_v5  ;;  %v1363_v31 = vmul.f32 %v8344_v62, %v10243_v15  ;;  %v8624_v53 = vpop.eup %6182 }
 0x362   :  { %v8614_v44 = vpop.permute.xlu2 %3246  ;;  %v3746_v22 = vpack.c.b16 %v3737_v14, %v3736_v38  ;;  %3271 = vmatpush.bf16.msrb.mxu3 %v3253_v28  ;;  %v3644_v38 = vunpack.c.l.b16 %v1553_v57  ;;  %v1382_v28 = vmul.f32 %v8258_v4, %v10245_v48  ;;  %v1571_v57 = vpack.c.bf16 %v1379_v42, %v1379_v42 }
 0x363   :  { %v3572_v5 = vpack.c.b16 %v3557_v11, %v3556_v30 }
 0x364   :  { %3582 = vrot.lane.b32.xlu2 %v3573_v36, %s6430_s21  ;;  %v1554_v36 = vpack.c.bf16 %v1362_v51, %v1362_v51  ;;  %v1380_v51 = vmul.f32 %v8342_v43, %v10245_v48  ;;  %v3730_v0 = vunpack.c.l.b16 %v1571_v57 }
 0x365   :  { %v3343_v35 = vpop.permute.xlu1 %3342 }
 0x366   :  { %3352 = vmatpush.bf16.msrb.mxu0 %v3343_v35  ;;  %v1556_v35 = vpack.c.bf16 %v1364_v41, %v1364_v41  ;;  %v3645_v14 = vunpack.c.l.b16 %v1554_v36  ;;  %3272 = vmatpush.bf16.msrb.mxu3 %v8597_v34  ;;  %v1572_v36 = vpack.c.bf16 %v1380_v51, %v1380_v51  ;;  %v1357_v51 = vmul.f32 %v8372_v19, %v10243_v15 }
 0x367   :  { %3762 = vrot.lane.b32.xlu1 %v3747_v12, %s6430_s21  ;;  %v2924_v12 = vmul.f32 0.5, %v2490_v9  ;;  %v8626_v61 = vpop.eup %6184 }
 0x368   :  { %v2987_v56 = vpack.c.bf16 %v8624_v53, %v8626_v61  ;;  %v3731_v34 = vunpack.c.l.b16 %v1572_v36 }
 0x369   :  { %3672 = vrot.lane.b32.xlu0 %v3660_v23, %s6430_s21  ;;  %v1555_v23 = vpack.c.bf16 %v1363_v31, %v1363_v31  ;;  %v2963_v9 = vmul.f32 1.442695, %v2924_v12  ;;  %v3647_v31 = vunpack.c.l.b16 %v1556_v35  ;;  %v1574_v35 = vpack.c.bf16 %v1382_v28, %v1382_v28 }
 0x36a   :  { %v3728_v28 = vunpack.c.l.b16 %v1569_v54  ;;  %v1567_v54 = vpack.c.bf16 %v1375_v59, %v1375_v59 }
 0x36b   :  { %v3646_v11 = vunpack.c.l.b16 %v1555_v23  ;;  %6186 = vpow2.f32 %v2963_v9  ;;  %v1573_v23 = vpack.c.bf16 %v1381_v13, %v1381_v13  ;;  %v1436_v9 = vmul.f32 %v8244_v52, %v7712_v17 }
 0x36c   :  { %3580 = vrot.lane.b32.xlu2 %v3572_v5, %s6430_s21  ;;  %6188 = vpow2.f32 %v2961_v26  ;;  %v3733_v42 = vunpack.c.l.b16 %v1574_v35 }
 0x36d   :  { %v3659_v5 = vpack.c.b16 %v3647_v31, %v3646_v11  ;;  %v1358_v11 = vmul.f32 %v8370_v7, %v10244_v29  ;;  %v8658_v31 = vpop.f32.mrf.mxu3  ;;  %v1628_v26 = vpack.c.bf16 %v1436_v9, %v1436_v9 }
 0x36e   :  { %v3339_v30 = vpop.permute.xlu2 %3338 }
 0x36f   :  { %3760 = vrot.lane.b32.xlu1 %v3746_v22, %s6430_s21  ;;  %v3658_v22 = vpack.c.b16 %v3645_v14, %v3644_v38  ;;  %v3732_v14 = vunpack.c.l.b16 %v1573_v23  ;;  %v1550_v23 = vpack.c.bf16 %v1358_v11, %v1358_v11  ;;  %v3991_v9 = vunpack.c.l.b16 %v1628_v26  ;;  %v10250_v11 = vld [vmem:[#allocation56_spill] sm:$0xff] }
 0x370   :  { %3095 = vmatmul.bf16.gmra.mxu2 %v2987_v56  ;;  %v1435_v56 = vmul.f32 %v8246_v20, %v7717_v39 }
 0x371   :  { %3758 = vrot.lane.b32.xlu0 %v3745_v50, %s6430_s21  ;;  %v1570_v50 = vpack.c.bf16 %v1378_v33, %v1378_v33  ;;  %v8664_v63 = vpop.eup %6186  ;;  %v3743_v33 = vpack.c.b16 %v3731_v34, %v3730_v0  ;;  %v3744_v57 = vpack.c.b16 %v3733_v42, %v3732_v14  ;;  %v1433_v0 = vmul.f32 %v8308_v2, %v7717_v39 }
 0x372   :  { %10248 = vst [vmem:[#allocation62_spill] sm:$0xff] %v8664_v63  ;;  %v1627_v29 = vpack.c.bf16 %v1435_v56, %v1435_v56  ;;  %v1403_v14 = vmul.f32 %v8246_v20, %v7586_v10 }
 0x373   :  { %v3249_v41 = vpop.permute.xlu0 %3248  ;;  %v2592_v12 = vpop.f32.mrf.mxu2 }
 0x374   :  { %3670 = vrot.lane.b32.xlu2 %v3659_v5, %s6430_s21  ;;  %3273 = vmatpush.bf16.msrb.mxu3 %v3249_v41  ;;  %v3729_v41 = vunpack.c.l.b16 %v1570_v50  ;;  %v1549_v5 = vpack.c.bf16 %v1357_v51, %v1357_v51  ;;  %v1568_v50 = vpack.c.bf16 %v1376_v40, %v1376_v40  ;;  %v3990_v56 = vunpack.c.l.b16 %v1627_v29 }
 0x375   :  { %v3641_v51 = vunpack.c.l.b16 %v1550_v23  ;;  %v1373_v40 = vmul.f32 %v8372_v19, %v7494_v3  ;;  %v1625_v29 = vpack.c.bf16 %v1433_v0, %v1433_v0  ;;  %v2698_v26 = vpop.f32.mrf.mxu3 }
 0x376   :  { %v3427_v38 = vpop.permute.xlu2 %3426  ;;  %v3742_v35 = vpack.c.b16 %v3729_v41, %v3728_v28  ;;  %v3726_v41 = vunpack.c.l.b16 %v1567_v54  ;;  %v3727_v59 = vunpack.c.l.b16 %v1568_v50 }
 0x377   :  { %3668 = vrot.lane.b32.xlu1 %v3658_v22, %s6430_s21  ;;  %3436 = vmatpush.bf16.msra.mxu1 %v3427_v38  ;;  %v8667_v22 = vpop.eup %6188  ;;  %v1434_v38 = vmul.f32 %v8306_v32, %v7712_v17  ;;  %v1565_v3 = vpack.c.bf16 %v1373_v40, %v1373_v40  ;;  %v1430_v40 = vmul.f32 %v8258_v4, %v7712_v17 }
 0x378   :  { %3274 = vmatpush.bf16.msrb.mxu3 %v8614_v44  ;;  %10249 = vst [vmem:[#allocation55_spill] sm:$0xff] %v8667_v22  ;;  %v2925_v44 = vmul.f32 0.5, %v2592_v12  ;;  %v3741_v54 = vpack.c.b16 %v3727_v59, %v3726_v41 }
 0x379   :  { %3666 = vrot.lane.b32.xlu0 %v3657_v6, %s6430_s21  ;;  %v2988_v6 = vpack.c.bf16 %v8664_v63, %v8667_v22  ;;  %v3724_v41 = vunpack.c.l.b16 %v1565_v3  ;;  %v1622_v22 = vpack.c.bf16 %v1430_v40, %v1430_v40 }
 0x37b   :  { %v3341_v13 = vpop.permute.xlu0 %3340  ;;  %v2594_v15 = vpop.f32.mrf.mxu2 }
 0x37c   :  { %3353 = vmatpush.bf16.msrb.mxu0 %v3341_v13  ;;  %v2926_v36 = vmul.f32 0.5, %v2594_v15  ;;  %3756 = vrot.lane.b32.xlu2 %v3744_v57, %s6430_s21  ;;  %v1404_v13 = vmul.f32 %v8244_v52, %v10250_v11  ;;  %v1374_v15 = vmul.f32 %v8370_v7, %v10245_v48  ;;  %v3999_v57 = vpack.c.b16 %v3991_v9, %v3990_v56 }
 0x37d   :  { %v3988_v48 = vunpack.c.l.b16 %v1625_v29  ;;  %v1432_v56 = vmul.f32 %v8285_v24, %v7712_v17  ;;  %v1401_v9 = vmul.f32 %v8308_v2, %v7586_v10 }
 0x37e   :  { %v8680_v42 = vpop.permute.xlu2 %3330  ;;  %v2967_v12 = vmul.f32 1.442695, %v2926_v36  ;;  %v1626_v36 = vpack.c.bf16 %v1434_v38, %v1434_v38  ;;  %v1566_v50 = vpack.c.bf16 %v1374_v15, %v1374_v15  ;;  %v1402_v38 = vmul.f32 %v8306_v32, %v10250_v11 }
 0x37f   :  { %3754 = vrot.lane.b32.xlu1 %v3743_v33, %s6430_s21  ;;  %v2965_v33 = vmul.f32 1.442695, %v2925_v44 }
 0x380   :  { %3354 = vmatpush.bf16.msrb.mxu0 %v3339_v30  ;;  %3100 = vmatmul.bf16.gmra.mxu2 %v2988_v6  ;;  %v3640_v30 = vunpack.c.l.b16 %v1549_v5  ;;  %v1595_v5 = vpack.c.bf16 %v1403_v14, %v1403_v14  ;;  %6190 = vpow2.f32 %v2967_v12  ;;  %v1431_v6 = vmul.f32 %v8287_v27, %v7717_v39 }
 0x381   :  { %v3245_v34 = vpop.permute.xlu1 %3244  ;;  %3752 = vrot.lane.b32.xlu0 %v3742_v35, %s6430_s21  ;;  %v1596_v35 = vpack.c.bf16 %v1404_v13, %v1404_v13  ;;  %6192 = vpow2.f32 %v2965_v33  ;;  %v3989_v0 = vunpack.c.l.b16 %v1626_v36  ;;  %v1429_v13 = vmul.f32 %v8260_v47, %v7717_v39 }
 0x382   :  { %3275 = vmatpush.bf16.msrb.mxu3 %v3245_v34  ;;  %v3656_v23 = vpack.c.b16 %v3641_v51, %v3640_v30  ;;  %v2928_v34 = vmul.f32 0.5, %v2698_v26  ;;  %v3822_v12 = vunpack.c.l.b16 %v1595_v5  ;;  %v1623_v51 = vpack.c.bf16 %v1431_v6, %v1431_v6 }
 0x383   :  { %v3337_v28 = vpop.permute.xlu0 %3336  ;;  %v3823_v30 = vunpack.c.l.b16 %v1596_v35  ;;  %v3725_v59 = vunpack.c.l.b16 %v1566_v50  ;;  %v2927_v33 = vmul.f32 0.5, %v8658_v31  ;;  %v3998_v29 = vpack.c.b16 %v3989_v0, %v3988_v48  ;;  %v8713_v48 = vpop.f32.mrf.mxu0 }
 0x384   :  { %3355 = vmatpush.bf16.msrb.mxu0 %v3337_v28  ;;  %3664 = vrot.lane.b32.xlu2 %v3656_v23, %s6430_s21  ;;  %v1593_v36 = vpack.c.bf16 %v1401_v9, %v1401_v9  ;;  %v1594_v5 = vpack.c.bf16 %v1402_v38, %v1402_v38  ;;  %v2971_v35 = vmul.f32 1.442695, %v2928_v34  ;;  %v1621_v3 = vpack.c.bf16 %v1429_v13, %v1429_v13 }
 0x385   :  { %v3831_v6 = vpack.c.b16 %v3823_v30, %v3822_v12  ;;  %v3740_v50 = vpack.c.b16 %v3725_v59, %v3724_v41  ;;  %v1397_v31 = vmul.f32 %v8260_v47, %v7586_v10  ;;  %v1398_v34 = vmul.f32 %v8258_v4, %v10250_v11 }
 0x386   :  { %v3329_v14 = vpop.permute.xlu2 %3328  ;;  %v8703_v15 = vpop.eup %6190  ;;  %v1399_v0 = vmul.f32 %v8287_v27, %v7586_v10  ;;  %v3820_v12 = vunpack.c.l.b16 %v1593_v36  ;;  %v3821_v30 = vunpack.c.l.b16 %v1594_v5  ;;  %v2969_v41 = vmul.f32 1.442695, %v2927_v33 }
 0x387   :  { %4014 = vrot.lane.b32.xlu1 %v3999_v57, %s6430_s21  ;;  %10251 = vst [vmem:[#allocation58_spill] sm:$0xff] %v8703_v15  ;;  %v1624_v57 = vpack.c.bf16 %v1432_v56, %v1432_v56  ;;  %v8706_v23 = vpop.eup %6192  ;;  %v1400_v56 = vmul.f32 %v8285_v24, %v10250_v11  ;;  %v3984_v40 = vunpack.c.l.b16 %v1621_v3  ;;  %v1419_v33 = vmul.f32 %v8246_v20, %v7640_v16 }
 0x388   :  { %10252 = vst [vmem:[#allocation67_spill] sm:$0xff] %v8706_v23  ;;  %v1591_v36 = vpack.c.bf16 %v1399_v0, %v1399_v0 }
 0x389   :  { %v3335_v44 = vpop.permute.xlu1 %3334  ;;  %3750 = vrot.lane.b32.xlu0 %v3741_v54, %s6430_s21  ;;  %v3986_v54 = vunpack.c.l.b16 %v1623_v51  ;;  %v3987_v38 = vunpack.c.l.b16 %v1624_v57  ;;  %v1395_v51 = vmul.f32 %v8344_v62, %v7586_v10  ;;  %v1590_v57 = vpack.c.bf16 %v1398_v34, %v1398_v34 }
 0x38a   :  { %3356 = vmatpush.bf16.msrb.mxu0 %v3335_v44  ;;  %v2989_v44 = vpack.c.bf16 %v8703_v15, %v8706_v23  ;;  %v1592_v5 = vpack.c.bf16 %v1400_v56, %v1400_v56 }
 0x38b   :  { %v3333_v28 = vpop.permute.xlu0 %3332  ;;  %v1587_v23 = vpack.c.bf16 %v1395_v51, %v1395_v51 }
 0x38c   :  { %3846 = vrot.lane.b32.xlu2 %v3831_v6, %s6430_s21  ;;  %v3997_v6 = vpack.c.b16 %v3987_v38, %v3986_v54  ;;  %v3817_v54 = vunpack.c.l.b16 %v1590_v57  ;;  %v3819_v34 = vunpack.c.l.b16 %v1592_v5  ;;  %v1428_v38 = vmul.f32 %v8342_v43, %v7712_v17 }
 0x38e   :  { %3357 = vmatpush.bf16.msrb.mxu0 %v3333_v28  ;;  %v8725_v13 = vpop.permute.xlu2 %3418  ;;  %v1396_v28 = vmul.f32 %v8342_v43, %v10250_v11 }
 0x38f   :  { %4012 = vrot.lane.b32.xlu1 %v3998_v29, %s6430_s21  ;;  %v3985_v29 = vunpack.c.l.b16 %v1622_v22  ;;  %v1420_v22 = vmul.f32 %v8244_v52, %v7643_v46 }
 0x390   :  { %3105 = vmatmul.bf16.gmra.mxu2 %v2989_v44 }
 0x391   :  { %v3425_v9 = vpop.permute.xlu1 %3424  ;;  %3748 = vrot.lane.b32.xlu0 %v3740_v50, %s6430_s21  ;;  %v3830_v50 = vpack.c.b16 %v3821_v30, %v3820_v12  ;;  %v3996_v3 = vpack.c.b16 %v3985_v29, %v3984_v40  ;;  %v2802_v12 = vpop.f32.mrf.mxu0 }
 0x392   :  { %3358 = vmatpush.bf16.msrb.mxu0 %v8680_v42  ;;  %3437 = vmatpush.bf16.msra.mxu1 %v3425_v9  ;;  %v1588_v42 = vpack.c.bf16 %v1396_v28, %v1396_v28  ;;  %v3814_v9 = vunpack.c.l.b16 %v1587_v23  ;;  %v1611_v28 = vpack.c.bf16 %v1419_v33, %v1419_v33  ;;  %v2930_v5 = vmul.f32 0.5, %v2802_v12 }
 0x393   :  { %v3066_v26 = vpop.f32.mrf.mxu2  ;;  %v3423_v59 = vpop.permute.xlu0 %3422 }
 0x394   :  { %6194 = vrcp.f32 %v3066_v26  ;;  %v1589_v26 = vpack.c.bf16 %v1397_v31, %v1397_v31  ;;  %3844 = vrot.lane.b32.xlu2 %v3830_v50, %s6430_s21  ;;  %v3818_v31 = vunpack.c.l.b16 %v1591_v36  ;;  %v3815_v51 = vunpack.c.l.b16 %v1588_v42 }
 0x395   :  { %6196 = vpow2.f32 %v2971_v35  ;;  %v1620_v42 = vpack.c.bf16 %v1428_v38, %v1428_v38 }
 0x396   :  { %3359 = vmatpush.bf16.msrb.mxu0 %v3329_v14  ;;  %3438 = vmatpush.bf16.msra.mxu1 %v3423_v59  ;;  %v3816_v35 = vunpack.c.l.b16 %v1589_v26  ;;  %v1427_v14 = vmul.f32 %v8344_v62, %v7717_v39  ;;  %v8742_v30 = vpop.permute.xlu2 %3504  ;;  %v1393_v59 = vmul.f32 %v8314_v58, %v7586_v10  ;;  %v3829_v26 = vpack.c.b16 %v3819_v34, %v3818_v31 }
 0x397   :  { %4010 = vrot.lane.b32.xlu1 %v3997_v6, %s6430_s21  ;;  %v3827_v33 = vpack.c.b16 %v3815_v51, %v3814_v9  ;;  %v1417_v31 = vmul.f32 %v8308_v2, %v7640_v16  ;;  %v2929_v34 = vmul.f32 0.5, %v8713_v48  ;;  %v2975_v9 = vmul.f32 1.442695, %v2930_v5 }
 0x398   :  { %v3828_v29 = vpack.c.b16 %v3817_v54, %v3816_v35  ;;  %v1619_v57 = vpack.c.bf16 %v1427_v14, %v1427_v14  ;;  %v8759_v14 = vpop.f32.mrf.mxu1  ;;  %v1426_v48 = vmul.f32 %v8312_v37, %v7712_v17 }
 0x399   :  { %v3511_v56 = vpop.permute.xlu1 %3510  ;;  %4008 = vrot.lane.b32.xlu0 %v3996_v3, %s6430_s21 }
 0x39a   :  { %v6195_v15 = vpop.eup %6194  ;;  %3520 = vmatpush.bf16.msra.mxu3 %v3511_v56  ;;  %v1585_v56 = vpack.c.bf16 %v1393_v59, %v1393_v59  ;;  %v1391_v59 = vmul.f32 %v8338_v18, %v7586_v10 }
 0x39b   :  { %v3068_v44 = vpop.f32.mrf.mxu2  ;;  %v3150_v0 = vmul.f32 %v6195_v15, %v8376_v1  ;;  %v8746_v40 = vpop.eup %6196  ;;  %v1394_v15 = vmul.f32 %v8312_v37, %v10250_v11 }
 0x39c   :  { %6198 = vrcp.f32 %v3068_v44  ;;  %10253 = vst [vmem:[#allocation60_spill] sm:$0xff] %v8746_v40  ;;  %v3421_v1 = vpop.permute.xlu0 %3420  ;;  %3842 = vrot.lane.b32.xlu2 %v3829_v26, %s6430_s21  ;;  %v2973_v26 = vmul.f32 1.442695, %v2929_v34  ;;  %v1423_v34 = vmul.f32 %v8338_v18, %v7717_v39 }
 0x39d   :  { %6200 = vpow2.f32 %v2969_v41  ;;  %v1612_v41 = vpack.c.bf16 %v1420_v22, %v1420_v22  ;;  %3439 = vmatpush.bf16.msra.mxu1 %v3421_v1  ;;  %v3174_v6 = vpack.c.bf16 %v3150_v0, %v3150_v0  ;;  %v3906_v22 = vunpack.c.l.b16 %v1611_v28 }
 0x39e   :  { %v1586_v54 = vpack.c.bf16 %v1394_v15, %v1394_v15  ;;  %v1425_v0 = vmul.f32 %v8314_v58, %v7717_v39  ;;  %v8770_v28 = vpop.permute.xlu2 %3412  ;;  %v1392_v1 = vmul.f32 %v8336_v60, %v10250_v11 }
 0x39f   :  { %v3907_v3 = vunpack.c.l.b16 %v1612_v41  ;;  %3840 = vrot.lane.b32.xlu1 %v3828_v29, %s6430_s21  ;;  %v3200_v38 = vunpack.c.l.b16 %v3174_v6  ;;  %v3983_v41 = vunpack.c.l.b16 %v1620_v42  ;;  %v1609_v6 = vpack.c.bf16 %v1417_v31, %v1417_v31 }
 0x3a0   :  { %v1415_v42 = vmul.f32 %v8287_v27, %v7640_v16 }
 0x3a1   :  { %3440 = vmatpush.bf16.msra.mxu1 %v8725_v13  ;;  %v3509_v51 = vpop.permute.xlu1 %3508  ;;  %3838 = vrot.lane.b32.xlu0 %v3827_v33, %s6430_s21  ;;  %v3982_v13 = vunpack.c.l.b16 %v1619_v57  ;;  %v3915_v5 = vpack.c.b16 %v3907_v3, %v3906_v22  ;;  %v1617_v33 = vpack.c.bf16 %v1425_v0, %v1425_v0  ;;  %v1618_v57 = vpack.c.bf16 %v1426_v48, %v1426_v48  ;;  %v2906_v48 = vpop.f32.mrf.mxu1 }
 0x3a2   :  { %v6199_v23 = vpop.eup %6198  ;;  %3521 = vmatpush.bf16.msra.mxu3 %v3509_v51  ;;  %v1416_v22 = vmul.f32 %v8285_v24, %v7643_v46  ;;  %v3904_v3 = vunpack.c.l.b16 %v1609_v6  ;;  %v1615_v6 = vpack.c.bf16 %v1423_v34, %v1423_v34 }
 0x3a3   :  { %v8750_v36 = vpop.eup %6200  ;;  %v3151_v50 = vmul.f32 %v6199_v23, %v8368_v8  ;;  %v3071_v44 = vpop.f32.mrf.mxu2  ;;  %v1418_v8 = vmul.f32 %v8306_v32, %v7643_v46  ;;  %v3813_v23 = vunpack.c.l.b16 %v1586_v54  ;;  %v3995_v51 = vpack.c.b16 %v3983_v41, %v3982_v13 }
 0x3a4   :  { %v2990_v35 = vpack.c.bf16 %v8746_v40, %v8750_v36  ;;  %6202 = vrcp.f32 %v3071_v44  ;;  %v3507_v15 = vpop.permute.xlu0 %3506  ;;  %v1583_v40 = vpack.c.bf16 %v1391_v59, %v1391_v59 }
 0x3a5   :  { %v3175_v63 = vpack.c.bf16 %v3151_v50, %v3151_v50  ;;  %v1610_v50 = vpack.c.bf16 %v1418_v8, %v1418_v8  ;;  %6204 = vpow2.f32 %v2975_v9  ;;  %4006 = vrot.lane.b32.xlu2 %v3995_v51, %s6430_s21  ;;  %v3980_v9 = vunpack.c.l.b16 %v1617_v33 }
 0x3a6   :  { %3110 = vmatmul.bf16.gmra.mxu2 %v2990_v35  ;;  %3522 = vmatpush.bf16.msra.mxu3 %v3507_v15  ;;  %v8786_v13 = vpop.permute.xlu2 %3498  ;;  %v3810_v41 = vunpack.c.l.b16 %v1583_v40 }
 0x3a7   :  { %v3201_v12 = vunpack.c.l.b16 %v3175_v63  ;;  %v3812_v63 = vunpack.c.l.b16 %v1585_v56  ;;  %v1584_v56 = vpack.c.bf16 %v1392_v1, %v1392_v1  ;;  %3930 = vrot.lane.b32.xlu1 %v3915_v5, %s6430_s21  ;;  %v3905_v31 = vunpack.c.l.b16 %v1610_v50 }
 0x3a8   :  { %v1424_v1 = vmul.f32 %v8336_v60, %v7712_v17  ;;  %v2932_v50 = vmul.f32 0.5, %v2906_v48 }
 0x3a9   :  { %v3202_v29 = vpack.c.b16 %v3201_v12, %v3200_v38  ;;  %v3826_v54 = vpack.c.b16 %v3813_v23, %v3812_v63  ;;  %v3417_v0 = vpop.permute.xlu1 %3416  ;;  %v3981_v38 = vunpack.c.l.b16 %v1618_v57  ;;  %v1607_v12 = vpack.c.bf16 %v1415_v42, %v1415_v42 }
 0x3aa   :  { %v6203_v35 = vpop.eup %6202  ;;  %3441 = vmatpush.bf16.msra.mxu1 %v3417_v0  ;;  %3523 = vmatpush.bf16.msra.mxu3 %v8742_v30  ;;  %v3811_v59 = vunpack.c.l.b16 %v1584_v56  ;;  %v1608_v23 = vpack.c.bf16 %v1416_v22, %v1416_v22  ;;  %v3914_v5 = vpack.c.b16 %v3905_v31, %v3904_v3  ;;  %v2931_v3 = vmul.f32 0.5, %v8759_v14 }
 0x3ab   :  { %v3073_v44 = vpop.f32.mrf.mxu2  ;;  %3276 = vmatmul.bf16.vlgmr.msrb.gmra.mxu3 %v3202_v29  ;;  %v3152_v8 = vmul.f32 %v6203_v35, %v8416_v25  ;;  %3836 = vrot.lane.b32.xlu0 %v3826_v54, %s6430_s21  ;;  %v1389_v25 = vmul.f32 %v8372_v19, %v7586_v10  ;;  %v8793_v15 = vpop.eup %6204  ;;  %v1390_v29 = vmul.f32 %v8370_v7, %v10250_v11  ;;  %v3902_v33 = vunpack.c.l.b16 %v1607_v12 }
 0x3ac   :  { %6206 = vrcp.f32 %v3073_v44  ;;  %v3415_v63 = vpop.permute.xlu0 %3414  ;;  %v3994_v10 = vpack.c.b16 %v3981_v38, %v3980_v9  ;;  %v3825_v42 = vpack.c.b16 %v3811_v59, %v3810_v41  ;;  %v1616_v35 = vpack.c.bf16 %v1424_v1, %v1424_v1 }
 0x3ad   :  { %6208 = vpow2.f32 %v2973_v26  ;;  %v3176_v30 = vpack.c.bf16 %v3152_v8, %v3152_v8  ;;  %v1581_v51 = vpack.c.bf16 %v1389_v25, %v1389_v25  ;;  %v3903_v11 = vunpack.c.l.b16 %v1608_v23 }
 0x3ae   :  { %3442 = vmatpush.bf16.msra.mxu1 %v3415_v63  ;;  %v1582_v22 = vpack.c.bf16 %v1390_v29, %v1390_v29  ;;  %4004 = vrot.lane.b32.xlu2 %v3994_v10, %s6430_s21  ;;  %v1413_v31 = vmul.f32 %v8260_v47, %v7640_v16  ;;  %v2979_v34 = vmul.f32 1.442695, %v2932_v50  ;;  %v1414_v38 = vmul.f32 %v8258_v4, %v7643_v46  ;;  %v8810_v12 = vpop.permute.xlu2 %3590 }
 0x3af   :  { %3928 = vrot.lane.b32.xlu1 %v3914_v5, %s6430_s21  ;;  %v3284_v8 = vunpack.c.l.b16 %v3176_v30  ;;  %v3979_v14 = vunpack.c.l.b16 %v1616_v35  ;;  %v3808_v48 = vunpack.c.l.b16 %v1581_v51  ;;  %v1421_v41 = vmul.f32 %v8372_v19, %v7717_v39 }
 0x3b0   :  { %v1422_v59 = vmul.f32 %v8370_v7, %v7712_v17  ;;  %v3809_v25 = vunpack.c.l.b16 %v1582_v22  ;;  %v1409_v23 = vmul.f32 %v8314_v58, %v7640_v16  ;;  %v1410_v29 = vmul.f32 %v8312_v37, %v7643_v46 }
 0x3b1   :  { %v3503_v9 = vpop.permute.xlu1 %3502  ;;  %v1606_v50 = vpack.c.bf16 %v1414_v38, %v1414_v38  ;;  %v1613_v17 = vpack.c.bf16 %v1421_v41, %v1421_v41  ;;  %v1408_v35 = vmul.f32 %v8336_v60, %v7643_v46  ;;  %v1411_v51 = vmul.f32 %v8344_v62, %v7640_v16 }
 0x3b2   :  { %v6207_v26 = vpop.eup %6206  ;;  %3443 = vmatpush.bf16.msra.mxu1 %v8770_v28  ;;  %3524 = vmatpush.bf16.msra.mxu3 %v3503_v9  ;;  %v3913_v28 = vpack.c.b16 %v3903_v11, %v3902_v33  ;;  %v1601_v10 = vpack.c.bf16 %v1409_v23, %v1409_v23  ;;  %v1407_v33 = vmul.f32 %v8338_v18, %v7640_v16 }
 0x3b3   :  { %v3153_v40 = vmul.f32 %v6207_v26, %v8414_v49  ;;  %v3076_v44 = vpop.f32.mrf.mxu2  ;;  %v8798_v57 = vpop.eup %6208  ;;  %v3978_v49 = vunpack.c.l.b16 %v1615_v6  ;;  %3834 = vrot.lane.b32.xlu0 %v3825_v42, %s6430_s21  ;;  %v2977_v26 = vmul.f32 1.442695, %v2931_v3  ;;  %v1605_v6 = vpack.c.bf16 %v1413_v31, %v1413_v31 }
 0x3b4   :  { %v2991_v54 = vpack.c.bf16 %v8793_v15, %v8798_v57  ;;  %6210 = vrcp.f32 %v3076_v44  ;;  %v3501_v1 = vpop.permute.xlu0 %3500  ;;  %v3824_v44 = vpack.c.b16 %v3809_v25, %v3808_v48  ;;  %v1602_v42 = vpack.c.bf16 %v1410_v29, %v1410_v29  ;;  %v10254_v25 = vld [vmem:[#allocation64_spill] sm:$0xff] }
 0x3b5   :  { %v3177_v56 = vpack.c.bf16 %v3153_v40, %v3153_v40  ;;  %6212 = vpow2.f32 %v2979_v34  ;;  %v3993_v30 = vpack.c.b16 %v3979_v14, %v3978_v49  ;;  %v1614_v40 = vpack.c.bf16 %v1422_v59, %v1422_v59 }
 0x3b6   :  { %3115 = vmatmul.bf16.gmra.mxu2 %v2991_v54  ;;  %3525 = vmatpush.bf16.msra.mxu3 %v3501_v1  ;;  %v3900_v54 = vunpack.c.l.b16 %v1605_v6  ;;  %v3901_v22 = vunpack.c.l.b16 %v1606_v50  ;;  %v3679_v3 = vpop.permute.xlu2 %3678  ;;  %v3976_v49 = vunpack.c.l.b16 %v1613_v17  ;;  %v1412_v34 = vmul.f32 %v8342_v43, %v7643_v46 }
 0x3b7   :  { %v3285_v0 = vunpack.c.l.b16 %v3177_v56  ;;  %3926 = vrot.lane.b32.xlu1 %v3913_v28, %s6430_s21  ;;  %4002 = vrot.lane.b32.xlu2 %v3993_v30, %s6430_s21  ;;  %v3977_v31 = vunpack.c.l.b16 %v1614_v40  ;;  %v3896_v9 = vunpack.c.l.b16 %v1601_v10  ;;  %v3897_v38 = vunpack.c.l.b16 %v1602_v42 }
 0x3b8   :  { %3688 = vmatpush.bf16.msrb.mxu1 %v3679_v3  ;;  %v1452_v14 = vmul.f32 %v8244_v52, %v7915_v45  ;;  %v1600_v41 = vpack.c.bf16 %v1408_v35, %v1408_v35  ;;  %v1603_v59 = vpack.c.bf16 %v1411_v51, %v1411_v51  ;;  %v3912_v23 = vpack.c.b16 %v3901_v22, %v3900_v54 }
 0x3b9   :  { %v3286_v63 = vpack.c.b16 %v3285_v0, %v3284_v8  ;;  %v3595_v11 = vpop.permute.xlu1 %3594  ;;  %v1451_v8 = vmul.f32 %v8246_v20, %v7920_v55  ;;  %v3992_v28 = vpack.c.b16 %v3977_v31, %v3976_v49  ;;  %v1449_v51 = vmul.f32 %v8308_v2, %v7920_v55 }
 0x3ba   :  { %v6211_v39 = vpop.eup %6210  ;;  %3526 = vmatpush.bf16.msra.mxu3 %v8786_v13  ;;  %3604 = vmatpush.bf16.msra.mxu0 %v3595_v11  ;;  %v1599_v13 = vpack.c.bf16 %v1407_v33, %v1407_v33  ;;  %v1644_v17 = vpack.c.bf16 %v1452_v14, %v1452_v14  ;;  %v3898_v10 = vunpack.c.l.b16 %v1603_v59  ;;  %v1405_v3 = vmul.f32 %v8372_v19, %v7640_v16 }
 0x3bb   :  { %v3078_v5 = vpop.f32.mrf.mxu2  ;;  %3360 = vmatmul.bf16.vlgmr.msrb.gmra.mxu0 %v3286_v63  ;;  %v3154_v56 = vmul.f32 %v6211_v39, %v8454_v21  ;;  %3832 = vrot.lane.b32.xlu0 %v3824_v44, %s6430_s21  ;;  %v8836_v0 = vpop.eup %6212  ;;  %v1643_v6 = vpack.c.bf16 %v1451_v8, %v1451_v8  ;;  %v3910_v39 = vpack.c.b16 %v3897_v38, %v3896_v9  ;;  %v3895_v44 = vunpack.c.l.b16 %v1600_v41 }
 0x3bc   :  { %6214 = vrcp.f32 %v3078_v5  ;;  %v3593_v21 = vpop.permute.xlu0 %3592  ;;  %v1604_v5 = vpack.c.bf16 %v1412_v34, %v1412_v34  ;;  %v3894_v40 = vunpack.c.l.b16 %v1599_v13  ;;  %v1406_v49 = vmul.f32 %v8370_v7, %v7643_v46 }
 0x3bd   :  { %6216 = vpow2.f32 %v2977_v26  ;;  %v3178_v1 = vpack.c.bf16 %v3154_v56, %v3154_v56  ;;  %v1450_v56 = vmul.f32 %v8306_v32, %v7915_v45  ;;  %v4074_v22 = vunpack.c.l.b16 %v1643_v6 }
 0x3be   :  { %3605 = vmatpush.bf16.msra.mxu0 %v3593_v21  ;;  %v8852_v11 = vpop.permute.xlu2 %3582  ;;  %v3899_v54 = vunpack.c.l.b16 %v1604_v5  ;;  %v4075_v8 = vunpack.c.l.b16 %v1644_v17  ;;  %v1445_v21 = vmul.f32 %v8260_v47, %v7920_v55  ;;  %v1446_v9 = vmul.f32 %v8258_v4, %v7915_v45 }
 0x3bf   :  { %3924 = vrot.lane.b32.xlu1 %v3912_v23, %s6430_s21  ;;  %4000 = vrot.lane.b32.xlu2 %v3992_v28, %s6430_s21  ;;  %v3368_v42 = vunpack.c.l.b16 %v3178_v1  ;;  %v3909_v38 = vpack.c.b16 %v3895_v44, %v3894_v40  ;;  %v1597_v41 = vpack.c.bf16 %v1405_v3, %v1405_v3  ;;  %v1598_v46 = vpack.c.bf16 %v1406_v49, %v1406_v49  ;;  %v10255_v28 = vld [vmem:[#allocation40_spill] sm:$0xff] }
 0x3c0   :  { %v3911_v16 = vpack.c.b16 %v3899_v54, %v3898_v10  ;;  %v4083_v59 = vpack.c.b16 %v4075_v8, %v4074_v22  ;;  %v1637_v1 = vpack.c.bf16 %v1445_v21, %v1445_v21  ;;  %v1444_v23 = vmul.f32 %v8342_v43, %v7915_v45 }
 0x3c1   :  { %v3497_v35 = vpop.permute.xlu1 %3496  ;;  %v3892_v17 = vunpack.c.l.b16 %v1597_v41  ;;  %v3893_v40 = vunpack.c.l.b16 %v1598_v46  ;;  %v1448_v44 = vmul.f32 %v8285_v24, %v7915_v45  ;;  %v1441_v10 = vmul.f32 %v8314_v58, %v7920_v55 }
 0x3c2   :  { %v6215_v48 = vpop.eup %6214  ;;  %3527 = vmatpush.bf16.msra.mxu3 %v3497_v35  ;;  %3606 = vmatpush.bf16.msra.mxu0 %v8810_v12  ;;  %v1641_v12 = vpack.c.bf16 %v1449_v51, %v1449_v51  ;;  %v1442_v51 = vmul.f32 %v8312_v37, %v7915_v45  ;;  %v1636_v22 = vpack.c.bf16 %v1444_v23, %v1444_v23  ;;  %v10258_v23 = vld [vmem:[#allocation52_spill] sm:$0xff] }
 0x3c3   :  { %v3155_v63 = vmul.f32 %v6215_v48, %v10254_v25  ;;  %v3081_v29 = vpop.f32.mrf.mxu2  ;;  %v8841_v26 = vpop.eup %6216  ;;  %3920 = vrot.lane.b32.xlu0 %v3910_v39, %s6430_s21  ;;  %v1642_v48 = vpack.c.bf16 %v1450_v56, %v1450_v56  ;;  %v1638_v25 = vpack.c.bf16 %v1446_v9, %v1446_v9  ;;  %v3908_v21 = vpack.c.b16 %v3893_v40, %v3892_v17 }
 0x3c4   :  { %v2992_v30 = vpack.c.bf16 %v8836_v0, %v8841_v26  ;;  %6218 = vrcp.f32 %v3081_v29  ;;  %v3589_v34 = vpop.permute.xlu0 %3588  ;;  %v1447_v29 = vmul.f32 %v8287_v27, %v7920_v55  ;;  %v1640_v9 = vpack.c.bf16 %v1448_v44, %v1448_v44 }
 0x3c5   :  { %v3179_v50 = vpack.c.bf16 %v3155_v63, %v3155_v63  ;;  %v1443_v63 = vmul.f32 %v8344_v62, %v7920_v55  ;;  %v4073_v39 = vunpack.c.l.b16 %v1642_v48  ;;  %v4069_v35 = vunpack.c.l.b16 %v1638_v25  ;;  %v10257_v25 = vld [vmem:[#allocation37_spill] sm:$0xff] }
 0x3c6   :  { %3120 = vmatmul.bf16.gmra.mxu2 %v2992_v30  ;;  %3607 = vmatpush.bf16.msra.mxu0 %v3589_v34  ;;  %v3581_v30 = vpop.permute.xlu2 %3580  ;;  %v1639_v3 = vpack.c.bf16 %v1447_v29, %v1447_v29  ;;  %v1634_v48 = vpack.c.bf16 %v1442_v51, %v1442_v51  ;;  %v1466_v29 = vmul.f32 %v8306_v32, %v10258_v23 }
 0x3c7   :  { %v3369_v33 = vunpack.c.l.b16 %v3179_v50  ;;  %3918 = vrot.lane.b32.xlu1 %v3909_v38, %s6430_s21  ;;  %3922 = vrot.lane.b32.xlu2 %v3911_v16, %s6430_s21  ;;  %v4072_v50 = vunpack.c.l.b16 %v1641_v12  ;;  %v1635_v54 = vpack.c.bf16 %v1443_v63, %v1443_v63  ;;  %v1633_v38 = vpack.c.bf16 %v1441_v10, %v1441_v10 }
 0x3c8   :  { %v4067_v16 = vunpack.c.l.b16 %v1636_v22  ;;  %v4070_v41 = vunpack.c.l.b16 %v1639_v3  ;;  %v1465_v63 = vmul.f32 %v8308_v2, %v10257_v25  ;;  %v4065_v40 = vunpack.c.l.b16 %v1634_v48 }
 0x3c9   :  { %v3370_v31 = vpack.c.b16 %v3369_v33, %v3368_v42  ;;  %v3587_v6 = vpop.permute.xlu1 %3586  ;;  %v4068_v33 = vunpack.c.l.b16 %v1637_v1  ;;  %v4082_v8 = vpack.c.b16 %v4073_v39, %v4072_v50  ;;  %v1467_v50 = vmul.f32 %v8246_v20, %v10257_v25 }
 0x3ca   :  { %v6219_v13 = vpop.eup %6218  ;;  %3608 = vmatpush.bf16.msra.mxu0 %v3587_v6  ;;  %v4064_v6 = vunpack.c.l.b16 %v1633_v38  ;;  %v1468_v39 = vmul.f32 %v8244_v52, %v10258_v23  ;;  %v1463_v2 = vmul.f32 %v8287_v27, %v10257_v25  ;;  %v1464_v32 = vmul.f32 %v8285_v24, %v10258_v23 }
 0x3cb   :  { %v3083_v14 = vpop.f32.mrf.mxu2  ;;  %3444 = vmatmul.bf16.vlgmr.msra.gmra.mxu1 %v3370_v31  ;;  %v3156_v5 = vmul.f32 %v6219_v13, %v10255_v28  ;;  %4098 = vrot.lane.b32.xlu0 %v4083_v59, %s6430_s21  ;;  %v10256_v31 = vld [vmem:[#allocation57_spill] sm:$0xff]  ;;  %v4080_v12 = vpack.c.b16 %v4069_v35, %v4068_v33  ;;  %v4066_v13 = vunpack.c.l.b16 %v1635_v54  ;;  %v1658_v33 = vpack.c.bf16 %v1466_v29, %v1466_v29 }
 0x3cc   :  { %6220 = vrcp.f32 %v3083_v14  ;;  %v3585_v42 = vpop.permute.xlu0 %3584  ;;  %v1659_v35 = vpack.c.bf16 %v1467_v50, %v1467_v50  ;;  %v1660_v51 = vpack.c.bf16 %v1468_v39, %v1468_v39  ;;  %v4078_v52 = vpack.c.b16 %v4065_v40, %v4064_v6  ;;  %v10259_v6 = vld [vmem:[#allocation54_spill] sm:$0xff] }
 0x3cd   :  { %v3180_v49 = vpack.c.bf16 %v3156_v5, %v3156_v5  ;;  %v4071_v5 = vunpack.c.l.b16 %v1640_v9  ;;  %v1656_v54 = vpack.c.bf16 %v1464_v32, %v1464_v32  ;;  %v4157_v22 = vunpack.c.l.b16 %v1658_v33 }
 0x3ce   :  { %3609 = vmatpush.bf16.msra.mxu0 %v3585_v42  ;;  %v3671_v28 = vpop.permute.xlu2 %3670  ;;  %v1657_v42 = vpack.c.bf16 %v1465_v63, %v1465_v63  ;;  %v1438_v3 = vmul.f32 %v8370_v7, %v7915_v45  ;;  %v1460_v48 = vmul.f32 %v8342_v43, %v10258_v23  ;;  %v1458_v40 = vmul.f32 %v8312_v37, %v10258_v23 }
 0x3cf   :  { %4096 = vrot.lane.b32.xlu1 %v4082_v8, %s6430_s21  ;;  %3916 = vrot.lane.b32.xlu2 %v3908_v21, %s6430_s21  ;;  %v3452_v46 = vunpack.c.l.b16 %v3180_v49  ;;  %v4081_v20 = vpack.c.b16 %v4071_v5, %v4070_v41  ;;  %v1439_v8 = vmul.f32 %v8338_v18, %v7920_v55  ;;  %v1440_v21 = vmul.f32 %v8336_v60, %v7915_v45 }
 0x3d0   :  { %v4156_v24 = vunpack.c.l.b16 %v1657_v42  ;;  %v1652_v5 = vpack.c.bf16 %v1460_v48, %v1460_v48  ;;  %v1454_v37 = vmul.f32 %v8370_v7, %v10258_v23 }
 0x3d1   :  { %v3677_v1 = vpop.permute.xlu1 %3676  ;;  %v1632_v63 = vpack.c.bf16 %v1440_v21, %v1440_v21 }
 0x3d2   :  { %v6221_v56 = vpop.eup %6220  ;;  %3610 = vmatpush.bf16.msra.mxu0 %v8852_v11  ;;  %3689 = vmatpush.bf16.msrb.mxu1 %v3677_v1  ;;  %v4079_v11 = vpack.c.b16 %v4067_v16, %v4066_v13  ;;  %v4166_v41 = vpack.c.b16 %v4157_v22, %v4156_v24  ;;  %v1631_v1 = vpack.c.bf16 %v1439_v8, %v1439_v8 }
 0x3d3   :  { %v3157_v34 = vmul.f32 %v6221_v56, %v10256_v31  ;;  %4092 = vrot.lane.b32.xlu0 %v4080_v12, %s6430_s21  ;;  %v3086_v10 = vpop.f32.mrf.mxu2  ;;  %v1655_v56 = vpack.c.bf16 %v1463_v2, %v1463_v2  ;;  %v4158_v31 = vunpack.c.l.b16 %v1659_v35  ;;  %v1459_v12 = vmul.f32 %v8344_v62, %v10257_v25 }
 0x3d4   :  { %v3675_v17 = vpop.permute.xlu0 %3674  ;;  %6222 = vrcp.f32 %v3086_v10  ;;  %v4062_v2 = vunpack.c.l.b16 %v1631_v1  ;;  %v4063_v32 = vunpack.c.l.b16 %v1632_v63  ;;  %v1461_v10 = vmul.f32 %v8260_v47, %v10257_v25 }
 0x3d5   :  { %v3181_v14 = vpack.c.bf16 %v3157_v34, %v3157_v34  ;;  %v4159_v34 = vunpack.c.l.b16 %v1660_v51  ;;  %v4154_v38 = vunpack.c.l.b16 %v1655_v56  ;;  %v1651_v29 = vpack.c.bf16 %v1459_v12, %v1459_v12  ;;  %v10260_v51 = vld [vmem:[#allocation38_spill] sm:$0xff] }
 0x3d6   :  { %3611 = vmatpush.bf16.msra.mxu0 %v3581_v30  ;;  %3690 = vmatpush.bf16.msrb.mxu1 %v3675_v17  ;;  %v1437_v30 = vmul.f32 %v8372_v19, %v7920_v55  ;;  %v8903_v49 = vpop.permute.xlu2 %3756  ;;  %v1457_v17 = vmul.f32 %v8314_v58, %v10257_v25  ;;  %v1453_v58 = vmul.f32 %v8372_v19, %v10257_v25 }
 0x3d7   :  { %v3453_v59 = vunpack.c.l.b16 %v3181_v14  ;;  %4090 = vrot.lane.b32.xlu1 %v4079_v11, %s6430_s21  ;;  %4094 = vrot.lane.b32.xlu2 %v4081_v20, %s6430_s21  ;;  %v4155_v14 = vunpack.c.l.b16 %v1656_v54  ;;  %v4167_v55 = vpack.c.b16 %v4159_v34, %v4158_v31  ;;  %v4150_v33 = vunpack.c.l.b16 %v1651_v29  ;;  %v10261_v29 = vld [vmem:[#allocation65_spill] sm:$0xff] }
 0x3d8   :  { %v4151_v20 = vunpack.c.l.b16 %v1652_v5  ;;  %v1650_v47 = vpack.c.bf16 %v1458_v40, %v1458_v40  ;;  %v1653_v22 = vpack.c.bf16 %v1461_v10, %v1461_v10  ;;  %v1645_v19 = vpack.c.bf16 %v1453_v58, %v1453_v58 }
 0x3d9   :  { %v3454_v44 = vpack.c.b16 %v3453_v59, %v3452_v46  ;;  %v3763_v27 = vpop.permute.xlu1 %3762  ;;  %v1629_v46 = vpack.c.bf16 %v1437_v30, %v1437_v30  ;;  %v1630_v59 = vpack.c.bf16 %v1438_v3, %v1438_v3  ;;  %v4165_v45 = vpack.c.b16 %v4155_v14, %v4154_v38 }
 0x3da   :  { %3772 = vmatpush.bf16.msrb.mxu3 %v3763_v27  ;;  %v6223_v16 = vpop.eup %6222  ;;  %v1649_v27 = vpack.c.bf16 %v1457_v17, %v1457_v17  ;;  %v4163_v3 = vpack.c.b16 %v4151_v20, %v4150_v33  ;;  %v1646_v31 = vpack.c.bf16 %v1454_v37, %v1454_v37  ;;  %v1455_v38 = vmul.f32 %v8338_v18, %v10257_v25  ;;  %v10262_v17 = vld [vmem:[#allocation59_spill] sm:$0xff] }
 0x3db   :  { %3528 = vmatmul.bf16.vlgmr.msra.gmra.mxu3 %v3454_v44  ;;  %4088 = vrot.lane.b32.xlu0 %v4078_v52, %s6430_s21  ;;  %v3088_v13 = vpop.f32.mrf.mxu2  ;;  %v3158_v62 = vmul.f32 %v6223_v16, %v10259_v6  ;;  %v4060_v50 = vunpack.c.l.b16 %v1629_v46  ;;  %v4061_v39 = vunpack.c.l.b16 %v1630_v59  ;;  %v4152_v12 = vunpack.c.l.b16 %v1653_v22 }
 0x3dc   :  { %v3673_v9 = vpop.permute.xlu0 %3672  ;;  %6224 = vrcp.f32 %v3088_v13  ;;  %v4148_v21 = vunpack.c.l.b16 %v1649_v27  ;;  %v1456_v16 = vmul.f32 %v8336_v60, %v10258_v23  ;;  %v4144_v46 = vunpack.c.l.b16 %v1645_v19 }
 0x3dd   :  { %3691 = vmatpush.bf16.msrb.mxu1 %v3673_v9  ;;  %v3182_v35 = vpack.c.bf16 %v3158_v62, %v3158_v62  ;;  %v4076_v54 = vpack.c.b16 %v4061_v39, %v4060_v50  ;;  %v4149_v9 = vunpack.c.l.b16 %v1650_v47  ;;  %v4145_v59 = vunpack.c.l.b16 %v1646_v31 }
 0x3de   :  { %v3665_v44 = vpop.permute.xlu2 %3664  ;;  %v1647_v25 = vpack.c.bf16 %v1455_v38, %v1455_v38 }
 0x3df   :  { %4180 = vrot.lane.b32.xlu1 %v4166_v41, %s6430_s21  ;;  %4182 = vrot.lane.b32.xlu2 %v4167_v55, %s6430_s21  ;;  %v3536_v34 = vunpack.c.l.b16 %v3182_v35  ;;  %v4162_v63 = vpack.c.b16 %v4149_v9, %v4148_v21 }
 0x3e0   :  { %v4146_v6 = vunpack.c.l.b16 %v1647_v25 }
 0x3e1   :  { %3692 = vmatpush.bf16.msrb.mxu1 %v3671_v28  ;;  %v3761_v43 = vpop.permute.xlu1 %3760  ;;  %v1462_v28 = vmul.f32 %v8258_v4, %v10258_v23  ;;  %v4077_v4 = vpack.c.b16 %v4063_v32, %v4062_v2 }
 0x3e2   :  { %3773 = vmatpush.bf16.msrb.mxu3 %v3761_v43  ;;  %v6225_v11 = vpop.eup %6224 }
 0x3e3   :  { %4178 = vrot.lane.b32.xlu0 %v4165_v45, %s6430_s21  ;;  %v3159_v52 = vmul.f32 %v6225_v11, %v10260_v51  ;;  %v3091_v56 = vpop.f32.mrf.mxu2  ;;  %v1654_v30 = vpack.c.bf16 %v1462_v28, %v1462_v28  ;;  %v1648_v45 = vpack.c.bf16 %v1456_v16, %v1456_v16  ;;  %v10263_v16 = vld [vmem:[#allocation62_spill] sm:$0xff] }
 0x3e4   :  { %v3759_v42 = vpop.permute.xlu0 %3758  ;;  %6226 = vrcp.f32 %v3091_v56 }
 0x3e5   :  { %v3183_v24 = vpack.c.bf16 %v3159_v52, %v3159_v52  ;;  %v4153_v48 = vunpack.c.l.b16 %v1654_v30  ;;  %v4147_v62 = vunpack.c.l.b16 %v1648_v45 }
 0x3e6   :  { %3774 = vmatpush.bf16.msrb.mxu3 %v3759_v42  ;;  %v3847_v14 = vpop.permute.xlu2 %3846 }
 0x3e7   :  { %4084 = vrot.lane.b32.xlu1 %v4076_v54, %s6430_s21  ;;  %v3537_v7 = vunpack.c.l.b16 %v3183_v24  ;;  %4086 = vrot.lane.b32.xlu2 %v4077_v4, %s6430_s21  ;;  %v4164_v18 = vpack.c.b16 %v4153_v48, %v4152_v12  ;;  %v4161_v10 = vpack.c.b16 %v4147_v62, %v4146_v6 }
 0x3e8   :  { %3856 = vmatpush.bf16.msrb.mxu0 %v3847_v14 }
 0x3e9   :  { %v3669_v8 = vpop.permute.xlu1 %3668  ;;  %v3538_v13 = vpack.c.b16 %v3537_v7, %v3536_v34 }
 0x3ea   :  { %3693 = vmatpush.bf16.msrb.mxu1 %v3669_v8  ;;  %3775 = vmatpush.bf16.msrb.mxu3 %v8903_v49  ;;  %v6227_v1 = vpop.eup %6226  ;;  %v4160_v49 = vpack.c.b16 %v4145_v59, %v4144_v46  ;;  %v10264_v59 = vld [vmem:[#allocation55_spill] sm:$0xff] }
 0x3eb   :  { %4174 = vrot.lane.b32.xlu0 %v4163_v3, %s6430_s21  ;;  %v3093_v55 = vpop.f32.mrf.mxu2  ;;  %3612 = vmatmul.bf16.vlgmr.msra.gmra.mxu0 %v3538_v13  ;;  %v3160_v5 = vmul.f32 %v6227_v1, %v10261_v29 }
 0x3ec   :  { %v3667_v41 = vpop.permute.xlu0 %3666  ;;  %6228 = vrcp.f32 %v3093_v55 }
 0x3ed   :  { %v3184_v39 = vpack.c.bf16 %v3160_v5, %v3160_v5 }
 0x3ee   :  { %3694 = vmatpush.bf16.msrb.mxu1 %v3667_v41  ;;  %v3845_v23 = vpop.permute.xlu2 %3844 }
 0x3ef   :  { %4172 = vrot.lane.b32.xlu1 %v4162_v63, %s6430_s21  ;;  %4176 = vrot.lane.b32.xlu2 %v4164_v18, %s6430_s21  ;;  %v3620_v28 = vunpack.c.l.b16 %v3184_v39  ;;  %v4209_v39 = vld [vmem:[%s9994_s6 + $0x18] sm:$0xff] }
 0x3f0   :  { %3857 = vmatpush.bf16.msrb.mxu0 %v3845_v23 }
 0x3f1   :  { %v3755_v60 = vpop.permute.xlu1 %3754 }
 0x3f2   :  { %3695 = vmatpush.bf16.msrb.mxu1 %v3665_v44  ;;  %3776 = vmatpush.bf16.msrb.mxu3 %v3755_v60  ;;  %v6229_v43 = vpop.eup %6228 }
 0x3f3   :  { %4168 = vrot.lane.b32.xlu0 %v4160_v49, %s6430_s21  ;;  %v3161_v40 = vmul.f32 %v6229_v43, %v10262_v17  ;;  %v3096_v2 = vpop.f32.mrf.mxu2  ;;  %v4208_v17 = vld [vmem:[%s9994_s6 + $0x10] sm:$0xff] }
 0x3f4   :  { %v3753_v50 = vpop.permute.xlu0 %3752  ;;  %6230 = vrcp.f32 %v3096_v2  ;;  %v6097_v2 = vpack.i.bf16 %v4208_v17, %v4209_v39 }
 0x3f5   :  { %v3185_v32 = vpack.c.bf16 %v3161_v40, %v3161_v40 }
 0x3f6   :  { %3777 = vmatpush.bf16.msrb.mxu3 %v3753_v50  ;;  %v3843_v33 = vpop.permute.xlu2 %3842 }
 0x3f7   :  { %v3621_v11 = vunpack.c.l.b16 %v3185_v32  ;;  %4170 = vrot.lane.b32.xlu2 %v4161_v10, %s6430_s21  ;;  %3858 = vmatpush.bf16.msrb.mxu0 %v3843_v33  ;;  %v4207_v32 = vld [vmem:[%s9994_s6 + $0x8] sm:$0xff] }
 0x3f8   :  { %6098 = vrot.lane.b32.xlu1 %v6097_v2, %s6429_s2 }
 0x3f9   :  { %v4015_v42 = vpop.permute.xlu1 %4014  ;;  %v3622_v44 = vpack.c.b16 %v3621_v11, %v3620_v28 }
 0x3fa   :  { %v6231_v37 = vpop.eup %6230 }
 0x3fb   :  { %v3098_v58 = vpop.f32.mrf.mxu2  ;;  %3696 = vmatmul.bf16.vlgmr.msrb.gmra.mxu1 %v3622_v44  ;;  %v3162_v35 = vmul.f32 %v6231_v37, %v8626_v61  ;;  %v10265_v44 = vld [vmem:[#allocation60_spill] sm:$0xff] }
 0x3fc   :  { %v3751_v20 = vpop.permute.xlu0 %3750  ;;  %6232 = vrcp.f32 %v3098_v58 }
 0x3fd   :  { %3778 = vmatpush.bf16.msrb.mxu3 %v3751_v20  ;;  %v3186_v27 = vpack.c.bf16 %v3162_v35, %v3162_v35 }
 0x3ff   :  { %v4007_v52 = vpop.permute.xlu2 %4006  ;;  %v3704_v22 = vunpack.c.l.b16 %v3186_v27 }
 0x401   :  { %v4013_v51 = vpop.permute.xlu1 %4012 }
 0x402   :  { %v6233_v56 = vpop.eup %6232 }
 0x403   :  { %v3163_v47 = vmul.f32 %v6233_v56, %v8624_v53  ;;  %v3101_v24 = vpop.f32.mrf.mxu2 }
 0x404   :  { %v3749_v54 = vpop.permute.xlu0 %3748 }
 0x405   :  { %3779 = vmatpush.bf16.msrb.mxu3 %v3749_v54  ;;  %v3187_v4 = vpack.c.bf16 %v3163_v47, %v3163_v47  ;;  %v10267_v47 = vld [vmem:[#allocation67_spill] sm:$0xff] }
 0x407   :  { %v3705_v30 = vunpack.c.l.b16 %v3187_v4 }
 0x408   :  { %v4005_v19 = vpop.permute.xlu2 %4004 }
 0x409   :  { %4024 = vmatpush.bf16.msra.mxu3 %v4015_v42  ;;  %v4011_v3 = vpop.permute.xlu1 %4010  ;;  %v3706_v31 = vpack.c.b16 %v3705_v30, %v3704_v22 }
 0x40b   :  { %v3103_v7 = vpop.f32.mrf.mxu2  ;;  %3780 = vmatmul.bf16.vlgmr.msrb.gmra.mxu3 %v3706_v31 }
 0x40c   :  { %v4009_v34 = vpop.permute.xlu0 %4008  ;;  %6234 = vrcp.f32 %v3103_v7 }
 0x40d   :  { %4025 = vmatpush.bf16.msra.mxu3 %v4013_v51  ;;  %6236 = vrcp.f32 %v3101_v24  ;;  %v10266_v51 = vld [vmem:[#allocation58_spill] sm:$0xff] }
 0x411   :  { %4026 = vmatpush.bf16.msra.mxu3 %v4011_v3  ;;  %v3841_v61 = vpop.permute.xlu1 %3840  ;;  %v4003_v8 = vpop.permute.xlu2 %4002 }
 0x412   :  { %3859 = vmatpush.bf16.msrb.mxu0 %v3841_v61  ;;  %v6235_v48 = vpop.eup %6234 }
 0x413   :  { %v3106_v53 = vpop.f32.mrf.mxu2  ;;  %v6237_v13 = vpop.eup %6236  ;;  %v3165_v41 = vmul.f32 %v6235_v48, %v10263_v16 }
 0x414   :  { %v3839_v21 = vpop.permute.xlu0 %3838  ;;  %v3164_v55 = vmul.f32 %v6237_v13, %v10264_v59 }
 0x415   :  { %4027 = vmatpush.bf16.msra.mxu3 %v4009_v34  ;;  %v3189_v25 = vpack.c.bf16 %v3165_v41, %v3165_v41 }
 0x416   :  { %3860 = vmatpush.bf16.msrb.mxu0 %v3839_v21  ;;  %v3188_v45 = vpack.c.bf16 %v3164_v55, %v3164_v55 }
 0x417   :  { %v3789_v49 = vunpack.c.l.b16 %v3189_v25 }
 0x418   :  { %v3788_v5 = vunpack.c.l.b16 %v3188_v45 }
 0x419   :  { %4028 = vmatpush.bf16.msra.mxu3 %v4007_v52  ;;  %v3931_v9 = vpop.permute.xlu1 %3930  ;;  %v4001_v38 = vpop.permute.xlu2 %4000 }
 0x41a   :  { %3940 = vmatpush.bf16.msra.mxu1 %v3931_v9  ;;  %v3790_v62 = vpack.c.b16 %v3789_v49, %v3788_v5 }
 0x41b   :  { %v3108_v12 = vpop.f32.mrf.mxu2 }
 0x41d   :  { %4029 = vmatpush.bf16.msra.mxu3 %v4005_v19  ;;  %v3837_v14 = vpop.permute.xlu0 %3836 }
 0x41e   :  { %3861 = vmatpush.bf16.msrb.mxu0 %v3837_v14 }
 0x421   :  { %4030 = vmatpush.bf16.msra.mxu3 %v4003_v8  ;;  %v3929_v46 = vpop.permute.xlu1 %3928  ;;  %v3923_v63 = vpop.permute.xlu2 %3922 }
 0x422   :  { %3941 = vmatpush.bf16.msra.mxu1 %v3929_v46 }
 0x425   :  { %4031 = vmatpush.bf16.msra.mxu3 %v4001_v38  ;;  %v3835_v1 = vpop.permute.xlu0 %3834 }
 0x426   :  { %3862 = vmatpush.bf16.msrb.mxu0 %v3835_v1 }
 0x429   :  { %v3111_v18 = vpop.f32.mrf.mxu2  ;;  %v3927_v29 = vpop.permute.xlu1 %3926  ;;  %4294 = vmatpush.msrb.mxu3 %v4209_v39 }
 0x42a   :  { %6238 = vrcp.f32 %v3111_v18  ;;  %3942 = vmatpush.bf16.msra.mxu1 %v3927_v29  ;;  %v3917_v43 = vpop.permute.xlu2 %3916 }
 0x42b   :  { %4295 = vmatpush.msrb.mxu3 %v4208_v17 }
 0x42d   :  { %v3833_v60 = vpop.permute.xlu0 %3832  ;;  %4296 = vmatpush.msrb.mxu3 %v4207_v32 }
 0x42e   :  { %3863 = vmatpush.bf16.msrb.mxu0 %v3833_v60  ;;  %v3277_v9 = vpop.f32.mrf.mxu3 }
 0x430   :  { %v6239_v6 = vpop.eup %6238 }
 0x431   :  { %v3113_v23 = vpop.f32.mrf.mxu2  ;;  %3864 = vmatmul.bf16.vlgmr.msrb.gmra.mxu0 %v3790_v62  ;;  %v3168_v50 = vmul.f32 %v6239_v6, %v8750_v36  ;;  %v3925_v40 = vpop.permute.xlu1 %3924  ;;  %v4206_v36 = vld [vmem:[%s9994_s6] sm:$0xff] }
 0x432   :  { %6240 = vrcp.f32 %v3113_v23  ;;  %3943 = vmatpush.bf16.msra.mxu1 %v3925_v40  ;;  %v6102_v20 = vpack.i.bf16 %v4206_v36, %v4207_v32  ;;  %4297 = vmatpush.msrb.mxu3 %v4206_v36  ;;  %v4095_v54 = vpop.permute.xlu2 %4094 }
 0x433   :  { %6242 = vrcp.f32 %v3108_v12  ;;  %v3192_v42 = vpack.c.bf16 %v3168_v50, %v3168_v50 }
 0x434   :  { %6244 = vrcp.f32 %v3106_v53  ;;  %6103 = vrot.lane.b32.xlu2 %v6102_v20, %s6429_s2 }
 0x435   :  { %v3921_v28 = vpop.permute.xlu0 %3920  ;;  %v3956_v56 = vunpack.c.l.b16 %v3192_v42 }
 0x436   :  { %3944 = vmatpush.bf16.msra.mxu1 %v3923_v63  ;;  %v3279_v55 = vpop.f32.mrf.mxu3 }
 0x438   :  { %v6241_v10 = vpop.eup %6240  ;;  %v3361_v49 = vpop.f32.mrf.mxu0 }
 0x439   :  { %v6243_v11 = vpop.eup %6242  ;;  %v3169_v33 = vmul.f32 %v6241_v10, %v10265_v44  ;;  %v3116_v58 = vpop.f32.mrf.mxu2 }
 0x43a   :  { %v6245_v37 = vpop.eup %6244  ;;  %v3167_v52 = vmul.f32 %v6243_v11, %v10266_v51  ;;  %v3919_v4 = vpop.permute.xlu1 %3918  ;;  %3945 = vmatpush.bf16.msra.mxu1 %v3921_v28 }
 0x43b   :  { %v3193_v35 = vpack.c.bf16 %v3169_v33, %v3169_v33  ;;  %v3166_v24 = vmul.f32 %v6245_v37, %v10267_v47  ;;  %v4183_v8 = vpop.permute.xlu2 %4182 }
 0x43c   :  { %v3191_v30 = vpack.c.bf16 %v3167_v52, %v3167_v52 }
 0x43d   :  { %v3957_v27 = vunpack.c.l.b16 %v3193_v35  ;;  %v4099_v3 = vpop.permute.xlu0 %4098  ;;  %v3190_v19 = vpack.c.bf16 %v3166_v24, %v3166_v24 }
 0x43e   :  { %4108 = vmatpush.bf16.msra.mxu0 %v4099_v3  ;;  %3946 = vmatpush.bf16.msra.mxu1 %v3919_v4  ;;  %v3873_v31 = vunpack.c.l.b16 %v3191_v30 }
 0x43f   :  { %v3958_v22 = vpack.c.b16 %v3957_v27, %v3956_v56  ;;  %v3872_v7 = vunpack.c.l.b16 %v3190_v19 }
 0x440   :  { %v3363_v39 = vpop.f32.mrf.mxu0 }
 0x441   :  { %4032 = vmatmul.bf16.vlgmr.msra.gmra.mxu3 %v3958_v22  ;;  %v3118_v34 = vpop.f32.mrf.mxu2  ;;  %v3874_v21 = vpack.c.b16 %v3873_v31, %v3872_v7  ;;  %v10268_v31 = vld [vmem:[#allocation7_spill] sm:$0xff] }
 0x442   :  { %v4097_v61 = vpop.permute.xlu1 %4096  ;;  %3947 = vmatpush.bf16.msra.mxu1 %v3917_v43  ;;  %6246 = vrcp.f32 %v3118_v34 }
 0x443   :  { %4109 = vmatpush.bf16.msra.mxu0 %v4097_v61  ;;  %6248 = vrcp.f32 %v3116_v58  ;;  %v4087_v16 = vpop.permute.xlu2 %4086 }
 0x445   :  { %v4093_v53 = vpop.permute.xlu0 %4092  ;;  %3948 = vmatmul.bf16.vlgmr.msra.gmra.mxu1 %v3874_v21 }
 0x446   :  { %4192 = vmatpush.bf16.msrb.mxu1 %v4183_v8  ;;  %v10269_v8 = vld [vmem:[#allocation10_spill] sm:$0xff] }
 0x447   :  { %4110 = vmatpush.bf16.msra.mxu0 %v4095_v54 }
 0x448   :  { %v6247_v48 = vpop.eup %6246  ;;  %v3445_v10 = vpop.f32.mrf.mxu1 }
 0x449   :  { %v3121_v14 = vpop.f32.mrf.mxu2  ;;  %v6249_v13 = vpop.eup %6248  ;;  %v3171_v41 = vmul.f32 %v6247_v48, %v8793_v15 }
 0x44a   :  { %v4091_v38 = vpop.permute.xlu1 %4090  ;;  %v3170_v46 = vmul.f32 %v6249_v13, %v8798_v57 }
 0x44b   :  { %4111 = vmatpush.bf16.msra.mxu0 %v4093_v53  ;;  %v3195_v1 = vpack.c.bf16 %v3171_v41, %v3171_v41  ;;  %v4177_v15 = vpop.permute.xlu2 %4176  ;;  %v10272_v41 = vld [vmem:[#allocation16_spill] sm:$0xff] }
 0x44c   :  { %v3194_v25 = vpack.c.bf16 %v3170_v46, %v3170_v46 }
 0x44d   :  { %v4089_v12 = vpop.permute.xlu0 %4088  ;;  %v4041_v45 = vunpack.c.l.b16 %v3195_v1  ;;  %v10273_v1 = vld [vmem:[#allocation18_spill] sm:$0xff] }
 0x44e   :  { %v4040_v29 = vunpack.c.l.b16 %v3194_v25 }
 0x44f   :  { %4112 = vmatpush.bf16.msra.mxu0 %v4091_v38 }
 0x450   :  { %v4042_v57 = vpack.c.b16 %v4041_v45, %v4040_v29  ;;  %v10274_v45 = vld [vmem:[#allocation19_spill] sm:$0xff] }
 0x451   :  { %5903 = vmatmul.msk.f32.vlgmr.msrb.gmra.mxu3 %vm82_vm0, %v3277_v9  ;;  %v3123_v18 = vpop.f32.mrf.mxu2  ;;  %v10270_v9 = vld [vmem:[#allocation13_spill] sm:$0xff] }
 0x452   :  { %v4181_v59 = vpop.permute.xlu1 %4180  ;;  %6250 = vrcp.f32 %v3123_v18 }
 0x453   :  { %4113 = vmatpush.bf16.msra.mxu0 %v4089_v12  ;;  %4193 = vmatpush.bf16.msrb.mxu1 %v4181_v59  ;;  %6252 = vrcp.f32 %v3121_v14  ;;  %v4171_v2 = vpop.permute.xlu2 %4170  ;;  %v10271_v12 = vld [vmem:[#allocation14_spill] sm:$0xff] }
 0x455   :  { %v4179_v63 = vpop.permute.xlu0 %4178 }
 0x457   :  { %4114 = vmatpush.bf16.msra.mxu0 %v4087_v16  ;;  %4194 = vmatpush.bf16.msrb.mxu1 %v4179_v63 }
 0x458   :  { %v6251_v60 = vpop.eup %6250 }
 0x459   :  { %5904 = vmatmul.msk.f32.gmra.mxu3 %vm82_vm0, %v3279_v55  ;;  %v6253_v6 = vpop.eup %6252  ;;  %v3173_v62 = vmul.f32 %v6251_v60, %v8836_v0  ;;  %v3447_v0 = vpop.f32.mrf.mxu1 }
 0x45a   :  { %v4085_v5 = vpop.permute.xlu1 %4084  ;;  %v3172_v43 = vmul.f32 %v6253_v6, %v8841_v26 }
 0x45b   :  { %4115 = vmatpush.bf16.msra.mxu0 %v4085_v5  ;;  %4195 = vmatpush.bf16.msrb.mxu1 %v4177_v15  ;;  %v3197_v17 = vpack.c.bf16 %v3173_v62, %v3173_v62  ;;  %v10275_v5 = vld [vmem:[#allocation20_spill] sm:$0xff] }
 0x45c   :  { %v3196_v40 = vpack.c.bf16 %v3172_v43, %v3172_v43  ;;  %v10277_v43 = vld [vmem:[#allocation22_spill] sm:$0xff] }
 0x45d   :  { %v4175_v23 = vpop.permute.xlu0 %4174  ;;  %v4125_v32 = vunpack.c.l.b16 %v3197_v17  ;;  %v10278_v17 = vld [vmem:[#allocation23_spill] sm:$0xff] }
 0x45e   :  { %4116 = vmatmul.bf16.vlgmr.msra.gmra.mxu0 %v4042_v57  ;;  %v4124_v28 = vunpack.c.l.b16 %v3196_v40  ;;  %v3529_v26 = vpop.f32.mrf.mxu3 }
 0x45f   :  { %4196 = vmatpush.bf16.msrb.mxu1 %v4175_v23  ;;  %v10276_v23 = vld [vmem:[#allocation21_spill] sm:$0xff] }
 0x460   :  { %v4126_v11 = vpack.c.b16 %v4125_v32, %v4124_v28  ;;  %v10279_v32 = vld [vmem:[#allocation24_spill] sm:$0xff] }
 0x461   :  { %5905 = vmatmul.msk.f32.gmra.mxu3 %vm82_vm0, %v3361_v49 }
 0x462   :  { %v4173_v50 = vpop.permute.xlu1 %4172 }
 0x463   :  { %4197 = vmatpush.bf16.msrb.mxu1 %v4173_v50 }
 0x465   :  { %v4169_v36 = vpop.permute.xlu0 %4168 }
 0x466   :  { %v3531_v42 = vpop.f32.mrf.mxu3 }
 0x467   :  { %4198 = vmatpush.bf16.msrb.mxu1 %v4171_v2 }
 0x468   :  { %v3613_v44 = vpop.f32.mrf.mxu0 }
 0x469   :  { %5906 = vmatmul.msk.f32.gmra.mxu3 %vm82_vm0, %v3363_v39 }
 0x46a   :  { %v6099_v35 = vpop.permute.xlu1 %6098 }
 0x46b   :  { %4199 = vmatpush.bf16.msrb.mxu1 %v4169_v36  ;;  %v6101_v51 = vunpack.i.h.bf16 %v6099_v35  ;;  %v6100_v52 = vunpack.i.l.bf16 %v6099_v35  ;;  %v10280_v36 = vld [vmem:[#allocation25_spill] sm:$0xff] }
 0x46d   :  { %4473 = vmatpush.msrb.mxu0 %v6100_v52 }
 0x46e   :  { %4200 = vmatmul.bf16.vlgmr.msrb.gmra.mxu1 %v4126_v11 }
 0x46f   :  { %4474 = vmatpush.msrb.mxu0 %v6101_v51  ;;  %v9029_v51 = vld [vmem:[%s9995_s7] ss:$0 sm:$0xff] }
 0x470   :  { %v3615_v33 = vpop.f32.mrf.mxu0 }
 0x471   :  { %5907 = vmatmul.msk.f32.gmra.mxu3 %vm82_vm0, %v3445_v10 }
 0x478   :  { %v3697_v20 = vpop.f32.mrf.mxu1 }
 0x479   :  { %5908 = vmatmul.msk.f32.gmra.mxu3 %vm82_vm0, %v3447_v0 }
 0x480   :  { %v3699_v58 = vpop.f32.mrf.mxu1 }
 0x481   :  { %5909 = vmatmul.msk.f32.gmra.mxu3 %vm82_vm0, %v3529_v26  ;;  %v10281_v26 = vld [vmem:[#allocation26_spill] sm:$0xff] }
 0x489   :  { %5910 = vmatmul.msk.f32.gmra.mxu3 %vm82_vm0, %v3531_v42 }
 0x48e   :  { %v3781_v37 = vpop.f32.mrf.mxu3  ;;  %v6104_v56 = vpop.permute.xlu2 %6103 }
 0x48f   :  { %v6105_v54 = vunpack.i.l.bf16 %v6104_v56  ;;  %v6106_v27 = vunpack.i.h.bf16 %v6104_v56 }
 0x491   :  { %5911 = vmatmul.msk.f32.gmra.mxu3 %vm82_vm0, %v3613_v44  ;;  %4475 = vmatpush.msrb.mxu0 %v6105_v54  ;;  %v10284_v54 = vld [vmem:[#allocation29_spill] sm:$0xff] }
 0x493   :  { %4476 = vmatpush.msrb.mxu0 %v6106_v27 }
 0x496   :  { %v3783_v47 = vpop.f32.mrf.mxu3 }
 0x499   :  { %5912 = vmatmul.msk.f32.gmra.mxu3 %vm82_vm0, %v3615_v33  ;;  %v10282_v33 = vld [vmem:[#allocation27_spill] sm:$0xff] }
 0x4a1   :  { %5913 = vmatmul.msk.f32.gmra.mxu3 %vm82_vm0, %v3697_v20 }
 0x4a9   :  { %5914 = vmatmul.msk.f32.gmra.mxu3 %vm82_vm0, %v3699_v58 }
 0x4ae   :  { %v3865_v24 = vpop.f32.mrf.mxu0 }
 0x4b1   :  { %5915 = vmatmul.msk.f32.gmra.mxu3 %vm82_vm0, %v3781_v37  ;;  %v10283_v37 = vld [vmem:[#allocation28_spill] sm:$0xff] }
 0x4b6   :  { %v3867_v22 = vpop.f32.mrf.mxu0 }
 0x4b9   :  { %5916 = vmatmul.msk.f32.gmra.mxu3 %vm82_vm0, %v3783_v47 }
 0x4c1   :  { %5917 = vmatmul.msk.f32.gmra.mxu3 %vm82_vm0, %v3865_v24 }
 0x4c2   :  { %v3949_v3 = vpop.f32.mrf.mxu1 }
 0x4c4   :  { %v4033_v4 = vpop.f32.mrf.mxu3 }
 0x4c9   :  { %5918 = vmatmul.msk.f32.gmra.mxu3 %vm82_vm0, %v3867_v22 }
 0x4ca   :  { %v3951_v7 = vpop.f32.mrf.mxu1 }
 0x4cc   :  { %v4035_v30 = vpop.f32.mrf.mxu3 }
 0x4d1   :  { %5919 = vmatmul.msk.f32.gmra.mxu3 %vm82_vm0, %v3949_v3 }
 0x4d4   :  { %v4299_v19 = vpop.f32.mrf.mxu3 }
 0x4d5   :  { %v4300_v34 = vadd.f32 %v4299_v19, %v10268_v31 }
 0x4d7   :  { %5927 = vmatmul.msk.f32.vlgmr.msrb.gmra.mxu0 %vm82_vm0, %v4300_v34 }
 0x4d9   :  { %5920 = vmatmul.msk.f32.gmra.mxu3 %vm82_vm0, %v3951_v7 }
 0x4db   :  { %v4117_v13 = vpop.f32.mrf.mxu0 }
 0x4dc   :  { %v4302_v61 = vpop.f32.mrf.mxu3 }
 0x4dd   :  { %v4303_v21 = vadd.f32 %v4302_v61, %v10269_v8  ;;  %v10286_v61 = vld [vmem:[#allocation31_spill] sm:$0xff] }
 0x4df   :  { %5928 = vmatmul.msk.f32.gmra.mxu0 %vm82_vm0, %v4303_v21 }
 0x4e1   :  { %5921 = vmatmul.msk.f32.gmra.mxu3 %vm82_vm0, %v4033_v4 }
 0x4e3   :  { %v4119_v59 = vpop.f32.mrf.mxu0 }
 0x4e4   :  { %v4305_v53 = vpop.f32.mrf.mxu3 }
 0x4e5   :  { %v4306_v38 = vadd.f32 %v4305_v53, %v10270_v9 }
 0x4e7   :  { %5929 = vmatmul.msk.f32.gmra.mxu0 %vm82_vm0, %v4306_v38 }
 0x4e9   :  { %5922 = vmatmul.msk.f32.gmra.mxu3 %vm82_vm0, %v4035_v30  ;;  %v10285_v30 = vld [vmem:[#allocation30_spill] sm:$0xff] }
 0x4eb   :  { %v4201_v18 = vpop.f32.mrf.mxu1 }
 0x4ec   :  { %v4308_v14 = vpop.f32.mrf.mxu3 }
 0x4ed   :  { %v4309_v48 = vadd.f32 %v4308_v14, %v10271_v12  ;;  %v10287_v14 = vld [vmem:[#allocation32_spill] sm:$0xff] }
 0x4ef   :  { %5930 = vmatmul.msk.f32.gmra.mxu0 %vm82_vm0, %v4309_v48 }
 0x4f1   :  { %5923 = vmatmul.msk.f32.gmra.mxu3 %vm82_vm0, %v4117_v13 }
 0x4f3   :  { %v4203_v29 = vpop.f32.mrf.mxu1 }
 0x4f4   :  { %v4311_v16 = vpop.f32.mrf.mxu3 }
 0x4f5   :  { %v4312_v46 = vadd.f32 %v4311_v16, %v10272_v41 }
 0x4f7   :  { %5931 = vmatmul.msk.f32.gmra.mxu0 %vm82_vm0, %v4312_v46  ;;  %v10288_v46 = vld [vmem:[#allocation33_spill] sm:$0xff] }
 0x4f9   :  { %5924 = vmatmul.msk.f32.gmra.mxu3 %vm82_vm0, %v4119_v59 }
 0x4fc   :  { %v4314_v55 = vpop.f32.mrf.mxu3 }
 0x4fd   :  { %v4315_v63 = vadd.f32 %v4314_v55, %v10273_v1 }
 0x4ff   :  { %5932 = vmatmul.msk.f32.gmra.mxu0 %vm82_vm0, %v4315_v63 }
 0x501   :  { %5925 = vmatmul.msk.f32.gmra.mxu3 %vm82_vm0, %v4201_v18 }
 0x504   :  { %v4317_v25 = vpop.f32.mrf.mxu3 }
 0x505   :  { %v4318_v49 = vadd.f32 %v4317_v25, %v10274_v45  ;;  %v10289_v25 = vld [vmem:[#allocation34_spill] sm:$0xff] }
 0x507   :  { %5933 = vmatmul.msk.f32.gmra.mxu0 %vm82_vm0, %v4318_v49 }
 0x509   :  { %5926 = vmatmul.msk.f32.gmra.mxu3 %vm82_vm0, %v4203_v29 }
 0x50c   :  { %v4320_v15 = vpop.f32.mrf.mxu3 }
 0x50d   :  { %v4321_v57 = vadd.f32 %v4320_v15, %v10275_v5 }
 0x50f   :  { %5934 = vmatmul.msk.f32.gmra.mxu0 %vm82_vm0, %v4321_v57  ;;  %v10290_v57 = vld [vmem:[#allocation35_spill] sm:$0xff] }
 0x514   :  { %v4323_v60 = vpop.f32.mrf.mxu3 }
 0x515   :  { %v4324_v6 = vadd.f32 %v4323_v60, %v10276_v23 }
 0x517   :  { %5935 = vmatmul.msk.f32.gmra.mxu0 %vm82_vm0, %v4324_v6 }
 0x51c   :  { %v4326_v62 = vpop.f32.mrf.mxu3 }
 0x51d   :  { %v4327_v50 = vadd.f32 %v4326_v62, %v10277_v43 }
 0x51f   :  { %5936 = vmatmul.msk.f32.gmra.mxu0 %vm82_vm0, %v4327_v50  ;;  %v10291_v50 = vld [vmem:[#allocation36_spill] sm:$0xff] }
 0x524   :  { %v4329_v39 = vpop.f32.mrf.mxu3 }
 0x525   :  { %v4330_v40 = vadd.f32 %v4329_v39, %v10278_v17 }
 0x527   :  { %5937 = vmatmul.msk.f32.gmra.mxu0 %vm82_vm0, %v4330_v40 }
 0x52c   :  { %v4332_v2 = vpop.f32.mrf.mxu3 }
 0x52d   :  { %v4333_v10 = vadd.f32 %v4332_v2, %v10279_v32 }
 0x52f   :  { %5938 = vmatmul.msk.f32.gmra.mxu0 %vm82_vm0, %v4333_v10 }
 0x534   :  { %v4335_v28 = vpop.f32.mrf.mxu3 }
 0x535   :  { %v4336_v11 = vadd.f32 %v4335_v28, %v10280_v36 }
 0x537   :  { %5939 = vmatmul.msk.f32.gmra.mxu0 %vm82_vm0, %v4336_v11 }
 0x53c   :  { %v4338_v0 = vpop.f32.mrf.mxu3 }
 0x53d   :  { %v4339_v42 = vadd.f32 %v4338_v0, %v10281_v26 }
 0x53f   :  { %5940 = vmatmul.msk.f32.gmra.mxu0 %vm82_vm0, %v4339_v42 }
 0x544   :  { %v4341_v44 = vpop.f32.mrf.mxu3 }
 0x545   :  { %v4342_v20 = vadd.f32 %v4341_v44, %v10282_v33 }
 0x547   :  { %5941 = vmatmul.msk.f32.gmra.mxu0 %vm82_vm0, %v4342_v20 }
 0x54c   :  { %v4344_v58 = vpop.f32.mrf.mxu3 }
 0x54d   :  { %v4345_v35 = vadd.f32 %v4344_v58, %v10283_v37  ;;  %v6431_v58 = vmov 32.0  }
 0x54e   :  { %6254 = vrcp.f32 %v6431_v58 }
 0x54f   :  { %5942 = vmatmul.msk.f32.gmra.mxu0 %vm82_vm0, %v4345_v35 }
 0x554   :  { %v4347_v52 = vpop.f32.mrf.mxu3  ;;  %v4478_v56 = vpop.f32.mrf.mxu0 }
 0x555   :  { %v4348_v27 = vadd.f32 %v4347_v52, %v10284_v54  ;;  %v9033_v47 = vadd.f32 %v9029_v51, %v4478_v56  ;;  %v6255_v52 = vpop.eup %6254 }
 0x556   :  { %v4623_v54 = vmul.f32 32.0, %v6255_v52  ;;  %vm4627_vm13 = vweird.f32 %v6255_v52 }
 0x557   :  { %5943 = vmatmul.msk.f32.gmra.mxu0 %vm82_vm0, %v4348_v27  ;;  %v4550_v24 = vsel %vm82_vm0, %v9033_v47, 0.0 }
 0x558   :  { %4551 = vadd.xlane.f32.xlu0 %v4550_v24 }
 0x55c   :  { %v4350_v4 = vpop.f32.mrf.mxu3  ;;  %v4481_v22 = vpop.f32.mrf.mxu0 }
 0x55d   :  { %v4351_v3 = vadd.f32 %v4350_v4, %v10285_v30  ;;  %v9040_v19 = vadd.f32 %v9029_v51, %v4481_v22  ;;  %v4624_v4 = vsub.f32 1.0, %v4623_v54 }
 0x55f   :  { %5944 = vmatmul.msk.f32.gmra.mxu0 %vm82_vm0, %v4351_v3  ;;  %v4553_v31 = vsel %vm82_vm0, %v9040_v19, 0.0  ;;  %v4625_v30 = vmul.f32 %v6255_v52, %v4624_v4 }
 0x560   :  { %4554 = vadd.xlane.f32.xlu1 %v4553_v31 }
 0x564   :  { %v4353_v34 = vpop.f32.mrf.mxu3  ;;  %v4484_v7 = vpop.f32.mrf.mxu0 }
 0x565   :  { %v4354_v8 = vadd.f32 %v4353_v34, %v10286_v61  ;;  %v9047_v21 = vadd.f32 %v9029_v51, %v4484_v7  ;;  %v4626_v34 = vadd.f32 %v6255_v52, %v4625_v30 }
 0x567   :  { %5945 = vmatmul.msk.f32.gmra.mxu0 %vm82_vm0, %v4354_v8  ;;  %v4556_v53 = vsel %vm82_vm0, %v9047_v21, 0.0  ;;  %v9122_v61 = vsel %vm4627_vm13, %v6255_v52, %v4626_v34 }
 0x568   :  { %4557 = vadd.xlane.f32.xlu2 %v4556_v53 }
 0x56c   :  { %v4356_v9 = vpop.f32.mrf.mxu3  ;;  %v4487_v38 = vpop.f32.mrf.mxu0 }
 0x56d   :  { %v4357_v12 = vadd.f32 %v4356_v9, %v10287_v14  ;;  %v9054_v48 = vadd.f32 %v9029_v51, %v4487_v38 }
 0x56f   :  { %5946 = vmatmul.msk.f32.gmra.mxu0 %vm82_vm0, %v4357_v12  ;;  %v4559_v13 = vsel %vm82_vm0, %v9054_v48, 0.0 }
 0x570   :  { %4560 = vadd.xlane.f32.xlu2 %v4559_v13 }
 0x574   :  { %v4359_v16 = vpop.f32.mrf.mxu3  ;;  %v4490_v41 = vpop.f32.mrf.mxu0 }
 0x575   :  { %v4360_v59 = vadd.f32 %v4359_v16, %v10288_v46  ;;  %v9061_v55 = vadd.f32 %v9029_v51, %v4490_v41 }
 0x577   :  { %5947 = vmatmul.msk.f32.gmra.mxu0 %vm82_vm0, %v4360_v59  ;;  %v4562_v1 = vsel %vm82_vm0, %v9061_v55, 0.0 }
 0x578   :  { %4563 = vadd.xlane.f32.xlu0 %v4562_v1 }
 0x57c   :  { %v4362_v63 = vpop.f32.mrf.mxu3  ;;  %v4493_v18 = vpop.f32.mrf.mxu0 }
 0x57d   :  { %v4363_v45 = vadd.f32 %v4362_v63, %v10289_v25  ;;  %v9068_v49 = vadd.f32 %v9029_v51, %v4493_v18 }
 0x57f   :  { %5948 = vmatmul.msk.f32.gmra.mxu0 %vm82_vm0, %v4363_v45  ;;  %v4565_v29 = vsel %vm82_vm0, %v9068_v49, 0.0 }
 0x580   :  { %4566 = vadd.xlane.f32.xlu1 %v4565_v29 }
 0x584   :  { %v4365_v15 = vpop.f32.mrf.mxu3  ;;  %v4496_v5 = vpop.f32.mrf.mxu0 }
 0x585   :  { %v4366_v60 = vadd.f32 %v4365_v15, %v10290_v57  ;;  %v9075_v23 = vadd.f32 %v9029_v51, %v4496_v5 }
 0x587   :  { %5949 = vmatmul.msk.f32.gmra.mxu0 %vm82_vm0, %v4366_v60  ;;  %v4568_v6 = vsel %vm82_vm0, %v9075_v23, 0.0 }
 0x588   :  { %4569 = vadd.xlane.f32.xlu2 %v4568_v6 }
 0x58c   :  { %v4368_v62 = vpop.f32.mrf.mxu3  ;;  %v4499_v43 = vpop.f32.mrf.mxu0 }
 0x58d   :  { %v4369_v39 = vadd.f32 %v4368_v62, %v10291_v50  ;;  %v9082_v17 = vadd.f32 %v9029_v51, %v4499_v43 }
 0x58f   :  { %5950 = vmatmul.msk.f32.gmra.mxu0 %vm82_vm0, %v4369_v39  ;;  %v4571_v40 = vsel %vm82_vm0, %v9082_v17, 0.0 }
 0x590   :  { %4572 = vadd.xlane.f32.xlu0 %v4571_v40 }
 0x594   :  { %v4502_v2 = vpop.f32.mrf.mxu0 }
 0x595   :  { %v9088_v32 = vadd.f32 %v9029_v51, %v4502_v2 }
 0x597   :  { %v4574_v10 = vsel %vm82_vm0, %v9088_v32, 0.0 }
 0x598   :  { %4575 = vadd.xlane.f32.xlu1 %v4574_v10 }
 0x59c   :  { %v4505_v28 = vpop.f32.mrf.mxu0 }
 0x59d   :  { %v9093_v36 = vadd.f32 %v9029_v51, %v4505_v28 }
 0x59f   :  { %v4577_v11 = vsel %vm82_vm0, %v9093_v36, 0.0 }
 0x5a0   :  { %4578 = vadd.xlane.f32.xlu2 %v4577_v11 }
 0x5a4   :  { %v4508_v0 = vpop.f32.mrf.mxu0 }
 0x5a5   :  { %v9098_v26 = vadd.f32 %v9029_v51, %v4508_v0 }
 0x5a7   :  { %v4580_v42 = vsel %vm82_vm0, %v9098_v26, 0.0 }
 0x5a8   :  { %4581 = vadd.xlane.f32.xlu0 %v4580_v42 }
 0x5ac   :  { %v4511_v44 = vpop.f32.mrf.mxu0 }
 0x5ad   :  { %v9103_v33 = vadd.f32 %v9029_v51, %v4511_v44 }
 0x5af   :  { %v4583_v20 = vsel %vm82_vm0, %v9103_v33, 0.0 }
 0x5b0   :  { %4584 = vadd.xlane.f32.xlu1 %v4583_v20 }
 0x5b4   :  { %v4514_v37 = vpop.f32.mrf.mxu0 }
 0x5b5   :  { %v9108_v35 = vadd.f32 %v9029_v51, %v4514_v37 }
 0x5b7   :  { %v4586_v56 = vsel %vm82_vm0, %v9108_v35, 0.0 }
 0x5b8   :  { %4587 = vadd.xlane.f32.xlu2 %v4586_v56 }
 0x5bc   :  { %v4517_v27 = vpop.f32.mrf.mxu0 }
 0x5bd   :  { %v9113_v24 = vadd.f32 %v9029_v51, %v4517_v27 }
 0x5bf   :  { %v4589_v22 = vsel %vm82_vm0, %v9113_v24, 0.0 }
 0x5c0   :  { %4590 = vadd.xlane.f32.xlu0 %v4589_v22 }
 0x5c4   :  { %v4520_v3 = vpop.f32.mrf.mxu0 }
 0x5c5   :  { %v9118_v31 = vadd.f32 %v9029_v51, %v4520_v3 }
 0x5c7   :  { %v4592_v7 = vsel %vm82_vm0, %v9118_v31, 0.0 }
 0x5c8   :  { %4593 = vadd.xlane.f32.xlu1 %v4592_v7 }
 0x5cb   :  { %v4552_v8 = vpop.xlane.xlu0 %4551 }
 0x5cc   :  { %v4629_v53 = vmul.f32 %v9122_v61, %v4552_v8  ;;  %v4523_v9 = vpop.f32.mrf.mxu0 }
 0x5cd   :  { %v9126_v38 = vadd.f32 %v9029_v51, %v4523_v9 }
 0x5ce   :  { %v9129_v14 = vsub.f32 %v9033_v47, %v4629_v53 }
 0x5cf   :  { %v4595_v12 = vsel %vm82_vm0, %v9126_v38, 0.0 }
 0x5d0   :  { %4596 = vadd.xlane.f32.xlu2 %v4595_v12  ;;  %v4677_v16 = vmul.f32 %v9129_v14, %v9129_v14 }
 0x5d2   :  { %v4701_v63 = vsel %vm82_vm0, %v4677_v16, 0.0 }
 0x5d3   :  { %v4555_v13 = vpop.xlane.xlu1 %4554 }
 0x5d4   :  { %v4630_v41 = vmul.f32 %v9122_v61, %v4555_v13  ;;  %v4526_v46 = vpop.f32.mrf.mxu0 }
 0x5d5   :  { %v9137_v59 = vadd.f32 %v9029_v51, %v4526_v46 }
 0x5d6   :  { %v9140_v1 = vsub.f32 %v9040_v19, %v4630_v41 }
 0x5d7   :  { %v4598_v47 = vsel %vm82_vm0, %v9137_v59, 0.0 }
 0x5d8   :  { %4599 = vadd.xlane.f32.xlu0 %v4598_v47  ;;  %4702 = vadd.xlane.f32.xlu2 %v4701_v63  ;;  %v4678_v25 = vmul.f32 %v9140_v1, %v9140_v1 }
 0x5da   :  { %v4704_v57 = vsel %vm82_vm0, %v4678_v25, 0.0 }
 0x5db   :  { %v4558_v18 = vpop.xlane.xlu2 %4557 }
 0x5dc   :  { %v4631_v45 = vmul.f32 %v9122_v61, %v4558_v18  ;;  %v4529_v29 = vpop.f32.mrf.mxu0 }
 0x5dd   :  { %v9149_v15 = vadd.f32 %v9029_v51, %v4529_v29 }
 0x5de   :  { %v9152_v19 = vsub.f32 %v9047_v21, %v4631_v45 }
 0x5df   :  { %v4601_v5 = vsel %vm82_vm0, %v9149_v15, 0.0 }
 0x5e0   :  { %4602 = vadd.xlane.f32.xlu1 %v4601_v5  ;;  %4705 = vadd.xlane.f32.xlu0 %v4704_v57  ;;  %v4679_v6 = vmul.f32 %v9152_v19, %v9152_v19 }
 0x5e2   :  { %v4707_v39 = vsel %vm82_vm0, %v4679_v6, 0.0 }
 0x5e3   :  { %v4561_v60 = vpop.xlane.xlu2 %4560 }
 0x5e4   :  { %v4632_v62 = vmul.f32 %v9122_v61, %v4561_v60  ;;  %v4532_v43 = vpop.f32.mrf.mxu0 }
 0x5e5   :  { %v9161_v50 = vadd.f32 %v9029_v51, %v4532_v43 }
 0x5e6   :  { %v9164_v21 = vsub.f32 %v9054_v48, %v4632_v62 }
 0x5e7   :  { %v4604_v40 = vsel %vm82_vm0, %v9161_v50, 0.0 }
 0x5e8   :  { %4708 = vadd.xlane.f32.xlu1 %v4707_v39  ;;  %4605 = vadd.xlane.f32.xlu2 %v4604_v40  ;;  %v4680_v10 = vmul.f32 %v9164_v21, %v9164_v21 }
 0x5ea   :  { %v4710_v44 = vsel %vm82_vm0, %v4680_v10, 0.0 }
 0x5eb   :  { %v4564_v2 = vpop.xlane.xlu0 %4563 }
 0x5ec   :  { %v4633_v28 = vmul.f32 %v9122_v61, %v4564_v2  ;;  %v4535_v11 = vpop.f32.mrf.mxu0 }
 0x5ed   :  { %v9173_v0 = vadd.f32 %v9029_v51, %v4535_v11 }
 0x5ee   :  { %v9176_v48 = vsub.f32 %v9061_v55, %v4633_v28 }
 0x5ef   :  { %v4607_v42 = vsel %vm82_vm0, %v9173_v0, 0.0 }
 0x5f0   :  { %4608 = vadd.xlane.f32.xlu0 %v4607_v42  ;;  %4711 = vadd.xlane.f32.xlu2 %v4710_v44  ;;  %v4681_v58 = vmul.f32 %v9176_v48, %v9176_v48 }
 0x5f2   :  { %v4713_v27 = vsel %vm82_vm0, %v4681_v58, 0.0 }
 0x5f3   :  { %v4567_v20 = vpop.xlane.xlu1 %4566 }
 0x5f4   :  { %v4634_v37 = vmul.f32 %v9122_v61, %v4567_v20  ;;  %v4538_v52 = vpop.f32.mrf.mxu0 }
 0x5f5   :  { %v9185_v56 = vadd.f32 %v9029_v51, %v4538_v52 }
 0x5f6   :  { %v9188_v55 = vsub.f32 %v9068_v49, %v4634_v37 }
 0x5f7   :  { %v4610_v54 = vsel %vm82_vm0, %v9185_v56, 0.0 }
 0x5f8   :  { %4611 = vadd.xlane.f32.xlu1 %v4610_v54  ;;  %4714 = vadd.xlane.f32.xlu0 %v4713_v27  ;;  %v4682_v22 = vmul.f32 %v9188_v55, %v9188_v55 }
 0x5fa   :  { %v4716_v7 = vsel %vm82_vm0, %v4682_v22, 0.0 }
 0x5fb   :  { %v4570_v4 = vpop.xlane.xlu2 %4569 }
 0x5fc   :  { %v4635_v30 = vmul.f32 %v9122_v61, %v4570_v4  ;;  %v4541_v3 = vpop.f32.mrf.mxu0 }
 0x5fd   :  { %v9197_v34 = vadd.f32 %v9029_v51, %v4541_v3 }
 0x5fe   :  { %v9200_v49 = vsub.f32 %v9075_v23, %v4635_v30 }
 0x5ff   :  { %v4613_v8 = vsel %vm82_vm0, %v9197_v34, 0.0 }
 0x600   :  { %4717 = vadd.xlane.f32.xlu1 %v4716_v7  ;;  %4614 = vadd.xlane.f32.xlu2 %v4613_v8  ;;  %v4683_v9 = vmul.f32 %v9200_v49, %v9200_v49 }
 0x602   :  { %v4719_v41 = vsel %vm82_vm0, %v4683_v9, 0.0 }
 0x603   :  { %v4573_v53 = vpop.xlane.xlu0 %4572 }
 0x604   :  { %v4636_v12 = vmul.f32 %v9122_v61, %v4573_v53  ;;  %v4544_v13 = vpop.f32.mrf.mxu0 }
 0x605   :  { %v9209_v16 = vadd.f32 %v9029_v51, %v4544_v13 }
 0x606   :  { %v9212_v23 = vsub.f32 %v9082_v17, %v4636_v12 }
 0x607   :  { %v4616_v46 = vsel %vm82_vm0, %v9209_v16, 0.0 }
 0x608   :  { %4720 = vadd.xlane.f32.xlu2 %v4719_v41  ;;  %4617 = vadd.xlane.f32.xlu0 %v4616_v46  ;;  %v4684_v63 = vmul.f32 %v9212_v23, %v9212_v23 }
 0x60a   :  { %v4722_v5 = vsel %vm82_vm0, %v4684_v63, 0.0 }
 0x60b   :  { %v4576_v47 = vpop.xlane.xlu1 %4575 }
 0x60c   :  { %v4637_v18 = vmul.f32 %v9122_v61, %v4576_v47  ;;  %v4547_v25 = vpop.f32.mrf.mxu0 }
 0x60d   :  { %v9221_v45 = vadd.f32 %v9029_v51, %v4547_v25 }
 0x60e   :  { %v9224_v17 = vsub.f32 %v9088_v32, %v4637_v18 }
 0x60f   :  { %v4619_v29 = vsel %vm82_vm0, %v9221_v45, 0.0 }
 0x610   :  { %4620 = vadd.xlane.f32.xlu1 %v4619_v29  ;;  %4723 = vadd.xlane.f32.xlu0 %v4722_v5  ;;  %v4685_v60 = vmul.f32 %v9224_v17, %v9224_v17 }
 0x612   :  { %v4725_v51 = vsel %vm82_vm0, %v4685_v60, 0.0 }
 0x613   :  { %v4579_v57 = vpop.xlane.xlu2 %4578 }
 0x614   :  { %v4638_v6 = vmul.f32 %v9122_v61, %v4579_v57 }
 0x616   :  { %v9233_v62 = vsub.f32 %v9093_v36, %v4638_v6  ;;  %v9290_v6 = vld [vmem:[%s9995_s7 + $0x2] ss:$0 sm:$0xff] }
 0x618   :  { %4726 = vadd.xlane.f32.xlu1 %v4725_v51  ;;  %v4686_v32 = vmul.f32 %v9233_v62, %v9233_v62 }
 0x61a   :  { %v4728_v43 = vsel %vm82_vm0, %v4686_v32, 0.0 }
 0x61b   :  { %4729 = vadd.xlane.f32.xlu2 %v4728_v43  ;;  %v4582_v39 = vpop.xlane.xlu0 %4581 }
 0x61c   :  { %v4639_v40 = vmul.f32 %v9122_v61, %v4582_v39 }
 0x61e   :  { %v9241_v2 = vsub.f32 %v9098_v26, %v4639_v40 }
 0x620   :  { %v4687_v10 = vmul.f32 %v9241_v2, %v9241_v2 }
 0x622   :  { %v4731_v36 = vsel %vm82_vm0, %v4687_v10, 0.0 }
 0x623   :  { %v4585_v28 = vpop.xlane.xlu1 %4584  ;;  %4732 = vadd.xlane.f32.xlu0 %v4731_v36 }
 0x624   :  { %v4640_v11 = vmul.f32 %v9122_v61, %v4585_v28 }
 0x626   :  { %v9248_v42 = vsub.f32 %v9103_v33, %v4640_v11 }
 0x628   :  { %v4688_v44 = vmul.f32 %v9248_v42, %v9248_v42 }
 0x62a   :  { %v4734_v20 = vsel %vm82_vm0, %v4688_v44, 0.0 }
 0x62b   :  { %v4588_v58 = vpop.xlane.xlu2 %4587  ;;  %4735 = vadd.xlane.f32.xlu1 %v4734_v20 }
 0x62c   :  { %v4641_v26 = vmul.f32 %v9122_v61, %v4588_v58 }
 0x62e   :  { %v9255_v37 = vsub.f32 %v9108_v35, %v4641_v26 }
 0x630   :  { %v4689_v52 = vmul.f32 %v9255_v37, %v9255_v37 }
 0x632   :  { %v4737_v54 = vsel %vm82_vm0, %v4689_v52, 0.0 }
 0x633   :  { %4738 = vadd.xlane.f32.xlu2 %v4737_v54  ;;  %v4591_v33 = vpop.xlane.xlu0 %4590 }
 0x634   :  { %v4642_v27 = vmul.f32 %v9122_v61, %v4591_v33 }
 0x636   :  { %v9262_v4 = vsub.f32 %v9113_v24, %v4642_v27 }
 0x638   :  { %v4690_v22 = vmul.f32 %v9262_v4, %v9262_v4 }
 0x63a   :  { %v4740_v30 = vsel %vm82_vm0, %v4690_v22, 0.0 }
 0x63b   :  { %v4594_v3 = vpop.xlane.xlu1 %4593  ;;  %4741 = vadd.xlane.f32.xlu0 %v4740_v30 }
 0x63c   :  { %v4643_v35 = vmul.f32 %v9122_v61, %v4594_v3 }
 0x63e   :  { %v9269_v7 = vsub.f32 %v9118_v31, %v4643_v35 }
 0x640   :  { %v4691_v8 = vmul.f32 %v9269_v7, %v9269_v7 }
 0x642   :  { %v4743_v53 = vsel %vm82_vm0, %v4691_v8, 0.0 }
 0x643   :  { %v4597_v9 = vpop.xlane.xlu2 %4596  ;;  %4744 = vadd.xlane.f32.xlu1 %v4743_v53 }
 0x644   :  { %v4644_v24 = vmul.f32 %v9122_v61, %v4597_v9 }
 0x646   :  { %v9276_v12 = vsub.f32 %v9126_v38, %v4644_v24  ;;  %v9285_v38 = vld [vmem:[%s9995_s7 + $0x1] ss:$0 sm:$0xff] }
 0x648   :  { %v4692_v13 = vmul.f32 %v9276_v12, %v9276_v12 }
 0x64a   :  { %v4746_v41 = vsel %vm82_vm0, %v4692_v13, 0.0 }
 0x64b   :  { %4747 = vadd.xlane.f32.xlu2 %v4746_v41  ;;  %v4703_v31 = vpop.xlane.xlu2 %4702  ;;  %v4600_v28 = vpop.xlane.xlu0 %4599 }
 0x64c   :  { %v4773_v46 = vmul.f32 %v4703_v31, %v9122_v61  ;;  %v4645_v11 = vmul.f32 %v9122_v61, %v4600_v28 }
 0x64e   :  { %v4797_v47 = vadd.f32 1e-05, %v4773_v46  ;;  %v9297_v26 = vsub.f32 %v9137_v59, %v4645_v11 }
 0x650   :  { %6256 = vrsqrt.f32 %v4797_v47  ;;  %vm4827_vm15 = vweird.f32 %v4797_v47 }
 0x653   :  { %v4706_v22 = vpop.xlane.xlu0 %4705 }
 0x654   :  { %v4774_v3 = vmul.f32 %v4706_v22, %v9122_v61 }
 0x656   :  { %v6257_v63 = vpop.eup %6256  ;;  %v4798_v53 = vadd.f32 1e-05, %v4774_v3 }
 0x657   :  { %v4822_v18 = vmul.f32 %v6257_v63, %v4797_v47  ;;  %vm4828_vm14 = vweird.f32 %v6257_v63 }
 0x658   :  { %vm4829_vm1 = vmor %vm4827_vm15, %vm4828_vm14  ;;  %vm4837_vm4 = vweird.f32 %v4798_v53 }
 0x659   :  { %v4823_v25 = vmul.f32 %v6257_v63, %v4822_v18 }
 0x65b   :  { %v4824_v29 = vmul.f32 0.5, %v4823_v25 }
 0x65d   :  { %v4825_v5 = vsub.f32 1.5, %v4824_v29 }
 0x65f   :  { %v4826_v57 = vmul.f32 %v6257_v63, %v4825_v5 }
 0x661   :  { %v4830_v60 = vsel %vm4829_vm1, %v6257_v63, %v4826_v57 }
 0x662   :  { %v5061_v51 = vmul.f32 %v4830_v60, %v9129_v14  ;;  %v4693_v14 = vmul.f32 %v9297_v26, %v9297_v26 }
 0x664   :  { %v5087_v32 = vmul.f32 %v9285_v38, %v5061_v51  ;;  %v4749_v27 = vsel %vm82_vm0, %v4693_v14, 0.0 }
 0x665   :  { %4750 = vadd.xlane.f32.xlu0 %v4749_v27 }
 0x666   :  { %v5113_v43 = vadd.f32 %v9290_v6, %v5087_v32 }
 0x668   :  { %v5161_v39 = vmul.f32 0.70710677, %v5113_v43  ;;  %v5137_v60 = vmul.f32 0.5, %v5113_v43 }
 0x66a   :  { %v5185_v40 = vand.u32 2147483647, %v5161_v39  ;;  %vm5641_vm2 = vcmp.ge.f32.partialorder %v5161_v39, 0.0  ;;  %v4603_v39 = vpop.xlane.xlu1 %4602 }
 0x66c   :  { %v5209_v10 = vmul.f32 0.3275911, %v5185_v40  ;;  %v5497_v20 = vsub.f32 0.0, %v5185_v40 }
 0x66e   :  { %v5233_v36 = vadd.f32 1.0, %v5209_v10  ;;  %v5521_v54 = vmul.f32 %v5497_v20, %v5185_v40 }
 0x670   :  { %6258 = vrcp.f32 %v5233_v36  ;;  %v5545_v35 = vmul.f32 1.442695, %v5521_v54 }
 0x671   :  { %6260 = vrsqrt.f32 %v4798_v53 }
 0x672   :  { %6262 = vpow2.f32 %v5545_v35  ;;  %v4709_v54 = vpop.xlane.xlu1 %4708 }
 0x676   :  { %v6259_v44 = vpop.eup %6258 }
 0x677   :  { %v5281_v58 = vmul.f32 1.0614054, %v6259_v44  ;;  %v6261_v13 = vpop.eup %6260 }
 0x678   :  { %v6263_v31 = vpop.eup %6262  ;;  %v4832_v46 = vmul.f32 %v6261_v13, %v4798_v53  ;;  %vm4838_vm3 = vweird.f32 %v6261_v13 }
 0x679   :  { %v5305_v52 = vadd.f32 -1.4531521, %v5281_v58  ;;  %vm4839_vm5 = vmor %vm4837_vm4, %vm4838_vm3  ;;  %v4646_v58 = vmul.f32 %v9122_v61, %v4603_v39 }
 0x67a   :  { %v4833_v63 = vmul.f32 %v6261_v13, %v4832_v46 }
 0x67b   :  { %v5329_v33 = vmul.f32 %v6259_v44, %v5305_v52  ;;  %v9309_v14 = vsub.f32 %v9149_v15, %v4646_v58 }
 0x67c   :  { %v4834_v25 = vmul.f32 0.5, %v4833_v63 }
 0x67d   :  { %v5353_v30 = vadd.f32 1.4214138, %v5329_v33  ;;  %v4775_v33 = vmul.f32 %v4709_v54, %v9122_v61 }
 0x67e   :  { %v4835_v5 = vsub.f32 1.5, %v4834_v25 }
 0x67f   :  { %v5377_v8 = vmul.f32 %v6259_v44, %v5353_v30  ;;  %v4799_v35 = vadd.f32 1e-05, %v4775_v33 }
 0x680   :  { %v4836_v32 = vmul.f32 %v6261_v13, %v4835_v5 }
 0x681   :  { %v5401_v9 = vadd.f32 -0.28449672, %v5377_v8  ;;  %vm4847_vm7 = vweird.f32 %v4799_v35 }
 0x682   :  { %v4840_v10 = vsel %vm4839_vm5, %v6261_v13, %v4836_v32 }
 0x683   :  { %v5425_v59 = vmul.f32 %v6259_v44, %v5401_v9  ;;  %v5062_v36 = vmul.f32 %v4840_v10, %v9140_v1  ;;  %v4694_v1 = vmul.f32 %v9309_v14, %v9309_v14 }
 0x685   :  { %v5449_v24 = vadd.f32 0.2548296, %v5425_v59  ;;  %v5088_v28 = vmul.f32 %v9285_v38, %v5062_v36  ;;  %v4752_v30 = vsel %vm82_vm0, %v4694_v1, 0.0 }
 0x686   :  { %4753 = vadd.xlane.f32.xlu1 %v4752_v30 }
 0x687   :  { %v5473_v41 = vmul.f32 %v6259_v44, %v5449_v24  ;;  %v5114_v11 = vadd.f32 %v9290_v6, %v5088_v28 }
 0x689   :  { %v5593_v47 = vmul.f32 %v6263_v31, %v5473_v41  ;;  %v5162_v44 = vmul.f32 0.70710677, %v5114_v11 }
 0x68b   :  { %v5617_v18 = vsub.f32 1.0, %v5593_v47  ;;  %v5186_v20 = vand.u32 2147483647, %v5162_v44  ;;  %vm5642_vm9 = vcmp.ge.f32.partialorder %v5162_v44, 0.0 }
 0x68d   :  { %v5665_v29 = vsub.f32 0.0, %v5617_v18  ;;  %v5210_v43 = vmul.f32 0.3275911, %v5186_v20  ;;  %v5498_v22 = vsub.f32 0.0, %v5186_v20 }
 0x68f   :  { %v5689_v57 = vsel %vm5641_vm2, %v5617_v18, %v5665_v29  ;;  %v5234_v52 = vadd.f32 1.0, %v5210_v43  ;;  %v5522_v53 = vmul.f32 %v5498_v22, %v5186_v20  ;;  %v5138_v20 = vmul.f32 0.5, %v5114_v11 }
 0x690   :  { %v5713_v51 = vadd.f32 1.0, %v5689_v57 }
 0x691   :  { %6264 = vrcp.f32 %v5234_v52  ;;  %v5547_v59 = vmul.f32 1.442695, %v5522_v53 }
 0x692   :  { %v5737_v40 = vmul.f32 %v5713_v51, %v5137_v60  ;;  %6266 = vrsqrt.f32 %v4799_v35 }
 0x693   :  { %6268 = vpow2.f32 %v5547_v59 }
 0x694   :  { %5761 = vst.msk [vmem:[#allocation2] sm:$0xff] %vm82_vm0, %v5737_v40 }
 0x697   :  { %v6265_v27 = vpop.eup %6264 }
 0x698   :  { %v5282_v3 = vmul.f32 1.0614054, %v6265_v27  ;;  %v6267_v24 = vpop.eup %6266 }
 0x699   :  { %v4842_v41 = vmul.f32 %v6267_v24, %v4799_v35  ;;  %vm4848_vm6 = vweird.f32 %v6267_v24  ;;  %v6269_v5 = vpop.eup %6268 }
 0x69a   :  { %v5306_v8 = vadd.f32 -1.4531521, %v5282_v3  ;;  %vm4849_vm8 = vmor %vm4847_vm7, %vm4848_vm6 }
 0x69b   :  { %v4843_v46 = vmul.f32 %v6267_v24, %v4842_v41 }
 0x69c   :  { %v5330_v9 = vmul.f32 %v6265_v27, %v5306_v8 }
 0x69d   :  { %v4844_v63 = vmul.f32 0.5, %v4843_v46 }
 0x69e   :  { %v5354_v15 = vadd.f32 1.4214138, %v5330_v9 }
 0x69f   :  { %v4845_v25 = vsub.f32 1.5, %v4844_v63 }
 0x6a0   :  { %v5378_v13 = vmul.f32 %v6265_v27, %v5354_v15 }
 0x6a1   :  { %v4846_v57 = vmul.f32 %v6267_v24, %v4845_v25 }
 0x6a2   :  { %v5402_v31 = vadd.f32 -0.28449672, %v5378_v13 }
 0x6a3   :  { %v4850_v51 = vsel %vm4849_vm8, %v6267_v24, %v4846_v57 }
 0x6a4   :  { %v5426_v47 = vmul.f32 %v6265_v27, %v5402_v31  ;;  %v5063_v40 = vmul.f32 %v4850_v51, %v9152_v19 }
 0x6a6   :  { %v5450_v18 = vadd.f32 0.2548296, %v5426_v47  ;;  %v5089_v36 = vmul.f32 %v9285_v38, %v5063_v40 }
 0x6a8   :  { %v5474_v29 = vmul.f32 %v6265_v27, %v5450_v18  ;;  %v5115_v39 = vadd.f32 %v9290_v6, %v5089_v36  ;;  %v4606_v27 = vpop.xlane.xlu2 %4605 }
 0x6a9   :  { %v4647_v19 = vmul.f32 %v9122_v61, %v4606_v27 }
 0x6aa   :  { %v5594_v60 = vmul.f32 %v6269_v5, %v5474_v29  ;;  %v5163_v43 = vmul.f32 0.70710677, %v5115_v39  ;;  %v5139_v36 = vmul.f32 0.5, %v5115_v39  ;;  %v4609_v39 = vpop.xlane.xlu0 %4608 }
 0x6ab   :  { %v9321_v44 = vsub.f32 %v9161_v50, %v4647_v19 }
 0x6ac   :  { %v5618_v32 = vsub.f32 1.0, %v5594_v60  ;;  %v5187_v1 = vand.u32 2147483647, %v5163_v43  ;;  %vm5643_vm10 = vcmp.ge.f32.partialorder %v5163_v43, 0.0 }
 0x6ad   :  { %v4695_v11 = vmul.f32 %v9321_v44, %v9321_v44 }
 0x6ae   :  { %v5666_v10 = vsub.f32 0.0, %v5618_v32  ;;  %v5211_v54 = vmul.f32 0.3275911, %v5187_v1  ;;  %v5499_v30 = vsub.f32 0.0, %v5187_v1 }
 0x6af   :  { %v4755_v9 = vsel %vm82_vm0, %v4695_v11, 0.0 }
 0x6b0   :  { %v5690_v28 = vsel %vm5642_vm9, %v5618_v32, %v5666_v10  ;;  %v5235_v33 = vadd.f32 1.0, %v5211_v54  ;;  %v5523_v8 = vmul.f32 %v5499_v30, %v5187_v1  ;;  %4756 = vadd.xlane.f32.xlu2 %v4755_v9  ;;  %v4712_v15 = vpop.xlane.xlu2 %4711  ;;  %v4648_v30 = vmul.f32 %v9122_v61, %v4609_v39 }
 0x6b1   :  { %v5714_v58 = vadd.f32 1.0, %v5690_v28  ;;  %v4776_v24 = vmul.f32 %v4712_v15, %v9122_v61 }
 0x6b2   :  { %6270 = vrcp.f32 %v5235_v33  ;;  %v5549_v13 = vmul.f32 1.442695, %v5523_v8  ;;  %v9333_v8 = vsub.f32 %v9173_v0, %v4648_v30 }
 0x6b3   :  { %v5738_v52 = vmul.f32 %v5714_v58, %v5138_v20  ;;  %v4800_v31 = vadd.f32 1e-05, %v4776_v24  ;;  %v4715_v24 = vpop.xlane.xlu0 %4714 }
 0x6b5   :  { %5762 = vst.msk [vmem:[#allocation2 + $0x8] sm:$0xff] %vm82_vm0, %v5738_v52  ;;  %6272 = vrsqrt.f32 %v4800_v31  ;;  %vm4857_vm12 = vweird.f32 %v4800_v31 }
 0x6b6   :  { %6274 = vpow2.f32 %v5549_v13 }
 0x6b8   :  { %v6271_v22 = vpop.eup %6270 }
 0x6b9   :  { %v5283_v3 = vmul.f32 1.0614054, %v6271_v22 }
 0x6bb   :  { %v5307_v35 = vadd.f32 -1.4531521, %v5283_v3  ;;  %v6273_v63 = vpop.eup %6272 }
 0x6bc   :  { %v6275_v25 = vpop.eup %6274  ;;  %v4852_v29 = vmul.f32 %v6273_v63, %v4800_v31  ;;  %vm4858_vm11 = vweird.f32 %v6273_v63 }
 0x6bd   :  { %v5331_v53 = vmul.f32 %v6271_v22, %v5307_v35  ;;  %vm4859_vm13 = vmor %vm4857_vm12, %vm4858_vm11 }
 0x6be   :  { %v4853_v57 = vmul.f32 %v6273_v63, %v4852_v29 }
 0x6bf   :  { %v5355_v59 = vadd.f32 1.4214138, %v5331_v53  ;;  %v4696_v53 = vmul.f32 %v9333_v8, %v9333_v8 }
 0x6c0   :  { %v4854_v51 = vmul.f32 0.5, %v4853_v57 }
 0x6c1   :  { %v5379_v41 = vmul.f32 %v6271_v22, %v5355_v59  ;;  %v4758_v59 = vsel %vm82_vm0, %v4696_v53, 0.0 }
 0x6c2   :  { %v4855_v40 = vsub.f32 1.5, %v4854_v51  ;;  %4759 = vadd.xlane.f32.xlu0 %v4758_v59 }
 0x6c3   :  { %v5403_v46 = vadd.f32 -0.28449672, %v5379_v41  ;;  %v4777_v41 = vmul.f32 %v4715_v24, %v9122_v61 }
 0x6c4   :  { %v4856_v20 = vmul.f32 %v6273_v63, %v4855_v40 }
 0x6c5   :  { %v5427_v50 = vmul.f32 %v6271_v22, %v5403_v46  ;;  %v4612_v46 = vpop.xlane.xlu1 %4611 }
 0x6c6   :  { %v4860_v52 = vsel %vm4859_vm13, %v6273_v63, %v4856_v20  ;;  %v4649_v0 = vmul.f32 %v9122_v61, %v4612_v46 }
 0x6c7   :  { %v5451_v47 = vadd.f32 0.2548296, %v5427_v50  ;;  %v5064_v1 = vmul.f32 %v4860_v52, %v9164_v21  ;;  %v4615_v52 = vpop.xlane.xlu2 %4614 }
 0x6c8   :  { %v9341_v29 = vsub.f32 %v9185_v56, %v4649_v0 }
 0x6c9   :  { %v5475_v18 = vmul.f32 %v6271_v22, %v5451_v47  ;;  %v5090_v54 = vmul.f32 %v9285_v38, %v5064_v1  ;;  %v4801_v47 = vadd.f32 1e-05, %v4777_v41 }
 0x6ca   :  { %v4697_v40 = vmul.f32 %v9341_v29, %v9341_v29 }
 0x6cb   :  { %v5595_v5 = vmul.f32 %v6275_v25, %v5475_v18  ;;  %v5116_v33 = vadd.f32 %v9290_v6, %v5090_v54  ;;  %v4650_v54 = vmul.f32 %v9122_v61, %v4615_v52  ;;  %vm4867_vm1 = vweird.f32 %v4801_v47 }
 0x6cd   :  { %v5619_v60 = vsub.f32 1.0, %v5595_v5  ;;  %v5164_v27 = vmul.f32 0.70710677, %v5116_v33  ;;  %v9349_v39 = vsub.f32 %v9197_v34, %v4650_v54  ;;  %v5140_v30 = vmul.f32 0.5, %v5116_v33 }
 0x6cf   :  { %v5667_v32 = vsub.f32 0.0, %v5619_v60  ;;  %v5188_v43 = vand.u32 2147483647, %v5164_v27  ;;  %vm5644_vm14 = vcmp.ge.f32.partialorder %v5164_v27, 0.0  ;;  %v4721_v34 = vpop.xlane.xlu2 %4720 }
 0x6d0   :  { %v4779_v59 = vmul.f32 %v4721_v34, %v9122_v61 }
 0x6d1   :  { %v5691_v10 = vsel %vm5643_vm10, %v5619_v60, %v5667_v32  ;;  %v5212_v19 = vmul.f32 0.3275911, %v5188_v43  ;;  %v5500_v35 = vsub.f32 0.0, %v5188_v43 }
 0x6d2   :  { %v5715_v28 = vadd.f32 1.0, %v5691_v10 }
 0x6d3   :  { %v5236_v22 = vadd.f32 1.0, %v5212_v19  ;;  %v5524_v9 = vmul.f32 %v5500_v35, %v5188_v43 }
 0x6d4   :  { %v5739_v58 = vmul.f32 %v5715_v28, %v5139_v36  ;;  %v4761_v28 = vsel %vm82_vm0, %v4697_v40, 0.0 }
 0x6d5   :  { %6276 = vrcp.f32 %v5236_v22  ;;  %v5551_v31 = vmul.f32 1.442695, %v5524_v9  ;;  %4762 = vadd.xlane.f32.xlu1 %v4761_v28 }
 0x6d6   :  { %5763 = vst.msk [vmem:[#allocation2 + $0x10] sm:$0xff] %vm82_vm0, %v5739_v58  ;;  %6278 = vrsqrt.f32 %v4801_v47  ;;  %v4718_v58 = vpop.xlane.xlu1 %4717 }
 0x6d7   :  { %6280 = vpow2.f32 %v5551_v31  ;;  %v4778_v56 = vmul.f32 %v4718_v58, %v9122_v61  ;;  %v4803_v31 = vadd.f32 1e-05, %v4779_v59 }
 0x6d9   :  { %v4802_v22 = vadd.f32 1e-05, %v4778_v56  ;;  %vm4887_vm7 = vweird.f32 %v4803_v31 }
 0x6db   :  { %v6277_v3 = vpop.eup %6276  ;;  %6282 = vrsqrt.f32 %v4802_v22  ;;  %vm4877_vm4 = vweird.f32 %v4802_v22 }
 0x6dc   :  { %v5284_v11 = vmul.f32 1.0614054, %v6277_v3  ;;  %v6279_v5 = vpop.eup %6278  ;;  %6284 = vrsqrt.f32 %v4803_v31 }
 0x6dd   :  { %v6281_v60 = vpop.eup %6280  ;;  %v4862_v51 = vmul.f32 %v6279_v5, %v4801_v47  ;;  %vm4868_vm15 = vweird.f32 %v6279_v5 }
 0x6de   :  { %v5308_v21 = vadd.f32 -1.4531521, %v5284_v11  ;;  %vm4869_vm2 = vmor %vm4867_vm1, %vm4868_vm15  ;;  %v4698_v11 = vmul.f32 %v9349_v39, %v9349_v39 }
 0x6df   :  { %v4863_v10 = vmul.f32 %v6279_v5, %v4862_v51 }
 0x6e0   :  { %v5332_v15 = vmul.f32 %v6277_v3, %v5308_v21  ;;  %v4764_v9 = vsel %vm82_vm0, %v4698_v11, 0.0 }
 0x6e1   :  { %v4864_v20 = vmul.f32 0.5, %v4863_v10  ;;  %4765 = vadd.xlane.f32.xlu2 %v4764_v9 }
 0x6e2   :  { %v5356_v13 = vadd.f32 1.4214138, %v5332_v15  ;;  %v4618_v15 = vpop.xlane.xlu0 %4617 }
 0x6e3   :  { %v4865_v43 = vsub.f32 1.5, %v4864_v20  ;;  %v4651_v24 = vmul.f32 %v9122_v61, %v4618_v15 }
 0x6e4   :  { %v5380_v50 = vmul.f32 %v6277_v3, %v5356_v13  ;;  %v6283_v13 = vpop.eup %6282 }
 0x6e5   :  { %v4866_v35 = vmul.f32 %v6279_v5, %v4865_v43  ;;  %v4872_v46 = vmul.f32 %v6283_v13, %v4802_v22  ;;  %vm4878_vm3 = vweird.f32 %v6283_v13  ;;  %v6285_v40 = vpop.eup %6284 }
 0x6e6   :  { %v5404_v63 = vadd.f32 -0.28449672, %v5380_v50  ;;  %v4882_v58 = vmul.f32 %v6285_v40, %v4803_v31  ;;  %vm4879_vm5 = vmor %vm4877_vm4, %vm4878_vm3  ;;  %vm4888_vm6 = vweird.f32 %v6285_v40 }
 0x6e7   :  { %v4870_v53 = vsel %vm4869_vm2, %v6279_v5, %v4866_v35  ;;  %v4873_v47 = vmul.f32 %v6283_v13, %v4872_v46  ;;  %vm4889_vm8 = vmor %vm4887_vm7, %vm4888_vm6 }
 0x6e8   :  { %v5428_v18 = vmul.f32 %v6277_v3, %v5404_v63  ;;  %v5065_v27 = vmul.f32 %v4870_v53, %v9176_v48  ;;  %v9363_v48 = vsub.f32 %v9209_v16, %v4651_v24  ;;  %v4883_v56 = vmul.f32 %v6285_v40, %v4882_v58 }
 0x6ea   :  { %v5452_v25 = vadd.f32 0.2548296, %v5428_v18  ;;  %v5091_v33 = vmul.f32 %v9285_v38, %v5065_v27  ;;  %v4699_v63 = vmul.f32 %v9363_v48, %v9363_v48  ;;  %v4874_v18 = vmul.f32 0.5, %v4873_v47 }
 0x6ec   :  { %v5476_v57 = vmul.f32 %v6277_v3, %v5452_v25  ;;  %v9360_v41 = vadd.f32 %v9290_v6, %v5091_v33  ;;  %v4621_v25 = vpop.xlane.xlu1 %4620  ;;  %v4767_v5 = vsel %vm82_vm0, %v4699_v63, 0.0 }
 0x6ed   :  { %v4652_v16 = vmul.f32 %v9122_v61, %v4621_v25  ;;  %4768 = vadd.xlane.f32.xlu0 %v4767_v5 }
 0x6ee   :  { %v5596_v32 = vmul.f32 %v6281_v60, %v5476_v57  ;;  %v9366_v50 = vmul.f32 0.70710677, %v9360_v41  ;;  %v4724_v57 = vpop.xlane.xlu0 %4723 }
 0x6ef   :  { %v4780_v51 = vmul.f32 %v4724_v57, %v9122_v61 }
 0x6f0   :  { %v5620_v36 = vsub.f32 1.0, %v5596_v32  ;;  %v5189_v0 = vand.u32 2147483647, %v9366_v50  ;;  %v4875_v32 = vsub.f32 1.5, %v4874_v18  ;;  %vm5645_vm12 = vcmp.ge.f32.partialorder %v9366_v50, 0.0 }
 0x6f1   :  { %v9377_v28 = vadd.f32 1e-05, %v4780_v51 }
 0x6f2   :  { %v5668_v1 = vsub.f32 0.0, %v5620_v36  ;;  %v5213_v60 = vmul.f32 0.3275911, %v5189_v0  ;;  %v4876_v20 = vmul.f32 %v6283_v13, %v4875_v32  ;;  %v5501_v11 = vsub.f32 0.0, %v5189_v0 }
 0x6f3   :  { %vm4897_vm10 = vweird.f32 %v9377_v28 }
 0x6f4   :  { %v5692_v19 = vsel %vm5644_vm14, %v5620_v36, %v5668_v1  ;;  %v5237_v10 = vadd.f32 1.0, %v5213_v60  ;;  %v9375_v36 = vsub.f32 %v9221_v45, %v4652_v16  ;;  %v4880_v1 = vsel %vm4879_vm5, %v6283_v13, %v4876_v20 }
 0x6f5   :  { %v5716_v3 = vadd.f32 1.0, %v5692_v19  ;;  %v5066_v54 = vmul.f32 %v4880_v1, %v9188_v55  ;;  %v4884_v45 = vmul.f32 0.5, %v4883_v56  ;;  %v4727_v19 = vpop.xlane.xlu1 %4726  ;;  %v4730_v55 = vpop.xlane.xlu2 %4729  ;;  %v5525_v46 = vmul.f32 %v5501_v11, %v5189_v0 }
 0x6f6   :  { %6286 = vrcp.f32 %v5237_v10  ;;  %v4700_v52 = vmul.f32 %v9375_v36, %v9375_v36  ;;  %v4781_v22 = vmul.f32 %v4727_v19, %v9122_v61  ;;  %v4782_v15 = vmul.f32 %v4730_v55, %v9122_v61  ;;  %v4733_v10 = vpop.xlane.xlu0 %4732 }
 0x6f7   :  { %v5740_v21 = vmul.f32 %v5716_v3, %v5140_v30  ;;  %6288 = vrsqrt.f32 %v9377_v28  ;;  %v5092_v30 = vmul.f32 %v9285_v38, %v5066_v54  ;;  %v4885_v3 = vsub.f32 1.5, %v4884_v45 }
 0x6f8   :  { %v4770_v43 = vsel %vm82_vm0, %v4700_v52, 0.0  ;;  %v9391_v53 = vadd.f32 1e-05, %v4781_v22  ;;  %v9403_v25 = vadd.f32 1e-05, %v4782_v15  ;;  %v4783_v58 = vmul.f32 %v4733_v10, %v9122_v61 }
 0x6f9   :  { %5764 = vst.msk [vmem:[#allocation2 + $0x18] sm:$0xff] %vm82_vm0, %v5740_v21  ;;  %4771 = vadd.xlane.f32.xlu1 %v4770_v43  ;;  %v9389_v21 = vadd.f32 %v9290_v6, %v5092_v30  ;;  %v4886_v34 = vmul.f32 %v6285_v40, %v4885_v3  ;;  %v5553_v51 = vmul.f32 1.442695, %v5525_v46  ;;  %v9422_v55 = vmul.f32 0.5, %v9360_v41 }
 0x6fa   :  { %6290 = vrsqrt.f32 %v9391_v53  ;;  %v9418_v19 = vadd.f32 1e-05, %v4783_v58  ;;  %vm4907_vm14 = vweird.f32 %v9391_v53  ;;  %vm4917_vm2 = vweird.f32 %v9403_v25 }
 0x6fb   :  { %v9396_v33 = vmul.f32 0.70710677, %v9389_v21  ;;  %v4890_v13 = vsel %vm4889_vm8, %v6285_v40, %v4886_v34  ;;  %6292 = vrsqrt.f32 %v9403_v25 }
 0x6fc   :  { %v9386_v35 = vpop.eup %6286  ;;  %v5067_v63 = vmul.f32 %v4890_v13, %v9200_v49  ;;  %vm4927_vm6 = vweird.f32 %v9418_v19 }
 0x6fd   :  { %v6289_v27 = vpop.eup %6288  ;;  %v5285_v9 = vmul.f32 1.0614054, %v9386_v35  ;;  %v5190_v47 = vand.u32 2147483647, %v9396_v33  ;;  %vm5646_vm4 = vcmp.ge.f32.partialorder %v9396_v33, 0.0 }
 0x6fe   :  { %v4892_v59 = vmul.f32 %v6289_v27, %v9377_v28  ;;  %v5093_v57 = vmul.f32 %v9285_v38, %v5067_v63  ;;  %vm4898_vm9 = vweird.f32 %v6289_v27 }
 0x6ff   :  { %v5309_v24 = vadd.f32 -1.4531521, %v5285_v9  ;;  %v5214_v5 = vmul.f32 0.3275911, %v5190_v47  ;;  %v5502_v56 = vsub.f32 0.0, %v5190_v47  ;;  %vm4899_vm11 = vmor %vm4897_vm10, %vm4898_vm9 }
 0x700   :  { %v4893_v18 = vmul.f32 %v6289_v27, %v4892_v59  ;;  %v9408_v0 = vadd.f32 %v9290_v6, %v5093_v57  ;;  %v6291_v49 = vpop.eup %6290 }
 0x701   :  { %v5333_v31 = vmul.f32 %v9386_v35, %v5309_v24  ;;  %v5238_v32 = vadd.f32 1.0, %v5214_v5  ;;  %v4902_v43 = vmul.f32 %v6291_v49, %v9391_v53  ;;  %v6293_v30 = vpop.eup %6292  ;;  %v5526_v59 = vmul.f32 %v5502_v56, %v5190_v47 }
 0x702   :  { %v4894_v60 = vmul.f32 0.5, %v4893_v18  ;;  %v9413_v52 = vmul.f32 0.70710677, %v9408_v0  ;;  %v4912_v34 = vmul.f32 %v6293_v30, %v9403_v25  ;;  %vm4908_vm13 = vweird.f32 %v6291_v49 }
 0x703   :  { %v5357_v16 = vadd.f32 1.4214138, %v5333_v31  ;;  %6294 = vrcp.f32 %v5238_v32  ;;  %v4903_v11 = vmul.f32 %v6291_v49, %v4902_v43  ;;  %v4736_v32 = vpop.xlane.xlu1 %4735  ;;  %vm4909_vm15 = vmor %vm4907_vm14, %vm4908_vm13  ;;  %vm4918_vm1 = vweird.f32 %v6293_v30 }
 0x704   :  { %v4895_v40 = vsub.f32 1.5, %v4894_v60  ;;  %6296 = vpow2.f32 %v5553_v51  ;;  %v5191_v45 = vand.u32 2147483647, %v9413_v52  ;;  %v4913_v63 = vmul.f32 %v6293_v30, %v4912_v34  ;;  %vm4919_vm3 = vmor %vm4917_vm2, %vm4918_vm1 }
 0x705   :  { %v5381_v20 = vmul.f32 %v9386_v35, %v5357_v16  ;;  %v4904_v24 = vmul.f32 0.5, %v4903_v11  ;;  %6298 = vrsqrt.f32 %v9418_v19  ;;  %v5555_v16 = vmul.f32 1.442695, %v5526_v59 }
 0x706   :  { %v4896_v54 = vmul.f32 %v6289_v27, %v4895_v40  ;;  %v5215_v28 = vmul.f32 0.3275911, %v5191_v45  ;;  %v4914_v5 = vmul.f32 0.5, %v4913_v63  ;;  %v5503_v40 = vsub.f32 0.0, %v5191_v45 }
 0x707   :  { %v5405_v1 = vadd.f32 -0.28449672, %v5381_v20  ;;  %vm5647_vm8 = vcmp.ge.f32.partialorder %v9413_v52, 0.0 }
 0x708   :  { %v4900_v3 = vsel %vm4899_vm11, %v6289_v27, %v4896_v54  ;;  %v5239_v46 = vadd.f32 1.0, %v5215_v28  ;;  %v4915_v10 = vsub.f32 1.5, %v4914_v5  ;;  %v5527_v34 = vmul.f32 %v5503_v40, %v5191_v45 }
 0x709   :  { %v5429_v22 = vmul.f32 %v9386_v35, %v5405_v1  ;;  %v5068_v9 = vmul.f32 %v4900_v3, %v9212_v23  ;;  %v9427_v13 = vpop.eup %6294  ;;  %v4905_v23 = vsub.f32 1.5, %v4904_v24 }
 0x70a   :  { %v5286_v18 = vmul.f32 1.0614054, %v9427_v13  ;;  %v6297_v31 = vpop.eup %6296  ;;  %6300 = vrcp.f32 %v5239_v46  ;;  %v4916_v43 = vmul.f32 %v6293_v30, %v4915_v10  ;;  %v5557_v40 = vmul.f32 1.442695, %v5527_v34 }
 0x70b   :  { %v5453_v15 = vadd.f32 0.2548296, %v5429_v22  ;;  %v5094_v27 = vmul.f32 %v9285_v38, %v5068_v9  ;;  %v4906_v51 = vmul.f32 %v6291_v49, %v4905_v23  ;;  %v9440_v20 = vpop.eup %6298  ;;  %v4784_v22 = vmul.f32 %v4736_v32, %v9122_v61 }
 0x70c   :  { %v5310_v60 = vadd.f32 -1.4531521, %v5286_v18  ;;  %6302 = vpow2.f32 %v5555_v16  ;;  %v4922_v28 = vmul.f32 %v9440_v20, %v9418_v19  ;;  %v9475_v32 = vmul.f32 0.5, %v9389_v21 }
 0x70d   :  { %v5477_v41 = vmul.f32 %v9386_v35, %v5453_v15  ;;  %v9434_v47 = vadd.f32 %v9290_v6, %v5094_v27  ;;  %v4910_v56 = vsel %vm4909_vm15, %v6291_v49, %v4906_v51  ;;  %v4920_v15 = vsel %vm4919_vm3, %v6293_v30, %v4916_v43 }
 0x70e   :  { %v5334_v1 = vmul.f32 %v9427_v13, %v5310_v60  ;;  %v5069_v54 = vmul.f32 %v4910_v56, %v9224_v17  ;;  %v5070_v46 = vmul.f32 %v4920_v15, %v9233_v62  ;;  %v9460_v18 = vadd.f32 1e-05, %v4784_v22 }
 0x70f   :  { %v5597_v57 = vmul.f32 %v6297_v31, %v5477_v41  ;;  %v9438_v35 = vmul.f32 0.70710677, %v9434_v47  ;;  %v4923_v50 = vmul.f32 %v9440_v20, %v4922_v28  ;;  %vm4928_vm5 = vweird.f32 %v9440_v20 }
 0x710   :  { %v5358_v11 = vadd.f32 1.4214138, %v5334_v1  ;;  %v9449_v9 = vpop.eup %6300  ;;  %v5095_v25 = vmul.f32 %v9285_v38, %v5069_v54  ;;  %v5096_v30 = vmul.f32 %v9285_v38, %v5070_v46  ;;  %v4739_v54 = vpop.xlane.xlu2 %4738  ;;  %vm4929_vm7 = vmor %vm4927_vm6, %vm4928_vm5  ;;  %vm4937_vm9 = vweird.f32 %v9460_v18 }
 0x711   :  { %v5621_v58 = vsub.f32 1.0, %v5597_v57  ;;  %v5192_v53 = vand.u32 2147483647, %v9438_v35  ;;  %v5287_v24 = vmul.f32 1.0614054, %v9449_v9  ;;  %v4924_v10 = vmul.f32 0.5, %v4923_v50 }
 0x712   :  { %v5382_v59 = vmul.f32 %v9427_v13, %v5358_v11  ;;  %v9458_v41 = vadd.f32 %v9290_v6, %v5095_v25  ;;  %v6303_v57 = vpop.eup %6302  ;;  %v9471_v51 = vadd.f32 %v9290_v6, %v5096_v30  ;;  %v4785_v25 = vmul.f32 %v4739_v54, %v9122_v61 }
 0x713   :  { %v5669_v3 = vsub.f32 0.0, %v5621_v58  ;;  %v5216_v49 = vmul.f32 0.3275911, %v5192_v53  ;;  %v5311_v23 = vadd.f32 -1.4531521, %v5287_v24  ;;  %v5504_v5 = vsub.f32 0.0, %v5192_v53 }
 0x714   :  { %v5406_v45 = vadd.f32 -0.28449672, %v5382_v59  ;;  %v9468_v16 = vmul.f32 0.70710677, %v9458_v41  ;;  %v9484_v22 = vmul.f32 0.70710677, %v9471_v51 }
 0x715   :  { %v5693_v17 = vsel %vm5645_vm12, %v5621_v58, %v5669_v3  ;;  %v5240_v63 = vadd.f32 1.0, %v5216_v49  ;;  %v5335_v60 = vmul.f32 %v9449_v9, %v5311_v23  ;;  %v5528_v43 = vmul.f32 %v5504_v5, %v5192_v53 }
 0x716   :  { %v5717_v27 = vadd.f32 1.0, %v5693_v17  ;;  %v5430_v62 = vmul.f32 %v9427_v13, %v5406_v45  ;;  %v5193_v56 = vand.u32 2147483647, %v9468_v16  ;;  %v4925_v21 = vsub.f32 1.5, %v4924_v10 }
 0x717   :  { %6304 = vrcp.f32 %v5240_v63  ;;  %v5359_v1 = vadd.f32 1.4214138, %v5335_v60  ;;  %v5194_v49 = vand.u32 2147483647, %v9484_v22  ;;  %v9501_v5 = vadd.f32 1e-05, %v4785_v25 }
 0x718   :  { %v5741_v31 = vmul.f32 %v5717_v27, %v9422_v55  ;;  %v9478_v55 = vmul.f32 0.5, %v9408_v0  ;;  %v5454_v58 = vadd.f32 0.2548296, %v5430_v62  ;;  %6306 = vrsqrt.f32 %v9460_v18 }
 0x719   :  { %v5383_v3 = vmul.f32 %v9449_v9, %v5359_v1  ;;  %v5217_v11 = vmul.f32 0.3275911, %v5193_v56  ;;  %v5505_v34 = vsub.f32 0.0, %v5193_v56  ;;  %v4926_v53 = vmul.f32 %v9440_v20, %v4925_v21 }
 0x71a   :  { %5765 = vst.msk [vmem:[#allocation2 + $0x20] sm:$0xff] %vm82_vm0, %v5741_v31  ;;  %v5478_v0 = vmul.f32 %v9427_v13, %v5454_v58  ;;  %6308 = vpow2.f32 %v5557_v40  ;;  %v5559_v13 = vmul.f32 1.442695, %v5528_v43  ;;  %v5218_v46 = vmul.f32 0.3275911, %v5194_v49 }
 0x71b   :  { %v5407_v17 = vadd.f32 -0.28449672, %v5383_v3  ;;  %v5241_v24 = vadd.f32 1.0, %v5217_v11  ;;  %v4930_v19 = vsel %vm4929_vm7, %v9440_v20, %v4926_v53  ;;  %v5529_v30 = vmul.f32 %v5505_v34, %v5193_v56 }
 0x71c   :  { %v5598_v15 = vmul.f32 %v6303_v57, %v5478_v0  ;;  %v5242_v50 = vadd.f32 1.0, %v5218_v46  ;;  %v5071_v31 = vmul.f32 %v4930_v19, %v9241_v2  ;;  %v9508_v40 = vmul.f32 0.5, %v9434_v47  ;;  %v4742_v47 = vpop.xlane.xlu0 %4741 }
 0x71d   :  { %v9490_v28 = vpop.eup %6304  ;;  %v5431_v45 = vmul.f32 %v9449_v9, %v5407_v17  ;;  %6310 = vrcp.f32 %v5241_v24  ;;  %v5506_v10 = vsub.f32 0.0, %v5194_v49  ;;  %v5561_v33 = vmul.f32 1.442695, %v5529_v30 }
 0x71e   :  { %v5288_v59 = vmul.f32 1.0614054, %v9490_v28  ;;  %v9497_v27 = vpop.eup %6306  ;;  %v5622_v63 = vsub.f32 1.0, %v5598_v15  ;;  %v5097_v58 = vmul.f32 %v9285_v38, %v5071_v31  ;;  %6312 = vrcp.f32 %v5242_v50 }
 0x71f   :  { %v5455_v62 = vadd.f32 0.2548296, %v5431_v45  ;;  %v4932_v20 = vmul.f32 %v9497_v27, %v9460_v18  ;;  %6314 = vpow2.f32 %v5559_v13  ;;  %v5530_v53 = vmul.f32 %v5506_v10, %v5194_v49 }
 0x720   :  { %v5312_v23 = vadd.f32 -1.4531521, %v5288_v59  ;;  %v5670_v57 = vsub.f32 0.0, %v5622_v63  ;;  %v6309_v54 = vpop.eup %6308  ;;  %v9515_v21 = vadd.f32 %v9290_v6, %v5097_v58  ;;  %6316 = vrsqrt.f32 %v9501_v5 }
 0x721   :  { %v5479_v1 = vmul.f32 %v9449_v9, %v5455_v62  ;;  %v4933_v0 = vmul.f32 %v9497_v27, %v4932_v20  ;;  %v4786_v59 = vmul.f32 %v4742_v47, %v9122_v61  ;;  %vm4938_vm10 = vweird.f32 %v9497_v27 }
 0x722   :  { %v5336_v60 = vmul.f32 %v9490_v28, %v5312_v23  ;;  %v5694_v2 = vsel %vm5646_vm4, %v5622_v63, %v5670_v57  ;;  %v9525_v25 = vmul.f32 0.70710677, %v9515_v21  ;;  %v5563_v50 = vmul.f32 1.442695, %v5530_v53  ;;  %vm4939_vm12 = vmor %vm4937_vm9, %vm4938_vm10 }
 0x723   :  { %v5718_v43 = vadd.f32 1.0, %v5694_v2  ;;  %v9518_v3 = vpop.eup %6310  ;;  %v5599_v11 = vmul.f32 %v6309_v54, %v5479_v1  ;;  %v4934_v17 = vmul.f32 0.5, %v4933_v0  ;;  %v9535_v63 = vadd.f32 1e-05, %v4786_v59 }
 0x724   :  { %v5360_v56 = vadd.f32 1.4214138, %v5336_v60  ;;  %v5289_v34 = vmul.f32 1.0614054, %v9518_v3  ;;  %v5195_v13 = vand.u32 2147483647, %v9525_v25  ;;  %vm4947_vm13 = vweird.f32 %v9501_v5 }
 0x725   :  { %v5742_v9 = vmul.f32 %v5718_v43, %v9475_v32  ;;  %v5623_v6 = vsub.f32 1.0, %v5599_v11  ;;  %v9532_v32 = vpop.eup %6312  ;;  %v4935_v19 = vsub.f32 1.5, %v4934_v17  ;;  %6318 = vrsqrt.f32 %v9535_v63  ;;  %v4745_v11 = vpop.xlane.xlu1 %4744 }
 0x726   :  { %v5384_v38 = vmul.f32 %v9490_v28, %v5360_v56  ;;  %v5313_v24 = vadd.f32 -1.4531521, %v5289_v34  ;;  %v6315_v45 = vpop.eup %6314  ;;  %v5290_v30 = vmul.f32 1.0614054, %v9532_v32  ;;  %v5219_v31 = vmul.f32 0.3275911, %v5195_v13 }
 0x727   :  { %5766 = vst.msk [vmem:[#allocation2 + $0x28] sm:$0xff] %vm82_vm0, %v5742_v9  ;;  %v5671_v49 = vsub.f32 0.0, %v5623_v6  ;;  %v9539_v57 = vpop.eup %6316  ;;  %v4936_v20 = vmul.f32 %v9497_v27, %v4935_v19  ;;  %vm5648_vm11 = vcmp.ge.f32.partialorder %v9438_v35, 0.0  ;;  %6320 = vpow2.f32 %v5561_v33 }
 0x728   :  { %v5408_v15 = vadd.f32 -0.28449672, %v5384_v38  ;;  %v5337_v23 = vmul.f32 %v9518_v3, %v5313_v24  ;;  %v5314_v2 = vadd.f32 -1.4531521, %v5290_v30  ;;  %v5243_v1 = vadd.f32 1.0, %v5219_v31 }
 0x729   :  { %v5695_v62 = vsel %vm5647_vm8, %v5623_v6, %v5671_v49  ;;  %v4940_v52 = vsel %vm4939_vm12, %v9497_v27, %v4936_v20  ;;  %v4942_v54 = vmul.f32 %v9539_v57, %v9501_v5  ;;  %v5507_v9 = vsub.f32 0.0, %v5195_v13  ;;  %v9568_v6 = vld [vmem:[%s9995_s7 + $0x1] ss:$0 sm:$0xff] }
 0x72a   :  { %v5432_v46 = vmul.f32 %v9490_v28, %v5408_v15  ;;  %v5719_v10 = vadd.f32 1.0, %v5695_v62  ;;  %v5361_v58 = vadd.f32 1.4214138, %v5337_v23  ;;  %v5338_v47 = vmul.f32 %v9532_v32, %v5314_v2 }
 0x72b   :  { %6322 = vrcp.f32 %v5243_v1  ;;  %v5072_v18 = vmul.f32 %v4940_v52, %v9248_v42  ;;  %v9561_v27 = vmul.f32 0.5, %v9458_v41  ;;  %v4787_v17 = vmul.f32 %v4745_v11, %v9122_v61 }
 0x72c   :  { %v5456_v60 = vadd.f32 0.2548296, %v5432_v46  ;;  %v5743_v43 = vmul.f32 %v5719_v10, %v9478_v55  ;;  %v5385_v0 = vmul.f32 %v9518_v3, %v5361_v58  ;;  %v5362_v34 = vadd.f32 1.4214138, %v5338_v47  ;;  %v9563_v55 = vpop.eup %6318 }
 0x72d   :  { %6324 = vpow2.f32 %v5563_v50  ;;  %v5098_v42 = vmul.f32 %v9568_v6, %v5072_v18  ;;  %v4952_v24 = vmul.f32 %v9563_v55, %v9535_v63  ;;  %v6321_v49 = vpop.eup %6320  ;;  %v5531_v19 = vmul.f32 %v5507_v9, %v5195_v13 }
 0x72e   :  { %v5480_v56 = vmul.f32 %v9490_v28, %v5456_v60  ;;  %v4943_v28 = vmul.f32 %v9539_v57, %v4942_v54  ;;  %5767 = vst.msk [vmem:[#allocation2 + $0x30] sm:$0xff] %vm82_vm0, %v5743_v43  ;;  %v5409_v33 = vadd.f32 -0.28449672, %v5385_v0  ;;  %v5386_v41 = vmul.f32 %v9532_v32, %v5362_v34  ;;  %v4748_v43 = vpop.xlane.xlu2 %4747 }
 0x72f   :  { %vm4948_vm14 = vweird.f32 %v9539_v57  ;;  %v4953_v60 = vmul.f32 %v9563_v55, %v4952_v24  ;;  %vm5649_vm15 = vcmp.ge.f32.partialorder %v9468_v16, 0.0  ;;  %v9596_v58 = vadd.f32 1e-05, %v4787_v17 }
 0x730   :  { %v5600_v38 = vmul.f32 %v6315_v45, %v5480_v56  ;;  %v4944_v15 = vmul.f32 0.5, %v4943_v28  ;;  %v5433_v59 = vmul.f32 %v9518_v3, %v5409_v33  ;;  %v9580_v45 = vld [vmem:[%s9995_s7 + $0x2] ss:$0 sm:$0xff]  ;;  %v5410_v62 = vadd.f32 -0.28449672, %v5386_v41  ;;  %vm4949_vm1 = vmor %vm4947_vm13, %vm4948_vm14  ;;  %s6432_s7 = smov [#allocation2]  }
 0x731   :  { %v9583_v23 = vadd.f32 %v9580_v45, %v5098_v42  ;;  %v9585_v50 = vpop.eup %6322  ;;  %v4954_v47 = vmul.f32 0.5, %v4953_v60  ;;  %vm4958_vm2 = vweird.f32 %v9563_v55  ;;  %v4788_v34 = vmul.f32 %v4748_v43, %v9122_v61  ;;  %s5789_s25 = sshll.u32 %s6432_s7, 4  ;;  %s5790_s25 = int_to_ptr.vmem [resolvable:$true] %s5789_s25 }
 0x732   :  { %v5624_v53 = vsub.f32 1.0, %v5600_v38  ;;  %v4945_v30 = vsub.f32 1.5, %v4944_v15  ;;  %v5457_v31 = vadd.f32 0.2548296, %v5433_v59  ;;  %v5291_v20 = vmul.f32 1.0614054, %v9585_v50 }
 0x733   :  { %v9594_v10 = vmul.f32 0.70710677, %v9583_v23  ;;  %v6325_v2 = vpop.eup %6324  ;;  %v5434_v52 = vmul.f32 %v9532_v32, %v5410_v62  ;;  %v4955_v42 = vsub.f32 1.5, %v4954_v47  ;;  %6326 = vrsqrt.f32 %v9596_v58 }
 0x734   :  { %v5672_v46 = vsub.f32 0.0, %v5624_v53  ;;  %v5481_v56 = vmul.f32 %v9518_v3, %v5457_v31  ;;  %v4946_v54 = vmul.f32 %v9539_v57, %v4945_v30  ;;  %v5315_v35 = vadd.f32 -1.4531521, %v5291_v20 }
 0x735   :  { %v5196_v0 = vand.u32 2147483647, %v9594_v10  ;;  %v5458_v3 = vadd.f32 0.2548296, %v5434_v52  ;;  %v5565_v15 = vmul.f32 1.442695, %v5531_v19  ;;  %v4956_v24 = vmul.f32 %v9563_v55, %v4955_v42 }
 0x736   :  { %v5696_v13 = vsel %vm5648_vm11, %v5624_v53, %v5672_v46  ;;  %v5601_v38 = vmul.f32 %v6321_v49, %v5481_v56  ;;  %v4950_v9 = vsel %vm4949_vm1, %v9539_v57, %v4946_v54  ;;  %v5339_v18 = vmul.f32 %v9585_v50, %v5315_v35 }
 0x737   :  { %v5720_v1 = vadd.f32 1.0, %v5696_v13  ;;  %v5220_v28 = vmul.f32 0.3275911, %v5196_v0  ;;  %v5073_v33 = vmul.f32 %v4950_v9, %v9255_v37  ;;  %v5482_v53 = vmul.f32 %v9532_v32, %v5458_v3 }
 0x738   :  { %v5625_v5 = vsub.f32 1.0, %v5601_v38  ;;  %vm4957_vm3 = vweird.f32 %v9535_v63  ;;  %v5508_v49 = vsub.f32 0.0, %v5196_v0  ;;  %v9627_v31 = vadd.f32 1e-05, %v4788_v34 }
 0x739   :  { %v5744_v11 = vmul.f32 %v5720_v1, %v9508_v40  ;;  %v5363_v40 = vadd.f32 1.4214138, %v5339_v18  ;;  %v5244_v17 = vadd.f32 1.0, %v5220_v28  ;;  %v5099_v57 = vmul.f32 %v9568_v6, %v5073_v33  ;;  %vm4959_vm4 = vmor %vm4957_vm3, %vm4958_vm2  ;;  %v6327_v60 = vpop.eup %6326 }
 0x73a   :  { %v5673_v59 = vsub.f32 0.0, %v5625_v5  ;;  %v5602_v41 = vmul.f32 %v6325_v2, %v5482_v53  ;;  %v4960_v30 = vsel %vm4959_vm4, %v9563_v55, %v4956_v24  ;;  %vm5650_vm5 = vcmp.ge.f32.partialorder %v9484_v22, 0.0 }
 0x73b   :  { %5768 = vst.msk [vmem:[#allocation2 + $0x38] sm:$0xff] %vm82_vm0, %v5744_v11  ;;  %v5387_v37 = vmul.f32 %v9585_v50, %v5363_v40  ;;  %6328 = vrcp.f32 %v5244_v17  ;;  %v9620_v32 = vadd.f32 %v9580_v45, %v5099_v57  ;;  %v5074_v2 = vmul.f32 %v4960_v30, %v9262_v4 }
 0x73c   :  { %v5697_v46 = vsel %vm5649_vm15, %v5625_v5, %v5673_v59  ;;  %v5626_v19 = vsub.f32 1.0, %v5602_v41  ;;  %6330 = vpow2.f32 %v5565_v15  ;;  %v5532_v1 = vmul.f32 %v5508_v49, %v5196_v0 }
 0x73d   :  { %v5721_v62 = vadd.f32 1.0, %v5697_v46  ;;  %v5411_v63 = vadd.f32 -0.28449672, %v5387_v37  ;;  %v9631_v20 = vmul.f32 0.70710677, %v9620_v32  ;;  %6332 = vrsqrt.f32 %v9627_v31 }
 0x73e   :  { %v5674_v13 = vsub.f32 0.0, %v5626_v19  ;;  %v4962_v56 = vmul.f32 %v6327_v60, %v9596_v58  ;;  %v5100_v54 = vmul.f32 %v9568_v6, %v5074_v2  ;;  %v5146_v4 = vmul.f32 0.5, %v9471_v51 }
 0x73f   :  { %v5745_v16 = vmul.f32 %v5721_v62, %v9561_v27  ;;  %v5435_v55 = vmul.f32 %v9585_v50, %v5411_v63  ;;  %v5197_v22 = vand.u32 2147483647, %v9631_v20  ;;  %v4751_v27 = vpop.xlane.xlu0 %4750  ;;  %v5147_v38 = vmul.f32 0.5, %v9515_v21 }
 0x740   :  { %v5698_v52 = vsel %vm5650_vm5, %v5626_v19, %v5674_v13  ;;  %v4963_v11 = vmul.f32 %v6327_v60, %v4962_v56  ;;  %v9647_v9 = vadd.f32 %v9580_v45, %v5100_v54  ;;  %v5567_v34 = vmul.f32 1.442695, %v5532_v1 }
 0x741   :  { %v9640_v43 = vpop.eup %6328  ;;  %5769 = vst.msk [vmem:[#allocation2 + $0x40] sm:$0xff] %vm82_vm0, %v5745_v16  ;;  %v5722_v35 = vadd.f32 1.0, %v5698_v52  ;;  %v5459_v47 = vadd.f32 0.2548296, %v5435_v55  ;;  %v5221_v3 = vmul.f32 0.3275911, %v5197_v22  ;;  %vm4968_vm6 = vweird.f32 %v6327_v60  ;;  %v4754_v16 = vpop.xlane.xlu1 %4753 }
 0x742   :  { %v5292_v0 = vmul.f32 1.0614054, %v9640_v43  ;;  %v6331_v18 = vpop.eup %6330  ;;  %v4964_v5 = vmul.f32 0.5, %v4963_v11  ;;  %v4789_v40 = vmul.f32 %v4751_v27, %v9122_v61  ;;  %v9653_v15 = vmul.f32 0.70710677, %v9647_v9 }
 0x743   :  { %v5746_v28 = vmul.f32 %v5722_v35, %v5146_v4  ;;  %v5483_v33 = vmul.f32 %v9585_v50, %v5459_v47  ;;  %v6333_v53 = vpop.eup %6332  ;;  %v5245_v42 = vadd.f32 1.0, %v5221_v3  ;;  %vm5651_vm7 = vcmp.ge.f32.partialorder %v9525_v25, 0.0 }
 0x744   :  { %v5316_v51 = vadd.f32 -1.4531521, %v5292_v0  ;;  %v4965_v17 = vsub.f32 1.5, %v4964_v5  ;;  %v4972_v57 = vmul.f32 %v6333_v53, %v9627_v31  ;;  %vm4967_vm8 = vweird.f32 %v9596_v58 }
 0x745   :  { %5770 = vst.msk [vmem:[#allocation2 + $0x48] sm:$0xff] %vm82_vm0, %v5746_v28  ;;  %v5603_v21 = vmul.f32 %v6331_v18, %v5483_v33  ;;  %6334 = vrcp.f32 %v5245_v42  ;;  %v5509_v41 = vsub.f32 0.0, %v5197_v22  ;;  %v5198_v24 = vand.u32 2147483647, %v9653_v15  ;;  %vm4969_vm9 = vmor %vm4967_vm8, %vm4968_vm6 }
 0x746   :  { %v5340_v50 = vmul.f32 %v9640_v43, %v5316_v51  ;;  %v4966_v37 = vmul.f32 %v6327_v60, %v4965_v17  ;;  %6336 = vpow2.f32 %v5567_v34  ;;  %v4973_v46 = vmul.f32 %v6333_v53, %v4972_v57 }
 0x747   :  { %v5627_v59 = vsub.f32 1.0, %v5603_v21  ;;  %v9661_v19 = vadd.f32 1e-05, %v4789_v40  ;;  %v5222_v62 = vmul.f32 0.3275911, %v5198_v24  ;;  %vm4977_vm10 = vweird.f32 %v9627_v31 }
 0x748   :  { %v5364_v49 = vadd.f32 1.4214138, %v5340_v50  ;;  %v4970_v63 = vsel %vm4969_vm9, %v6327_v60, %v4966_v37  ;;  %v4974_v2 = vmul.f32 0.5, %v4973_v46  ;;  %v5533_v1 = vmul.f32 %v5509_v41, %v5197_v22 }
 0x749   :  { %v5675_v30 = vsub.f32 0.0, %v5627_v59  ;;  %v5075_v58 = vmul.f32 %v4970_v63, %v9269_v7  ;;  %6338 = vrsqrt.f32 %v9661_v19  ;;  %v5246_v56 = vadd.f32 1.0, %v5222_v62 }
 0x74a   :  { %v5388_v13 = vmul.f32 %v9640_v43, %v5364_v49  ;;  %vm4978_vm11 = vweird.f32 %v6333_v53  ;;  %v4975_v35 = vsub.f32 1.5, %v4974_v2  ;;  %v5510_v7 = vsub.f32 0.0, %v5198_v24 }
 0x74b   :  { %v5699_v55 = vsel %vm5651_vm7, %v5627_v59, %v5675_v30  ;;  %v9669_v52 = vpop.eup %6334  ;;  %v5101_v4 = vmul.f32 %v9568_v6, %v5075_v58  ;;  %6340 = vrcp.f32 %v5246_v56  ;;  %v4790_v11 = vmul.f32 %v4754_v16, %v9122_v61  ;;  %vm4979_vm12 = vmor %vm4977_vm10, %vm4978_vm11 }
 0x74c   :  { %v5723_v54 = vadd.f32 1.0, %v5699_v55  ;;  %v5412_v60 = vadd.f32 -0.28449672, %v5388_v13  ;;  %v5293_v47 = vmul.f32 1.0614054, %v9669_v52  ;;  %v6337_v27 = vpop.eup %6336  ;;  %v4976_v3 = vmul.f32 %v6333_v53, %v4975_v35 }
 0x74d   :  { %v9676_v22 = vadd.f32 %v9580_v45, %v5101_v4  ;;  %v5569_v28 = vmul.f32 1.442695, %v5533_v1  ;;  %v9681_v33 = vadd.f32 1e-05, %v4790_v11  ;;  %v5534_v40 = vmul.f32 %v5510_v7, %v5198_v24  ;;  %v4757_v24 = vpop.xlane.xlu2 %4756 }
 0x74e   :  { %v5747_v0 = vmul.f32 %v5723_v54, %v5147_v38  ;;  %v5436_v25 = vmul.f32 %v9640_v43, %v5412_v60  ;;  %v5317_v18 = vadd.f32 -1.4531521, %v5293_v47  ;;  %v4980_v51 = vsel %vm4979_vm12, %v6333_v53, %v4976_v3 }
 0x74f   :  { %v9683_v34 = vpop.eup %6338  ;;  %v9687_v38 = vmul.f32 0.70710677, %v9676_v22  ;;  %v5076_v21 = vmul.f32 %v4980_v51, %v9276_v12  ;;  %v5148_v17 = vmul.f32 0.5, %v9583_v23  ;;  %6342 = vrsqrt.f32 %v9681_v33 }
 0x750   :  { %5771 = vst.msk [vmem:[#allocation2 + $0x50] sm:$0xff] %vm82_vm0, %v5747_v0  ;;  %v5460_v5 = vadd.f32 0.2548296, %v5436_v25  ;;  %v5341_v42 = vmul.f32 %v9669_v52, %v5317_v18  ;;  %v4982_v31 = vmul.f32 %v9683_v34, %v9661_v19  ;;  %vm5652_vm13 = vcmp.ge.f32.partialorder %v9594_v10, 0.0 }
 0x751   :  { %v5199_v50 = vand.u32 2147483647, %v9687_v38  ;;  %v9697_v59 = vpop.eup %6340  ;;  %v5102_v41 = vmul.f32 %v9568_v6, %v5076_v21  ;;  %6344 = vpow2.f32 %v5569_v28  ;;  %v5571_v46 = vmul.f32 1.442695, %v5534_v40 }
 0x752   :  { %v5484_v57 = vmul.f32 %v9640_v43, %v5460_v5  ;;  %v5365_v53 = vadd.f32 1.4214138, %v5341_v42  ;;  %v4983_v12 = vmul.f32 %v9683_v34, %v4982_v31  ;;  %v5294_v23 = vmul.f32 1.0614054, %v9697_v59 }
 0x753   :  { %v5223_v49 = vmul.f32 0.3275911, %v5199_v50  ;;  %v9705_v30 = vadd.f32 %v9580_v45, %v5102_v41  ;;  %v4791_v2 = vmul.f32 %v4757_v24, %v9122_v61  ;;  %vm4987_vm14 = vweird.f32 %v9661_v19 }
 0x754   :  { %v5604_v37 = vmul.f32 %v6337_v27, %v5484_v57  ;;  %v5389_v43 = vmul.f32 %v9669_v52, %v5365_v53  ;;  %v4984_v62 = vmul.f32 0.5, %v4983_v12  ;;  %v5318_v13 = vadd.f32 -1.4531521, %v5294_v23 }
 0x755   :  { %v5247_v58 = vadd.f32 1.0, %v5223_v49  ;;  %v9709_v55 = vmul.f32 0.70710677, %v9705_v30  ;;  %v9712_v56 = vpop.eup %6342  ;;  %vm4988_vm15 = vweird.f32 %v9683_v34  ;;  %v5511_v35 = vsub.f32 0.0, %v5199_v50 }
 0x756   :  { %v5628_v63 = vsub.f32 1.0, %v5604_v37  ;;  %v5413_v16 = vadd.f32 -0.28449672, %v5389_v43  ;;  %v4985_v1 = vsub.f32 1.5, %v4984_v62  ;;  %v5342_v60 = vmul.f32 %v9697_v59, %v5318_v13  ;;  %vm4989_vm1 = vmor %vm4987_vm14, %vm4988_vm15  ;;  %v4760_v43 = vpop.xlane.xlu0 %4759 }
 0x757   :  { %6346 = vrcp.f32 %v5247_v58  ;;  %v5200_v47 = vand.u32 2147483647, %v9709_v55  ;;  %v6345_v11 = vpop.eup %6344  ;;  %v4992_v25 = vmul.f32 %v9712_v56, %v9681_v33  ;;  %v9723_v3 = vadd.f32 1e-05, %v4791_v2 }
 0x758   :  { %v5676_v54 = vsub.f32 0.0, %v5628_v63  ;;  %v5437_v4 = vmul.f32 %v9669_v52, %v5413_v16  ;;  %v4986_v7 = vmul.f32 %v9683_v34, %v4985_v1  ;;  %v5366_v0 = vadd.f32 1.4214138, %v5342_v60 }
 0x759   :  { %v5149_v28 = vmul.f32 0.5, %v9620_v32  ;;  %v5224_v51 = vmul.f32 0.3275911, %v5200_v47  ;;  %6348 = vpow2.f32 %v5571_v46  ;;  %v4993_v40 = vmul.f32 %v9712_v56, %v4992_v25 }
 0x75a   :  { %v5700_v27 = vsel %vm5652_vm13, %v5628_v63, %v5676_v54  ;;  %v5461_v5 = vadd.f32 0.2548296, %v5437_v4  ;;  %v5390_v42 = vmul.f32 %v9697_v59, %v5366_v0  ;;  %v4990_v10 = vsel %vm4989_vm1, %v9683_v34, %v4986_v7 }
 0x75b   :  { %v5724_v18 = vadd.f32 1.0, %v5700_v27  ;;  %v5535_v57 = vmul.f32 %v5511_v35, %v5199_v50  ;;  %v5248_v53 = vadd.f32 1.0, %v5224_v51  ;;  %v5077_v12 = vmul.f32 %v4990_v10, %v9297_v26 }
 0x75c   :  { %v5485_v31 = vmul.f32 %v9669_v52, %v5461_v5  ;;  %v5414_v32 = vadd.f32 -0.28449672, %v5390_v42  ;;  %v4994_v24 = vmul.f32 0.5, %v4993_v40  ;;  %6350 = vrsqrt.f32 %v9723_v3 }
 0x75d   :  { %v5748_v21 = vmul.f32 %v5724_v18, %v5148_v17  ;;  %v9732_v41 = vpop.eup %6346  ;;  %6352 = vrcp.f32 %v5248_v53  ;;  %v5512_v37 = vsub.f32 0.0, %v5200_v47  ;;  %v5103_v52 = vmul.f32 %v9568_v6, %v5077_v12 }
 0x75e   :  { %v5605_v19 = vmul.f32 %v6345_v11, %v5485_v31  ;;  %v5295_v34 = vmul.f32 1.0614054, %v9732_v41  ;;  %v5438_v17 = vmul.f32 %v9697_v59, %v5414_v32  ;;  %v4995_v50 = vsub.f32 1.5, %v4994_v24 }
 0x75f   :  { %5772 = vst.msk [vmem:[#allocation2 + $0x58] sm:$0xff] %vm82_vm0, %v5748_v21  ;;  %vm4998_vm2 = vweird.f32 %v9712_v56  ;;  %vm5653_vm3 = vcmp.ge.f32.partialorder %v9631_v20, 0.0  ;;  %v9743_v26 = vmul.f32 0.5, %v9647_v9  ;;  %v6349_v46 = vpop.eup %6348  ;;  %v9746_v63 = vadd.f32 %v9580_v45, %v5103_v52 }
 0x760   :  { %v5629_v23 = vsub.f32 1.0, %v5605_v19  ;;  %v5319_v49 = vadd.f32 -1.4531521, %v5295_v34  ;;  %v5462_v62 = vadd.f32 0.2548296, %v5438_v17  ;;  %v4996_v13 = vmul.f32 %v9712_v56, %v4995_v50  ;;  %v4763_v19 = vpop.xlane.xlu1 %4762 }
 0x761   :  { %vm4997_vm4 = vweird.f32 %v9681_v33  ;;  %vm5654_vm5 = vcmp.ge.f32.partialorder %v9653_v15, 0.0  ;;  %v5573_v16 = vmul.f32 1.442695, %v5535_v57  ;;  %v5536_v1 = vmul.f32 %v5512_v37, %v5200_v47 }
 0x762   :  { %v5677_v58 = vsub.f32 0.0, %v5629_v23  ;;  %v5343_v2 = vmul.f32 %v9732_v41, %v5319_v49  ;;  %vm4999_vm6 = vmor %vm4997_vm4, %vm4998_vm2  ;;  %v6351_v9 = vpop.eup %6350  ;;  %v5486_v54 = vmul.f32 %v9697_v59, %v5462_v62  ;;  %v9756_v60 = vmul.f32 0.70710677, %v9746_v63 }
 0x763   :  { %v5000_v4 = vsel %vm4999_vm6, %v9712_v56, %v4996_v13  ;;  %v4792_v33 = vmul.f32 %v4760_v43, %v9122_v61  ;;  %v9760_v35 = vpop.eup %6352  ;;  %v5002_v27 = vmul.f32 %v6351_v9, %v9723_v3  ;;  %6354 = vpow2.f32 %v5573_v16 }
 0x764   :  { %v5701_v7 = vsel %vm5653_vm3, %v5629_v23, %v5677_v58  ;;  %v5367_v11 = vadd.f32 1.4214138, %v5343_v2  ;;  %v5078_v47 = vmul.f32 %v5000_v4, %v9309_v14  ;;  %v5606_v25 = vmul.f32 %v6349_v46, %v5486_v54  ;;  %v4766_v23 = vpop.xlane.xlu2 %4765 }
 0x765   :  { %v5725_v0 = vadd.f32 1.0, %v5701_v7  ;;  %v5296_v59 = vmul.f32 1.0614054, %v9760_v35  ;;  %v5201_v18 = vand.u32 2147483647, %v9756_v60  ;;  %v5003_v51 = vmul.f32 %v6351_v9, %v5002_v27 }
 0x766   :  { %v5391_v56 = vmul.f32 %v9732_v41, %v5367_v11  ;;  %v5104_v5 = vmul.f32 %v9568_v6, %v5078_v47  ;;  %v5630_v20 = vsub.f32 1.0, %v5606_v25  ;;  %v5575_v14 = vmul.f32 1.442695, %v5536_v1 }
 0x767   :  { %v5749_v42 = vmul.f32 %v5725_v0, %v5149_v28  ;;  %v5320_v10 = vadd.f32 -1.4531521, %v5296_v59  ;;  %v5225_v40 = vmul.f32 0.3275911, %v5201_v18  ;;  %v5004_v57 = vmul.f32 0.5, %v5003_v51 }
 0x768   :  { %v5415_v21 = vadd.f32 -0.28449672, %v5391_v56  ;;  %v9771_v31 = vadd.f32 %v9580_v45, %v5104_v5  ;;  %v5678_v53 = vsub.f32 0.0, %v5630_v20  ;;  %v9775_v24 = vadd.f32 1e-05, %v4792_v33 }
 0x769   :  { %5773 = vst.msk [vmem:[#allocation2 + $0x60] sm:$0xff] %vm82_vm0, %v5749_v42  ;;  %v5344_v32 = vmul.f32 %v9760_v35, %v5320_v10  ;;  %v5249_v12 = vadd.f32 1.0, %v5225_v40  ;;  %v5513_v34 = vsub.f32 0.0, %v5201_v18  ;;  %vm5008_vm7 = vweird.f32 %v6351_v9  ;;  %v6355_v49 = vpop.eup %6354 }
 0x76a   :  { %v5439_v28 = vmul.f32 %v9732_v41, %v5415_v21  ;;  %v9779_v37 = vmul.f32 0.70710677, %v9771_v31  ;;  %v5702_v17 = vsel %vm5654_vm5, %v5630_v20, %v5678_v53  ;;  %v5005_v50 = vsub.f32 1.5, %v5004_v57 }
 0x76b   :  { %v5368_v52 = vadd.f32 1.4214138, %v5344_v32  ;;  %6356 = vrcp.f32 %v5249_v12  ;;  %v5726_v43 = vadd.f32 1.0, %v5702_v17  ;;  %vm5007_vm8 = vweird.f32 %v9723_v3 }
 0x76c   :  { %v5463_v46 = vadd.f32 0.2548296, %v5439_v28  ;;  %v4793_v62 = vmul.f32 %v4763_v19, %v9122_v61  ;;  %v5202_v58 = vand.u32 2147483647, %v9779_v37  ;;  %v5006_v2 = vmul.f32 %v6351_v9, %v5005_v50  ;;  %vm5009_vm9 = vmor %vm5007_vm8, %vm5008_vm7 }
 0x76d   :  { %v5392_v13 = vmul.f32 %v9760_v35, %v5368_v52  ;;  %6358 = vrsqrt.f32 %v9775_v24  ;;  %v5750_v15 = vmul.f32 %v5726_v43, %v9743_v26  ;;  %v4794_v1 = vmul.f32 %v4766_v23, %v9122_v61 }
 0x76e   :  { %v5487_v16 = vmul.f32 %v9732_v41, %v5463_v46  ;;  %v5537_v4 = vmul.f32 %v5513_v34, %v5201_v18  ;;  %v5226_v3 = vmul.f32 0.3275911, %v5202_v58  ;;  %v5010_v33 = vsel %vm5009_vm9, %v6351_v9, %v5006_v2 }
 0x76f   :  { %v5416_v54 = vadd.f32 -0.28449672, %v5392_v13  ;;  %5774 = vst.msk [vmem:[#allocation2 + $0x68] sm:$0xff] %vm82_vm0, %v5750_v15  ;;  %6360 = vpow2.f32 %v5575_v14  ;;  %v5079_v11 = vmul.f32 %v5010_v33, %v9321_v44  ;;  %v9794_v47 = vadd.f32 1e-05, %v4793_v62  ;;  %v4769_v14 = vpop.xlane.xlu0 %4768 }
 0x770   :  { %v5607_v7 = vmul.f32 %v6355_v49, %v5487_v16  ;;  %v5151_v41 = vmul.f32 0.5, %v9676_v22  ;;  %v5250_v0 = vadd.f32 1.0, %v5226_v3  ;;  %v5514_v25 = vsub.f32 0.0, %v5202_v58 }
 0x771   :  { %v9796_v27 = vpop.eup %6356  ;;  %v5440_v26 = vmul.f32 %v9760_v35, %v5416_v54  ;;  %v5105_v9 = vmul.f32 %v9568_v6, %v5079_v11  ;;  %6362 = vrsqrt.f32 %v9794_v47  ;;  %v5577_v5 = vmul.f32 1.442695, %v5537_v4 }
 0x772   :  { %v5631_v59 = vsub.f32 1.0, %v5607_v7  ;;  %v5297_v18 = vmul.f32 1.0614054, %v9796_v27  ;;  %6364 = vrcp.f32 %v5250_v0  ;;  %v9805_v51 = vadd.f32 1e-05, %v4794_v1 }
 0x773   :  { %v9803_v56 = vpop.eup %6358  ;;  %v5464_v44 = vadd.f32 0.2548296, %v5440_v26  ;;  %v9808_v20 = vadd.f32 %v9580_v45, %v5105_v9  ;;  %vm5655_vm10 = vcmp.ge.f32.partialorder %v9687_v38, 0.0  ;;  %v5152_v40 = vmul.f32 0.5, %v9705_v30 }
 0x774   :  { %v5679_v42 = vsub.f32 0.0, %v5631_v59  ;;  %v5321_v22 = vadd.f32 -1.4531521, %v5297_v18  ;;  %v5012_v10 = vmul.f32 %v9803_v56, %v9775_v24  ;;  %vm5656_vm11 = vcmp.ge.f32.partialorder %v9709_v55, 0.0 }
 0x775   :  { %v5488_v21 = vmul.f32 %v9760_v35, %v5464_v44  ;;  %v6361_v57 = vpop.eup %6360  ;;  %v5538_v12 = vmul.f32 %v5514_v25, %v5202_v58  ;;  %v9818_v19 = vmul.f32 0.70710677, %v9808_v20  ;;  %6366 = vrsqrt.f32 %v9805_v51 }
 0x776   :  { %v5703_v53 = vsel %vm5655_vm10, %v5631_v59, %v5679_v42  ;;  %v5345_v32 = vmul.f32 %v9796_v27, %v5321_v22  ;;  %v5013_v17 = vmul.f32 %v9803_v56, %v5012_v10  ;;  %6368 = vpow2.f32 %v5577_v5 }
 0x777   :  { %v5727_v28 = vadd.f32 1.0, %v5703_v53  ;;  %v5608_v34 = vmul.f32 %v6361_v57, %v5488_v21  ;;  %v6363_v38 = vpop.eup %6362  ;;  %v9823_v35 = vand.u32 2147483647, %v9818_v19  ;;  %v4795_v52 = vmul.f32 %v4769_v14, %v9122_v61 }
 0x778   :  { %v5369_v30 = vadd.f32 1.4214138, %v5345_v32  ;;  %v9826_v50 = vpop.eup %6364  ;;  %v5014_v43 = vmul.f32 0.5, %v5013_v17  ;;  %v5022_v46 = vmul.f32 %v6363_v38, %v9794_v47  ;;  %v5579_v58 = vmul.f32 1.442695, %v5538_v12 }
 0x779   :  { %v5751_v23 = vmul.f32 %v5727_v28, %v5151_v41  ;;  %v5632_v49 = vsub.f32 1.0, %v5608_v34  ;;  %v5298_v13 = vmul.f32 1.0614054, %v9826_v50  ;;  %v5227_v2 = vmul.f32 0.3275911, %v9823_v35 }
 0x77a   :  { %v5393_v62 = vmul.f32 %v9796_v27, %v5369_v30  ;;  %v5015_v16 = vsub.f32 1.5, %v5014_v43  ;;  %vm5018_vm12 = vweird.f32 %v9803_v56  ;;  %v5023_v1 = vmul.f32 %v6363_v38, %v5022_v46 }
 0x77b   :  { %5775 = vst.msk [vmem:[#allocation2 + $0x70] sm:$0xff] %vm82_vm0, %v5751_v23  ;;  %v5680_v15 = vsub.f32 0.0, %v5632_v49  ;;  %v5322_v4 = vadd.f32 -1.4531521, %v5298_v13  ;;  %v5251_v3 = vadd.f32 1.0, %v5227_v2  ;;  %vm5017_vm13 = vweird.f32 %v9775_v24  ;;  %v9835_v33 = vpop.eup %6366  ;;  %v4772_v24 = vpop.xlane.xlu1 %4771 }
 0x77c   :  { %v5417_v54 = vadd.f32 -0.28449672, %v5393_v62  ;;  %v5016_v11 = vmul.f32 %v9803_v56, %v5015_v16  ;;  %v5024_v41 = vmul.f32 0.5, %v5023_v1  ;;  %v9840_v26 = vadd.f32 1e-05, %v4795_v52  ;;  %v6369_v0 = vpop.eup %6368  ;;  %vm5019_vm14 = vmor %vm5017_vm13, %vm5018_vm12 }
 0x77d   :  { %v5704_v7 = vsel %vm5656_vm11, %v5632_v49, %v5680_v15  ;;  %v5346_v18 = vmul.f32 %v9826_v50, %v5322_v4  ;;  %6370 = vrcp.f32 %v5251_v3  ;;  %vm5028_vm15 = vweird.f32 %v6363_v38 }
 0x77e   :  { %v5728_v25 = vadd.f32 1.0, %v5704_v7  ;;  %v5441_v59 = vmul.f32 %v9796_v27, %v5417_v54  ;;  %v5020_v9 = vsel %vm5019_vm14, %v9803_v56, %v5016_v11  ;;  %v5025_v55 = vsub.f32 1.5, %v5024_v41 }
 0x77f   :  { %v5032_v44 = vmul.f32 %v9835_v33, %v9805_v51  ;;  %v5370_v22 = vadd.f32 1.4214138, %v5346_v18  ;;  %v5080_v10 = vmul.f32 %v5020_v9, %v9333_v8  ;;  %vm5027_vm1 = vweird.f32 %v9794_v47 }
 0x780   :  { %v5752_v5 = vmul.f32 %v5728_v25, %v5152_v40  ;;  %v5465_v42 = vadd.f32 0.2548296, %v5441_v59  ;;  %v5026_v21 = vmul.f32 %v6363_v38, %v5025_v55  ;;  %v4796_v57 = vmul.f32 %v4772_v24, %v9122_v61  ;;  %vm5029_vm2 = vmor %vm5027_vm1, %vm5028_vm15 }
 0x781   :  { %v5033_v14 = vmul.f32 %v9835_v33, %v5032_v44  ;;  %v5394_v53 = vmul.f32 %v9826_v50, %v5370_v22  ;;  %v5106_v32 = vmul.f32 %v9568_v6, %v5080_v10  ;;  %6372 = vrsqrt.f32 %v9840_v26 }
 0x782   :  { %5776 = vst.msk [vmem:[#allocation2 + $0x78] sm:$0xff] %vm82_vm0, %v5752_v5  ;;  %v5489_v56 = vmul.f32 %v9796_v27, %v5465_v42  ;;  %6374 = vpow2.f32 %v5579_v58  ;;  %v5515_v8 = vsub.f32 0.0, %v9823_v35  ;;  %v5030_v40 = vsel %vm5029_vm2, %v6363_v38, %v5026_v21 }
 0x783   :  { %v5034_v47 = vmul.f32 0.5, %v5033_v14  ;;  %v9859_v12 = vpop.eup %6370  ;;  %v5418_v61 = vadd.f32 -0.28449672, %v5394_v53  ;;  %v9862_v34 = vadd.f32 %v9580_v45, %v5106_v32  ;;  %v5081_v27 = vmul.f32 %v5030_v40, %v9341_v29 }
 0x784   :  { %v5609_v28 = vmul.f32 %v6369_v0, %v5489_v56  ;;  %v5299_v17 = vmul.f32 1.0614054, %v9859_v12  ;;  %vm5038_vm3 = vweird.f32 %v9835_v33  ;;  %v9867_v52 = vadd.f32 1e-05, %v4796_v57 }
 0x785   :  { %v5035_v30 = vsub.f32 1.5, %v5034_v47  ;;  %vm5657_vm4 = vcmp.ge.f32.partialorder %v9756_v60, 0.0  ;;  %v5442_v38 = vmul.f32 %v9826_v50, %v5418_v61  ;;  %v9872_v49 = vmul.f32 0.70710677, %v9862_v34 }
 0x786   :  { %v5633_v23 = vsub.f32 1.0, %v5609_v28  ;;  %v5323_v43 = vadd.f32 -1.4531521, %v5299_v17  ;;  %v5107_v46 = vmul.f32 %v9568_v6, %v5081_v27  ;;  %vm5037_vm5 = vweird.f32 %v9805_v51 }
 0x787   :  { %v5036_v29 = vmul.f32 %v9835_v33, %v5035_v30  ;;  %v9877_v62 = vpop.eup %6372  ;;  %v5466_v58 = vadd.f32 0.2548296, %v5442_v38  ;;  %v5539_v2 = vmul.f32 %v5515_v8, %v9823_v35  ;;  %v5204_v15 = vand.u32 2147483647, %v9872_v49  ;;  %vm9883_vm6 = vmor %vm5037_vm5, %vm5038_vm3 }
 0x788   :  { %v5681_v13 = vsub.f32 0.0, %v5633_v23  ;;  %v6375_v1 = vpop.eup %6374  ;;  %v5347_v54 = vmul.f32 %v9859_v12, %v5323_v43  ;;  %v9889_v4 = vadd.f32 %v9580_v45, %v5107_v46  ;;  %6376 = vrsqrt.f32 %v9867_v52 }
 0x789   :  { %v5040_v51 = vsel %vm9883_vm6, %v9835_v33, %v5036_v29  ;;  %v5153_v35 = vmul.f32 0.5, %v9746_v63  ;;  %v5490_v7 = vmul.f32 %v9826_v50, %v5466_v58  ;;  %v5228_v11 = vmul.f32 0.3275911, %v5204_v15 }
 0x78a   :  { %v5705_v3 = vsel %vm5657_vm4, %v5633_v23, %v5681_v13  ;;  %v5371_v0 = vadd.f32 1.4214138, %v5347_v54  ;;  %v9900_v25 = vmul.f32 0.70710677, %v9889_v4  ;;  %v5042_v59 = vmul.f32 %v9877_v62, %v9840_v26 }
 0x78b   :  { %v5729_v41 = vadd.f32 1.0, %v5705_v3  ;;  %v5610_v18 = vmul.f32 %v6375_v1, %v5490_v7  ;;  %v5581_v33 = vmul.f32 1.442695, %v5539_v2  ;;  %v5252_v24 = vadd.f32 1.0, %v5228_v11 }
 0x78c   :  { %v5082_v9 = vmul.f32 %v5040_v51, %v9349_v39  ;;  %v5395_v60 = vmul.f32 %v9859_v12, %v5371_v0  ;;  %v5205_v55 = vand.u32 2147483647, %v9900_v25  ;;  %v5043_v10 = vmul.f32 %v9877_v62, %v5042_v59 }
 0x78d   :  { %v5753_v63 = vmul.f32 %v5729_v41, %v5153_v35  ;;  %v5634_v50 = vsub.f32 1.0, %v5610_v18  ;;  %6378 = vrcp.f32 %v5252_v24  ;;  %vm5658_vm7 = vcmp.ge.f32.partialorder %v9779_v37, 0.0 }
 0x78e   :  { %v5108_v44 = vmul.f32 %v9568_v6, %v5082_v9  ;;  %v9908_v5 = vpop.eup %6376  ;;  %v5419_v42 = vadd.f32 -0.28449672, %v5395_v60  ;;  %v5229_v22 = vmul.f32 0.3275911, %v5205_v55  ;;  %6380 = vpow2.f32 %v5581_v33 }
 0x78f   :  { %5777 = vst.msk [vmem:[#allocation2 + $0x80] sm:$0xff] %vm82_vm0, %v5753_v63  ;;  %v5682_v21 = vsub.f32 0.0, %v5634_v50  ;;  %v5044_v56 = vmul.f32 0.5, %v5043_v10  ;;  %v5154_v53 = vmul.f32 0.5, %v9771_v31  ;;  %v5052_v40 = vmul.f32 %v9908_v5, %v9867_v52 }
 0x790   :  { %v9913_v39 = vadd.f32 %v9580_v45, %v5108_v44  ;;  %v5443_v14 = vmul.f32 %v9859_v12, %v5419_v42  ;;  %v5253_v57 = vadd.f32 1.0, %v5229_v22  ;;  %v5516_v61 = vsub.f32 0.0, %v5204_v15 }
 0x791   :  { %v5706_v32 = vsel %vm5658_vm7, %v5634_v50, %v5682_v21  ;;  %v5045_v17 = vsub.f32 1.5, %v5044_v56  ;;  %vm5048_vm8 = vweird.f32 %v9877_v62  ;;  %v5053_v31 = vmul.f32 %v9908_v5, %v5052_v40 }
 0x792   :  { %v9919_v8 = vmul.f32 0.70710677, %v9913_v39  ;;  %v5730_v47 = vadd.f32 1.0, %v5706_v32  ;;  %v5467_v28 = vadd.f32 0.2548296, %v5443_v14  ;;  %6382 = vrcp.f32 %v5253_v57 }
 0x793   :  { %v9923_v27 = vpop.eup %6378  ;;  %v5046_v29 = vmul.f32 %v9877_v62, %v5045_v17  ;;  %vm5047_vm9 = vweird.f32 %v9840_v26  ;;  %v5054_v13 = vmul.f32 0.5, %v5053_v31  ;;  %v5540_v16 = vmul.f32 %v5516_v61, %v5204_v15 }
 0x794   :  { %v9926_v37 = vand.u32 2147483647, %v9919_v8  ;;  %v5754_v30 = vmul.f32 %v5730_v47, %v5154_v53  ;;  %v5491_v23 = vmul.f32 %v9859_v12, %v5467_v28  ;;  %v5300_v38 = vmul.f32 1.0614054, %v9923_v27  ;;  %v6381_v43 = vpop.eup %6380  ;;  %vm5049_vm10 = vmor %vm5047_vm9, %vm5048_vm8 }
 0x795   :  { %v5517_v1 = vsub.f32 0.0, %v5205_v55  ;;  %v5050_v54 = vsel %vm5049_vm10, %v9877_v62, %v5046_v29  ;;  %v5055_v51 = vsub.f32 1.5, %v5054_v13  ;;  %vm5058_vm11 = vweird.f32 %v9908_v5 }
 0x796   :  { %v5230_v46 = vmul.f32 0.3275911, %v9926_v37  ;;  %5778 = vst.msk [vmem:[#allocation2 + $0x88] sm:$0xff] %vm82_vm0, %v5754_v30  ;;  %v5611_v58 = vmul.f32 %v6381_v43, %v5491_v23  ;;  %v5324_v2 = vadd.f32 -1.4531521, %v5300_v38  ;;  %v5083_v7 = vmul.f32 %v5050_v54, %v9363_v48 }
 0x797   :  { %v5056_v15 = vmul.f32 %v9908_v5, %v5055_v51  ;;  %vm5057_vm12 = vweird.f32 %v9867_v52  ;;  %vm5659_vm13 = vcmp.ge.f32.partialorder %v9818_v19, 0.0  ;;  %v5583_v59 = vmul.f32 1.442695, %v5540_v16 }
 0x798   :  { %v5254_v12 = vadd.f32 1.0, %v5230_v46  ;;  %v6383_v35 = vpop.eup %6382  ;;  %v5635_v3 = vsub.f32 1.0, %v5611_v58  ;;  %v5348_v26 = vmul.f32 %v9923_v27, %v5324_v2  ;;  %v5109_v62 = vmul.f32 %v9568_v6, %v5083_v7  ;;  %vm5059_vm14 = vmor %vm5057_vm12, %vm5058_vm11 }
 0x799   :  { %v5301_v11 = vmul.f32 1.0614054, %v6383_v35  ;;  %v5541_v33 = vmul.f32 %v5517_v1, %v5205_v55  ;;  %v5060_v24 = vsel %vm5059_vm14, %v9908_v5, %v5056_v15  ;;  %v5155_v19 = vmul.f32 0.5, %v9808_v20 }
 0x79a   :  { %6384 = vrcp.f32 %v5254_v12  ;;  %v5683_v41 = vsub.f32 0.0, %v5635_v3  ;;  %v5372_v0 = vadd.f32 1.4214138, %v5348_v26  ;;  %v9949_v63 = vadd.f32 %v9580_v45, %v5109_v62 }
 0x79b   :  { %v5325_v18 = vadd.f32 -1.4531521, %v5301_v11  ;;  %v5084_v52 = vmul.f32 %v5060_v24, %v9375_v36  ;;  %v5518_v42 = vsub.f32 0.0, %v9926_v37  ;;  %6386 = vpow2.f32 %v5583_v59 }
 0x79c   :  { %v5707_v9 = vsel %vm5659_vm13, %v5635_v3, %v5683_v41  ;;  %v5396_v48 = vmul.f32 %v9923_v27, %v5372_v0  ;;  %v9955_v22 = vmul.f32 0.70710677, %v9949_v63  ;;  %v5585_v57 = vmul.f32 1.442695, %v5541_v33 }
 0x79d   :  { %v5731_v60 = vadd.f32 1.0, %v5707_v9  ;;  %v5349_v50 = vmul.f32 %v6383_v35, %v5325_v18  ;;  %v5110_v55 = vmul.f32 %v9568_v6, %v5084_v52  ;;  %v5542_v6 = vmul.f32 %v5518_v42, %v9926_v37 }
 0x79e   :  { %v5420_v44 = vadd.f32 -0.28449672, %v5396_v48  ;;  %v5207_v20 = vand.u32 2147483647, %v9955_v22  ;;  %6388 = vpow2.f32 %v5585_v57  ;;  %vm5660_vm15 = vcmp.ge.f32.partialorder %v9872_v49, 0.0 }
 0x79f   :  { %v5755_v10 = vmul.f32 %v5731_v60, %v5155_v19  ;;  %v5373_v21 = vadd.f32 1.4214138, %v5349_v50  ;;  %v9962_v53 = vadd.f32 %v9580_v45, %v5110_v55  ;;  %v5587_v29 = vmul.f32 1.442695, %v5542_v6 }
 0x7a0   :  { %v6385_v5 = vpop.eup %6384  ;;  %v5444_v14 = vmul.f32 %v9923_v27, %v5420_v44  ;;  %v5231_v47 = vmul.f32 0.3275911, %v5207_v20  ;;  %v5519_v11 = vsub.f32 0.0, %v5207_v20  ;;  %v5156_v15 = vmul.f32 0.5, %v9862_v34 }
 0x7a1   :  { %v5302_v36 = vmul.f32 1.0614054, %v6385_v5  ;;  %5779 = vst.msk [vmem:[#allocation2 + $0x90] sm:$0xff] %vm82_vm0, %v5755_v10  ;;  %v5397_v56 = vmul.f32 %v6383_v35, %v5373_v21  ;;  %v9966_v61 = vmul.f32 0.70710677, %v9962_v53  ;;  %v6387_v23 = vpop.eup %6386  ;;  %vm5661_vm1 = vcmp.ge.f32.partialorder %v9900_v25, 0.0 }
 0x7a2   :  { %v5468_v32 = vadd.f32 0.2548296, %v5444_v14  ;;  %v5255_v30 = vadd.f32 1.0, %v5231_v47  ;;  %v5543_v49 = vmul.f32 %v5519_v11, %v5207_v20  ;;  %v5157_v34 = vmul.f32 0.5, %v9889_v4 }
 0x7a3   :  { %v5326_v40 = vadd.f32 -1.4531521, %v5302_v36  ;;  %v5421_v28 = vadd.f32 -0.28449672, %v5397_v56  ;;  %v5208_v43 = vand.u32 2147483647, %v9966_v61 }
 0x7a4   :  { %v5492_v17 = vmul.f32 %v9923_v27, %v5468_v32  ;;  %6390 = vrcp.f32 %v5255_v30  ;;  %v6389_v12 = vpop.eup %6388  ;;  %v5589_v14 = vmul.f32 1.442695, %v5543_v49  ;;  %vm5662_vm2 = vcmp.ge.f32.partialorder %v9919_v8, 0.0 }
 0x7a5   :  { %v5350_v31 = vmul.f32 %v6385_v5, %v5326_v40  ;;  %v5445_v38 = vmul.f32 %v6383_v35, %v5421_v28  ;;  %v5232_v37 = vmul.f32 0.3275911, %v5208_v43  ;;  %6392 = vpow2.f32 %v5587_v29 }
 0x7a6   :  { %v5612_v45 = vmul.f32 %v6387_v23, %v5492_v17  ;;  %v5520_v60 = vsub.f32 0.0, %v5208_v43  ;;  %v5158_v40 = vmul.f32 0.5, %v9913_v39  ;;  %vm5663_vm3 = vcmp.ge.f32.partialorder %v9955_v22, 0.0 }
 0x7a7   :  { %v5374_v46 = vadd.f32 1.4214138, %v5350_v31  ;;  %v5469_v13 = vadd.f32 0.2548296, %v5445_v38  ;;  %v5256_v1 = vadd.f32 1.0, %v5232_v37  ;;  %vm5664_vm4 = vcmp.ge.f32.partialorder %v9966_v61, 0.0 }
 0x7a8   :  { %v5636_v58 = vsub.f32 1.0, %v5612_v45  ;;  %v5544_v25 = vmul.f32 %v5520_v60, %v5208_v43  ;;  %v5160_v22 = vmul.f32 0.5, %v9962_v53 }
 0x7a9   :  { %v5398_v2 = vmul.f32 %v6385_v5, %v5374_v46  ;;  %v5493_v16 = vmul.f32 %v6383_v35, %v5469_v13  ;;  %6394 = vrcp.f32 %v5256_v1 }
 0x7aa   :  { %v5684_v54 = vsub.f32 0.0, %v5636_v58  ;;  %v6391_v3 = vpop.eup %6390  ;;  %6396 = vpow2.f32 %v5589_v14  ;;  %v5591_v28 = vmul.f32 1.442695, %v5544_v25 }
 0x7ab   :  { %v5422_v27 = vadd.f32 -0.28449672, %v5398_v2  ;;  %v5613_v51 = vmul.f32 %v6389_v12, %v5493_v16  ;;  %v5303_v62 = vmul.f32 1.0614054, %v6391_v3  ;;  %v6393_v24 = vpop.eup %6392  ;;  %v5159_v16 = vmul.f32 0.5, %v9949_v63 }
 0x7ac   :  { %v5708_v26 = vsel %vm5660_vm15, %v5636_v58, %v5684_v54  ;;  %6398 = vpow2.f32 %v5591_v28 }
 0x7ad   :  { %v5446_v7 = vmul.f32 %v6385_v5, %v5422_v27  ;;  %v5732_v41 = vadd.f32 1.0, %v5708_v26  ;;  %v5637_v0 = vsub.f32 1.0, %v5613_v51  ;;  %v5327_v33 = vadd.f32 -1.4531521, %v5303_v62 }
 0x7af   :  { %v5470_v59 = vadd.f32 0.2548296, %v5446_v7  ;;  %v5756_v35 = vmul.f32 %v5732_v41, %v5156_v15  ;;  %v5685_v18 = vsub.f32 0.0, %v5637_v0  ;;  %v6395_v48 = vpop.eup %6394  ;;  %v5351_v19 = vmul.f32 %v6391_v3, %v5327_v33 }
 0x7b0   :  { %v5304_v42 = vmul.f32 1.0614054, %v6395_v48  ;;  %v6397_v43 = vpop.eup %6396 }
 0x7b1   :  { %v5494_v9 = vmul.f32 %v6385_v5, %v5470_v59  ;;  %5780 = vst.msk [vmem:[#allocation2 + $0x98] sm:$0xff] %vm82_vm0, %v5756_v35  ;;  %v5709_v52 = vsel %vm5661_vm1, %v5637_v0, %v5685_v18  ;;  %v5375_v55 = vadd.f32 1.4214138, %v5351_v19 }
 0x7b2   :  { %v5733_v50 = vadd.f32 1.0, %v5709_v52  ;;  %v5328_v57 = vadd.f32 -1.4531521, %v5304_v42  ;;  %v6399_v37 = vpop.eup %6398 }
 0x7b3   :  { %v5614_v44 = vmul.f32 %v6393_v24, %v5494_v9  ;;  %v5399_v36 = vmul.f32 %v6391_v3, %v5375_v55 }
 0x7b4   :  { %v5757_v10 = vmul.f32 %v5733_v50, %v5157_v34  ;;  %v5352_v20 = vmul.f32 %v6395_v48, %v5328_v57 }
 0x7b5   :  { %v5638_v21 = vsub.f32 1.0, %v5614_v44  ;;  %v5423_v56 = vadd.f32 -0.28449672, %v5399_v36 }
 0x7b6   :  { %5781 = vst.msk [vmem:[#allocation2 + $0xa0] sm:$0xff] %vm82_vm0, %v5757_v10  ;;  %v5376_v4 = vadd.f32 1.4214138, %v5352_v20 }
 0x7b7   :  { %v5686_v5 = vsub.f32 0.0, %v5638_v21  ;;  %v5447_v47 = vmul.f32 %v6391_v3, %v5423_v56 }
 0x7b8   :  { %v5400_v17 = vmul.f32 %v6395_v48, %v5376_v4 }
 0x7b9   :  { %v5710_v32 = vsel %vm5662_vm2, %v5638_v21, %v5686_v5  ;;  %v5471_v30 = vadd.f32 0.2548296, %v5447_v47 }
 0x7ba   :  { %v5734_v6 = vadd.f32 1.0, %v5710_v32  ;;  %v5424_v23 = vadd.f32 -0.28449672, %v5400_v17 }
 0x7bb   :  { %v5495_v38 = vmul.f32 %v6391_v3, %v5471_v30 }
 0x7bc   :  { %v5758_v31 = vmul.f32 %v5734_v6, %v5158_v40  ;;  %v5448_v45 = vmul.f32 %v6395_v48, %v5424_v23 }
 0x7bd   :  { %v5615_v8 = vmul.f32 %v6397_v43, %v5495_v38 }
 0x7be   :  { %5782 = vst.msk [vmem:[#allocation2 + $0xa8] sm:$0xff] %vm82_vm0, %v5758_v31  ;;  %v5472_v46 = vadd.f32 0.2548296, %v5448_v45 }
 0x7bf   :  { %v5639_v29 = vsub.f32 1.0, %v5615_v8 }
 0x7c0   :  { %v5496_v13 = vmul.f32 %v6395_v48, %v5472_v46 }
 0x7c1   :  { %v5687_v58 = vsub.f32 0.0, %v5639_v29 }
 0x7c2   :  { %v5616_v39 = vmul.f32 %v6399_v37, %v5496_v13 }
 0x7c3   :  { %v5711_v2 = vsel %vm5663_vm3, %v5639_v29, %v5687_v58 }
 0x7c4   :  { %v5735_v1 = vadd.f32 1.0, %v5711_v2  ;;  %v5640_v12 = vsub.f32 1.0, %v5616_v39 }
 0x7c6   :  { %v5759_v54 = vmul.f32 %v5735_v1, %v5159_v16  ;;  %v5688_v27 = vsub.f32 0.0, %v5640_v12 }
 0x7c8   :  { %5783 = vst.msk [vmem:[#allocation2 + $0xb0] sm:$0xff] %vm82_vm0, %v5759_v54  ;;  %v5712_v51 = vsel %vm5664_vm4, %v5640_v12, %v5688_v27 }
 0x7c9   :  { %v5736_v3 = vadd.f32 1.0, %v5712_v51 }
 0x7cb   :  { %v5760_v63 = vmul.f32 %v5736_v3, %v5160_v22 }
 0x7cd   :  { %5784 = vst.msk [vmem:[#allocation2 + $0xb8] sm:$0xff] %vm82_vm0, %v5760_v63 }
 0x7ce   :  { %5797 = dma.vmem_to_hbm [thread:$0]  %s5790_s25, 3072, %s5792_s28, [#allocation3], %s6433_s29, %s6433_s29, %s6434_s30  }
 0x7cf   :  { %6426 = dma.done.wait [#allocation3], 3072  }
 0x7d0   :  { %6427 = vsyncadd [#allocation3], 4294964224 }
 0x7d1   :  { %5802 = vsyncpa [#allocation3], 1 }

</bundles_post_ra>
